<compile_context>
chip_gen: v6e
topology: v6e:2x2x1
jax: 0.10.0
libtpu: 0.0.40
codegen_flags: <defaults>
</compile_context>

<pallas_src>
import functools

import jax
import jax.numpy as jnp
from jax.experimental import pallas as pl
from jax.experimental.pallas import tpu as pltpu

EPS = 1e-5  # BatchNorm2d default eps

_VMEM = pl.BlockSpec(memory_space=pltpu.MemorySpace.VMEM)


# ---------------------------------------------------------------------------
# Conv kernel: one output row (or one pooled 2-row group) per (batch, row)
# grid point, accumulating over the kh row taps via the last grid axis.
# ---------------------------------------------------------------------------
def _conv_rows_kernel(*refs, kw, w_out, col_off, pool, affine,
                      row_lo, row_hi, col_lo, col_hi):
    # refs layout: inputs  : xa[, xb], w, b[, scale, shift]
    #              outputs : o
    #              scratch : acc0[, acc1]
    k = 0
    xa_ref = refs[k]; k += 1
    xb_ref = None
    if pool:
        xb_ref = refs[k]; k += 1
    w_ref = refs[k]; k += 1
    b_ref = refs[k]; k += 1
    s_ref = t_ref = None
    if affine:
        s_ref = refs[k]; t_ref = refs[k + 1]; k += 2
    o_ref = refs[k]; k += 1
    acc0_ref = refs[k]; k += 1
    acc1_ref = refs[k] if pool else None

    i = pl.program_id(1)
    dh = pl.program_id(2)
    last = pl.num_programs(2) - 1

    @pl.when(dh == 0)
    def _init():
        acc0_ref[...] = jnp.zeros_like(acc0_ref)
        if pool:
            acc1_ref[...] = jnp.zeros_like(acc1_ref)

    w_tap = w_ref[0]  # (kw*cin, cout) bf16

    def contrib(x_ref, pad_row_idx):
        x = x_ref[0, 0]  # (Wp, cin) f32
        if affine:
            # fold the preceding BatchNorm affine into this conv's input read;
            # mask so the zero padding stays zero (shift must not leak there).
            col = jax.lax.broadcasted_iota(jnp.int32, x.shape, 0)
            valid = (col >= col_lo) & (col <= col_hi)
            valid = valid & (pad_row_idx >= row_lo) & (pad_row_idx <= row_hi)
            x = jnp.where(valid, x * s_ref[...] + t_ref[...], 0.0)
        # in-VMEM "row im2col": kw shifted column windows, concatenated on lanes
        pieces = [x[col_off + d: col_off + d + w_out, :] for d in range(kw)]
        patch = pieces[0] if kw == 1 else jnp.concatenate(pieces, axis=1)
        return jnp.dot(patch.astype(jnp.bfloat16), w_tap,
                       preferred_element_type=jnp.float32)

    if pool:
        acc0_ref[...] += contrib(xa_ref, 2 * i + dh)      # conv output row 2i
        acc1_ref[...] += contrib(xb_ref, 2 * i + dh + 1)  # conv output row 2i+1
    else:
        acc0_ref[...] += contrib(xa_ref, i + dh)

    @pl.when(dh == last)
    def _finish():
        bias = b_ref[...]  # (1, cout) f32
        if pool:
            # fused 2x2 max-pool epilogue: max over the two rows, then over
            # adjacent column pairs (via tiny selection matmuls -> safe layout)
            m = jnp.maximum(acc0_ref[...], acc1_ref[...])  # (w_out, cout)
            half = w_out // 2
            r = jax.lax.broadcasted_iota(jnp.int32, (half, w_out), 0)
            c = jax.lax.broadcasted_iota(jnp.int32, (half, w_out), 1)
            sel_e = (c == 2 * r).astype(jnp.float32)
            sel_o = (c == 2 * r + 1).astype(jnp.float32)
            even = jnp.dot(sel_e, m, preferred_element_type=jnp.float32)
            odd = jnp.dot(sel_o, m, preferred_element_type=jnp.float32)
            o_ref[0, 0] = (jnp.maximum(even, odd) + bias).astype(o_ref.dtype)
        else:
            o_ref[0, 0] = (acc0_ref[...] + bias).astype(o_ref.dtype)


def conv_rows(x_pad, w_taps, bias, *, h_out, w_out, col_off=0, pool=False,
              scale=None, shift=None, valid_rows=(0, 0), valid_cols=(0, 0)):
    """Stride-1 'valid' conv on a pre-padded NHWC input.

    x_pad  : (N, Hp, Wp, Cin) f32
    w_taps : (kh, kw*Cin, Cout) bf16, column order (dw, cin)
    bias   : (1, Cout) f32
    pool   : fuse a 2x2/stride-2 max-pool epilogue (h_out, w_out must be even)
    scale/shift : optional (1, Cin) f32 per-channel affine folded into the
                  input read (applied only inside valid_rows/valid_cols).
    """
    n, hp, wp, cin = x_pad.shape
    kh, kwcin, cout = w_taps.shape
    kw = kwcin // cin
    affine = scale is not None

    if pool:
        assert h_out % 2 == 0 and w_out % 2 == 0
        grid = (n, h_out // 2, kh)
        out_shape = jax.ShapeDtypeStruct((n, h_out // 2, w_out // 2, cout),
                                         jnp.float32)
        out_spec = pl.BlockSpec((1, 1, w_out // 2, cout),
                                lambda b, i, d: (b, i, 0, 0))
        x_specs = [
            pl.BlockSpec((1, 1, wp, cin), lambda b, i, d: (b, 2 * i + d, 0, 0)),
            pl.BlockSpec((1, 1, wp, cin), lambda b, i, d: (b, 2 * i + d + 1, 0, 0)),
        ]
        x_args = [x_pad, x_pad]
        scratch = [pltpu.VMEM((w_out, cout), jnp.float32),
                   pltpu.VMEM((w_out, cout), jnp.float32)]
    else:
        grid = (n, h_out, kh)
        out_shape = jax.ShapeDtypeStruct((n, h_out, w_out, cout), jnp.float32)
        out_spec = pl.BlockSpec((1, 1, w_out, cout),
                                lambda b, i, d: (b, i, 0, 0))
        x_specs = [pl.BlockSpec((1, 1, wp, cin),
                                lambda b, i, d: (b, i + d, 0, 0))]
        x_args = [x_pad]
        scratch = [pltpu.VMEM((w_out, cout), jnp.float32)]

    in_specs = x_specs + [
        pl.BlockSpec((1, kwcin, cout), lambda b, i, d: (d, 0, 0)),
        pl.BlockSpec((1, cout), lambda b, i, d: (0, 0)),
    ]
    args = x_args + [w_taps, bias]
    if affine:
        in_specs += [pl.BlockSpec((1, cin), lambda b, i, d: (0, 0)),
                     pl.BlockSpec((1, cin), lambda b, i, d: (0, 0))]
        args += [scale, shift]

    kern = functools.partial(
        _conv_rows_kernel, kw=kw, w_out=w_out, col_off=col_off,
        pool=pool, affine=affine,
        row_lo=valid_rows[0], row_hi=valid_rows[1],
        col_lo=valid_cols[0], col_hi=valid_cols[1])

    return pl.pallas_call(
        kern,
        out_shape=out_shape,
        grid=grid,
        in_specs=in_specs,
        out_specs=out_spec,
        scratch_shapes=scratch,
        compiler_params=pltpu.CompilerParams(
            dimension_semantics=("parallel", "parallel", "arbitrary")),
    )(*args)


# ---------------------------------------------------------------------------
# Tiled per-channel sum / sum-of-squares (for bn11 batch stats on conv1 out).
# ---------------------------------------------------------------------------
def _stats_kernel(x_ref, o_ref):
    @pl.when(pl.program_id(0) == 0)
    def _init():
        o_ref[...] = jnp.zeros_like(o_ref)
    x = x_ref[...]
    o_ref[0:1, :] += jnp.sum(x, axis=0, keepdims=True)
    o_ref[1:2, :] += jnp.sum(x * x, axis=0, keepdims=True)


def channel_stats(x2d, max_tile_rows=512):
    m, c = x2d.shape
    tm = m
    if m % 8 == 0:
        tm = 8
        for t in range(8, min(m, max_tile_rows) + 1, 8):
            if m % t == 0:
                tm = t
    out = pl.pallas_call(
        _stats_kernel,
        out_shape=jax.ShapeDtypeStruct((8, c), jnp.float32),
        grid=(m // tm,),
        in_specs=[pl.BlockSpec((tm, c), lambda i: (i, 0))],
        out_specs=pl.BlockSpec((8, c), lambda i: (0, 0)),
        compiler_params=pltpu.CompilerParams(
            dimension_semantics=("arbitrary",)),
    )(x2d)
    mean = out[0] / m
    var = jnp.maximum(out[1] / m - mean * mean, 0.0)  # biased var (train mode)
    return mean, var


# ---------------------------------------------------------------------------
# Fused decoder tail:
#   bn11(d1) -> deconv2(1x1)+b -> bn31 -> deconv3(1x1)+b -> ReLU
#   -> softmax over batch (legacy F.softmax(dim=None) on a 3-D tensor)
#   -> softmax over the flattened spatial axis per sample.
# Whole d1 tensor (N*Hd*Wd, 64) is VMEM resident, so the BN batch statistics
# stay exact/global.  (For much larger feature maps this would become a
# two-pass tiled scheme like channel_stats above.)
# ---------------------------------------------------------------------------
def _tail_kernel(x_ref, g1_ref, b1_ref, w2_ref, b2_ref, g3_ref, b3_ref,
                 w3_ref, bb3_ref, o_ref, *, n_batch, hw):
    x = x_ref[...]                                   # (M, 64) f32
    inv_m = 1.0 / x.shape[0]

    mu = jnp.sum(x, axis=0, keepdims=True) * inv_m
    xc = x - mu
    var = jnp.sum(xc * xc, axis=0, keepdims=True) * inv_m
    xn = xc * (g1_ref[...] * jax.lax.rsqrt(var + EPS)) + b1_ref[...]

    y = jnp.dot(xn, w2_ref[...], preferred_element_type=jnp.float32) + b2_ref[...]

    mu2 = jnp.sum(y, axis=0, keepdims=True) * inv_m
    yc = y - mu2
    var2 = jnp.sum(yc * yc, axis=0, keepdims=True) * inv_m
    yn = yc * (g3_ref[...] * jax.lax.rsqrt(var2 + EPS)) + b3_ref[...]

    # deconv3 (32 -> 1) as a lane reduction (avoids an (M,1) MXU matmul)
    z = jnp.sum(yn * w3_ref[...], axis=1, keepdims=True) + bb3_ref[0, 0]
    z = jnp.maximum(z, 0.0)                          # (M, 1)

    # softmax #1: over the batch dim, per spatial position
    zs = [z[i * hw:(i + 1) * hw, :] for i in range(n_batch)]
    mb = zs[0]
    for t in zs[1:]:
        mb = jnp.maximum(mb, t)
    es = [jnp.exp(t - mb) for t in zs]
    den = es[0]
    for t in es[1:]:
        den = den + t

    # softmax #2: over all spatial positions of each sample
    for i in range(n_batch):
        p = es[i] / den
        m1 = jnp.max(p, axis=0, keepdims=True)
        e1 = jnp.exp(p - m1)
        s1 = jnp.sum(e1, axis=0, keepdims=True)
        o_ref[i * hw:(i + 1) * hw, :] = e1 / s1


# ---------------------------------------------------------------------------
# Parameters: raw (PyTorch-layout) init + one-time kernel-layout preparation.
# ---------------------------------------------------------------------------
def _xavier_uniform(key, shape, fan_in, fan_out):
    bound = (6.0 / (fan_in + fan_out)) ** 0.5
    return jax.random.uniform(key, shape, jnp.float32, -bound, bound)


def init_params(key):
    ks = jax.random.split(key, 10)
    p = {}
    p["conv1_w"] = _xavier_uniform(ks[0], (64, 60, 3, 3), 60 * 9, 64 * 9)
    p["conv1_b"] = jax.random.uniform(ks[1], (64,), jnp.float32, -0.05, 0.05)
    p["conv2_w"] = _xavier_uniform(ks[2], (128, 64, 3, 3), 64 * 9, 128 * 9)
    p["conv2_b"] = jax.random.uniform(ks[3], (128,), jnp.float32, -0.05, 0.05)
    p["deconv1_w"] = _xavier_uniform(ks[4], (128, 64, 3, 4), 64 * 12, 128 * 12)
    p["deconv1_b"] = jax.random.uniform(ks[5], (64,), jnp.float32, -0.05, 0.05)
    p["deconv2_w"] = _xavier_uniform(ks[6], (64, 32, 1, 1), 32, 64)
    p["deconv2_b"] = jax.random.uniform(ks[7], (32,), jnp.float32, -0.05, 0.05)
    p["deconv3_w"] = jax.random.uniform(ks[8], (32, 1, 1, 1), jnp.float32, -0.17, 0.17)
    p["deconv3_b"] = jax.random.uniform(ks[9], (1,), jnp.float32, -0.17, 0.17)
    # BatchNorm params (PyTorch defaults); bn11 is intentionally reused for the
    # encoder and decoder 64-channel BNs (as in the PyTorch module); bn21 unused.
    p["bn11_g"] = jnp.ones((64,), jnp.float32)
    p["bn11_b"] = jnp.zeros((64,), jnp.float32)
    p["bn31_g"] = jnp.ones((32,), jnp.float32)
    p["bn31_b"] = jnp.zeros((32,), jnp.float32)
    return p


def _conv_w_taps(w_oihw):
    """(cout,cin,kh,kw) -> (kh, kw*cin, cout) bf16, column order (dw, cin)."""
    cout, cin, kh, kw = w_oihw.shape
    t = jnp.transpose(w_oihw, (2, 3, 1, 0))       # (kh, kw, cin, cout)
    return t.reshape(kh, kw * cin, cout).astype(jnp.bfloat16)


def _deconv1_phase_w(w_iohw, khsel, kwsel):
    """Sub-pixel phase slab of a ConvTranspose2d weight (cin,cout,kh,kw)."""
    cin, cout, _, _ = w_iohw.shape
    sub = w_iohw[:, :, khsel, :][:, :, :, kwsel]  # (cin, cout, nkh, nkw)
    sub = jnp.transpose(sub, (2, 3, 0, 1))        # (nkh, nkw, cin, cout)
    return sub.reshape(len(khsel), len(kwsel) * cin, cout).astype(jnp.bfloat16)


def prepare_params(p):
    """One-time re-layout of weights into the forms the kernels consume."""
    q = {}
    q["conv1_w"] = _conv_w_taps(p["conv1_w"])                 # (3, 180, 64) bf16
    q["conv1_b"] = p["conv1_b"].reshape(1, 64).astype(jnp.float32)
    q["conv2_w"] = _conv_w_taps(p["conv2_w"])                 # (3, 192, 128) bf16
    q["conv2_b"] = p["conv2_b"].reshape(1, 128).astype(jnp.float32)
    w1 = p["deconv1_w"]                                       # (128, 64, 3, 4)
    q["dc1_ee_w"] = _deconv1_phase_w(w1, [1], [3, 1])         # even rows, even cols
    q["dc1_eo_w"] = _deconv1_phase_w(w1, [1], [2, 0])         # even rows, odd  cols
    q["dc1_oe_w"] = _deconv1_phase_w(w1, [2, 0], [3, 1])      # odd  rows, even cols
    q["dc1_oo_w"] = _deconv1_phase_w(w1, [2, 0], [2, 0])      # odd  rows, odd  cols
    q["dc1_b"] = p["deconv1_b"].reshape(1, 64).astype(jnp.float32)
    q["w2"] = p["deconv2_w"][:, :, 0, 0].astype(jnp.float32)  # (64, 32)
    q["b2"] = p["deconv2_b"].reshape(1, 32).astype(jnp.float32)
    q["w3"] = p["deconv3_w"][:, 0, 0, 0].reshape(1, 32).astype(jnp.float32)
    q["b3"] = p["deconv3_b"].reshape(1, 1).astype(jnp.float32)
    q["bn11_g"] = p["bn11_g"]
    q["bn11_b"] = p["bn11_b"]
    q["bn31_g"] = p["bn31_g"].reshape(1, 32)
    q["bn31_b"] = p["bn31_b"].reshape(1, 32)
    return q


# ---------------------------------------------------------------------------
# Forward pass
# ---------------------------------------------------------------------------
def home_forward(q, x_nchw):
    x = jnp.transpose(x_nchw, (0, 2, 3, 1)).astype(jnp.float32)   # -> NHWC
    n, h, w, _ = x.shape
    assert h % 2 == 0 and w % 2 == 0

    # ------------------------- encoder -------------------------
    # conv1 (3x3, pad 1), no activation
    xp = jnp.pad(x, ((0, 0), (1, 1), (1, 1), (0, 0)))
    h1 = conv_rows(xp, q["conv1_w"], q["conv1_b"], h_out=h, w_out=w)   # (n,h,w,64)

    # bn11 training-mode batch stats (tiled Pallas reduction), folded as a
    # per-channel affine into conv2's input read.
    mean1, var1 = channel_stats(h1.reshape(-1, 64))
    scale1 = (q["bn11_g"] * jax.lax.rsqrt(var1 + EPS)).reshape(1, 64)
    shift1 = (q["bn11_b"] - mean1 * scale1[0]).reshape(1, 64)

    # conv2 (3x3, pad 1) with fused bn11 affine + fused 2x2 max-pool epilogue
    h1p = jnp.pad(h1, ((0, 0), (1, 1), (1, 1), (0, 0)))
    enc = conv_rows(h1p, q["conv2_w"], q["conv2_b"], h_out=h, w_out=w,
                    pool=True, scale=scale1, shift=shift1,
                    valid_rows=(1, h), valid_cols=(1, w))              # (n,h/2,w/2,128)

    # ------------------------- decoder -------------------------
    he, we = h // 2, w // 2
    # Sub-pixel decomposition of ConvTranspose2d(128,64,(3,4),stride=2,pad=1,op=1):
    # 4 small valid convolutions directly on enc (zero-padded halo), no dilation.
    encp = jnp.pad(enc, ((0, 0), (0, 1), (1, 1), (0, 0)))              # (n,he+1,we+2,128)
    ee = conv_rows(encp, q["dc1_ee_w"], q["dc1_b"], h_out=he, w_out=we + 1, col_off=0)
    eo = conv_rows(encp, q["dc1_eo_w"], q["dc1_b"], h_out=he, w_out=we, col_off=1)
    oe = conv_rows(encp, q["dc1_oe_w"], q["dc1_b"], h_out=he, w_out=we + 1, col_off=0)
    oo = conv_rows(encp, q["dc1_oo_w"], q["dc1_b"], h_out=he, w_out=we, col_off=1)

    # Everything between deconv1 and the final heatmap is pointwise / uses
    # global statistics, so the phase outputs can stay phase-concatenated and
    # only the tiny (n, 2he, 2we+1) result is re-interleaved at the end.
    hw_out = (2 * he) * (2 * we + 1)
    d1 = jnp.concatenate(
        [ee.reshape(n, -1, 64), eo.reshape(n, -1, 64),
         oe.reshape(n, -1, 64), oo.reshape(n, -1, 64)], axis=1)
    d1 = d1.reshape(n * hw_out, 64)

    flat = pl.pallas_call(
        functools.partial(_tail_kernel, n_batch=n, hw=hw_out),
        out_shape=jax.ShapeDtypeStruct((n * hw_out, 1), jnp.float32),
        in_specs=[_VMEM] * 9,
        out_specs=_VMEM,
    )(d1,
      q["bn11_g"].reshape(1, 64), q["bn11_b"].reshape(1, 64),
      q["w2"], q["b2"], q["bn31_g"], q["bn31_b"], q["w3"], q["b3"])

    # Undo the phase ordering into the (n, 2he, 2we+1) heatmap (tiny, XLA side)
    flat = flat.reshape(n, hw_out)
    n_ee = he * (we + 1)
    n_eo = he * we
    ee_o = flat[:, :n_ee].reshape(n, he, we + 1)
    eo_o = flat[:, n_ee:n_ee + n_eo].reshape(n, he, we)
    oe_o = flat[:, n_ee + n_eo:2 * n_ee + n_eo].reshape(n, he, we + 1)
    oo_o = flat[:, 2 * n_ee + n_eo:].reshape(n, he, we)
    out = jnp.zeros((n, 2 * he, 2 * we + 1), jnp.float32)
    out = out.at[:, 0::2, 0::2].set(ee_o)
    out = out.at[:, 0::2, 1::2].set(eo_o)
    out = out.at[:, 1::2, 0::2].set(oe_o)
    out = out.at[:, 1::2, 1::2].set(oo_o)
    return out


# ---------------------------------------------------------------------------
# main
# ---------------------------------------------------------------------------
if __name__ == "__main__":
    key = jax.random.PRNGKey(0)
    pkey, xkey = jax.random.split(key)
    params = init_params(pkey)
    prepped = prepare_params(params)   # one-time bf16 tap-slab weight layout
    # small shapes: batch=2, the module's fixed 60 input channels, 16x16 spatial
    x = jax.random.normal(xkey, (2, 60, 16, 16), jnp.float32)

    fwd = jax.jit(home_forward)
    y = jax.block_until_ready(fwd(prepped, x))

    assert y.shape == (2, 16, 17), y.shape             # deconv1 widens W by 1
    assert bool(jnp.all(jnp.isfinite(y)))
    # second softmax is over the flattened spatial axis -> rows sum to 1
    assert bool(jnp.allclose(jnp.sum(y.reshape(2, -1), axis=1), 1.0, atol=1e-4))
    print("KERNEL_OK")
</pallas_src>

<mosaic_0001>
module attributes {stable_mosaic.version = 11 : i64} {
  func.func @_stats_kernel(%arg0: i32, %arg1: memref<512x64xf32, #tpu.memory_space<vmem>>, %arg2: memref<8x64xf32, #tpu.memory_space<vmem>>) attributes {dimension_semantics = [#tpu.dimension_semantics<arbitrary>], iteration_bounds = array<i64: 1>, scalar_prefetch = 0 : i64, scratch_operands = 0 : i64, tpu.core_type = #tpu.core_type<tc>, window_params = [{transform_indices = @transform_0, window_bounds = array<i64: 512, 64>}, {pipeline_mode = #tpu.pipeline_mode<synchronous>, transform_indices = @transform_1, window_bounds = array<i64: 8, 64>}]} {
    %c0_i32 = arith.constant 0 : i32
    %0 = arith.cmpi eq, %arg0, %c0_i32 : i32
    %1 = arith.extui %0 : i1 to i32
    %c0_i32_0 = arith.constant 0 : i32
    %2 = arith.cmpi ne, %1, %c0_i32_0 : i32
    scf.if %2 {
      %cst_10 = arith.constant 0.000000e+00 : f32
      %15 = vector.broadcast %cst_10 : f32 to vector<8x64xf32>
      %c0_11 = arith.constant 0 : index
      %c0_12 = arith.constant 0 : index
      %16 = vector.load %arg2[%c0_11, %c0_12] : memref<8x64xf32, #tpu.memory_space<vmem>>, vector<8x64xf32>
      tpu.vector_store %arg2[%c0_11, %c0_12], %15 {strides = array<i32>} : memref<8x64xf32, #tpu.memory_space<vmem>>, vector<8x64xf32>,
    } else {
    }
    %c0 = arith.constant 0 : index
    %c0_1 = arith.constant 0 : index
    %3 = vector.load %arg1[%c0, %c0_1] : memref<512x64xf32, #tpu.memory_space<vmem>>, vector<512x64xf32>
    %c0_2 = arith.constant 0 : index
    %c0_3 = arith.constant 0 : index
    %4 = vector.load %arg2[%c0_2, %c0_3] : memref<8x64xf32, #tpu.memory_space<vmem>>, vector<1x64xf32>
    %cst = arith.constant dense<0.000000e+00> : vector<64xf32>
    %5 = vector.multi_reduction <add>, %3, %cst [0] : vector<512x64xf32> to vector<64xf32>
    %6 = vector.shape_cast %5 : vector<64xf32> to vector<1x64xf32>
    %7 = arith.addf %4, %6 : vector<1x64xf32>
    %c0_4 = arith.constant 0 : index
    %c0_5 = arith.constant 0 : index
    %8 = vector.load %arg2[%c0_4, %c0_5] : memref<8x64xf32, #tpu.memory_space<vmem>>, vector<1x64xf32>
    tpu.vector_store %arg2[%c0_4, %c0_5], %7 {strides = array<i32>} : memref<8x64xf32, #tpu.memory_space<vmem>>, vector<1x64xf32>,
    %c1 = arith.constant 1 : index
    %c0_6 = arith.constant 0 : index
    %9 = vector.load %arg2[%c1, %c0_6] : memref<8x64xf32, #tpu.memory_space<vmem>>, vector<1x64xf32>
    %10 = arith.mulf %3, %3 : vector<512x64xf32>
    %cst_7 = arith.constant dense<0.000000e+00> : vector<64xf32>
    %11 = vector.multi_reduction <add>, %10, %cst_7 [0] : vector<512x64xf32> to vector<64xf32>
    %12 = vector.shape_cast %11 : vector<64xf32> to vector<1x64xf32>
    %13 = arith.addf %9, %12 : vector<1x64xf32>
    %c1_8 = arith.constant 1 : index
    %c0_9 = arith.constant 0 : index
    %14 = vector.load %arg2[%c1_8, %c0_9] : memref<8x64xf32, #tpu.memory_space<vmem>>, vector<1x64xf32>
    tpu.vector_store %arg2[%c1_8, %c0_9], %13 {strides = array<i32>} : memref<8x64xf32, #tpu.memory_space<vmem>>, vector<1x64xf32>,
    return
  }
  func.func @transform_0(%arg0: i32) -> (i32, i32) {
    %c0_i32 = arith.constant 0 : i32
    %c0_i32_0 = arith.constant 0 : i32
    return %arg0, %c0_i32 : i32, i32
  }
  func.func @transform_1(%arg0: i32) -> (i32, i32) {
    %c0_i32 = arith.constant 0 : i32
    %c0_i32_0 = arith.constant 0 : i32
    %c0_i32_1 = arith.constant 0 : i32
    return %c0_i32, %c0_i32_0 : i32, i32
  }
}

module attributes {stable_mosaic.version = 11 : i64} {
  func.func @_conv_rows_kernel(%arg0: i32, %arg1: i32, %arg2: i32, %arg3: memref<1x1x18x60xf32, #tpu.memory_space<vmem>>, %arg4: memref<1x180x64xbf16, #tpu.memory_space<vmem>>, %arg5: memref<1x64xf32, #tpu.memory_space<vmem>>, %arg6: memref<1x1x16x64xf32, #tpu.memory_space<vmem>>, %arg7: memref<16x64xf32, #tpu.memory_space<vmem>>) attributes {dimension_semantics = [#tpu.dimension_semantics<parallel>, #tpu.dimension_semantics<parallel>, #tpu.dimension_semantics<arbitrary>], iteration_bounds = array<i64: 2, 16, 3>, scalar_prefetch = 0 : i64, scratch_operands = 1 : i64, tpu.core_type = #tpu.core_type<tc>, window_params = [{transform_indices = @transform_0, window_bounds = array<i64: 1, 1, 18, 60>}, {transform_indices = @transform_1, window_bounds = array<i64: 1, 180, 64>}, {pipeline_mode = #tpu.pipeline_mode<synchronous>, transform_indices = @transform_2, window_bounds = array<i64: 1, 64>}, {transform_indices = @transform_3, window_bounds = array<i64: 1, 1, 16, 64>}]} {
    %c0_i32 = arith.constant 0 : i32
    %0 = arith.cmpi eq, %arg2, %c0_i32 : i32
    %1 = arith.extui %0 : i1 to i32
    %c0_i32_0 = arith.constant 0 : i32
    %2 = arith.cmpi ne, %1, %c0_i32_0 : i32
    scf.if %2 {
      %cst_12 = arith.constant 0.000000e+00 : f32
      %19 = vector.broadcast %cst_12 : f32 to vector<16x64xf32>
      %c0_13 = arith.constant 0 : index
      %c0_14 = arith.constant 0 : index
      %20 = vector.load %arg7[%c0_13, %c0_14] : memref<16x64xf32, #tpu.memory_space<vmem>>, vector<16x64xf32>
      tpu.vector_store %arg7[%c0_13, %c0_14], %19 {strides = array<i32>} : memref<16x64xf32, #tpu.memory_space<vmem>>, vector<16x64xf32>,
    } else {
    }
    %c0 = arith.constant 0 : index
    %c0_1 = arith.constant 0 : index
    %c0_2 = arith.constant 0 : index
    %3 = vector.load %arg4[%c0, %c0_1, %c0_2] : memref<1x180x64xbf16, #tpu.memory_space<vmem>>, vector<1x180x64xbf16>
    %4 = vector.shape_cast %3 : vector<1x180x64xbf16> to vector<180x64xbf16>
    %c0_3 = arith.constant 0 : index
    %c0_4 = arith.constant 0 : index
    %5 = vector.load %arg7[%c0_3, %c0_4] : memref<16x64xf32, #tpu.memory_space<vmem>>, vector<16x64xf32>
    %c0_5 = arith.constant 0 : index
    %c0_6 = arith.constant 0 : index
    %c0_7 = arith.constant 0 : index
    %c0_8 = arith.constant 0 : index
    %6 = vector.load %arg3[%c0_5, %c0_6, %c0_7, %c0_8] : memref<1x1x18x60xf32, #tpu.memory_space<vmem>>, vector<1x1x18x60xf32>
    %7 = vector.shape_cast %6 : vector<1x1x18x60xf32> to vector<18x60xf32>
    %8 = vector.extract_strided_slice %7 {offsets = [0, 0], sizes = [16, 60], strides = [1, 1]} : vector<18x60xf32> to vector<16x60xf32>
    %9 = vector.extract_strided_slice %7 {offsets = [1, 0], sizes = [16, 60], strides = [1, 1]} : vector<18x60xf32> to vector<16x60xf32>
    %10 = vector.extract_strided_slice %7 {offsets = [2, 0], sizes = [16, 60], strides = [1, 1]} : vector<18x60xf32> to vector<16x60xf32>
    %11 = tpu.concatenate %8, %9, %10 in 1 : vector<16x60xf32>, vector<16x60xf32>, vector<16x60xf32> -> vector<16x180xf32>
    %12 = arith.truncf %11 : vector<16x180xf32> to vector<16x180xbf16>
    %cst = arith.constant dense<0.000000e+00> : vector<16x64xf32>
    %13 = tpu.matmul %12, %4, %cst {dimension_numbers = #tpu.dot_dimension_numbers<[1], [0], [0], [1], [0, 0, 1, 1], [], []>} : vector<16x180xbf16>, vector<180x64xbf16>, vector<16x64xf32> -> vector<16x64xf32>
    %14 = arith.addf %5, %13 : vector<16x64xf32>
    %c0_9 = arith.constant 0 : index
    %c0_10 = arith.constant 0 : index
    %15 = vector.load %arg7[%c0_9, %c0_10] : memref<16x64xf32, #tpu.memory_space<vmem>>, vector<16x64xf32>
    tpu.vector_store %arg7[%c0_9, %c0_10], %14 {strides = array<i32>} : memref<16x64xf32, #tpu.memory_space<vmem>>, vector<16x64xf32>,
    %c2_i32 = arith.constant 2 : i32
    %16 = arith.cmpi eq, %arg2, %c2_i32 : i32
    %17 = arith.extui %16 : i1 to i32
    %c0_i32_11 = arith.constant 0 : i32
    %18 = arith.cmpi ne, %17, %c0_i32_11 : i32
    scf.if %18 {
      %c0_12 = arith.constant 0 : index
      %c0_13 = arith.constant 0 : index
      %19 = vector.load %arg5[%c0_12, %c0_13] : memref<1x64xf32, #tpu.memory_space<vmem>>, vector<1x64xf32>
      %c0_14 = arith.constant 0 : index
      %c0_15 = arith.constant 0 : index
      %20 = vector.load %arg7[%c0_14, %c0_15] : memref<16x64xf32, #tpu.memory_space<vmem>>, vector<16x64xf32>
      %21 = vector.broadcast %19 : vector<1x64xf32> to vector<16x64xf32>
      %22 = arith.addf %20, %21 : vector<16x64xf32>
      %c0_16 = arith.constant 0 : index
      %c0_17 = arith.constant 0 : index
      %c0_18 = arith.constant 0 : index
      %c0_19 = arith.constant 0 : index
      %23 = vector.load %arg6[%c0_16, %c0_17, %c0_18, %c0_19] : memref<1x1x16x64xf32, #tpu.memory_space<vmem>>, vector<1x1x16x64xf32>
      %24 = vector.shape_cast %23 : vector<1x1x16x64xf32> to vector<16x64xf32>
      %25 = vector.shape_cast %22 : vector<16x64xf32> to vector<1x1x16x64xf32>
      tpu.vector_store %arg6[%c0_16, %c0_17, %c0_18, %c0_19], %25 {strides = array<i32>} : memref<1x1x16x64xf32, #tpu.memory_space<vmem>>, vector<1x1x16x64xf32>,
    } else {
    }
    return
  }
  func.func @transform_0(%arg0: i32, %arg1: i32, %arg2: i32) -> (i32, i32, i32, i32) {
    %0 = arith.addi %arg1, %arg2 : i32
    %c0_i32 = arith.constant 0 : i32
    %c0_i32_0 = arith.constant 0 : i32
    %c0_i32_1 = arith.constant 0 : i32
    return %arg0, %0, %c0_i32, %c0_i32_0 : i32, i32, i32, i32
  }
  func.func @transform_1(%arg0: i32, %arg1: i32, %arg2: i32) -> (i32, i32, i32) {
    %c0_i32 = arith.constant 0 : i32
    %c0_i32_0 = arith.constant 0 : i32
    %c0_i32_1 = arith.constant 0 : i32
    return %arg2, %c0_i32, %c0_i32_0 : i32, i32, i32
  }
  func.func @transform_2(%arg0: i32, %arg1: i32, %arg2: i32) -> (i32, i32) {
    %c0_i32 = arith.constant 0 : i32
    %c0_i32_0 = arith.constant 0 : i32
    %c0_i32_1 = arith.constant 0 : i32
    return %c0_i32, %c0_i32_0 : i32, i32
  }
  func.func @transform_3(%arg0: i32, %arg1: i32, %arg2: i32) -> (i32, i32, i32, i32) {
    %c0_i32 = arith.constant 0 : i32
    %c0_i32_0 = arith.constant 0 : i32
    %c0_i32_1 = arith.constant 0 : i32
    return %arg0, %arg1, %c0_i32, %c0_i32_0 : i32, i32, i32, i32
  }
}

module attributes {stable_mosaic.version = 11 : i64} {
  func.func @_conv_rows_kernel(%arg0: i32, %arg1: i32, %arg2: i32, %arg3: memref<1x1x18x64xf32, #tpu.memory_space<vmem>>, %arg4: memref<1x1x18x64xf32, #tpu.memory_space<vmem>>, %arg5: memref<1x192x128xbf16, #tpu.memory_space<vmem>>, %arg6: memref<1x128xf32, #tpu.memory_space<vmem>>, %arg7: memref<1x64xf32, #tpu.memory_space<vmem>>, %arg8: memref<1x64xf32, #tpu.memory_space<vmem>>, %arg9: memref<1x1x8x128xf32, #tpu.memory_space<vmem>>, %arg10: memref<16x128xf32, #tpu.memory_space<vmem>>, %arg11: memref<16x128xf32, #tpu.memory_space<vmem>>) attributes {dimension_semantics = [#tpu.dimension_semantics<parallel>, #tpu.dimension_semantics<parallel>, #tpu.dimension_semantics<arbitrary>], iteration_bounds = array<i64: 2, 8, 3>, scalar_prefetch = 0 : i64, scratch_operands = 2 : i64, tpu.core_type = #tpu.core_type<tc>, window_params = [{transform_indices = @transform_0, window_bounds = array<i64: 1, 1, 18, 64>}, {transform_indices = @transform_1, window_bounds = array<i64: 1, 1, 18, 64>}, {transform_indices = @transform_2, window_bounds = array<i64: 1, 192, 128>}, {pipeline_mode = #tpu.pipeline_mode<synchronous>, transform_indices = @transform_3, window_bounds = array<i64: 1, 128>}, {pipeline_mode = #tpu.pipeline_mode<synchronous>, transform_indices = @transform_4, window_bounds = array<i64: 1, 64>}, {pipeline_mode = #tpu.pipeline_mode<synchronous>, transform_indices = @transform_5, window_bounds = array<i64: 1, 64>}, {transform_indices = @transform_6, window_bounds = array<i64: 1, 1, 8, 128>}]} {
    %c0_i32 = arith.constant 0 : i32
    %0 = arith.cmpi eq, %arg2, %c0_i32 : i32
    %1 = arith.extui %0 : i1 to i32
    %c0_i32_0 = arith.constant 0 : i32
    %2 = arith.cmpi ne, %1, %c0_i32_0 : i32
    scf.if %2 {
      %cst_40 = arith.constant 0.000000e+00 : f32
      %75 = vector.broadcast %cst_40 : f32 to vector<16x128xf32>
      %c0_41 = arith.constant 0 : index
      %c0_42 = arith.constant 0 : index
      %76 = vector.load %arg10[%c0_41, %c0_42] : memref<16x128xf32, #tpu.memory_space<vmem>>, vector<16x128xf32>
      tpu.vector_store %arg10[%c0_41, %c0_42], %75 {strides = array<i32>} : memref<16x128xf32, #tpu.memory_space<vmem>>, vector<16x128xf32>,
      %cst_43 = arith.constant 0.000000e+00 : f32
      %77 = vector.broadcast %cst_43 : f32 to vector<16x128xf32>
      %c0_44 = arith.constant 0 : index
      %c0_45 = arith.constant 0 : index
      %78 = vector.load %arg11[%c0_44, %c0_45] : memref<16x128xf32, #tpu.memory_space<vmem>>, vector<16x128xf32>
      tpu.vector_store %arg11[%c0_44, %c0_45], %77 {strides = array<i32>} : memref<16x128xf32, #tpu.memory_space<vmem>>, vector<16x128xf32>,
    } else {
    }
    %c0 = arith.constant 0 : index
    %c0_1 = arith.constant 0 : index
    %c0_2 = arith.constant 0 : index
    %3 = vector.load %arg5[%c0, %c0_1, %c0_2] : memref<1x192x128xbf16, #tpu.memory_space<vmem>>, vector<1x192x128xbf16>
    %4 = vector.shape_cast %3 : vector<1x192x128xbf16> to vector<192x128xbf16>
    %c0_3 = arith.constant 0 : index
    %c0_4 = arith.constant 0 : index
    %5 = vector.load %arg10[%c0_3, %c0_4] : memref<16x128xf32, #tpu.memory_space<vmem>>, vector<16x128xf32>
    %c2_i32 = arith.constant 2 : i32
    %6 = arith.muli %c2_i32, %arg1 : i32
    %7 = arith.addi %6, %arg2 : i32
    %c0_5 = arith.constant 0 : index
    %c0_6 = arith.constant 0 : index
    %c0_7 = arith.constant 0 : index
    %c0_8 = arith.constant 0 : index
    %8 = vector.load %arg3[%c0_5, %c0_6, %c0_7, %c0_8] : memref<1x1x18x64xf32, #tpu.memory_space<vmem>>, vector<1x1x18x64xf32>
    %9 = vector.shape_cast %8 : vector<1x1x18x64xf32> to vector<18x64xf32>
    %10 = tpu.iota {dimensions = array<i32: 0>} : vector<18x64xi32>
    %c1_i32 = arith.constant 1 : i32
    %11 = vector.broadcast %c1_i32 : i32 to vector<18x64xi32>
    %12 = arith.cmpi sge, %10, %11 : vector<18x64xi32>
    %c16_i32 = arith.constant 16 : i32
    %13 = vector.broadcast %c16_i32 : i32 to vector<18x64xi32>
    %14 = arith.cmpi sle, %10, %13 : vector<18x64xi32>
    %15 = arith.andi %12, %14 : vector<18x64xi1>
    %c1_i32_9 = arith.constant 1 : i32
    %16 = arith.cmpi sge, %7, %c1_i32_9 : i32
    %17 = vector.broadcast %16 : i1 to vector<18x64xi1>
    %18 = arith.andi %15, %17 : vector<18x64xi1>
    %c16_i32_10 = arith.constant 16 : i32
    %19 = arith.cmpi sle, %7, %c16_i32_10 : i32
    %20 = vector.broadcast %19 : i1 to vector<18x64xi1>
    %21 = arith.andi %18, %20 : vector<18x64xi1>
    %c0_11 = arith.constant 0 : index
    %c0_12 = arith.constant 0 : index
    %22 = vector.load %arg7[%c0_11, %c0_12] : memref<1x64xf32, #tpu.memory_space<vmem>>, vector<1x64xf32>
    %23 = vector.broadcast %22 : vector<1x64xf32> to vector<18x64xf32>
    %24 = arith.mulf %9, %23 : vector<18x64xf32>
    %c0_13 = arith.constant 0 : index
    %c0_14 = arith.constant 0 : index
    %25 = vector.load %arg8[%c0_13, %c0_14] : memref<1x64xf32, #tpu.memory_space<vmem>>, vector<1x64xf32>
    %26 = vector.broadcast %25 : vector<1x64xf32> to vector<18x64xf32>
    %27 = arith.addf %24, %26 : vector<18x64xf32>
    %cst = arith.constant 0.000000e+00 : f32
    %28 = vector.broadcast %cst : f32 to vector<18x64xf32>
    %29 = arith.select %21, %27, %28 : vector<18x64xi1>, vector<18x64xf32>
    %30 = vector.extract_strided_slice %29 {offsets = [0, 0], sizes = [16, 64], strides = [1, 1]} : vector<18x64xf32> to vector<16x64xf32>
    %31 = vector.extract_strided_slice %29 {offsets = [1, 0], sizes = [16, 64], strides = [1, 1]} : vector<18x64xf32> to vector<16x64xf32>
    %32 = vector.extract_strided_slice %29 {offsets = [2, 0], sizes = [16, 64], strides = [1, 1]} : vector<18x64xf32> to vector<16x64xf32>
    %33 = tpu.concatenate %30, %31, %32 in 1 : vector<16x64xf32>, vector<16x64xf32>, vector<16x64xf32> -> vector<16x192xf32>
    %34 = arith.truncf %33 : vector<16x192xf32> to vector<16x192xbf16>
    %cst_15 = arith.constant dense<0.000000e+00> : vector<16x128xf32>
    %35 = tpu.matmul %34, %4, %cst_15 {dimension_numbers = #tpu.dot_dimension_numbers<[1], [0], [0], [1], [0, 0, 1, 1], [], []>} : vector<16x192xbf16>, vector<192x128xbf16>, vector<16x128xf32> -> vector<16x128xf32>
    %36 = arith.addf %5, %35 : vector<16x128xf32>
    %c0_16 = arith.constant 0 : index
    %c0_17 = arith.constant 0 : index
    %37 = vector.load %arg10[%c0_16, %c0_17] : memref<16x128xf32, #tpu.memory_space<vmem>>, vector<16x128xf32>
    tpu.vector_store %arg10[%c0_16, %c0_17], %36 {strides = array<i32>} : memref<16x128xf32, #tpu.memory_space<vmem>>, vector<16x128xf32>,
    %c0_18 = arith.constant 0 : index
    %c0_19 = arith.constant 0 : index
    %38 = vector.load %arg11[%c0_18, %c0_19] : memref<16x128xf32, #tpu.memory_space<vmem>>, vector<16x128xf32>
    %c2_i32_20 = arith.constant 2 : i32
    %39 = arith.muli %c2_i32_20, %arg1 : i32
    %40 = arith.addi %39, %arg2 : i32
    %c1_i32_21 = arith.constant 1 : i32
    %41 = arith.addi %40, %c1_i32_21 : i32
    %c0_22 = arith.constant 0 : index
    %c0_23 = arith.constant 0 : index
    %c0_24 = arith.constant 0 : index
    %c0_25 = arith.constant 0 : index
    %42 = vector.load %arg4[%c0_22, %c0_23, %c0_24, %c0_25] : memref<1x1x18x64xf32, #tpu.memory_space<vmem>>, vector<1x1x18x64xf32>
    %43 = vector.shape_cast %42 : vector<1x1x18x64xf32> to vector<18x64xf32>
    %44 = tpu.iota {dimensions = array<i32: 0>} : vector<18x64xi32>
    %c1_i32_26 = arith.constant 1 : i32
    %45 = vector.broadcast %c1_i32_26 : i32 to vector<18x64xi32>
    %46 = arith.cmpi sge, %44, %45 : vector<18x64xi32>
    %c16_i32_27 = arith.constant 16 : i32
    %47 = vector.broadcast %c16_i32_27 : i32 to vector<18x64xi32>
    %48 = arith.cmpi sle, %44, %47 : vector<18x64xi32>
    %49 = arith.andi %46, %48 : vector<18x64xi1>
    %c1_i32_28 = arith.constant 1 : i32
    %50 = arith.cmpi sge, %41, %c1_i32_28 : i32
    %51 = vector.broadcast %50 : i1 to vector<18x64xi1>
    %52 = arith.andi %49, %51 : vector<18x64xi1>
    %c16_i32_29 = arith.constant 16 : i32
    %53 = arith.cmpi sle, %41, %c16_i32_29 : i32
    %54 = vector.broadcast %53 : i1 to vector<18x64xi1>
    %55 = arith.andi %52, %54 : vector<18x64xi1>
    %c0_30 = arith.constant 0 : index
    %c0_31 = arith.constant 0 : index
    %56 = vector.load %arg7[%c0_30, %c0_31] : memref<1x64xf32, #tpu.memory_space<vmem>>, vector<1x64xf32>
    %57 = vector.broadcast %56 : vector<1x64xf32> to vector<18x64xf32>
    %58 = arith.mulf %43, %57 : vector<18x64xf32>
    %c0_32 = arith.constant 0 : index
    %c0_33 = arith.constant 0 : index
    %59 = vector.load %arg8[%c0_32, %c0_33] : memref<1x64xf32, #tpu.memory_space<vmem>>, vector<1x64xf32>
    %60 = vector.broadcast %59 : vector<1x64xf32> to vector<18x64xf32>
    %61 = arith.addf %58, %60 : vector<18x64xf32>
    %cst_34 = arith.constant 0.000000e+00 : f32
    %62 = vector.broadcast %cst_34 : f32 to vector<18x64xf32>
    %63 = arith.select %55, %61, %62 : vector<18x64xi1>, vector<18x64xf32>
    %64 = vector.extract_strided_slice %63 {offsets = [0, 0], sizes = [16, 64], strides = [1, 1]} : vector<18x64xf32> to vector<16x64xf32>
    %65 = vector.extract_strided_slice %63 {offsets = [1, 0], sizes = [16, 64], strides = [1, 1]} : vector<18x64xf32> to vector<16x64xf32>
    %66 = vector.extract_strided_slice %63 {offsets = [2, 0], sizes = [16, 64], strides = [1, 1]} : vector<18x64xf32> to vector<16x64xf32>
    %67 = tpu.concatenate %64, %65, %66 in 1 : vector<16x64xf32>, vector<16x64xf32>, vector<16x64xf32> -> vector<16x192xf32>
    %68 = arith.truncf %67 : vector<16x192xf32> to vector<16x192xbf16>
    %cst_35 = arith.constant dense<0.000000e+00> : vector<16x128xf32>
    %69 = tpu.matmul %68, %4, %cst_35 {dimension_numbers = #tpu.dot_dimension_numbers<[1], [0], [0], [1], [0, 0, 1, 1], [], []>} : vector<16x192xbf16>, vector<192x128xbf16>, vector<16x128xf32> -> vector<16x128xf32>
    %70 = arith.addf %38, %69 : vector<16x128xf32>
    %c0_36 = arith.constant 0 : index
    %c0_37 = arith.constant 0 : index
    %71 = vector.load %arg11[%c0_36, %c0_37] : memref<16x128xf32, #tpu.memory_space<vmem>>, vector<16x128xf32>
    tpu.vector_store %arg11[%c0_36, %c0_37], %70 {strides = array<i32>} : memref<16x128xf32, #tpu.memory_space<vmem>>, vector<16x128xf32>,
    %c2_i32_38 = arith.constant 2 : i32
    %72 = arith.cmpi eq, %arg2, %c2_i32_38 : i32
    %73 = arith.extui %72 : i1 to i32
    %c0_i32_39 = arith.constant 0 : i32
    %74 = arith.cmpi ne, %73, %c0_i32_39 : i32
    scf.if %74 {
      %c0_40 = arith.constant 0 : index
      %c0_41 = arith.constant 0 : index
      %75 = vector.load %arg6[%c0_40, %c0_41] : memref<1x128xf32, #tpu.memory_space<vmem>>, vector<1x128xf32>
      %c0_42 = arith.constant 0 : index
      %c0_43 = arith.constant 0 : index
      %76 = vector.load %arg10[%c0_42, %c0_43] : memref<16x128xf32, #tpu.memory_space<vmem>>, vector<16x128xf32>
      %c0_44 = arith.constant 0 : index
      %c0_45 = arith.constant 0 : index
      %77 = vector.load %arg11[%c0_44, %c0_45] : memref<16x128xf32, #tpu.memory_space<vmem>>, vector<16x128xf32>
      %78 = arith.maximumf %76, %77 : vector<16x128xf32>
      %79 = tpu.iota {dimensions = array<i32: 0>} : vector<8x16xi32>
      %80 = tpu.iota {dimensions = array<i32: 1>} : vector<8x16xi32>
      %c2_i32_46 = arith.constant 2 : i32
      %81 = vector.broadcast %c2_i32_46 : i32 to vector<8x16xi32>
      %82 = arith.muli %81, %79 : vector<8x16xi32>
      %83 = arith.cmpi eq, %80, %82 : vector<8x16xi32>
      %84 = arith.extui %83 : vector<8x16xi1> to vector<8x16xi32>
      %85 = arith.sitofp %84 : vector<8x16xi32> to vector<8x16xf32>
      %c2_i32_47 = arith.constant 2 : i32
      %86 = vector.broadcast %c2_i32_47 : i32 to vector<8x16xi32>
      %87 = arith.muli %86, %79 : vector<8x16xi32>
      %c1_i32_48 = arith.constant 1 : i32
      %88 = vector.broadcast %c1_i32_48 : i32 to vector<8x16xi32>
      %89 = arith.addi %87, %88 : vector<8x16xi32>
      %90 = arith.cmpi eq, %80, %89 : vector<8x16xi32>
      %91 = arith.extui %90 : vector<8x16xi1> to vector<8x16xi32>
      %92 = arith.sitofp %91 : vector<8x16xi32> to vector<8x16xf32>
      %cst_49 = arith.constant dense<0.000000e+00> : vector<8x128xf32>
      %93 = tpu.matmul %85, %78, %cst_49 {dimension_numbers = #tpu.dot_dimension_numbers<[1], [0], [0], [1], [0, 0, 1, 1], [], []>} : vector<8x16xf32>, vector<16x128xf32>, vector<8x128xf32> -> vector<8x128xf32>
      %cst_50 = arith.constant dense<0.000000e+00> : vector<8x128xf32>
      %94 = tpu.matmul %92, %78, %cst_50 {dimension_numbers = #tpu.dot_dimension_numbers<[1], [0], [0], [1], [0, 0, 1, 1], [], []>} : vector<8x16xf32>, vector<16x128xf32>, vector<8x128xf32> -> vector<8x128xf32>
      %95 = arith.maximumf %93, %94 : vector<8x128xf32>
      %96 = vector.broadcast %75 : vector<1x128xf32> to vector<8x128xf32>
      %97 = arith.addf %95, %96 : vector<8x128xf32>
      %c0_51 = arith.constant 0 : index
      %c0_52 = arith.constant 0 : index
      %c0_53 = arith.constant 0 : index
      %c0_54 = arith.constant 0 : index
      %98 = vector.load %arg9[%c0_51, %c0_52, %c0_53, %c0_54] : memref<1x1x8x128xf32, #tpu.memory_space<vmem>>, vector<1x1x8x128xf32>
      %99 = vector.shape_cast %98 : vector<1x1x8x128xf32> to vector<8x128xf32>
      %100 = vector.shape_cast %97 : vector<8x128xf32> to vector<1x1x8x128xf32>
      tpu.vector_store %arg9[%c0_51, %c0_52, %c0_53, %c0_54], %100 {strides = array<i32>} : memref<1x1x8x128xf32, #tpu.memory_space<vmem>>, vector<1x1x8x128xf32>,
    } else {
    }
    return
  }
  func.func @transform_0(%arg0: i32, %arg1: i32, %arg2: i32) -> (i32, i32, i32, i32) {
    %c2_i32 = arith.constant 2 : i32
    %0 = arith.muli %c2_i32, %arg1 : i32
    %1 = arith.addi %0, %arg2 : i32
    %c0_i32 = arith.constant 0 : i32
    %c0_i32_0 = arith.constant 0 : i32
    %c0_i32_1 = arith.constant 0 : i32
    return %arg0, %1, %c0_i32, %c0_i32_0 : i32, i32, i32, i32
  }
  func.func @transform_1(%arg0: i32, %arg1: i32, %arg2: i32) -> (i32, i32, i32, i32) {
    %c2_i32 = arith.constant 2 : i32
    %0 = arith.muli %c2_i32, %arg1 : i32
    %1 = arith.addi %0, %arg2 : i32
    %c1_i32 = arith.constant 1 : i32
    %2 = arith.addi %1, %c1_i32 : i32
    %c0_i32 = arith.constant 0 : i32
    %c0_i32_0 = arith.constant 0 : i32
    %c0_i32_1 = arith.constant 0 : i32
    return %arg0, %2, %c0_i32, %c0_i32_0 : i32, i32, i32, i32
  }
  func.func @transform_2(%arg0: i32, %arg1: i32, %arg2: i32) -> (i32, i32, i32) {
    %c0_i32 = arith.constant 0 : i32
    %c0_i32_0 = arith.constant 0 : i32
    %c0_i32_1 = arith.constant 0 : i32
    return %arg2, %c0_i32, %c0_i32_0 : i32, i32, i32
  }
  func.func @transform_3(%arg0: i32, %arg1: i32, %arg2: i32) -> (i32, i32) {
    %c0_i32 = arith.constant 0 : i32
    %c0_i32_0 = arith.constant 0 : i32
    %c0_i32_1 = arith.constant 0 : i32
    return %c0_i32, %c0_i32_0 : i32, i32
  }
  func.func @transform_4(%arg0: i32, %arg1: i32, %arg2: i32) -> (i32, i32) {
    %c0_i32 = arith.constant 0 : i32
    %c0_i32_0 = arith.constant 0 : i32
    %c0_i32_1 = arith.constant 0 : i32
    return %c0_i32, %c0_i32_0 : i32, i32
  }
  func.func @transform_5(%arg0: i32, %arg1: i32, %arg2: i32) -> (i32, i32) {
    %c0_i32 = arith.constant 0 : i32
    %c0_i32_0 = arith.constant 0 : i32
    %c0_i32_1 = arith.constant 0 : i32
    return %c0_i32, %c0_i32_0 : i32, i32
  }
  func.func @transform_6(%arg0: i32, %arg1: i32, %arg2: i32) -> (i32, i32, i32, i32) {
    %c0_i32 = arith.constant 0 : i32
    %c0_i32_0 = arith.constant 0 : i32
    %c0_i32_1 = arith.constant 0 : i32
    return %arg0, %arg1, %c0_i32, %c0_i32_0 : i32, i32, i32, i32
  }
}

module attributes {stable_mosaic.version = 11 : i64} {
  func.func @_conv_rows_kernel(%arg0: i32, %arg1: i32, %arg2: i32, %arg3: memref<1x1x10x128xf32, #tpu.memory_space<vmem>>, %arg4: memref<1x256x64xbf16, #tpu.memory_space<vmem>>, %arg5: memref<1x64xf32, #tpu.memory_space<vmem>>, %arg6: memref<1x1x9x64xf32, #tpu.memory_space<vmem>>, %arg7: memref<9x64xf32, #tpu.memory_space<vmem>>) attributes {dimension_semantics = [#tpu.dimension_semantics<parallel>, #tpu.dimension_semantics<parallel>, #tpu.dimension_semantics<arbitrary>], iteration_bounds = array<i64: 2, 8, 2>, scalar_prefetch = 0 : i64, scratch_operands = 1 : i64, tpu.core_type = #tpu.core_type<tc>, window_params = [{transform_indices = @transform_0, window_bounds = array<i64: 1, 1, 10, 128>}, {transform_indices = @transform_1, window_bounds = array<i64: 1, 256, 64>}, {pipeline_mode = #tpu.pipeline_mode<synchronous>, transform_indices = @transform_2, window_bounds = array<i64: 1, 64>}, {transform_indices = @transform_3, window_bounds = array<i64: 1, 1, 9, 64>}]} {
    %c0_i32 = arith.constant 0 : i32
    %0 = arith.cmpi eq, %arg2, %c0_i32 : i32
    %1 = arith.extui %0 : i1 to i32
    %c0_i32_0 = arith.constant 0 : i32
    %2 = arith.cmpi ne, %1, %c0_i32_0 : i32
    scf.if %2 {
      %cst_12 = arith.constant 0.000000e+00 : f32
      %18 = vector.broadcast %cst_12 : f32 to vector<9x64xf32>
      %c0_13 = arith.constant 0 : index
      %c0_14 = arith.constant 0 : index
      %19 = vector.load %arg7[%c0_13, %c0_14] : memref<9x64xf32, #tpu.memory_space<vmem>>, vector<9x64xf32>
      tpu.vector_store %arg7[%c0_13, %c0_14], %18 {strides = array<i32>} : memref<9x64xf32, #tpu.memory_space<vmem>>, vector<9x64xf32>,
    } else {
    }
    %c0 = arith.constant 0 : index
    %c0_1 = arith.constant 0 : index
    %c0_2 = arith.constant 0 : index
    %3 = vector.load %arg4[%c0, %c0_1, %c0_2] : memref<1x256x64xbf16, #tpu.memory_space<vmem>>, vector<1x256x64xbf16>
    %4 = vector.shape_cast %3 : vector<1x256x64xbf16> to vector<256x64xbf16>
    %c0_3 = arith.constant 0 : index
    %c0_4 = arith.constant 0 : index
    %5 = vector.load %arg7[%c0_3, %c0_4] : memref<9x64xf32, #tpu.memory_space<vmem>>, vector<9x64xf32>
    %c0_5 = arith.constant 0 : index
    %c0_6 = arith.constant 0 : index
    %c0_7 = arith.constant 0 : index
    %c0_8 = arith.constant 0 : index
    %6 = vector.load %arg3[%c0_5, %c0_6, %c0_7, %c0_8] : memref<1x1x10x128xf32, #tpu.memory_space<vmem>>, vector<1x1x10x128xf32>
    %7 = vector.shape_cast %6 : vector<1x1x10x128xf32> to vector<10x128xf32>
    %8 = vector.extract_strided_slice %7 {offsets = [0, 0], sizes = [9, 128], strides = [1, 1]} : vector<10x128xf32> to vector<9x128xf32>
    %9 = vector.extract_strided_slice %7 {offsets = [1, 0], sizes = [9, 128], strides = [1, 1]} : vector<10x128xf32> to vector<9x128xf32>
    %10 = tpu.concatenate %8, %9 in 1 : vector<9x128xf32>, vector<9x128xf32> -> vector<9x256xf32>
    %11 = arith.truncf %10 : vector<9x256xf32> to vector<9x256xbf16>
    %cst = arith.constant dense<0.000000e+00> : vector<9x64xf32>
    %12 = tpu.matmul %11, %4, %cst {dimension_numbers = #tpu.dot_dimension_numbers<[1], [0], [0], [1], [0, 0, 1, 1], [], []>} : vector<9x256xbf16>, vector<256x64xbf16>, vector<9x64xf32> -> vector<9x64xf32>
    %13 = arith.addf %5, %12 : vector<9x64xf32>
    %c0_9 = arith.constant 0 : index
    %c0_10 = arith.constant 0 : index
    %14 = vector.load %arg7[%c0_9, %c0_10] : memref<9x64xf32, #tpu.memory_space<vmem>>, vector<9x64xf32>
    tpu.vector_store %arg7[%c0_9, %c0_10], %13 {strides = array<i32>} : memref<9x64xf32, #tpu.memory_space<vmem>>, vector<9x64xf32>,
    %c1_i32 = arith.constant 1 : i32
    %15 = arith.cmpi eq, %arg2, %c1_i32 : i32
    %16 = arith.extui %15 : i1 to i32
    %c0_i32_11 = arith.constant 0 : i32
    %17 = arith.cmpi ne, %16, %c0_i32_11 : i32
    scf.if %17 {
      %c0_12 = arith.constant 0 : index
      %c0_13 = arith.constant 0 : index
      %18 = vector.load %arg5[%c0_12, %c0_13] : memref<1x64xf32, #tpu.memory_space<vmem>>, vector<1x64xf32>
      %c0_14 = arith.constant 0 : index
      %c0_15 = arith.constant 0 : index
      %19 = vector.load %arg7[%c0_14, %c0_15] : memref<9x64xf32, #tpu.memory_space<vmem>>, vector<9x64xf32>
      %20 = vector.broadcast %18 : vector<1x64xf32> to vector<9x64xf32>
      %21 = arith.addf %19, %20 : vector<9x64xf32>
      %c0_16 = arith.constant 0 : index
      %c0_17 = arith.constant 0 : index
      %c0_18 = arith.constant 0 : index
      %c0_19 = arith.constant 0 : index
      %22 = vector.load %arg6[%c0_16, %c0_17, %c0_18, %c0_19] : memref<1x1x9x64xf32, #tpu.memory_space<vmem>>, vector<1x1x9x64xf32>
      %23 = vector.shape_cast %22 : vector<1x1x9x64xf32> to vector<9x64xf32>
      %24 = vector.shape_cast %21 : vector<9x64xf32> to vector<1x1x9x64xf32>
      tpu.vector_store %arg6[%c0_16, %c0_17, %c0_18, %c0_19], %24 {strides = array<i32>} : memref<1x1x9x64xf32, #tpu.memory_space<vmem>>, vector<1x1x9x64xf32>,
    } else {
    }
    return
  }
  func.func @transform_0(%arg0: i32, %arg1: i32, %arg2: i32) -> (i32, i32, i32, i32) {
    %0 = arith.addi %arg1, %arg2 : i32
    %c0_i32 = arith.constant 0 : i32
    %c0_i32_0 = arith.constant 0 : i32
    %c0_i32_1 = arith.constant 0 : i32
    return %arg0, %0, %c0_i32, %c0_i32_0 : i32, i32, i32, i32
  }
  func.func @transform_1(%arg0: i32, %arg1: i32, %arg2: i32) -> (i32, i32, i32) {
    %c0_i32 = arith.constant 0 : i32
    %c0_i32_0 = arith.constant 0 : i32
    %c0_i32_1 = arith.constant 0 : i32
    return %arg2, %c0_i32, %c0_i32_0 : i32, i32, i32
  }
  func.func @transform_2(%arg0: i32, %arg1: i32, %arg2: i32) -> (i32, i32) {
    %c0_i32 = arith.constant 0 : i32
    %c0_i32_0 = arith.constant 0 : i32
    %c0_i32_1 = arith.constant 0 : i32
    return %c0_i32, %c0_i32_0 : i32, i32
  }
  func.func @transform_3(%arg0: i32, %arg1: i32, %arg2: i32) -> (i32, i32, i32, i32) {
    %c0_i32 = arith.constant 0 : i32
    %c0_i32_0 = arith.constant 0 : i32
    %c0_i32_1 = arith.constant 0 : i32
    return %arg0, %arg1, %c0_i32, %c0_i32_0 : i32, i32, i32, i32
  }
}

module attributes {stable_mosaic.version = 11 : i64} {
  func.func @_conv_rows_kernel(%arg0: i32, %arg1: i32, %arg2: i32, %arg3: memref<1x1x10x128xf32, #tpu.memory_space<vmem>>, %arg4: memref<1x256x64xbf16, #tpu.memory_space<vmem>>, %arg5: memref<1x64xf32, #tpu.memory_space<vmem>>, %arg6: memref<1x1x9x64xf32, #tpu.memory_space<vmem>>, %arg7: memref<9x64xf32, #tpu.memory_space<vmem>>) attributes {dimension_semantics = [#tpu.dimension_semantics<parallel>, #tpu.dimension_semantics<parallel>, #tpu.dimension_semantics<arbitrary>], iteration_bounds = array<i64: 2, 8, 1>, scalar_prefetch = 0 : i64, scratch_operands = 1 : i64, tpu.core_type = #tpu.core_type<tc>, window_params = [{transform_indices = @transform_0, window_bounds = array<i64: 1, 1, 10, 128>}, {transform_indices = @transform_1, window_bounds = array<i64: 1, 256, 64>}, {pipeline_mode = #tpu.pipeline_mode<synchronous>, transform_indices = @transform_2, window_bounds = array<i64: 1, 64>}, {transform_indices = @transform_3, window_bounds = array<i64: 1, 1, 9, 64>}]} {
    %c0_i32 = arith.constant 0 : i32
    %0 = arith.cmpi eq, %arg2, %c0_i32 : i32
    %1 = arith.extui %0 : i1 to i32
    %c0_i32_0 = arith.constant 0 : i32
    %2 = arith.cmpi ne, %1, %c0_i32_0 : i32
    scf.if %2 {
      %cst_13 = arith.constant 0.000000e+00 : f32
      %18 = vector.broadcast %cst_13 : f32 to vector<9x64xf32>
      %c0_14 = arith.constant 0 : index
      %c0_15 = arith.constant 0 : index
      %19 = vector.load %arg7[%c0_14, %c0_15] : memref<9x64xf32, #tpu.memory_space<vmem>>, vector<9x64xf32>
      tpu.vector_store %arg7[%c0_14, %c0_15], %18 {strides = array<i32>} : memref<9x64xf32, #tpu.memory_space<vmem>>, vector<9x64xf32>,
    } else {
    }
    %c0 = arith.constant 0 : index
    %c0_1 = arith.constant 0 : index
    %c0_2 = arith.constant 0 : index
    %3 = vector.load %arg4[%c0, %c0_1, %c0_2] : memref<1x256x64xbf16, #tpu.memory_space<vmem>>, vector<1x256x64xbf16>
    %4 = vector.shape_cast %3 : vector<1x256x64xbf16> to vector<256x64xbf16>
    %c0_3 = arith.constant 0 : index
    %c0_4 = arith.constant 0 : index
    %5 = vector.load %arg7[%c0_3, %c0_4] : memref<9x64xf32, #tpu.memory_space<vmem>>, vector<9x64xf32>
    %c0_5 = arith.constant 0 : index
    %c0_6 = arith.constant 0 : index
    %c0_7 = arith.constant 0 : index
    %c0_8 = arith.constant 0 : index
    %6 = vector.load %arg3[%c0_5, %c0_6, %c0_7, %c0_8] : memref<1x1x10x128xf32, #tpu.memory_space<vmem>>, vector<1x1x10x128xf32>
    %7 = vector.shape_cast %6 : vector<1x1x10x128xf32> to vector<10x128xf32>
    %8 = vector.extract_strided_slice %7 {offsets = [0, 0], sizes = [9, 128], strides = [1, 1]} : vector<10x128xf32> to vector<9x128xf32>
    %9 = vector.extract_strided_slice %7 {offsets = [1, 0], sizes = [9, 128], strides = [1, 1]} : vector<10x128xf32> to vector<9x128xf32>
    %10 = tpu.concatenate %8, %9 in 1 : vector<9x128xf32>, vector<9x128xf32> -> vector<9x256xf32>
    %11 = arith.truncf %10 : vector<9x256xf32> to vector<9x256xbf16>
    %cst = arith.constant dense<0.000000e+00> : vector<9x64xf32>
    %12 = tpu.matmul %11, %4, %cst {dimension_numbers = #tpu.dot_dimension_numbers<[1], [0], [0], [1], [0, 0, 1, 1], [], []>} : vector<9x256xbf16>, vector<256x64xbf16>, vector<9x64xf32> -> vector<9x64xf32>
    %13 = arith.addf %5, %12 : vector<9x64xf32>
    %c0_9 = arith.constant 0 : index
    %c0_10 = arith.constant 0 : index
    %14 = vector.load %arg7[%c0_9, %c0_10] : memref<9x64xf32, #tpu.memory_space<vmem>>, vector<9x64xf32>
    tpu.vector_store %arg7[%c0_9, %c0_10], %13 {strides = array<i32>} : memref<9x64xf32, #tpu.memory_space<vmem>>, vector<9x64xf32>,
    %c0_i32_11 = arith.constant 0 : i32
    %15 = arith.cmpi eq, %arg2, %c0_i32_11 : i32
    %16 = arith.extui %15 : i1 to i32
    %c0_i32_12 = arith.constant 0 : i32
    %17 = arith.cmpi ne, %16, %c0_i32_12 : i32
    scf.if %17 {
      %c0_13 = arith.constant 0 : index
      %c0_14 = arith.constant 0 : index
      %18 = vector.load %arg5[%c0_13, %c0_14] : memref<1x64xf32, #tpu.memory_space<vmem>>, vector<1x64xf32>
      %c0_15 = arith.constant 0 : index
      %c0_16 = arith.constant 0 : index
      %19 = vector.load %arg7[%c0_15, %c0_16] : memref<9x64xf32, #tpu.memory_space<vmem>>, vector<9x64xf32>
      %20 = vector.broadcast %18 : vector<1x64xf32> to vector<9x64xf32>
      %21 = arith.addf %19, %20 : vector<9x64xf32>
      %c0_17 = arith.constant 0 : index
      %c0_18 = arith.constant 0 : index
      %c0_19 = arith.constant 0 : index
      %c0_20 = arith.constant 0 : index
      %22 = vector.load %arg6[%c0_17, %c0_18, %c0_19, %c0_20] : memref<1x1x9x64xf32, #tpu.memory_space<vmem>>, vector<1x1x9x64xf32>
      %23 = vector.shape_cast %22 : vector<1x1x9x64xf32> to vector<9x64xf32>
      %24 = vector.shape_cast %21 : vector<9x64xf32> to vector<1x1x9x64xf32>
      tpu.vector_store %arg6[%c0_17, %c0_18, %c0_19, %c0_20], %24 {strides = array<i32>} : memref<1x1x9x64xf32, #tpu.memory_space<vmem>>, vector<1x1x9x64xf32>,
    } else {
    }
    return
  }
  func.func @transform_0(%arg0: i32, %arg1: i32, %arg2: i32) -> (i32, i32, i32, i32) {
    %0 = arith.addi %arg1, %arg2 : i32
    %c0_i32 = arith.constant 0 : i32
    %c0_i32_0 = arith.constant 0 : i32
    %c0_i32_1 = arith.constant 0 : i32
    return %arg0, %0, %c0_i32, %c0_i32_0 : i32, i32, i32, i32
  }
  func.func @transform_1(%arg0: i32, %arg1: i32, %arg2: i32) -> (i32, i32, i32) {
    %c0_i32 = arith.constant 0 : i32
    %c0_i32_0 = arith.constant 0 : i32
    %c0_i32_1 = arith.constant 0 : i32
    return %arg2, %c0_i32, %c0_i32_0 : i32, i32, i32
  }
  func.func @transform_2(%arg0: i32, %arg1: i32, %arg2: i32) -> (i32, i32) {
    %c0_i32 = arith.constant 0 : i32
    %c0_i32_0 = arith.constant 0 : i32
    %c0_i32_1 = arith.constant 0 : i32
    return %c0_i32, %c0_i32_0 : i32, i32
  }
  func.func @transform_3(%arg0: i32, %arg1: i32, %arg2: i32) -> (i32, i32, i32, i32) {
    %c0_i32 = arith.constant 0 : i32
    %c0_i32_0 = arith.constant 0 : i32
    %c0_i32_1 = arith.constant 0 : i32
    return %arg0, %arg1, %c0_i32, %c0_i32_0 : i32, i32, i32, i32
  }
}

module attributes {stable_mosaic.version = 11 : i64} {
  func.func @_conv_rows_kernel(%arg0: i32, %arg1: i32, %arg2: i32, %arg3: memref<1x1x10x128xf32, #tpu.memory_space<vmem>>, %arg4: memref<1x256x64xbf16, #tpu.memory_space<vmem>>, %arg5: memref<1x64xf32, #tpu.memory_space<vmem>>, %arg6: memref<1x1x8x64xf32, #tpu.memory_space<vmem>>, %arg7: memref<8x64xf32, #tpu.memory_space<vmem>>) attributes {dimension_semantics = [#tpu.dimension_semantics<parallel>, #tpu.dimension_semantics<parallel>, #tpu.dimension_semantics<arbitrary>], iteration_bounds = array<i64: 2, 8, 2>, scalar_prefetch = 0 : i64, scratch_operands = 1 : i64, tpu.core_type = #tpu.core_type<tc>, window_params = [{transform_indices = @transform_0, window_bounds = array<i64: 1, 1, 10, 128>}, {transform_indices = @transform_1, window_bounds = array<i64: 1, 256, 64>}, {pipeline_mode = #tpu.pipeline_mode<synchronous>, transform_indices = @transform_2, window_bounds = array<i64: 1, 64>}, {transform_indices = @transform_3, window_bounds = array<i64: 1, 1, 8, 64>}]} {
    %c0_i32 = arith.constant 0 : i32
    %0 = arith.cmpi eq, %arg2, %c0_i32 : i32
    %1 = arith.extui %0 : i1 to i32
    %c0_i32_0 = arith.constant 0 : i32
    %2 = arith.cmpi ne, %1, %c0_i32_0 : i32
    scf.if %2 {
      %cst_12 = arith.constant 0.000000e+00 : f32
      %18 = vector.broadcast %cst_12 : f32 to vector<8x64xf32>
      %c0_13 = arith.constant 0 : index
      %c0_14 = arith.constant 0 : index
      %19 = vector.load %arg7[%c0_13, %c0_14] : memref<8x64xf32, #tpu.memory_space<vmem>>, vector<8x64xf32>
      tpu.vector_store %arg7[%c0_13, %c0_14], %18 {strides = array<i32>} : memref<8x64xf32, #tpu.memory_space<vmem>>, vector<8x64xf32>,
    } else {
    }
    %c0 = arith.constant 0 : index
    %c0_1 = arith.constant 0 : index
    %c0_2 = arith.constant 0 : index
    %3 = vector.load %arg4[%c0, %c0_1, %c0_2] : memref<1x256x64xbf16, #tpu.memory_space<vmem>>, vector<1x256x64xbf16>
    %4 = vector.shape_cast %3 : vector<1x256x64xbf16> to vector<256x64xbf16>
    %c0_3 = arith.constant 0 : index
    %c0_4 = arith.constant 0 : index
    %5 = vector.load %arg7[%c0_3, %c0_4] : memref<8x64xf32, #tpu.memory_space<vmem>>, vector<8x64xf32>
    %c0_5 = arith.constant 0 : index
    %c0_6 = arith.constant 0 : index
    %c0_7 = arith.constant 0 : index
    %c0_8 = arith.constant 0 : index
    %6 = vector.load %arg3[%c0_5, %c0_6, %c0_7, %c0_8] : memref<1x1x10x128xf32, #tpu.memory_space<vmem>>, vector<1x1x10x128xf32>
    %7 = vector.shape_cast %6 : vector<1x1x10x128xf32> to vector<10x128xf32>
    %8 = vector.extract_strided_slice %7 {offsets = [1, 0], sizes = [8, 128], strides = [1, 1]} : vector<10x128xf32> to vector<8x128xf32>
    %9 = vector.extract_strided_slice %7 {offsets = [2, 0], sizes = [8, 128], strides = [1, 1]} : vector<10x128xf32> to vector<8x128xf32>
    %10 = tpu.concatenate %8, %9 in 1 : vector<8x128xf32>, vector<8x128xf32> -> vector<8x256xf32>
    %11 = arith.truncf %10 : vector<8x256xf32> to vector<8x256xbf16>
    %cst = arith.constant dense<0.000000e+00> : vector<8x64xf32>
    %12 = tpu.matmul %11, %4, %cst {dimension_numbers = #tpu.dot_dimension_numbers<[1], [0], [0], [1], [0, 0, 1, 1], [], []>} : vector<8x256xbf16>, vector<256x64xbf16>, vector<8x64xf32> -> vector<8x64xf32>
    %13 = arith.addf %5, %12 : vector<8x64xf32>
    %c0_9 = arith.constant 0 : index
    %c0_10 = arith.constant 0 : index
    %14 = vector.load %arg7[%c0_9, %c0_10] : memref<8x64xf32, #tpu.memory_space<vmem>>, vector<8x64xf32>
    tpu.vector_store %arg7[%c0_9, %c0_10], %13 {strides = array<i32>} : memref<8x64xf32, #tpu.memory_space<vmem>>, vector<8x64xf32>,
    %c1_i32 = arith.constant 1 : i32
    %15 = arith.cmpi eq, %arg2, %c1_i32 : i32
    %16 = arith.extui %15 : i1 to i32
    %c0_i32_11 = arith.constant 0 : i32
    %17 = arith.cmpi ne, %16, %c0_i32_11 : i32
    scf.if %17 {
      %c0_12 = arith.constant 0 : index
      %c0_13 = arith.constant 0 : index
      %18 = vector.load %arg5[%c0_12, %c0_13] : memref<1x64xf32, #tpu.memory_space<vmem>>, vector<1x64xf32>
      %c0_14 = arith.constant 0 : index
      %c0_15 = arith.constant 0 : index
      %19 = vector.load %arg7[%c0_14, %c0_15] : memref<8x64xf32, #tpu.memory_space<vmem>>, vector<8x64xf32>
      %20 = vector.broadcast %18 : vector<1x64xf32> to vector<8x64xf32>
      %21 = arith.addf %19, %20 : vector<8x64xf32>
      %c0_16 = arith.constant 0 : index
      %c0_17 = arith.constant 0 : index
      %c0_18 = arith.constant 0 : index
      %c0_19 = arith.constant 0 : index
      %22 = vector.load %arg6[%c0_16, %c0_17, %c0_18, %c0_19] : memref<1x1x8x64xf32, #tpu.memory_space<vmem>>, vector<1x1x8x64xf32>
      %23 = vector.shape_cast %22 : vector<1x1x8x64xf32> to vector<8x64xf32>
      %24 = vector.shape_cast %21 : vector<8x64xf32> to vector<1x1x8x64xf32>
      tpu.vector_store %arg6[%c0_16, %c0_17, %c0_18, %c0_19], %24 {strides = array<i32>} : memref<1x1x8x64xf32, #tpu.memory_space<vmem>>, vector<1x1x8x64xf32>,
    } else {
    }
    return
  }
  func.func @transform_0(%arg0: i32, %arg1: i32, %arg2: i32) -> (i32, i32, i32, i32) {
    %0 = arith.addi %arg1, %arg2 : i32
    %c0_i32 = arith.constant 0 : i32
    %c0_i32_0 = arith.constant 0 : i32
    %c0_i32_1 = arith.constant 0 : i32
    return %arg0, %0, %c0_i32, %c0_i32_0 : i32, i32, i32, i32
  }
  func.func @transform_1(%arg0: i32, %arg1: i32, %arg2: i32) -> (i32, i32, i32) {
    %c0_i32 = arith.constant 0 : i32
    %c0_i32_0 = arith.constant 0 : i32
    %c0_i32_1 = arith.constant 0 : i32
    return %arg2, %c0_i32, %c0_i32_0 : i32, i32, i32
  }
  func.func @transform_2(%arg0: i32, %arg1: i32, %arg2: i32) -> (i32, i32) {
    %c0_i32 = arith.constant 0 : i32
    %c0_i32_0 = arith.constant 0 : i32
    %c0_i32_1 = arith.constant 0 : i32
    return %c0_i32, %c0_i32_0 : i32, i32
  }
  func.func @transform_3(%arg0: i32, %arg1: i32, %arg2: i32) -> (i32, i32, i32, i32) {
    %c0_i32 = arith.constant 0 : i32
    %c0_i32_0 = arith.constant 0 : i32
    %c0_i32_1 = arith.constant 0 : i32
    return %arg0, %arg1, %c0_i32, %c0_i32_0 : i32, i32, i32, i32
  }
}

module attributes {stable_mosaic.version = 11 : i64} {
  func.func @_tail_kernel(%arg0: memref<544x64xf32, #tpu.memory_space<vmem>>, %arg1: memref<1x64xf32, #tpu.memory_space<vmem>>, %arg2: memref<1x64xf32, #tpu.memory_space<vmem>>, %arg3: memref<64x32xf32, #tpu.memory_space<vmem>>, %arg4: memref<1x32xf32, #tpu.memory_space<vmem>>, %arg5: memref<1x32xf32, #tpu.memory_space<vmem>>, %arg6: memref<1x32xf32, #tpu.memory_space<vmem>>, %arg7: memref<1x32xf32, #tpu.memory_space<vmem>>, %arg8: memref<1x1xf32, #tpu.memory_space<vmem>>, %arg9: memref<544x1xf32, #tpu.memory_space<vmem>>) attributes {dimension_semantics = [], scalar_prefetch = 0 : i64, scratch_operands = 0 : i64, tpu.core_type = #tpu.core_type<tc>} {
    %c0 = arith.constant 0 : index
    %c0_0 = arith.constant 0 : index
    %0 = vector.load %arg0[%c0, %c0_0] : memref<544x64xf32, #tpu.memory_space<vmem>>, vector<544x64xf32>
    %cst = arith.constant dense<0.000000e+00> : vector<64xf32>
    %1 = vector.multi_reduction <add>, %0, %cst [0] : vector<544x64xf32> to vector<64xf32>
    %2 = vector.shape_cast %1 : vector<64xf32> to vector<1x64xf32>
    %cst_1 = arith.constant 0.0018382353 : f32
    %3 = vector.broadcast %cst_1 : f32 to vector<1x64xf32>
    %4 = arith.mulf %2, %3 : vector<1x64xf32>
    %5 = vector.broadcast %4 : vector<1x64xf32> to vector<544x64xf32>
    %6 = arith.subf %0, %5 : vector<544x64xf32>
    %7 = arith.mulf %6, %6 : vector<544x64xf32>
    %cst_2 = arith.constant dense<0.000000e+00> : vector<64xf32>
    %8 = vector.multi_reduction <add>, %7, %cst_2 [0] : vector<544x64xf32> to vector<64xf32>
    %9 = vector.shape_cast %8 : vector<64xf32> to vector<1x64xf32>
    %cst_3 = arith.constant 0.0018382353 : f32
    %10 = vector.broadcast %cst_3 : f32 to vector<1x64xf32>
    %11 = arith.mulf %9, %10 : vector<1x64xf32>
    %c0_4 = arith.constant 0 : index
    %c0_5 = arith.constant 0 : index
    %12 = vector.load %arg1[%c0_4, %c0_5] : memref<1x64xf32, #tpu.memory_space<vmem>>, vector<1x64xf32>
    %cst_6 = arith.constant 9.99999974E-6 : f32
    %13 = vector.broadcast %cst_6 : f32 to vector<1x64xf32>
    %14 = arith.addf %11, %13 : vector<1x64xf32>
    %15 = math.rsqrt %14 : vector<1x64xf32>
    %16 = arith.mulf %12, %15 : vector<1x64xf32>
    %17 = vector.broadcast %16 : vector<1x64xf32> to vector<544x64xf32>
    %18 = arith.mulf %6, %17 : vector<544x64xf32>
    %c0_7 = arith.constant 0 : index
    %c0_8 = arith.constant 0 : index
    %19 = vector.load %arg2[%c0_7, %c0_8] : memref<1x64xf32, #tpu.memory_space<vmem>>, vector<1x64xf32>
    %20 = vector.broadcast %19 : vector<1x64xf32> to vector<544x64xf32>
    %21 = arith.addf %18, %20 : vector<544x64xf32>
    %c0_9 = arith.constant 0 : index
    %c0_10 = arith.constant 0 : index
    %22 = vector.load %arg3[%c0_9, %c0_10] : memref<64x32xf32, #tpu.memory_space<vmem>>, vector<64x32xf32>
    %cst_11 = arith.constant dense<0.000000e+00> : vector<544x32xf32>
    %23 = tpu.matmul %21, %22, %cst_11 {dimension_numbers = #tpu.dot_dimension_numbers<[1], [0], [0], [1], [0, 0, 1, 1], [], []>} : vector<544x64xf32>, vector<64x32xf32>, vector<544x32xf32> -> vector<544x32xf32>
    %c0_12 = arith.constant 0 : index
    %c0_13 = arith.constant 0 : index
    %24 = vector.load %arg4[%c0_12, %c0_13] : memref<1x32xf32, #tpu.memory_space<vmem>>, vector<1x32xf32>
    %25 = vector.broadcast %24 : vector<1x32xf32> to vector<544x32xf32>
    %26 = arith.addf %23, %25 : vector<544x32xf32>
    %cst_14 = arith.constant dense<0.000000e+00> : vector<32xf32>
    %27 = vector.multi_reduction <add>, %26, %cst_14 [0] : vector<544x32xf32> to vector<32xf32>
    %28 = vector.shape_cast %27 : vector<32xf32> to vector<1x32xf32>
    %cst_15 = arith.constant 0.0018382353 : f32
    %29 = vector.broadcast %cst_15 : f32 to vector<1x32xf32>
    %30 = arith.mulf %28, %29 : vector<1x32xf32>
    %31 = vector.broadcast %30 : vector<1x32xf32> to vector<544x32xf32>
    %32 = arith.subf %26, %31 : vector<544x32xf32>
    %33 = arith.mulf %32, %32 : vector<544x32xf32>
    %cst_16 = arith.constant dense<0.000000e+00> : vector<32xf32>
    %34 = vector.multi_reduction <add>, %33, %cst_16 [0] : vector<544x32xf32> to vector<32xf32>
    %35 = vector.shape_cast %34 : vector<32xf32> to vector<1x32xf32>
    %cst_17 = arith.constant 0.0018382353 : f32
    %36 = vector.broadcast %cst_17 : f32 to vector<1x32xf32>
    %37 = arith.mulf %35, %36 : vector<1x32xf32>
    %c0_18 = arith.constant 0 : index
    %c0_19 = arith.constant 0 : index
    %38 = vector.load %arg5[%c0_18, %c0_19] : memref<1x32xf32, #tpu.memory_space<vmem>>, vector<1x32xf32>
    %cst_20 = arith.constant 9.99999974E-6 : f32
    %39 = vector.broadcast %cst_20 : f32 to vector<1x32xf32>
    %40 = arith.addf %37, %39 : vector<1x32xf32>
    %41 = math.rsqrt %40 : vector<1x32xf32>
    %42 = arith.mulf %38, %41 : vector<1x32xf32>
    %43 = vector.broadcast %42 : vector<1x32xf32> to vector<544x32xf32>
    %44 = arith.mulf %32, %43 : vector<544x32xf32>
    %c0_21 = arith.constant 0 : index
    %c0_22 = arith.constant 0 : index
    %45 = vector.load %arg6[%c0_21, %c0_22] : memref<1x32xf32, #tpu.memory_space<vmem>>, vector<1x32xf32>
    %46 = vector.broadcast %45 : vector<1x32xf32> to vector<544x32xf32>
    %47 = arith.addf %44, %46 : vector<544x32xf32>
    %c0_23 = arith.constant 0 : index
    %c0_24 = arith.constant 0 : index
    %48 = vector.load %arg7[%c0_23, %c0_24] : memref<1x32xf32, #tpu.memory_space<vmem>>, vector<1x32xf32>
    %49 = vector.broadcast %48 : vector<1x32xf32> to vector<544x32xf32>
    %50 = arith.mulf %47, %49 : vector<544x32xf32>
    %cst_25 = arith.constant dense<0.000000e+00> : vector<544xf32>
    %51 = vector.multi_reduction <add>, %50, %cst_25 [1] : vector<544x32xf32> to vector<544xf32>
    %52 = vector.shape_cast %51 : vector<544xf32> to vector<544x1xf32>
    %c0_26 = arith.constant 0 : index
    %c0_27 = arith.constant 0 : index
    %53 = vector.load %arg8[%c0_26, %c0_27] : memref<1x1xf32, #tpu.memory_space<vmem>>, vector<1x1xf32>
    %54 = vector.extract %53[0, 0] : f32 from vector<1x1xf32>
    %55 = vector.broadcast %54 : f32 to vector<544x1xf32>
    %56 = arith.addf %52, %55 : vector<544x1xf32>
    %cst_28 = arith.constant 0.000000e+00 : f32
    %57 = vector.broadcast %cst_28 : f32 to vector<544x1xf32>
    %58 = arith.maximumf %56, %57 : vector<544x1xf32>
    %59 = vector.extract_strided_slice %58 {offsets = [0, 0], sizes = [272, 1], strides = [1, 1]} : vector<544x1xf32> to vector<272x1xf32>
    %60 = vector.extract_strided_slice %58 {offsets = [272, 0], sizes = [272, 1], strides = [1, 1]} : vector<544x1xf32> to vector<272x1xf32>
    %61 = arith.maximumf %59, %60 : vector<272x1xf32>
    %62 = arith.subf %59, %61 : vector<272x1xf32>
    %63 = math.exp %62 : vector<272x1xf32>
    %64 = arith.subf %60, %61 : vector<272x1xf32>
    %65 = math.exp %64 : vector<272x1xf32>
    %66 = arith.addf %63, %65 : vector<272x1xf32>
    %67 = arith.divf %63, %66 : vector<272x1xf32>
    %cst_29 = arith.constant dense<0xFF800000> : vector<1xf32>
    %68 = vector.multi_reduction <maximumf>, %67, %cst_29 [0] : vector<272x1xf32> to vector<1xf32>
    %69 = vector.shape_cast %68 : vector<1xf32> to vector<1x1xf32>
    %70 = vector.broadcast %69 : vector<1x1xf32> to vector<272x1xf32>
    %71 = arith.subf %67, %70 : vector<272x1xf32>
    %72 = math.exp %71 : vector<272x1xf32>
    %cst_30 = arith.constant dense<0.000000e+00> : vector<1xf32>
    %73 = vector.multi_reduction <add>, %72, %cst_30 [0] : vector<272x1xf32> to vector<1xf32>
    %74 = vector.shape_cast %73 : vector<1xf32> to vector<1x1xf32>
    %75 = vector.broadcast %74 : vector<1x1xf32> to vector<272x1xf32>
    %76 = arith.divf %72, %75 : vector<272x1xf32>
    %c0_31 = arith.constant 0 : index
    %c0_32 = arith.constant 0 : index
    %77 = vector.load %arg9[%c0_31, %c0_32] : memref<544x1xf32, #tpu.memory_space<vmem>>, vector<272x1xf32>
    tpu.vector_store %arg9[%c0_31, %c0_32], %76 {strides = array<i32>} : memref<544x1xf32, #tpu.memory_space<vmem>>, vector<272x1xf32>,
    %78 = arith.divf %65, %66 : vector<272x1xf32>
    %cst_33 = arith.constant dense<0xFF800000> : vector<1xf32>
    %79 = vector.multi_reduction <maximumf>, %78, %cst_33 [0] : vector<272x1xf32> to vector<1xf32>
    %80 = vector.shape_cast %79 : vector<1xf32> to vector<1x1xf32>
    %81 = vector.broadcast %80 : vector<1x1xf32> to vector<272x1xf32>
    %82 = arith.subf %78, %81 : vector<272x1xf32>
    %83 = math.exp %82 : vector<272x1xf32>
    %cst_34 = arith.constant dense<0.000000e+00> : vector<1xf32>
    %84 = vector.multi_reduction <add>, %83, %cst_34 [0] : vector<272x1xf32> to vector<1xf32>
    %85 = vector.shape_cast %84 : vector<1xf32> to vector<1x1xf32>
    %86 = vector.broadcast %85 : vector<1x1xf32> to vector<272x1xf32>
    %87 = arith.divf %83, %86 : vector<272x1xf32>
    %c272 = arith.constant 272 : index
    %c0_35 = arith.constant 0 : index
    %88 = vector.load %arg9[%c272, %c0_35] : memref<544x1xf32, #tpu.memory_space<vmem>>, vector<272x1xf32>
    tpu.vector_store %arg9[%c272, %c0_35], %87 {strides = array<i32>} : memref<544x1xf32, #tpu.memory_space<vmem>>, vector<272x1xf32>,
    return
  }
}

module attributes {stable_mosaic.version = 11 : i64} {
  func.func @_conv_rows_kernel(%arg0: i32, %arg1: i32, %arg2: i32, %arg3: memref<1x1x10x128xf32, #tpu.memory_space<vmem>>, %arg4: memref<1x256x64xbf16, #tpu.memory_space<vmem>>, %arg5: memref<1x64xf32, #tpu.memory_space<vmem>>, %arg6: memref<1x1x8x64xf32, #tpu.memory_space<vmem>>, %arg7: memref<8x64xf32, #tpu.memory_space<vmem>>) attributes {dimension_semantics = [#tpu.dimension_semantics<parallel>, #tpu.dimension_semantics<parallel>, #tpu.dimension_semantics<arbitrary>], iteration_bounds = array<i64: 2, 8, 1>, scalar_prefetch = 0 : i64, scratch_operands = 1 : i64, tpu.core_type = #tpu.core_type<tc>, window_params = [{transform_indices = @transform_0, window_bounds = array<i64: 1, 1, 10, 128>}, {transform_indices = @transform_1, window_bounds = array<i64: 1, 256, 64>}, {pipeline_mode = #tpu.pipeline_mode<synchronous>, transform_indices = @transform_2, window_bounds = array<i64: 1, 64>}, {transform_indices = @transform_3, window_bounds = array<i64: 1, 1, 8, 64>}]} {
    %c0_i32 = arith.constant 0 : i32
    %0 = arith.cmpi eq, %arg2, %c0_i32 : i32
    %1 = arith.extui %0 : i1 to i32
    %c0_i32_0 = arith.constant 0 : i32
    %2 = arith.cmpi ne, %1, %c0_i32_0 : i32
    scf.if %2 {
      %cst_13 = arith.constant 0.000000e+00 : f32
      %18 = vector.broadcast %cst_13 : f32 to vector<8x64xf32>
      %c0_14 = arith.constant 0 : index
      %c0_15 = arith.constant 0 : index
      %19 = vector.load %arg7[%c0_14, %c0_15] : memref<8x64xf32, #tpu.memory_space<vmem>>, vector<8x64xf32>
      tpu.vector_store %arg7[%c0_14, %c0_15], %18 {strides = array<i32>} : memref<8x64xf32, #tpu.memory_space<vmem>>, vector<8x64xf32>,
    } else {
    }
    %c0 = arith.constant 0 : index
    %c0_1 = arith.constant 0 : index
    %c0_2 = arith.constant 0 : index
    %3 = vector.load %arg4[%c0, %c0_1, %c0_2] : memref<1x256x64xbf16, #tpu.memory_space<vmem>>, vector<1x256x64xbf16>
    %4 = vector.shape_cast %3 : vector<1x256x64xbf16> to vector<256x64xbf16>
    %c0_3 = arith.constant 0 : index
    %c0_4 = arith.constant 0 : index
    %5 = vector.load %arg7[%c0_3, %c0_4] : memref<8x64xf32, #tpu.memory_space<vmem>>, vector<8x64xf32>
    %c0_5 = arith.constant 0 : index
    %c0_6 = arith.constant 0 : index
    %c0_7 = arith.constant 0 : index
    %c0_8 = arith.constant 0 : index
    %6 = vector.load %arg3[%c0_5, %c0_6, %c0_7, %c0_8] : memref<1x1x10x128xf32, #tpu.memory_space<vmem>>, vector<1x1x10x128xf32>
    %7 = vector.shape_cast %6 : vector<1x1x10x128xf32> to vector<10x128xf32>
    %8 = vector.extract_strided_slice %7 {offsets = [1, 0], sizes = [8, 128], strides = [1, 1]} : vector<10x128xf32> to vector<8x128xf32>
    %9 = vector.extract_strided_slice %7 {offsets = [2, 0], sizes = [8, 128], strides = [1, 1]} : vector<10x128xf32> to vector<8x128xf32>
    %10 = tpu.concatenate %8, %9 in 1 : vector<8x128xf32>, vector<8x128xf32> -> vector<8x256xf32>
    %11 = arith.truncf %10 : vector<8x256xf32> to vector<8x256xbf16>
    %cst = arith.constant dense<0.000000e+00> : vector<8x64xf32>
    %12 = tpu.matmul %11, %4, %cst {dimension_numbers = #tpu.dot_dimension_numbers<[1], [0], [0], [1], [0, 0, 1, 1], [], []>} : vector<8x256xbf16>, vector<256x64xbf16>, vector<8x64xf32> -> vector<8x64xf32>
    %13 = arith.addf %5, %12 : vector<8x64xf32>
    %c0_9 = arith.constant 0 : index
    %c0_10 = arith.constant 0 : index
    %14 = vector.load %arg7[%c0_9, %c0_10] : memref<8x64xf32, #tpu.memory_space<vmem>>, vector<8x64xf32>
    tpu.vector_store %arg7[%c0_9, %c0_10], %13 {strides = array<i32>} : memref<8x64xf32, #tpu.memory_space<vmem>>, vector<8x64xf32>,
    %c0_i32_11 = arith.constant 0 : i32
    %15 = arith.cmpi eq, %arg2, %c0_i32_11 : i32
    %16 = arith.extui %15 : i1 to i32
    %c0_i32_12 = arith.constant 0 : i32
    %17 = arith.cmpi ne, %16, %c0_i32_12 : i32
    scf.if %17 {
      %c0_13 = arith.constant 0 : index
      %c0_14 = arith.constant 0 : index
      %18 = vector.load %arg5[%c0_13, %c0_14] : memref<1x64xf32, #tpu.memory_space<vmem>>, vector<1x64xf32>
      %c0_15 = arith.constant 0 : index
      %c0_16 = arith.constant 0 : index
      %19 = vector.load %arg7[%c0_15, %c0_16] : memref<8x64xf32, #tpu.memory_space<vmem>>, vector<8x64xf32>
      %20 = vector.broadcast %18 : vector<1x64xf32> to vector<8x64xf32>
      %21 = arith.addf %19, %20 : vector<8x64xf32>
      %c0_17 = arith.constant 0 : index
      %c0_18 = arith.constant 0 : index
      %c0_19 = arith.constant 0 : index
      %c0_20 = arith.constant 0 : index
      %22 = vector.load %arg6[%c0_17, %c0_18, %c0_19, %c0_20] : memref<1x1x8x64xf32, #tpu.memory_space<vmem>>, vector<1x1x8x64xf32>
      %23 = vector.shape_cast %22 : vector<1x1x8x64xf32> to vector<8x64xf32>
      %24 = vector.shape_cast %21 : vector<8x64xf32> to vector<1x1x8x64xf32>
      tpu.vector_store %arg6[%c0_17, %c0_18, %c0_19, %c0_20], %24 {strides = array<i32>} : memref<1x1x8x64xf32, #tpu.memory_space<vmem>>, vector<1x1x8x64xf32>,
    } else {
    }
    return
  }
  func.func @transform_0(%arg0: i32, %arg1: i32, %arg2: i32) -> (i32, i32, i32, i32) {
    %0 = arith.addi %arg1, %arg2 : i32
    %c0_i32 = arith.constant 0 : i32
    %c0_i32_0 = arith.constant 0 : i32
    %c0_i32_1 = arith.constant 0 : i32
    return %arg0, %0, %c0_i32, %c0_i32_0 : i32, i32, i32, i32
  }
  func.func @transform_1(%arg0: i32, %arg1: i32, %arg2: i32) -> (i32, i32, i32) {
    %c0_i32 = arith.constant 0 : i32
    %c0_i32_0 = arith.constant 0 : i32
    %c0_i32_1 = arith.constant 0 : i32
    return %arg2, %c0_i32, %c0_i32_0 : i32, i32, i32
  }
  func.func @transform_2(%arg0: i32, %arg1: i32, %arg2: i32) -> (i32, i32) {
    %c0_i32 = arith.constant 0 : i32
    %c0_i32_0 = arith.constant 0 : i32
    %c0_i32_1 = arith.constant 0 : i32
    return %c0_i32, %c0_i32_0 : i32, i32
  }
  func.func @transform_3(%arg0: i32, %arg1: i32, %arg2: i32) -> (i32, i32, i32, i32) {
    %c0_i32 = arith.constant 0 : i32
    %c0_i32_0 = arith.constant 0 : i32
    %c0_i32_1 = arith.constant 0 : i32
    return %arg0, %arg1, %c0_i32, %c0_i32_0 : i32, i32, i32, i32
  }
}

</mosaic_0001>

<bundles_post_ra>
// kernel: home_forward.9
= control target key start
LH: loop header
LB: loop body
LE: loop exit
PB: predicated region body
PF: predicated region fallthrough
CT: control target
= control target key end

     0   :  { %vm12_vm0 = vcmask 523264   ;;  %v421_v0 = vmov 0.0   ;;  %vm214_vm1 = vcmask 516096   ;;  %s1302_s0 = inlined_call_operand.vmem [shape: f32[512,64], index: 0, kind: input, shape index: {}]   ;;  %s1303_s1 = inlined_call_operand.vmem [shape: f32[8,64], index: 1, kind: output, shape index: {}]  }
   0x1   :  { %13 = vst.msk [vmem:[%s1303_s1] sm:$0xff] %vm12_vm0, %v421_v0  ;;  %v439_v1 = vld [vmem:[%s1302_s0] sm:$0xff]  ;;  %v444_v2 = vld [vmem:[%s1302_s0 + $0x8] sm:$0xff]  ;;  %v449_v3 = vld [vmem:[%s1302_s0 + $0x10] sm:$0xff] }
   0x2   :  { %v80_v4 = vsel %vm12_vm0, %v439_v1, 0.0  ;;  %v81_v5 = vsel %vm12_vm0, %v444_v2, 0.0  ;;  %v83_v6 = vsel %vm12_vm0, %v449_v3, 0.0  ;;  %v460_v7 = vld [vmem:[%s1302_s0 + $0x18] sm:$0xff]  ;;  %v467_v10 = vld [vmem:[%s1302_s0 + $0x20] sm:$0xff]  ;;  %v474_v13 = vld [vmem:[%s1302_s0 + $0x28] sm:$0xff] }
   0x3   :  { %v82_v8 = vadd.f32 %v81_v5, %v80_v4  ;;  %v85_v9 = vsel %vm12_vm0, %v460_v7, 0.0  ;;  %v87_v12 = vsel %vm12_vm0, %v467_v10, 0.0  ;;  %v89_v15 = vsel %vm12_vm0, %v474_v13, 0.0  ;;  %v481_v16 = vld [vmem:[%s1302_s0 + $0x30] sm:$0xff]  ;;  %v486_v18 = vld [vmem:[%s1302_s0 + $0x38] sm:$0xff]  ;;  %v491_v19 = vld [vmem:[%s1302_s0 + $0x40] sm:$0xff] }
   0x4   :  { %v91_v20 = vsel %vm12_vm0, %v481_v16, 0.0  ;;  %v498_v21 = vld [vmem:[%s1302_s0 + $0x48] sm:$0xff]  ;;  %v503_v22 = vld [vmem:[%s1302_s0 + $0x50] sm:$0xff]  ;;  %v508_v23 = vld [vmem:[%s1302_s0 + $0x58] sm:$0xff]  ;;  %v93_v25 = vsel %vm12_vm0, %v486_v18, 0.0  ;;  %v95_v26 = vsel %vm12_vm0, %v491_v19, 0.0 }
   0x5   :  { %v84_v11 = vadd.f32 %v83_v6, %v82_v8  ;;  %v517_v27 = vld [vmem:[%s1302_s0 + $0x108] sm:$0xff]  ;;  %v522_v28 = vld [vmem:[%s1302_s0 + $0x110] sm:$0xff]  ;;  %v527_v29 = vld [vmem:[%s1302_s0 + $0x118] sm:$0xff]  ;;  %v97_v30 = vsel %vm12_vm0, %v498_v21, 0.0  ;;  %v99_v31 = vsel %vm12_vm0, %v503_v22, 0.0  ;;  %v535_v32 = vsel %vm12_vm0, %v508_v23, 0.0 }
   0x6   :  { %v540_v33 = vld [vmem:[%s1302_s0 + $0x120] sm:$0xff]  ;;  %v545_v34 = vld [vmem:[%s1302_s0 + $0x128] sm:$0xff]  ;;  %v550_v35 = vld [vmem:[%s1302_s0 + $0x130] sm:$0xff]  ;;  %v554_v37 = vsel %vm12_vm0, %v517_v27, 0.0  ;;  %v558_v38 = vsel %vm12_vm0, %v522_v28, 0.0  ;;  %v562_v39 = vsel %vm12_vm0, %v527_v29, 0.0 }
   0x7   :  { %v86_v14 = vadd.f32 %v85_v9, %v84_v11  ;;  %1322 = vst [vmem:[#allocation2_spill] sm:$0xff] %v554_v37  ;;  %1323 = vst [vmem:[#allocation3_spill] sm:$0xff] %v558_v38  ;;  %v567_v40 = vld [vmem:[%s1302_s0 + $0x138] sm:$0xff]  ;;  %v572_v41 = vld [vmem:[%s1302_s0 + $0x140] sm:$0xff]  ;;  %v581_v43 = vsel %vm12_vm0, %v540_v33, 0.0  ;;  %v585_v44 = vsel %vm12_vm0, %v545_v34, 0.0 }
   0x8   :  { %1324 = vst [vmem:[#allocation4_spill] sm:$0xff] %v562_v39  ;;  %v577_v42 = vld [vmem:[%s1302_s0 + $0x148] sm:$0xff]  ;;  %1325 = vst [vmem:[#allocation5_spill] sm:$0xff] %v581_v43  ;;  %v589_v45 = vsel %vm12_vm0, %v550_v35, 0.0  ;;  %v594_v46 = vld [vmem:[%s1302_s0 + $0x150] sm:$0xff]  ;;  %v608_v50 = vsel %vm12_vm0, %v567_v40, 0.0 }
   0x9   :  { %v88_v17 = vadd.f32 %v87_v12, %v86_v14  ;;  %1326 = vst [vmem:[#allocation6_spill] sm:$0xff] %v585_v44  ;;  %1327 = vst [vmem:[#allocation7_spill] sm:$0xff] %v589_v45  ;;  %v599_v47 = vld [vmem:[%s1302_s0 + $0x158] sm:$0xff]  ;;  %v604_v48 = vld [vmem:[%s1302_s0 + $0x160] sm:$0xff]  ;;  %v612_v51 = vsel %vm12_vm0, %v572_v41, 0.0  ;;  %v616_v52 = vsel %vm12_vm0, %v577_v42, 0.0  ;;  %v219_v45 = vmul.f32 %v449_v3, %v449_v3 }
   0xa   :  { %1328 = vst [vmem:[#allocation8_spill] sm:$0xff] %v608_v50  ;;  %1329 = vst [vmem:[#allocation9_spill] sm:$0xff] %v612_v51  ;;  %v621_v53 = vld [vmem:[%s1302_s0 + $0x168] sm:$0xff]  ;;  %v626_v54 = vld [vmem:[%s1302_s0 + $0x170] sm:$0xff]  ;;  %v635_v56 = vsel %vm12_vm0, %v594_v46, 0.0  ;;  %v639_v57 = vsel %vm12_vm0, %v599_v47, 0.0 }
   0xb   :  { %v90_v24 = vadd.f32 %v89_v15, %v88_v17  ;;  %1330 = vst [vmem:[#allocation10_spill] sm:$0xff] %v616_v52  ;;  %v631_v55 = vld [vmem:[%s1302_s0 + $0x178] sm:$0xff]  ;;  %1331 = vst [vmem:[#allocation11_spill] sm:$0xff] %v635_v56  ;;  %v643_v58 = vsel %vm12_vm0, %v604_v48, 0.0  ;;  %v648_v59 = vld [vmem:[%s1302_s0 + $0x180] sm:$0xff]  ;;  %v662_v63 = vsel %vm12_vm0, %v621_v53, 0.0 }
   0xc   :  { %1332 = vst [vmem:[#allocation12_spill] sm:$0xff] %v639_v57  ;;  %1333 = vst [vmem:[#allocation13_spill] sm:$0xff] %v643_v58  ;;  %v653_v60 = vld [vmem:[%s1302_s0 + $0x188] sm:$0xff]  ;;  %v658_v61 = vld [vmem:[%s1302_s0 + $0x190] sm:$0xff]  ;;  %v666_v0 = vsel %vm12_vm0, %v626_v54, 0.0  ;;  %v670_v4 = vsel %vm12_vm0, %v631_v55, 0.0 }
   0xd   :  { %v92_v36 = vadd.f32 %v91_v20, %v90_v24  ;;  %1334 = vst [vmem:[#allocation14_spill] sm:$0xff] %v662_v63  ;;  %1335 = vst [vmem:[#allocation15_spill] sm:$0xff] %v666_v0  ;;  %v675_v5 = vld [vmem:[%s1302_s0 + $0x198] sm:$0xff]  ;;  %v680_v6 = vld [vmem:[%s1302_s0 + $0x1a0] sm:$0xff]  ;;  %v689_v9 = vsel %vm12_vm0, %v648_v59, 0.0  ;;  %v693_v11 = vsel %vm12_vm0, %v653_v60, 0.0 }
   0xe   :  { %1336 = vst [vmem:[#allocation16_spill] sm:$0xff] %v670_v4  ;;  %v685_v8 = vld [vmem:[%s1302_s0 + $0x1a8] sm:$0xff]  ;;  %1337 = vst [vmem:[#allocation17_spill] sm:$0xff] %v689_v9  ;;  %v697_v12 = vsel %vm12_vm0, %v658_v61, 0.0  ;;  %v702_v14 = vld [vmem:[%s1302_s0 + $0x60] sm:$0xff] }
   0xf   :  { %v94_v49 = vadd.f32 %v93_v25, %v92_v36  ;;  %1338 = vst [vmem:[#allocation18_spill] sm:$0xff] %v693_v11  ;;  %1339 = vst [vmem:[#allocation19_spill] sm:$0xff] %v697_v12  ;;  %v707_v15 = vld [vmem:[%s1302_s0 + $0x1b0] sm:$0xff]  ;;  %v712_v17 = vld [vmem:[%s1302_s0 + $0x1b8] sm:$0xff]  ;;  %v721_v25 = vsel %vm12_vm0, %v675_v5, 0.0  ;;  %v729_v36 = vsel %vm12_vm0, %v685_v8, 0.0 }
  0x10   :  { %v717_v20 = vld [vmem:[%s1302_s0 + $0x1c0] sm:$0xff]  ;;  %1340 = vst [vmem:[#allocation20_spill] sm:$0xff] %v721_v25  ;;  %1342 = vst [vmem:[#allocation22_spill] sm:$0xff] %v729_v36  ;;  %v752_v36 = vsel %vm12_vm0, %v712_v17, 0.0  ;;  %v766_v11 = vld [vmem:[%s1302_s0 + $0x1e8] sm:$0xff] }
  0x11   :  { %v96_v62 = vadd.f32 %v95_v26, %v94_v49  ;;  %v725_v26 = vsel %vm12_vm0, %v680_v6, 0.0  ;;  %v734_v49 = vld [vmem:[%s1302_s0 + $0x1c8] sm:$0xff]  ;;  %1344 = vst [vmem:[#allocation24_spill] sm:$0xff] %v752_v36  ;;  %v756_v25 = vsel %vm12_vm0, %v717_v20, 0.0  ;;  %v761_v12 = vld [vmem:[%s1302_s0 + $0x1e0] sm:$0xff]  ;;  %v788_v0 = vld [vmem:[%s1302_s0 + $0x1f8] sm:$0xff] }
  0x12   :  { %1341 = vst [vmem:[#allocation21_spill] sm:$0xff] %v725_v26  ;;  %v748_v26 = vsel %vm12_vm0, %v707_v15, 0.0  ;;  %1345 = vst [vmem:[#allocation25_spill] sm:$0xff] %v756_v25  ;;  %v775_v9 = vsel %vm12_vm0, %v734_v49, 0.0  ;;  %v810_v58 = vsel %vm12_vm0, %v788_v0, 0.0  ;;  %v842_v56 = vld [vmem:[%s1302_s0 + $0x98] sm:$0xff] }
  0x13   :  { %v98_v24 = vadd.f32 %v97_v30, %v96_v62  ;;  %v739_v30 = vld [vmem:[%s1302_s0 + $0x1d0] sm:$0xff]  ;;  %v744_v62 = vld [vmem:[%s1302_s0 + $0x1d8] sm:$0xff]  ;;  %1343 = vst [vmem:[#allocation23_spill] sm:$0xff] %v748_v26  ;;  %1347 = vst [vmem:[#allocation27_spill] sm:$0xff] %v775_v9  ;;  %v798_v9 = vsel %vm12_vm0, %v766_v11, 0.0  ;;  %v117_v3 = vsel %vm12_vm0, %v842_v56, 0.0 }
  0x14   :  { %v771_v26 = vld [vmem:[%s1302_s0 + $0x1f0] sm:$0xff]  ;;  %v779_v25 = vsel %vm12_vm0, %v739_v30, 0.0  ;;  %v783_v4 = vsel %vm12_vm0, %v744_v62, 0.0  ;;  %1350 = vst [vmem:[#allocation30_spill] sm:$0xff] %v788_v0  ;;  %1352 = vst [vmem:[#allocation32_spill] sm:$0xff] %v798_v9  ;;  %v847_v52 = vld [vmem:[%s1302_s0 + $0xa0] sm:$0xff] }
  0x15   :  { %1346 = vst [vmem:[#allocation26_spill] sm:$0xff] %v771_v26  ;;  %v100_v36 = vadd.f32 %v99_v31, %v98_v24  ;;  %1348 = vst [vmem:[#allocation28_spill] sm:$0xff] %v779_v25  ;;  %v103_v31 = vsel %vm12_vm0, %v702_v14, 0.0  ;;  %v794_v24 = vsel %vm12_vm0, %v761_v12, 0.0  ;;  %v802_v25 = vsel %vm12_vm0, %v771_v26, 0.0  ;;  %v28_v9 = vld [vmem:[%s1302_s0 + $0x70] sm:$0xff] }
  0x16   :  { %1349 = vst [vmem:[#allocation29_spill] sm:$0xff] %v783_v4  ;;  %1351 = vst [vmem:[#allocation31_spill] sm:$0xff] %v794_v24  ;;  %v27_v4 = vld [vmem:[%s1302_s0 + $0x68] sm:$0xff]  ;;  %v863_v43 = vld [vmem:[%s1302_s0 + $0xb0] sm:$0xff] }
  0x17   :  { %1353 = vst [vmem:[#allocation33_spill] sm:$0xff] %v802_v25  ;;  %v102_v63 = vadd.f32 %v535_v32, %v100_v36  ;;  %1354 = vst [vmem:[#allocation34_spill] sm:$0xff] %v810_v58  ;;  %v105_v24 = vsel %vm12_vm0, %v27_v4, 0.0  ;;  %v819_v25 = vld [vmem:[%s1302_s0 + $0x78] sm:$0xff]  ;;  %v824_v32 = vld [vmem:[%s1302_s0 + $0x80] sm:$0xff]  ;;  %v107_v58 = vsel %vm12_vm0, %v28_v9, 0.0 }
  0x18   :  { %1355 = vst [vmem:[#allocation35_spill] sm:$0xff] %v819_v25  ;;  %1356 = vst [vmem:[#allocation36_spill] sm:$0xff] %v824_v32  ;;  %v829_v36 = vld [vmem:[%s1302_s0 + $0x88] sm:$0xff]  ;;  %v109_v50 = vsel %vm12_vm0, %v819_v25, 0.0  ;;  %v876_v39 = vld [vmem:[%s1302_s0 + $0xb8] sm:$0xff] }
  0x19   :  { %v104_v57 = vadd.f32 %v103_v31, %v102_v63  ;;  %1357 = vst [vmem:[#allocation37_spill] sm:$0xff] %v829_v36  ;;  %v217_v63 = vmul.f32 %v439_v1, %v439_v1  ;;  %v837_v31 = vld [vmem:[%s1302_s0 + $0x90] sm:$0xff]  ;;  %1359 = vst [vmem:[#allocation39_spill] sm:$0xff] %v842_v56  ;;  %v218_v1 = vmul.f32 %v444_v2, %v444_v2  ;;  %v858_v44 = vld [vmem:[%s1302_s0 + $0xa8] sm:$0xff] }
  0x1a   :  { %1358 = vst [vmem:[#allocation38_spill] sm:$0xff] %v837_v31  ;;  %1360 = vst [vmem:[#allocation40_spill] sm:$0xff] %v847_v52  ;;  %v115_v2 = vsel %vm12_vm0, %v837_v31, 0.0  ;;  %v881_v38 = vld [vmem:[%s1302_s0 + $0xc0] sm:$0xff]  ;;  %v886_v37 = vld [vmem:[%s1302_s0 + $0xc8] sm:$0xff]  ;;  %v119_v31 = vsel %vm12_vm0, %v847_v52, 0.0 }
  0x1b   :  { %v106_v51 = vadd.f32 %v105_v24, %v104_v57  ;;  %1361 = vst [vmem:[#allocation41_spill] sm:$0xff] %v858_v44  ;;  %1362 = vst [vmem:[#allocation42_spill] sm:$0xff] %v863_v43  ;;  %v111_v57 = vsel %vm12_vm0, %v824_v32, 0.0  ;;  %v113_v24 = vsel %vm12_vm0, %v829_v36, 0.0  ;;  %v121_v56 = vsel %vm12_vm0, %v858_v44, 0.0  ;;  %v897_v25 = vld [vmem:[%s1302_s0 + $0xd0] sm:$0xff] }
  0x1c   :  { %1363 = vst [vmem:[#allocation43_spill] sm:$0xff] %v876_v39  ;;  %1364 = vst [vmem:[#allocation44_spill] sm:$0xff] %v881_v38  ;;  %v220_v32 = vmul.f32 %v460_v7, %v460_v7  ;;  %v902_v0 = vld [vmem:[%s1302_s0 + $0xd8] sm:$0xff]  ;;  %v914_v7 = vsel %vm12_vm0, %v881_v38, 0.0  ;;  %v918_v44 = vsel %vm12_vm0, %v886_v37, 0.0  ;;  %v923_v52 = vld [vmem:[%s1302_s0 + $0xe0] sm:$0xff] }
  0x1d   :  { %1365 = vst [vmem:[#allocation45_spill] sm:$0xff] %v886_v37  ;;  %v108_v36 = vadd.f32 %v107_v58, %v106_v51  ;;  %1366 = vst [vmem:[#allocation46_spill] sm:$0xff] %v897_v25  ;;  %v906_v51 = vsel %vm12_vm0, %v863_v43, 0.0  ;;  %v910_v58 = vsel %vm12_vm0, %v876_v39, 0.0  ;;  %v928_v43 = vld [vmem:[%s1302_s0 + $0xe8] sm:$0xff]  ;;  %v933_v39 = vld [vmem:[%s1302_s0 + $0xf0] sm:$0xff] }
  0x1e   :  { %1367 = vst [vmem:[#allocation47_spill] sm:$0xff] %v902_v0  ;;  %1368 = vst [vmem:[#allocation48_spill] sm:$0xff] %v910_v58  ;;  %v937_v37 = vsel %vm12_vm0, %v897_v25, 0.0  ;;  %v947_v58 = vsel %vm12_vm0, %v923_v52, 0.0  ;;  %v951_v26 = vsel %vm12_vm0, %v928_v43, 0.0  ;;  %v223_v25 = vmul.f32 %v481_v16, %v481_v16 }
  0x1f   :  { %1369 = vst [vmem:[#allocation49_spill] sm:$0xff] %v914_v7  ;;  %1370 = vst [vmem:[#allocation50_spill] sm:$0xff] %v918_v44  ;;  %v110_v38 = vadd.f32 %v109_v50, %v108_v36  ;;  %v941_v44 = vsel %vm12_vm0, %v902_v0, 0.0  ;;  %v221_v7 = vmul.f32 %v467_v10, %v467_v10  ;;  %v955_v50 = vsel %vm12_vm0, %v933_v39, 0.0 }
  0x20   :  { %1371 = vst [vmem:[#allocation51_spill] sm:$0xff] %v923_v52  ;;  %1372 = vst [vmem:[#allocation52_spill] sm:$0xff] %v928_v43  ;;  %v222_v36 = vmul.f32 %v474_v13, %v474_v13  ;;  %v224_v10 = vmul.f32 %v486_v18, %v486_v18  ;;  %v225_v52 = vmul.f32 %v491_v19, %v491_v19 }
  0x21   :  { %1373 = vst [vmem:[#allocation53_spill] sm:$0xff] %v933_v39  ;;  %1374 = vst [vmem:[#allocation54_spill] sm:$0xff] %v955_v50  ;;  %v112_v0 = vadd.f32 %v111_v57, %v110_v38  ;;  %v226_v43 = vmul.f32 %v498_v21, %v498_v21  ;;  %v227_v39 = vmul.f32 %v503_v22, %v503_v22 }
  0x22   :  { %v228_v50 = vmul.f32 %v508_v23, %v508_v23  ;;  %v229_v13 = vmul.f32 %v702_v14, %v702_v14  ;;  %v973_v16 = vmul.f32 %v27_v4, %v27_v4  ;;  %v975_v57 = vmul.f32 %v28_v9, %v28_v9 }
  0x23   :  { %v114_v38 = vadd.f32 %v113_v24, %v112_v0  ;;  %v250_v18 = vmul.f32 %v517_v27, %v517_v27  ;;  %v251_v19 = vmul.f32 %v522_v28, %v522_v28  ;;  %v252_v21 = vmul.f32 %v527_v29, %v527_v29 }
  0x24   :  { %v253_v22 = vmul.f32 %v540_v33, %v540_v33  ;;  %v254_v23 = vmul.f32 %v545_v34, %v545_v34  ;;  %v255_v4 = vmul.f32 %v550_v35, %v550_v35  ;;  %v256_v9 = vmul.f32 %v567_v40, %v567_v40 }
  0x25   :  { %v116_v0 = vadd.f32 %v115_v2, %v114_v38  ;;  %v257_v27 = vmul.f32 %v572_v41, %v572_v41  ;;  %v258_v28 = vmul.f32 %v577_v42, %v577_v42  ;;  %v259_v29 = vmul.f32 %v594_v46, %v594_v46  ;;  %v1375_v38 = vld [vmem:[#allocation26_spill] sm:$0xff] }
  0x26   :  { %v260_v33 = vmul.f32 %v599_v47, %v599_v47  ;;  %v281_v34 = vsel %vm12_vm0, %v217_v63, 0.0  ;;  %v261_v35 = vmul.f32 %v604_v48, %v604_v48  ;;  %v282_v40 = vsel %vm12_vm0, %v218_v1, 0.0 }
  0x27   :  { %v118_v14 = vadd.f32 %v117_v3, %v116_v0  ;;  %v284_v24 = vsel %vm12_vm0, %v219_v45, 0.0  ;;  %v262_v41 = vmul.f32 %v621_v53, %v621_v53  ;;  %v263_v42 = vmul.f32 %v626_v54, %v626_v54 }
  0x28   :  { %v264_v46 = vmul.f32 %v631_v55, %v631_v55  ;;  %v283_v47 = vadd.f32 %v282_v40, %v281_v34  ;;  %v265_v63 = vmul.f32 %v648_v59, %v648_v59  ;;  %v266_v48 = vmul.f32 %v653_v60, %v653_v60  ;;  %v1376_v34 = vld [vmem:[#allocation48_spill] sm:$0xff] }
  0x29   :  { %v120_v2 = vadd.f32 %v119_v31, %v118_v14  ;;  %v286_v1 = vsel %vm12_vm0, %v220_v32, 0.0  ;;  %v267_v45 = vmul.f32 %v658_v61, %v658_v61  ;;  %v268_v53 = vmul.f32 %v675_v5, %v675_v5  ;;  %v1377_v14 = vld [vmem:[#allocation30_spill] sm:$0xff] }
  0x2a   :  { %v269_v54 = vmul.f32 %v680_v6, %v680_v6  ;;  %v285_v55 = vadd.f32 %v284_v24, %v283_v47  ;;  %v270_v31 = vmul.f32 %v685_v8, %v685_v8  ;;  %v271_v59 = vmul.f32 %v707_v15, %v707_v15  ;;  %v1378_v47 = vld [vmem:[#allocation49_spill] sm:$0xff] }
  0x2b   :  { %v122_v3 = vadd.f32 %v121_v56, %v120_v2  ;;  %v288_v60 = vsel %vm12_vm0, %v221_v7, 0.0  ;;  %v272_v32 = vmul.f32 %v712_v17, %v712_v17  ;;  %v273_v61 = vmul.f32 %v717_v20, %v717_v20 }
  0x2c   :  { %v274_v5 = vmul.f32 %v734_v49, %v734_v49  ;;  %v287_v6 = vadd.f32 %v286_v1, %v285_v55  ;;  %v275_v8 = vmul.f32 %v739_v30, %v739_v30  ;;  %v276_v15 = vmul.f32 %v744_v62, %v744_v62 }
  0x2d   :  { %v124_v56 = vadd.f32 %v906_v51, %v122_v3  ;;  %v290_v7 = vsel %vm12_vm0, %v222_v36, 0.0  ;;  %v277_v17 = vmul.f32 %v761_v12, %v761_v12  ;;  %v278_v20 = vmul.f32 %v766_v11, %v766_v11 }
  0x2e   :  { %v279_v49 = vmul.f32 %v1375_v38, %v1375_v38  ;;  %v289_v0 = vadd.f32 %v288_v60, %v287_v6  ;;  %v280_v30 = vmul.f32 %v1377_v14, %v1377_v14  ;;  %v292_v40 = vsel %vm12_vm0, %v223_v25, 0.0  ;;  %v1381_v14 = vld [vmem:[#allocation35_spill] sm:$0xff] }
  0x2f   :  { %v126_v51 = vadd.f32 %v1376_v34, %v124_v56  ;;  %v294_v62 = vsel %vm12_vm0, %v224_v10, 0.0  ;;  %v296_v24 = vsel %vm12_vm0, %v225_v52, 0.0  ;;  %v298_v12 = vsel %vm12_vm0, %v226_v43, 0.0  ;;  %v1163_v34 = vld [vmem:[%s1302_s0 + $0x100] sm:$0xff] }
  0x30   :  { %v291_v36 = vadd.f32 %v290_v7, %v289_v0  ;;  %v300_v11 = vsel %vm12_vm0, %v227_v39, 0.0  ;;  %v302_v1 = vsel %vm12_vm0, %v228_v50, 0.0  ;;  %v304_v55 = vsel %vm12_vm0, %v229_v13, 0.0  ;;  %v1379_v39 = vld [vmem:[#allocation50_spill] sm:$0xff] }
  0x31   :  { %v128_v2 = vadd.f32 %v1378_v47, %v126_v51  ;;  %v1056_v3 = vsel %vm12_vm0, %v250_v18, 0.0  ;;  %v1059_v25 = vsel %vm12_vm0, %v251_v19, 0.0  ;;  %v1062_v10 = vsel %vm12_vm0, %v252_v21, 0.0  ;;  %v1380_v51 = vld [vmem:[#allocation54_spill] sm:$0xff] }
  0x32   :  { %v293_v60 = vadd.f32 %v292_v40, %v291_v36  ;;  %v1065_v43 = vsel %vm12_vm0, %v253_v22, 0.0  ;;  %v1069_v6 = vsel %vm12_vm0, %v254_v23, 0.0  ;;  %v1072_v50 = vsel %vm12_vm0, %v255_v4, 0.0  ;;  %v1382_v36 = vld [vmem:[#allocation36_spill] sm:$0xff] }
  0x33   :  { %v130_v52 = vadd.f32 %v1379_v39, %v128_v2  ;;  %v1075_v13 = vsel %vm12_vm0, %v256_v9, 0.0  ;;  %v1078_v19 = vsel %vm12_vm0, %v257_v27, 0.0  ;;  %v1081_v21 = vsel %vm12_vm0, %v258_v28, 0.0  ;;  %v1383_v2 = vld [vmem:[#allocation37_spill] sm:$0xff] }
  0x34   :  { %v295_v18 = vadd.f32 %v294_v62, %v293_v60  ;;  %v1084_v22 = vsel %vm12_vm0, %v259_v29, 0.0  ;;  %v1088_v23 = vsel %vm12_vm0, %v260_v33, 0.0  ;;  %v1091_v4 = vsel %vm12_vm0, %v261_v35, 0.0 }
  0x35   :  { %v132_v56 = vadd.f32 %v937_v37, %v130_v52  ;;  %v1094_v9 = vsel %vm12_vm0, %v262_v41, 0.0  ;;  %v1097_v27 = vsel %vm12_vm0, %v263_v42, 0.0  ;;  %v1100_v28 = vsel %vm12_vm0, %v264_v46, 0.0 }
  0x36   :  { %v297_v7 = vadd.f32 %v296_v24, %v295_v18  ;;  %v1103_v29 = vsel %vm12_vm0, %v265_v63, 0.0  ;;  %v1107_v33 = vsel %vm12_vm0, %v266_v48, 0.0  ;;  %v1110_v35 = vsel %vm12_vm0, %v267_v45, 0.0  ;;  %v1385_v18 = vld [vmem:[#allocation38_spill] sm:$0xff] }
  0x37   :  { %v134_v37 = vadd.f32 %v941_v44, %v132_v56  ;;  %v1113_v41 = vsel %vm12_vm0, %v268_v53, 0.0  ;;  %v1116_v42 = vsel %vm12_vm0, %v269_v54, 0.0  ;;  %v1119_v46 = vsel %vm12_vm0, %v270_v31, 0.0 }
  0x38   :  { %v299_v38 = vadd.f32 %v298_v12, %v297_v7  ;;  %v1122_v63 = vsel %vm12_vm0, %v271_v59, 0.0  ;;  %v1126_v48 = vsel %vm12_vm0, %v272_v32, 0.0  ;;  %v1129_v45 = vsel %vm12_vm0, %v273_v61, 0.0 }
  0x39   :  { %v136_v44 = vadd.f32 %v947_v58, %v134_v37  ;;  %v1132_v53 = vsel %vm12_vm0, %v274_v5, 0.0  ;;  %v1135_v54 = vsel %vm12_vm0, %v275_v8, 0.0  ;;  %v1138_v31 = vsel %vm12_vm0, %v276_v15, 0.0  ;;  %v1146_v58 = vld [vmem:[%s1302_s0 + $0xf8] sm:$0xff]  ;;  %v1386_v37 = vld [vmem:[#allocation3_spill] sm:$0xff] }
  0x3a   :  { %v301_v0 = vadd.f32 %v300_v11, %v299_v38  ;;  %v1141_v59 = vsel %vm12_vm0, %v277_v17, 0.0  ;;  %v1150_v61 = vsel %vm12_vm0, %v278_v20, 0.0  ;;  %v1153_v5 = vsel %vm12_vm0, %v279_v49, 0.0 }
  0x3b   :  { %v138_v32 = vadd.f32 %v951_v26, %v136_v44  ;;  %v1156_v8 = vsel %vm12_vm0, %v280_v30, 0.0  ;;  %v141_v15 = vsel %vm12_vm0, %v1146_v58, 0.0  ;;  %v232_v20 = vmul.f32 %v1381_v14, %v1381_v14  ;;  %v1387_v44 = vld [vmem:[#allocation39_spill] sm:$0xff] }
  0x3c   :  { %v303_v17 = vadd.f32 %v302_v1, %v301_v0  ;;  %v306_v49 = vsel %vm12_vm0, %v973_v16, 0.0  ;;  %v143_v30 = vsel %vm12_vm0, %v1163_v34, 0.0  ;;  %v233_v24 = vmul.f32 %v1382_v36, %v1382_v36  ;;  %v1384_v16 = vld [vmem:[#allocation2_spill] sm:$0xff] }
  0x3d   :  { %v140_v26 = vadd.f32 %v1380_v51, %v138_v32  ;;  %v308_v12 = vsel %vm12_vm0, %v975_v57, 0.0  ;;  %v234_v1 = vmul.f32 %v1383_v2, %v1383_v2  ;;  %v310_v60 = vsel %vm12_vm0, %v232_v20, 0.0  ;;  %v1389_v51 = vld [vmem:[#allocation40_spill] sm:$0xff] }
  0x3e   :  { %v305_v40 = vadd.f32 %v304_v55, %v303_v17  ;;  %v235_v55 = vmul.f32 %v1385_v18, %v1385_v18  ;;  %v312_v56 = vsel %vm12_vm0, %v233_v24, 0.0  ;;  %v236_v57 = vmul.f32 %v1387_v44, %v1387_v44 }
  0x3f   :  { %v142_v62 = vadd.f32 %v141_v15, %v140_v26  ;;  %v314_v0 = vsel %vm12_vm0, %v234_v1, 0.0  ;;  %v1388_v15 = vld [vmem:[#allocation4_spill] sm:$0xff]  ;;  %v237_v26 = vmul.f32 %v1389_v51, %v1389_v51 }
  0x40   :  { %v307_v11 = vadd.f32 %v306_v49, %v305_v40  ;;  %v316_v14 = vsel %vm12_vm0, %v235_v55, 0.0  ;;  %v1390_v49 = vld [vmem:[#allocation5_spill] sm:$0xff]  ;;  %v318_v36 = vsel %vm12_vm0, %v236_v57, 0.0 }
  0x41   :  { %v144_v47 = vadd.f32 %v143_v30, %v142_v62  ;;  %v1391_v40 = vld [vmem:[#allocation41_spill] sm:$0xff]  ;;  %v320_v1 = vsel %vm12_vm0, %v237_v26, 0.0 }
  0x42   :  { %v309_v39 = vadd.f32 %v308_v12, %v307_v11  ;;  %v238_v62 = vmul.f32 %v1391_v40, %v1391_v40  ;;  %v1392_v12 = vld [vmem:[#allocation6_spill] sm:$0xff] }
  0x43   :  { %v146_v52 = vadd.f32 %v1384_v16, %v144_v47  ;;  %v1393_v47 = vld [vmem:[#allocation42_spill] sm:$0xff] }
  0x44   :  { %v311_v7 = vadd.f32 %v310_v60, %v309_v39  ;;  %v239_v2 = vmul.f32 %v1393_v47, %v1393_v47  ;;  %v1394_v39 = vld [vmem:[#allocation7_spill] sm:$0xff]  ;;  %v322_v55 = vsel %vm12_vm0, %v238_v62, 0.0 }
  0x45   :  { %v148_v38 = vadd.f32 %v1386_v37, %v146_v52  ;;  %v1395_v52 = vld [vmem:[#allocation43_spill] sm:$0xff] }
  0x46   :  { %v313_v32 = vadd.f32 %v312_v56, %v311_v7  ;;  %v240_v18 = vmul.f32 %v1395_v52, %v1395_v52  ;;  %v1396_v7 = vld [vmem:[#allocation8_spill] sm:$0xff]  ;;  %v324_v57 = vsel %vm12_vm0, %v239_v2, 0.0 }
  0x47   :  { %v150_v17 = vadd.f32 %v1388_v15, %v148_v38  ;;  %v1397_v38 = vld [vmem:[#allocation44_spill] sm:$0xff] }
  0x48   :  { %v315_v20 = vadd.f32 %v314_v0, %v313_v32  ;;  %v241_v44 = vmul.f32 %v1397_v38, %v1397_v38  ;;  %v1398_v32 = vld [vmem:[#allocation9_spill] sm:$0xff]  ;;  %v326_v26 = vsel %vm12_vm0, %v240_v18, 0.0 }
  0x49   :  { %v152_v30 = vadd.f32 %v1390_v49, %v150_v17  ;;  %v1399_v17 = vld [vmem:[#allocation45_spill] sm:$0xff] }
  0x4a   :  { %v317_v24 = vadd.f32 %v316_v14, %v315_v20  ;;  %v242_v51 = vmul.f32 %v1399_v17, %v1399_v17  ;;  %v1400_v20 = vld [vmem:[#allocation10_spill] sm:$0xff]  ;;  %v328_v62 = vsel %vm12_vm0, %v241_v44, 0.0 }
  0x4b   :  { %v154_v11 = vadd.f32 %v1392_v12, %v152_v30  ;;  %v1401_v30 = vld [vmem:[#allocation46_spill] sm:$0xff] }
  0x4c   :  { %v319_v60 = vadd.f32 %v318_v36, %v317_v24  ;;  %v243_v40 = vmul.f32 %v1401_v30, %v1401_v30  ;;  %v1402_v24 = vld [vmem:[#allocation11_spill] sm:$0xff]  ;;  %v330_v2 = vsel %vm12_vm0, %v242_v51, 0.0 }
  0x4d   :  { %v156_v16 = vadd.f32 %v1394_v39, %v154_v11  ;;  %v1403_v11 = vld [vmem:[#allocation47_spill] sm:$0xff] }
  0x4e   :  { %v321_v56 = vadd.f32 %v320_v1, %v319_v60  ;;  %v244_v47 = vmul.f32 %v1403_v11, %v1403_v11  ;;  %v1404_v60 = vld [vmem:[#allocation12_spill] sm:$0xff]  ;;  %v332_v18 = vsel %vm12_vm0, %v243_v40, 0.0 }
  0x4f   :  { %v158_v37 = vadd.f32 %v1396_v7, %v156_v16  ;;  %v1405_v16 = vld [vmem:[#allocation51_spill] sm:$0xff] }
  0x50   :  { %v323_v0 = vadd.f32 %v322_v55, %v321_v56  ;;  %v245_v52 = vmul.f32 %v1405_v16, %v1405_v16  ;;  %v1406_v56 = vld [vmem:[#allocation13_spill] sm:$0xff]  ;;  %v334_v44 = vsel %vm12_vm0, %v244_v47, 0.0 }
  0x51   :  { %v160_v15 = vadd.f32 %v1398_v32, %v158_v37  ;;  %v1407_v37 = vld [vmem:[#allocation52_spill] sm:$0xff]  ;;  %v1412_v47 = vld [vmem:[#allocation17_spill] sm:$0xff] }
  0x52   :  { %v325_v14 = vadd.f32 %v324_v57, %v323_v0  ;;  %v246_v38 = vmul.f32 %v1407_v37, %v1407_v37  ;;  %v1408_v0 = vld [vmem:[#allocation14_spill] sm:$0xff]  ;;  %v336_v51 = vsel %vm12_vm0, %v245_v52, 0.0 }
  0x53   :  { %v162_v49 = vadd.f32 %v1400_v20, %v160_v15  ;;  %v1409_v15 = vld [vmem:[#allocation53_spill] sm:$0xff] }
  0x54   :  { %v327_v36 = vadd.f32 %v326_v26, %v325_v14  ;;  %v247_v17 = vmul.f32 %v1409_v15, %v1409_v15  ;;  %v1410_v14 = vld [vmem:[#allocation15_spill] sm:$0xff]  ;;  %v338_v30 = vsel %vm12_vm0, %v246_v38, 0.0  ;;  %v1416_v38 = vld [vmem:[#allocation21_spill] sm:$0xff] }
  0x55   :  { %v164_v12 = vadd.f32 %v1402_v24, %v162_v49  ;;  %v248_v49 = vmul.f32 %v1146_v58, %v1146_v58  ;;  %v249_v24 = vmul.f32 %v1163_v34, %v1163_v34 }
  0x56   :  { %v329_v1 = vadd.f32 %v328_v62, %v327_v36  ;;  %v1411_v62 = vld [vmem:[#allocation16_spill] sm:$0xff] }
  0x57   :  { %v166_v39 = vadd.f32 %v1404_v60, %v164_v12  ;;  %v340_v12 = vsel %vm12_vm0, %v247_v17, 0.0  ;;  %v344_v58 = vsel %vm12_vm0, %v249_v24, 0.0  ;;  %v1418_v17 = vld [vmem:[#allocation23_spill] sm:$0xff]  ;;  %v1422_v24 = vld [vmem:[#allocation28_spill] sm:$0xff] }
  0x58   :  { %v331_v55 = vadd.f32 %v330_v2, %v329_v1  ;;  %v342_v1 = vsel %vm12_vm0, %v248_v49, 0.0 }
  0x59   :  { %v168_v7 = vadd.f32 %v1406_v56, %v166_v39  ;;  %v1413_v39 = vld [vmem:[#allocation18_spill] sm:$0xff] }
  0x5a   :  { %v333_v57 = vadd.f32 %v332_v18, %v331_v55  ;;  %v1414_v18 = vld [vmem:[#allocation19_spill] sm:$0xff] }
  0x5b   :  { %v170_v32 = vadd.f32 %v1408_v0, %v168_v7  ;;  %v1415_v7 = vld [vmem:[#allocation20_spill] sm:$0xff]  ;;  %v1417_v0 = vld [vmem:[#allocation22_spill] sm:$0xff] }
  0x5c   :  { %v335_v26 = vadd.f32 %v334_v44, %v333_v57 }
  0x5d   :  { %v172_v20 = vadd.f32 %v1410_v14, %v170_v32  ;;  %v1419_v14 = vld [vmem:[#allocation24_spill] sm:$0xff] }
  0x5e   :  { %v337_v40 = vadd.f32 %v336_v51, %v335_v26 }
  0x5f   :  { %v174_v36 = vadd.f32 %v1411_v62, %v172_v20  ;;  %v1421_v62 = vld [vmem:[#allocation27_spill] sm:$0xff] }
  0x60   :  { %v339_v11 = vadd.f32 %v338_v30, %v337_v40  ;;  %v1420_v30 = vld [vmem:[#allocation25_spill] sm:$0xff] }
  0x61   :  { %v176_v2 = vadd.f32 %v1412_v47, %v174_v36 }
  0x62   :  { %v341_v60 = vadd.f32 %v340_v12, %v339_v11  ;;  %v1423_v11 = vld [vmem:[#allocation29_spill] sm:$0xff] }
  0x63   :  { %v178_v16 = vadd.f32 %v1413_v39, %v176_v2  ;;  %v1424_v2 = vld [vmem:[#allocation31_spill] sm:$0xff] }
  0x64   :  { %v343_v52 = vadd.f32 %v342_v1, %v341_v60  ;;  %v1425_v60 = vld [vmem:[#allocation32_spill] sm:$0xff] }
  0x65   :  { %v180_v55 = vadd.f32 %v1414_v18, %v178_v16  ;;  %v1426_v16 = vld [vmem:[#allocation33_spill] sm:$0xff] }
  0x66   :  { %v345_v56 = vadd.f32 %v344_v58, %v343_v52  ;;  %v1427_v52 = vld [vmem:[#allocation34_spill] sm:$0xff] }
  0x67   :  { %v182_v37 = vadd.f32 %v1415_v7, %v180_v55 }
  0x68   :  { %v347_v34 = vadd.f32 %v1056_v3, %v345_v56 }
  0x69   :  { %v184_v44 = vadd.f32 %v1416_v38, %v182_v37 }
  0x6a   :  { %v349_v57 = vadd.f32 %v1059_v25, %v347_v34 }
  0x6b   :  { %v186_v32 = vadd.f32 %v1417_v0, %v184_v44 }
  0x6c   :  { %v351_v15 = vadd.f32 %v1062_v10, %v349_v57 }
  0x6d   :  { %v188_v51 = vadd.f32 %v1418_v17, %v186_v32 }
  0x6e   :  { %v353_v26 = vadd.f32 %v1065_v43, %v351_v15 }
  0x6f   :  { %v190_v20 = vadd.f32 %v1419_v14, %v188_v51 }
  0x70   :  { %v355_v49 = vadd.f32 %v1069_v6, %v353_v26 }
  0x71   :  { %v192_v40 = vadd.f32 %v1420_v30, %v190_v20 }
  0x72   :  { %v357_v3 = vadd.f32 %v1072_v50, %v355_v49 }
  0x73   :  { %v194_v36 = vadd.f32 %v1421_v62, %v192_v40 }
  0x74   :  { %v359_v25 = vadd.f32 %v1075_v13, %v357_v3 }
  0x75   :  { %v196_v12 = vadd.f32 %v1422_v24, %v194_v36 }
  0x76   :  { %v361_v10 = vadd.f32 %v1078_v19, %v359_v25 }
  0x77   :  { %v198_v47 = vadd.f32 %v1423_v11, %v196_v12 }
  0x78   :  { %v363_v43 = vadd.f32 %v1081_v21, %v361_v10 }
  0x79   :  { %v200_v1 = vadd.f32 %v1424_v2, %v198_v47 }
  0x7a   :  { %v365_v6 = vadd.f32 %v1084_v22, %v363_v43 }
  0x7b   :  { %v202_v39 = vadd.f32 %v1425_v60, %v200_v1 }
  0x7c   :  { %v367_v50 = vadd.f32 %v1088_v23, %v365_v6 }
  0x7d   :  { %v204_v58 = vadd.f32 %v1426_v16, %v202_v39 }
  0x7e   :  { %v369_v13 = vadd.f32 %v1091_v4, %v367_v50  ;;  %v78_v4 = vld [vmem:[%s1303_s1] sm:$0x1] }
  0x7f   :  { %v206_v18 = vadd.f32 %v1427_v52, %v204_v58 }
  0x80   :  { %v371_v19 = vadd.f32 %v1094_v9, %v369_v13 }
  0x81   :  { %v207_v55 = vrot.slane %v206_v18, 4 }
  0x82   :  { %v373_v56 = vadd.f32 %v1097_v27, %v371_v19 }
  0x83   :  { %v208_v21 = vadd.f32 %v207_v55, %v206_v18 }
  0x84   :  { %v375_v7 = vadd.f32 %v1100_v28, %v373_v56 }
  0x85   :  { %v209_v37 = vrot.slane %v208_v21, 2 }
  0x86   :  { %v377_v22 = vadd.f32 %v1103_v29, %v375_v7 }
  0x87   :  { %v210_v34 = vadd.f32 %v209_v37, %v208_v21 }
  0x88   :  { %v379_v23 = vadd.f32 %v1107_v33, %v377_v22 }
  0x89   :  { %v211_v38 = vrot.slane %v210_v34, 1 }
  0x8a   :  { %v381_v44 = vadd.f32 %v1110_v35, %v379_v23 }
  0x8b   :  { %v212_v9 = vadd.f32 %v211_v38, %v210_v34 }
  0x8c   :  { %v383_v27 = vadd.f32 %v1113_v41, %v381_v44 }
  0x8d   :  { %v213_v57 = vadd.f32 %v212_v9, %v78_v4 }
  0x8e   :  { %v385_v28 = vadd.f32 %v1116_v42, %v383_v27 }
  0x8f   :  { %215 = vst.msk [vmem:[%s1303_s1] sm:$0x1] %vm214_vm1, %v213_v57 }
  0x90   :  { %v387_v29 = vadd.f32 %v1119_v46, %v385_v28 }
  0x92   :  { %v389_v33 = vadd.f32 %v1122_v63, %v387_v29 }
  0x94   :  { %v391_v0 = vadd.f32 %v1126_v48, %v389_v33 }
  0x96   :  { %v393_v35 = vadd.f32 %v1129_v45, %v391_v0  ;;  %v216_v45 = vld [vmem:[%s1303_s1 + $0x1] sm:$0x1] }
  0x98   :  { %v395_v32 = vadd.f32 %v1132_v53, %v393_v35 }
  0x9a   :  { %v397_v41 = vadd.f32 %v1135_v54, %v395_v32 }
  0x9c   :  { %v399_v15 = vadd.f32 %v1138_v31, %v397_v41 }
  0x9e   :  { %v401_v42 = vadd.f32 %v1141_v59, %v399_v15 }
  0xa0   :  { %v403_v17 = vadd.f32 %v1150_v61, %v401_v42 }
  0xa2   :  { %v405_v51 = vadd.f32 %v1153_v5, %v403_v17 }
  0xa4   :  { %v407_v46 = vadd.f32 %v1156_v8, %v405_v51 }
  0xa6   :  { %v408_v26 = vrot.slane %v407_v46, 4 }
  0xa8   :  { %v409_v63 = vadd.f32 %v408_v26, %v407_v46 }
  0xaa   :  { %v410_v14 = vrot.slane %v409_v63, 2 }
  0xac   :  { %v411_v48 = vadd.f32 %v410_v14, %v409_v63 }
  0xae   :  { %v412_v20 = vrot.slane %v411_v48, 1 }
  0xb0   :  { %v413_v53 = vadd.f32 %v412_v20, %v411_v48 }
  0xb2   :  { %v414_v54 = vadd.f32 %v413_v53, %v216_v45 }
  0xb4   :  { %415 = vst.msk [vmem:[%s1303_s1 + $0x1] sm:$0x1] %vm214_vm1, %v414_v54 }

// kernel: home_forward.8
= control target key start
LH: loop header
LB: loop body
LE: loop exit
PB: predicated region body
PF: predicated region fallthrough
CT: control target
= control target key end

     0   :  { %s758_s12 = smov 0   ;;  %s760_s13 = smov 0   ;;  %s877_s0 = inlined_call_operand.vmem [shape: f32[2,18,18,60], index: 0, kind: input, shape index: {}]   ;;  %s878_s1 = inlined_call_operand.vmem [shape: bf16[3,180,64], index: 1, kind: input, shape index: {}]   ;;  %s879_s2 = inlined_call_operand.vmem [shape: f32[1,64], index: 2, kind: input, shape index: {}]   ;;  %s880_s3 = inlined_call_operand.vmem [shape: f32[2,16,16,64], index: 3, kind: output, shape index: {}]  }
   0x1   :  { %s762_s14 = smov 0   ;;  %s764_s15 = smov 0  }
   0x2   :  { %s766_s16 = smov 0   ;;  %s768_s17 = smov 0  }
   0x3   :  { %s770_s18 = smov 0  }
   0x4 LB: > { %s25_s19 = sadd.s32 1, %s720_s15  ;;  %s28_s20 = sadd.s32 1, %s724_s16  ;;  %s732_s18 = sphi %s770_s18, %s13_s18   ;;  %s728_s17 = sphi %s768_s17, %s888_s17   ;;  %s724_s16 = sphi %s766_s16, %s887_s16   ;;  %s720_s15 = sphi %s764_s15, %s886_s15   ;;  %s716_s14 = sphi %s762_s14, %s885_s14   ;;  %s712_s13 = sphi %s760_s13, %s884_s13   ;;  %s708_s12 = sphi %s758_s12, %s883_s12  }
   0x5   : > { %p26_p0 = scmp.ge.s32.totalorder %s25_s19, 3  ;;  %p569_p1 = scmp.ge.s32.totalorder %s732_s18, 1 }
   0x6   : > { %p178_p2 = scmp.lt.s32.totalorder %s732_s18, 97  ;;  %s32_s21 = sadd.s32 1, %s728_s17 }
   0x7   : > { %s890_s19 = smov (%p26_p0, %s25_s19), 0  ;;  %s892_s20 = smov (!%p26_p0, %s28_s20), %s724_s16 }
   0x8   : > { %p179_p3 = pnand %p569_p1, %p178_p2  ;;  %p30_p4 = scmp.ge.s32.totalorder %s892_s20, 16 }
   0x9   : > { %s216_s22 = sadd.s32 (!%p179_p3), %s708_s12, %s712_s13  ;;  %p217_p6 = scmp.lt.s32.totalorder (!%p179_p3), %s716_s14, 1 }
   0xa   : > { %s894_s20 = smov (%p30_p4, %s892_s20), 0  ;;  %s896_s21 = smov (!%p30_p4, %s32_s21), %s728_s17 }
   0xb   : > { %p34_p5 = scmp.ge.s32.totalorder %s896_s21, 2  ;;  %182 = sbr.rel (%p179_p3) target bundleno = 371 (0x173), region = 32 }
   0xc   : > { %p219_p7 = scmp.lt.s32.totalorder (!%p179_p3), %s216_s22, 17  ;;  %p227_p8 = scmp.lt.s32.totalorder (!%p179_p3), %s708_s12, 2 }
   0xd   : > { %s898_s21 = smov (%p34_p5, %s896_s21), 0  ;;  %p234_p9 = scmp.lt.s32.totalorder (!%p179_p3), %s712_s13, 15 }
   0xe   : > { %881 = sst [smem:[#allocation3_spill]] %s898_s21  ;;  %p575_p10 = scmp.ne.s32.totalorder (!%p179_p3), %s708_s12, 0 }
  0x10   : > { %s900_s14 = smov (!%p217_p6, %s716_s14), 1  ;;  %s902_s22 = smov (!%p219_p7, %s216_s22), 17 }
  0x11   : > { %s594_s23 = smul.u32 54, %s900_s14  ;;  %s573_s8 = sshll.u32 %s900_s14, 5 }
  0x12   : > { %s593_s24 = smul.u32 3, %s902_s22  ;;  %s904_s13 = smov (!%p234_p9, %s712_s13), 15 }
  0x13   : > { %s228_s25 = scalar_select %p227_p8, %s708_s12, 2 }
  0x14   : > { %s223_s26 = sadd.s32 %s594_s23, %s593_s24  ;;  %s572_s9 = sshll.u32 %s904_s13, 1 }
  0x15   : > { %s570_s27 = sshll.u32 %s223_s26, 3  ;;  %s595_s28 = smul.u32 92, %s228_s25 }
  0x16   : > { %s225_s4 = scalar_lea.vmem %s877_s0, %s570_s27  ;;  %s238_s10 = sadd.s32 %s573_s8, %s572_s9 }
  0x17   : > { %s815_s7 = scalar_lea.vmem %s878_s1, %s595_s28  ;;  %s574_s11 = sshll.u32 %s238_s10, 3 }
  0x18   : > { %s821_s23 = scalar_lea.vmem %s880_s3, %s574_s11  ;;  %245 = sbr.rel (%p575_p10) target bundleno = 31 (0x1f), region = 36 }
  0x1d   : > { %vm246_vm0 = vcmask 523264   ;;  %v734_v0 = vmov 0.0  }
  0x1e   : > { %247 = vst.msk [vmem:[#allocation2] sm:$0xff] %vm246_vm0, %v734_v0  ;;  %248 = vst.msk [vmem:[#allocation2 + $0x8] sm:$0xff] %vm246_vm0, %v734_v0 }
  0x1f PF: > { %v824_v1 = vld [vmem:[%s225_s4] sm:$0xff]  ;;  %v826_v2 = vld [vmem:[%s225_s4 + $0x8] sm:$0xff]  ;;  %v276_v3 = vld [vmem:[%s225_s4 + $0x10] sm:$0x3]  ;;  %vm280_vm1 = vcmask 1046528   ;;  %vm292_vm2 = vcmask 1045504  }
  0x20   : > { %v281_v4 = vrot.slane %v824_v1, 1  ;;  %v282_v5 = vrot.slane %v826_v2, 1  ;;  %v284_v6 = vrot.slane %v276_v3, 1  ;;  %v296_v7 = vrot.slane %v276_v3, 2  ;;  %v666_v8 = vld [vmem:[%s815_s7 + $0x38] sm:$0xff]   ;;  %v667_v17 = vld [vmem:[%s815_s7 + $0x30] sm:$0xff]  }
  0x21   : > { %v293_v9 = vrot.slane %v824_v1, 2  ;;  %v294_v10 = vrot.slane %v826_v2, 2  ;;  %v735_v13 = vmov 0   ;;  %s736_s13 = smov 60   ;;  %v668_v19 = vld [vmem:[%s815_s7 + $0x28] sm:$0xff]   ;;  %s737_s14 = smov 120  }
  0x22   : > { %v283_v11 = vsel %vm280_vm1, %v281_v4, %v282_v5  ;;  %v285_v12 = vsel %vm280_vm1, %v282_v5, %v284_v6  ;;  %389 = vmatprep.subr.bf16.mxu0 %v735_v13  ;;  %v669_v20 = vld [vmem:[%s815_s7 + $0x20] sm:$0xff]   ;;  %v670_v21 = vld [vmem:[%s815_s7 + $0x18] sm:$0xff]   ;;  %v671_v22 = vld [vmem:[%s815_s7 + $0x10] sm:$0xff]   ;;  %vm385_vm3 = vcmask 1041408   ;;  %vm304_vm4 = vcmask 490496   ;;  %p589_p11 = scmp.ne.s32.totalorder %s708_s12, 2 }
  0x23   : > { %v656_v14 = vpack.i.bf16 %v285_v12, %v283_v11  ;;  %v295_v15 = vsel %vm292_vm2, %v293_v9, %v294_v10  ;;  %v297_v16 = vsel %vm292_vm2, %v294_v10, %v296_v7  ;;  %390 = vmatpush1.bf16.msra.mxu0 %v666_v8  ;;  %v672_v23 = vld [vmem:[%s815_s7 + $0x8] sm:$0xff]   ;;  %v673_v24 = vld [vmem:[%s815_s7] sm:$0xff]   ;;  %v674_v25 = vld [vmem:[%s815_s7 + $0x58] ss:$0 sps:$4 sm:$0x33]   ;;  %vm307_vm5 = vcmask 982016  }
  0x24   : > { %391 = vmatprep.subr.bf16.mxu0 %v735_v13  ;;  %v661_v18 = vpack.i.bf16 %v297_v16, %v295_v15  ;;  %v387_v26 = vsel %vm385_vm3, %v674_v25, 0  ;;  %v675_v27 = vld [vmem:[%s815_s7 + $0x50] sm:$0xff]   ;;  %v676_v28 = vld [vmem:[%s815_s7 + $0x48] sm:$0xff]   ;;  %v677_v29 = vld [vmem:[%s815_s7 + $0x40] sm:$0xff]   ;;  %vm381_vm6 = vcmask 424960   ;;  %vm432_vm7 = vcmask 523264  }
  0x25   : > { %657 = vrot.lane.b32.xlu0 %v656_v14, %s736_s13  ;;  %v272_v42 = vld [vmem:[#allocation2] sm:$0xff]  ;;  %v273_v46 = vld [vmem:[#allocation2 + $0x8] sm:$0xff] }
  0x27   : > { %392 = vmatpush1.bf16.msra.mxu0 %v667_v17 }
  0x28   : > { %393 = vmatprep.subr.bf16.mxu0 %v735_v13 }
  0x29   : > { %662 = vrot.lane.b32.xlu0 %v661_v18, %s737_s14 }
  0x2b   : > { %394 = vmatpush1.bf16.msra.mxu0 %v668_v19 }
  0x2c   : > { %395 = vmatprep.subr.bf16.mxu0 %v735_v13 }
  0x2f   : > { %396 = vmatpush1.bf16.msra.mxu0 %v669_v20 }
  0x30   : > { %397 = vmatprep.subr.bf16.mxu0 %v735_v13 }
  0x33   : > { %398 = vmatpush1.bf16.msra.mxu0 %v670_v21 }
  0x34   : > { %399 = vmatprep.subr.bf16.mxu0 %v735_v13 }
  0x37   : > { %400 = vmatpush1.bf16.msra.mxu0 %v671_v22 }
  0x38   : > { %401 = vmatprep.subr.bf16.mxu0 %v735_v13 }
  0x3b   : > { %402 = vmatpush1.bf16.msra.mxu0 %v672_v23 }
  0x3c   : > { %403 = vmatprep.subr.bf16.mxu0 %v735_v13 }
  0x3f   : > { %404 = vmatpush1.bf16.msra.mxu0 %v673_v24 }
  0x40   : > { %413 = vmatprep.subr.bf16.mxu0 %v735_v13 }
  0x43   : > { %414 = vmatpush2.bf16.msra.mxu0 %v387_v26 }
  0x44   : > { %415 = vmatprep.subr.bf16.mxu0 %v735_v13 }
  0x47   : > { %416 = vmatpush2.bf16.msra.mxu0 %v675_v27 }
  0x48   : > { %417 = vmatprep.subr.bf16.mxu0 %v735_v13 }
  0x4b   : > { %418 = vmatpush2.bf16.msra.mxu0 %v676_v28 }
  0x4c   : > { %419 = vmatprep.subr.bf16.mxu0 %v735_v13 }
  0x4f   : > { %420 = vmatpush2.bf16.msra.mxu0 %v677_v29 }
  0x97   : > { %v658_v30 = vpop.permute.xlu0 %657 }
  0x98   : > { %v660_v31 = vunpack.i.h.bf16 %v658_v30  ;;  %v659_v32 = vunpack.i.l.bf16 %v658_v30 }
  0x9a   : > { %v306_v36 = vsel %vm304_vm4, %v826_v2, %v660_v31  ;;  %v305_v37 = vsel %vm304_vm4, %v824_v1, %v659_v32 }
  0x9b   : > { %v663_v33 = vpop.permute.xlu0 %662 }
  0x9c   : > { %v665_v34 = vunpack.i.h.bf16 %v663_v33  ;;  %v664_v35 = vunpack.i.l.bf16 %v663_v33 }
  0x9e   : > { %v311_v38 = vpack.c.bf16 %v665_v34, %v664_v35  ;;  %v308_v39 = vsel %vm307_vm5, %v305_v37, %v664_v35  ;;  %v309_v40 = vsel %vm307_vm5, %v306_v36, %v665_v34 }
  0x9f   : > { %v310_v41 = vpack.c.bf16 %v309_v40, %v308_v39 }
  0xa0   : > { %588 = vmatprep.mubr.msk.bf16.mxu0 %vm381_vm6, %v311_v38 }
  0xa1   : > { %422 = vmatmul.mubr.bf16.vlgmr.msra.gmra.mxu0 %v310_v41 }
 0x161   : > { %v423_v43 = vpop.f32.mrf.mxu0 }
 0x162   : > { %v430_v44 = vadd.f32 %v423_v43, %v272_v42 }
 0x163   : > { %v425_v45 = vpop.f32.mrf.mxu0 }
 0x164   : > { %433 = vst.msk [vmem:[#allocation2] sm:$0xff] %vm432_vm7, %v430_v44  ;;  %438 = sbr.rel (%p589_p11) target bundleno = 371 (0x173), region = 40 }
 0x165   : > { %v426_v47 = vpop.f32.mrf.mxu0 }
 0x166   : > { %v431_v48 = vadd.f32 %v426_v47, %v273_v46 }
 0x167   : > { %v428_v49 = vpop.f32.mrf.mxu0 }
 0x168   : > { %434 = vst.msk [vmem:[#allocation2 + $0x8] sm:$0xff] %vm432_vm7, %v431_v48 }
 0x169   : > { %v590_v50 = vld [vmem:[%s879_s2] ss:$0 sm:$0xff] }
 0x16b   : > { %v440_v51 = vld [vmem:[#allocation2] sm:$0xff] }
 0x16c   : > { %v448_v53 = vadd.f32 %v590_v50, %v440_v51 }
 0x16e   : > { %450 = vst.msk [vmem:[%s821_s23] sm:$0xff] %vm432_vm7, %v448_v53 }
 0x16f   : > { %v441_v52 = vld [vmem:[#allocation2 + $0x8] sm:$0xff] }
 0x170   : > { %v449_v54 = vadd.f32 %v590_v50, %v441_v52 }
 0x172   : > { %451 = vst.msk [vmem:[%s821_s23 + $0x8] sm:$0xff] %vm432_vm7, %v449_v54 }
 0x173 PF: > { %s13_s18 = sadd.s32 1, %s732_s18   ;;  %s882_s25 = sld [smem:[#allocation3_spill]] }
 0x174   : > { %p10_p12 = scmp.ge.s32.totalorder %s13_s18, 98   ;;  %s883_s12 = smov %s720_s15 }
 0x175   : > { %s884_s13 = smov %s724_s16  ;;  %s885_s14 = smov %s728_s17 }
 0x176   : > { %s886_s15 = smov %s890_s19  ;;  %s887_s16 = smov %s894_s20 }
 0x177   :  { %12 = sbr.rel (!%p10_p12) target bundleno = 4 (0x4), region = 73 }
 0x179   : > { %s888_s17 = smov %s882_s25 }

// kernel: home_forward.10
= control target key start
LH: loop header
LB: loop body
LE: loop exit
PB: predicated region body
PF: predicated region fallthrough
CT: control target
= control target key end

     0   :  { %s1288_s21 = smov 0   ;;  %s1290_s22 = smov 0   ;;  %s1558_s0 = inlined_call_operand.vmem [shape: f32[2,18,18,64], index: 0, kind: input, shape index: {}, may-alias: {0,1}]   ;;  %s1559_s1 = inlined_call_operand.vmem [shape: f32[2,18,18,64], index: 1, kind: input, shape index: {}, may-alias: {0,1}]   ;;  %s1560_s2 = inlined_call_operand.vmem [shape: bf16[3,192,128], index: 2, kind: input, shape index: {}]   ;;  %s1561_s3 = inlined_call_operand.vmem [shape: f32[1,128], index: 3, kind: input, shape index: {}]   ;;  %s1562_s4 = inlined_call_operand.vmem [shape: f32[1,64], index: 4, kind: input, shape index: {}]   ;;  %s1563_s5 = inlined_call_operand.vmem [shape: f32[1,64], index: 5, kind: input, shape index: {}]   ;;  %s1564_s6 = inlined_call_operand.vmem [shape: f32[2,8,8,128], index: 6, kind: output, shape index: {}]  }
   0x1   :  { %s1292_s23 = smov 0   ;;  %s1294_s24 = smov 0  }
   0x2   :  { %s1296_s25 = smov 0   ;;  %s1298_s26 = smov 0  }
   0x3   :  { %s1300_s27 = smov 0  }
   0x4 LB: > { %1568 = sst [smem:[#allocation4_spill]] %s1234_s24  ;;  %s28_s28 = sadd.s32 1, %s1234_s24  ;;  %s1246_s27 = sphi %s1300_s27, %s16_s27   ;;  %s1242_s26 = sphi %s1298_s26, %s1595_s26   ;;  %s1238_s25 = sphi %s1296_s25, %s1594_s25   ;;  %s1234_s24 = sphi %s1294_s24, %s1593_s24   ;;  %s1230_s23 = sphi %s1292_s23, %s1592_s23   ;;  %s1226_s22 = sphi %s1290_s22, %s1591_s22   ;;  %s1222_s21 = sphi %s1288_s21, %s1590_s21  }
   0x5   : > { %1569 = sst [smem:[#allocation5_spill]] %s1238_s25  ;;  %p29_p0 = scmp.ge.s32.totalorder %s28_s28, 3 }
   0x6   : > { %1570 = sst [smem:[#allocation6_spill]] %s1242_s26  ;;  %s31_s29 = sadd.s32 1, %s1238_s25 }
   0x7   : > { %p1049_p1 = scmp.ge.s32.totalorder %s1246_s27, 1  ;;  %p285_p2 = scmp.lt.s32.totalorder %s1246_s27, 49 }
   0x8   : > { %s1597_s28 = smov (%p29_p0, %s28_s28), 0  ;;  %s1599_s29 = smov (!%p29_p0, %s31_s29), %s1238_s25 }
   0x9   : > { %1571 = sst [smem:[#allocation7_spill]] %s1597_s28  ;;  %p286_p3 = pnand %p1049_p1, %p285_p2 }
   0xa   : > { %p33_p4 = scmp.ge.s32.totalorder %s1599_s29, 8  ;;  %s35_s30 = sadd.s32 1, %s1242_s26 }
   0xb   : > { %s1050_s7 = sshll.u32 (!%p286_p3), %s1226_s22, 1  ;;  %p343_p6 = scmp.lt.s32.totalorder (!%p286_p3), %s1230_s23, 1 }
   0xc   : > { %s1601_s29 = smov (%p33_p4, %s1599_s29), 0  ;;  %s1603_s30 = smov (!%p33_p4, %s35_s30), %s1242_s26 }
   0xd   : > { %1572 = sst [smem:[#allocation8_spill]] %s1601_s29  ;;  %p37_p5 = scmp.ge.s32.totalorder %s1603_s30, 2 }
   0xe   : > { %289 = sbr.rel (%p286_p3) target bundleno = 590 (0x24e), region = 44  ;;  %s1336_s8 = sadd.s32 (!%p286_p3), %s1222_s21, %s1050_s7 }
   0xf   : > { %s1605_s30 = smov (%p37_p5, %s1603_s30), 0  ;;  %p345_p7 = scmp.lt.s32.totalorder (!%p286_p3), %s1336_s8, 17 }
  0x10   : > { %1573 = sst [smem:[#allocation9_spill]] %s1605_s30  ;;  %s1340_s9 = sadd.s32 (!%p286_p3), 1, %s1336_s8 }
  0x11   : > { %p359_p8 = scmp.lt.s32.totalorder (!%p286_p3), %s1340_s9, 17  ;;  %p369_p9 = scmp.lt.s32.totalorder (!%p286_p3), %s1222_s21, 2 }
  0x12   : > { %p376_p10 = scmp.lt.s32.totalorder (!%p286_p3), %s1226_s22, 7  ;;  %p1057_p11 = scmp.ne.s32.totalorder (!%p286_p3), %s1222_s21, 0 }
  0x13   : > { %s1607_s23 = smov (!%p343_p6, %s1230_s23), 1 }
  0x14   : > { %s1106_s10 = smul.u32 54, %s1607_s23  ;;  %s1055_s26 = sshll.u32 %s1607_s23, 3 }
  0x15   : > { %s346_s11 = scalar_select %p345_p7, %s1336_s8, 17 }
  0x16   : > { %s360_s12 = scalar_select %p359_p8, %s1340_s9, 17 }
  0x17   : > { %s1105_s13 = smul.u32 3, %s346_s11  ;;  %s1609_s22 = smov (!%p376_p10, %s1226_s22), 7 }
  0x18   : > { %s1107_s14 = smul.u32 3, %s360_s12  ;;  %s379_s12 = sadd.s32 %s1055_s26, %s1609_s22 }
  0x19   : > { %s349_s15 = sadd.s32 %s1106_s10, %s1105_s13 }
  0x1a   : > { %s1051_s16 = sshll.u32 %s349_s15, 3  ;;  %s363_s17 = sadd.s32 %s1107_s14, %s1106_s10 }
  0x1b   : > { %s351_s20 = scalar_lea.vmem %s1558_s0, %s1051_s16  ;;  %s1053_s7 = sshll.u32 %s363_s17, 3 }
  0x1c   : > { %s1353_s28 = scalar_lea.vmem %s1559_s1, %s1053_s7  ;;  %s1056_s10 = sshll.u32 %s379_s12, 3 }
  0x1d   : > { %s370_s25 = scalar_select %p369_p9, %s1222_s21, 2 }
  0x1e   : > { %s1365_s16 = scalar_lea.vmem %s1564_s6, %s1056_s10  ;;  %386 = sbr.rel (%p1057_p11) target bundleno = 38 (0x26), region = 48 }
  0x1f   : > { %s1108_s11 = smul.u32 96, %s370_s25 }
  0x21   : > { %s1360_s15 = scalar_lea.vmem %s1560_s2, %s1108_s11 }
  0x23   : > { %v1248_v0 = vmov 0.0  }
  0x24   : > { %387 = vst [vmem:[#allocation2] sm:$0xff] %v1248_v0  ;;  %388 = vst [vmem:[#allocation2 + $0x8] sm:$0xff] %v1248_v0 }
  0x25   : > { %389 = vst [vmem:[#allocation3 + $0x8] sm:$0xff] %v1248_v0  ;;  %390 = vst [vmem:[#allocation3] sm:$0xff] %v1248_v0 }
  0x26 PF: > { %v419_v1 = vld [vmem:[%s351_s20] sm:$0xff]  ;;  %v420_v2 = vld [vmem:[%s351_s20 + $0x8] sm:$0xff]  ;;  %v421_v3 = vld [vmem:[%s351_s20 + $0x10] sm:$0x3]  ;;  %v422_v4 = vlaneseq  ;;  %p435_p12 = scmp.ge.s32.totalorder %s1336_s8, 1  ;;  %p442_p13 = scmp.le.s32.totalorder %s1336_s8, 16 }
  0x27   : > { %v1059_v5 = vld [vmem:[%s1562_s4] ss:$0 sm:$0xff]  ;;  %v1180_v11 = vld [vmem:[%s1360_s15 + $0x38] sm:$0xff]   ;;  %v624_v13 = vld [vmem:[%s1353_s28 + $0x8] sm:$0xff]  ;;  %p626_p0 = scmp.ge.s32.totalorder %s1340_s9, 1  ;;  %p633_p1 = scmp.le.s32.totalorder %s1340_s9, 16 }
  0x28   : > { %v1060_v6 = vld [vmem:[%s1563_s5] ss:$0 sm:$0xff]  ;;  %v1377_v7 = vshrl.u32 %v422_v4, 7  ;;  %s436_s26 = scalar_select %p435_p12, 1, 0  ;;  %v456_v8 = vmul.f32 %v1059_v5, %v419_v1  ;;  %v457_v9 = vmul.f32 %v1059_v5, %v420_v2  ;;  %v458_v12 = vmul.f32 %v1059_v5, %v421_v3  ;;  %v1181_v22 = vld [vmem:[%s1360_s15 + $0x30] sm:$0xff]  }
  0x29   : > { %v623_v10 = vld [vmem:[%s1353_s28] sm:$0xff]  ;;  %s443_s29 = scalar_select %p442_p13, 1, 0  ;;  %v625_v14 = vld [vmem:[%s1353_s28 + $0x10] sm:$0x3]  ;;  %v1249_v17 = vmov 0   ;;  %v648_v28 = vmul.f32 %v1059_v5, %v624_v13 }
  0x2a   : > { %v425_v15 = vadd.s32 16, %v1377_v7  ;;  %vm426_vm0 = vcmp.ge.s32.totalorder %v1377_v7, 1  ;;  %v437_v16 = vstv %s436_s26  ;;  %575 = vmatprep.subr.bf16.mxu0 %v1249_v17  ;;  %691 = vmatprep.subr.bf16.mxu1 %v1249_v17  ;;  %v466_v20 = vadd.f32 %v1060_v6, %v456_v8  ;;  %s627_s28 = scalar_select %p626_p0, 1, 0  ;;  %v1182_v35 = vld [vmem:[%s1360_s15 + $0x28] sm:$0xff]   ;;  %v1183_v49 = vld [vmem:[%s1360_s15 + $0x20] sm:$0xff]  }
  0x2b   : > { %vm1389_vm1 = vcmp.eq.s32.totalorder %v437_v16, 1  ;;  %v444_v19 = vstv %s443_s29  ;;  %v647_v21 = vmul.f32 %v1059_v5, %v623_v10  ;;  %576 = vmatpush1.bf16.msra.mxu0 %v1180_v11  ;;  %692 = vmatpush1.bf16.msra.mxu1 %v1180_v11  ;;  %v467_v25 = vadd.f32 %v1060_v6, %v457_v9  ;;  %s634_s30 = scalar_select %p633_p1, 1, 0  ;;  %v1184_v62 = vld [vmem:[%s1360_s15 + $0x18] sm:$0xff]   ;;  %v1186_v11 = vld [vmem:[%s1360_s15 + $0x8] sm:$0xff]   ;;  %v1191_v16 = vld [vmem:[%s1360_s15 + $0x40] sm:$0xff]  }
  0x2c   : > { %vm431_vm2 = vcmp.le.s32.totalorder %v425_v15, 16  ;;  %vm1398_vm3 = vmand %vm426_vm0, %vm1389_vm1  ;;  %vm1402_vm4 = vcmp.eq.s32.totalorder %v444_v19, 1  ;;  %577 = vmatprep.subr.bf16.mxu0 %v1249_v17  ;;  %693 = vmatprep.subr.bf16.mxu1 %v1249_v17  ;;  %v468_v27 = vadd.f32 %v1060_v6, %v458_v12  ;;  %vm475_vm7 = vcmask 1046528   ;;  %s1250_s8 = smov 64   ;;  %v1187_v12 = vld [vmem:[%s1360_s15] sm:$0xff]   ;;  %v1188_v13 = vld [vmem:[%s1360_s15 + $0x58] sm:$0xff]  }
  0x2d   : > { %vm1413_vm5 = vmand %vm431_vm2, %vm1389_vm1  ;;  %v628_v29 = vstv %s627_s28  ;;  %v649_v30 = vmul.f32 %v1059_v5, %v625_v14  ;;  %v635_v33 = vstv %s634_s30  ;;  %v657_v34 = vadd.f32 %v1060_v6, %v647_v21  ;;  %v1189_v14 = vld [vmem:[%s1360_s15 + $0x50] sm:$0xff]   ;;  %v1190_v15 = vld [vmem:[%s1360_s15 + $0x48] sm:$0xff]   ;;  %p1077_p2 = scmp.ne.s32.totalorder %s1222_s21, 2 }
  0x2e   : > { %vm446_vm6 = vmand %vm1398_vm3, %vm1402_vm4  ;;  %vm1429_vm9 = vcmp.eq.s32.totalorder %v628_v29, 1  ;;  %vm1441_vm11 = vcmp.eq.s32.totalorder %v635_v33, 1  ;;  %vm487_vm12 = vcmask 1045504   ;;  %v658_v42 = vadd.f32 %v1060_v6, %v648_v28  ;;  %v415_v29 = vld [vmem:[#allocation2] sm:$0xff]  ;;  %v416_v33 = vld [vmem:[#allocation2 + $0x8] sm:$0xff] }
  0x2f   : > { %vm447_vm8 = vmand %vm1389_vm1, %vm1402_vm4  ;;  %v1427_v31 = vsel %vm446_vm6, %v466_v20, 0.0  ;;  %578 = vmatpush1.bf16.msra.mxu0 %v1181_v22  ;;  %694 = vmatpush1.bf16.msra.mxu1 %v1181_v22  ;;  %v659_v45 = vadd.f32 %v1060_v6, %v649_v30  ;;  %v1185_v6 = vld [vmem:[%s1360_s15 + $0x10] sm:$0xff]  }
  0x30   : > { %vm448_vm10 = vmand %vm1413_vm5, %vm1402_vm4  ;;  %v1438_v36 = vsel %vm447_vm8, %v467_v25, 0.0  ;;  %v476_v37 = vrot.slane %v1427_v31, 1  ;;  %579 = vmatprep.subr.bf16.mxu0 %v1249_v17  ;;  %695 = vmatprep.subr.bf16.mxu1 %v1249_v17  ;;  %v488_v46 = vrot.slane %v1427_v31, 2  ;;  %v621_v41 = vld [vmem:[#allocation3] sm:$0xff] }
  0x31   : > { %v471_v39 = vsel %vm448_vm10, %v468_v27, 0.0  ;;  %v477_v40 = vrot.slane %v1438_v36, 1  ;;  %vm1452_vm13 = vmand %vm426_vm0, %vm1429_vm9  ;;  %v489_v47 = vrot.slane %v1438_v36, 2 }
  0x32   : > { %v479_v43 = vrot.slane %v471_v39, 1  ;;  %vm1459_vm14 = vmand %vm431_vm2, %vm1429_vm9  ;;  %v491_v50 = vrot.slane %v471_v39, 2  ;;  %vm495_vm2 = vcmask 523264  }
  0x33   : > { %v478_v48 = vsel %vm475_vm7, %v476_v37, %v477_v40  ;;  %vm637_vm15 = vmand %vm1452_vm13, %vm1441_vm11  ;;  %580 = vmatpush1.bf16.msra.mxu0 %v1182_v35  ;;  %696 = vmatpush1.bf16.msra.mxu1 %v1182_v35  ;;  %v490_v53 = vsel %vm487_vm12, %v488_v46, %v489_v47 }
  0x34   : > { %v480_v51 = vsel %vm475_vm7, %v477_v40, %v479_v43  ;;  %vm638_vm0 = vmand %vm1429_vm9, %vm1441_vm11  ;;  %v1476_v52 = vsel %vm637_vm15, %v657_v34, 0.0  ;;  %581 = vmatprep.subr.bf16.mxu0 %v1249_v17  ;;  %697 = vmatprep.subr.bf16.mxu1 %v1249_v17  ;;  %v492_v57 = vsel %vm487_vm12, %v489_v47, %v491_v50  ;;  %v620_v34 = vld [vmem:[#allocation3 + $0x8] sm:$0xff] }
  0x35   : > { %v1170_v54 = vpack.i.bf16 %v480_v51, %v478_v48  ;;  %vm639_vm1 = vmand %vm1459_vm14, %vm1441_vm11  ;;  %v1485_v55 = vsel %vm638_vm0, %v658_v42, 0.0  ;;  %v666_v56 = vrot.slane %v1476_v52, 1  ;;  %v499_v60 = vpack.c.bf16 %v492_v57, %v490_v53 }
  0x36   : > { %v662_v58 = vsel %vm639_vm1, %v659_v45, 0.0  ;;  %v667_v59 = vrot.slane %v1485_v55, 1  ;;  %v677_v1 = vrot.slane %v1476_v52, 2  ;;  %v678_v2 = vrot.slane %v1485_v55, 2 }
  0x37   : > { %1171 = vrot.lane.b32.xlu0 %v1170_v54, %s1250_s8  ;;  %v669_v61 = vrot.slane %v662_v58, 1  ;;  %582 = vmatpush1.bf16.msra.mxu0 %v1183_v49  ;;  %v680_v3 = vrot.slane %v662_v58, 2 }
  0x38   : > { %v668_v63 = vsel %vm475_vm7, %v666_v56, %v667_v59  ;;  %583 = vmatprep.subr.bf16.mxu0 %v1249_v17  ;;  %698 = vmatpush1.bf16.msra.mxu1 %v1183_v49  ;;  %v679_v8 = vsel %vm487_vm12, %v677_v1, %v678_v2 }
  0x39   : > { %v670_v0 = vsel %vm475_vm7, %v667_v59, %v669_v61  ;;  %699 = vmatprep.subr.bf16.mxu1 %v1249_v17  ;;  %1073 = vmatprep.mubr.msk.bf16.mxu0 %vm495_vm2, %v499_v60  ;;  %v681_v9 = vsel %vm487_vm12, %v678_v2, %v680_v3 }
  0x3a   : > { %v1175_v5 = vpack.i.bf16 %v670_v0, %v668_v63  ;;  %v687_v10 = vpack.c.bf16 %v681_v9, %v679_v8 }
  0x3b   : > { %584 = vmatpush1.bf16.msra.mxu0 %v1184_v62 }
  0x3c   : > { %1176 = vrot.lane.b32.xlu0 %v1175_v5, %s1250_s8  ;;  %585 = vmatprep.subr.bf16.mxu0 %v1249_v17 }
  0x3d   : > { %700 = vmatpush1.bf16.msra.mxu1 %v1184_v62  ;;  %1076 = vmatprep.mubr.msk.bf16.mxu1 %vm495_vm2, %v687_v10 }
  0x3e   : > { %701 = vmatprep.subr.bf16.mxu1 %v1249_v17 }
  0x3f   : > { %586 = vmatpush1.bf16.msra.mxu0 %v1185_v6 }
  0x40   : > { %587 = vmatprep.subr.bf16.mxu0 %v1249_v17 }
  0x41   : > { %702 = vmatpush1.bf16.msra.mxu1 %v1185_v6 }
  0x42   : > { %703 = vmatprep.subr.bf16.mxu1 %v1249_v17 }
  0x43   : > { %588 = vmatpush1.bf16.msra.mxu0 %v1186_v11 }
  0x44   : > { %589 = vmatprep.subr.bf16.mxu0 %v1249_v17 }
  0x45   : > { %704 = vmatpush1.bf16.msra.mxu1 %v1186_v11 }
  0x46   : > { %705 = vmatprep.subr.bf16.mxu1 %v1249_v17 }
  0x47   : > { %590 = vmatpush1.bf16.msra.mxu0 %v1187_v12 }
  0x48   : > { %599 = vmatprep.subr.bf16.mxu0 %v1249_v17 }
  0x49   : > { %706 = vmatpush1.bf16.msra.mxu1 %v1187_v12 }
  0x4a   : > { %715 = vmatprep.subr.bf16.mxu1 %v1249_v17 }
  0x4b   : > { %600 = vmatpush2.bf16.msra.mxu0 %v1188_v13 }
  0x4c   : > { %601 = vmatprep.subr.bf16.mxu0 %v1249_v17 }
  0x4d   : > { %716 = vmatpush2.bf16.msra.mxu1 %v1188_v13 }
  0x4e   : > { %717 = vmatprep.subr.bf16.mxu1 %v1249_v17 }
  0x4f   : > { %602 = vmatpush2.bf16.msra.mxu0 %v1189_v14 }
  0x50   : > { %603 = vmatprep.subr.bf16.mxu0 %v1249_v17 }
  0x51   : > { %718 = vmatpush2.bf16.msra.mxu1 %v1189_v14 }
  0x52   : > { %719 = vmatprep.subr.bf16.mxu1 %v1249_v17 }
  0x53   : > { %604 = vmatpush2.bf16.msra.mxu0 %v1190_v15 }
  0x54   : > { %605 = vmatprep.subr.bf16.mxu0 %v1249_v17 }
  0x55   : > { %720 = vmatpush2.bf16.msra.mxu1 %v1190_v15 }
  0x56   : > { %721 = vmatprep.subr.bf16.mxu1 %v1249_v17 }
  0x57   : > { %606 = vmatpush2.bf16.msra.mxu0 %v1191_v16 }
  0x59   : > { %722 = vmatpush2.bf16.msra.mxu1 %v1191_v16 }
  0xa9   : > { %v1172_v18 = vpop.permute.xlu0 %1171 }
  0xaa   : > { %v1174_v19 = vunpack.i.h.bf16 %v1172_v18  ;;  %v1173_v20 = vunpack.i.l.bf16 %v1172_v18 }
  0xac   : > { %v496_v21 = vsel %vm495_vm2, %v1427_v31, %v1173_v20  ;;  %v497_v22 = vsel %vm495_vm2, %v1438_v36, %v1174_v19 }
  0xad   : > { %v498_v23 = vpack.c.bf16 %v497_v22, %v496_v21 }
  0xae   : > { %v1177_v24 = vpop.permute.xlu0 %1176 }
  0xaf   : > { %v1179_v25 = vunpack.i.h.bf16 %v1177_v24  ;;  %v1178_v26 = vunpack.i.l.bf16 %v1177_v24  ;;  %608 = vmatmul.mubr.bf16.vlgmr.msra.gmra.mxu0 %v498_v23 }
  0xb1   : > { %v684_v27 = vsel %vm495_vm2, %v1476_v52, %v1178_v26  ;;  %v685_v17 = vsel %vm495_vm2, %v1485_v55, %v1179_v25 }
  0xb2   : > { %v686_v28 = vpack.c.bf16 %v685_v17, %v684_v27 }
  0xb4   : > { %724 = vmatmul.mubr.bf16.vlgmr.msra.gmra.mxu1 %v686_v28 }
 0x16f   : > { %v609_v30 = vpop.f32.mrf.mxu0 }
 0x170   : > { %v616_v32 = vadd.f32 %v609_v30, %v415_v29 }
 0x171   : > { %v611_v31 = vpop.f32.mrf.mxu0 }
 0x172   : > { %618 = vst [vmem:[#allocation2] sm:$0xff] %v616_v32 }
 0x173   : > { %v612_v35 = vpop.f32.mrf.mxu0 }
 0x174   : > { %v617_v36 = vadd.f32 %v612_v35, %v416_v33  ;;  %v725_v37 = vpop.f32.mrf.mxu1 }
 0x175   : > { %v732_v38 = vadd.f32 %v725_v37, %v620_v34  ;;  %v614_v39 = vpop.f32.mrf.mxu0 }
 0x176   : > { %619 = vst [vmem:[#allocation2 + $0x8] sm:$0xff] %v617_v36  ;;  %v727_v40 = vpop.f32.mrf.mxu1 }
 0x177   : > { %734 = vst [vmem:[#allocation3 + $0x8] sm:$0xff] %v732_v38  ;;  %739 = sbr.rel (%p1077_p2) target bundleno = 590 (0x24e), region = 52 }
 0x178   : > { %v728_v42 = vpop.f32.mrf.mxu1 }
 0x179   : > { %v733_v43 = vadd.f32 %v728_v42, %v621_v41 }
 0x17a   : > { %v730_v44 = vpop.f32.mrf.mxu1 }
 0x17b   : > { %735 = vst [vmem:[#allocation3] sm:$0xff] %v733_v43 }
 0x17c   : > { %v741_v47 = vld [vmem:[#allocation2] sm:$0xff]  ;;  %v748_v48 = vand.u32 127, %v422_v4  ;;  %v1251_v49 = vmov 0.0   ;;  %v749_v52 = vmul.u32 2, %v1377_v7  ;;  %vm1252_vm3 = vmmov 0  }
 0x17d   : > { %v742_v45 = vld [vmem:[#allocation2 + $0x8] sm:$0xff]  ;;  %1091 = vmatprep.subr.mxu0 %v1251_v49  ;;  %1098 = vmatprep.subr.mxu1 %v1251_v49  ;;  %vm757_vm5 = vcmask 130048   ;;  %v1082_v56 = vld [vmem:[%s1561_s3] ss:$0 sm:$0xff] }
 0x17e   : > { %v743_v51 = vld [vmem:[#allocation3 + $0x8] sm:$0xff]  ;;  %1095 = vmatprep.mubr.msk.f32.mxu0 %vm1252_vm3, %v1251_v49  ;;  %1102 = vmatprep.mubr.msk.f32.mxu1 %vm1252_vm3, %v1251_v49  ;;  %vm750_vm4 = vcmp.eq.s32.totalorder %v748_v48, %v749_v52  ;;  %v753_v54 = vadd.s32 1, %v749_v52 }
 0x17f   : > { %v745_v53 = vmax.f32 %v741_v47, %v743_v51  ;;  %v1078_v4 = vsel %vm750_vm4, 1.0, %v1251_v49 }
 0x180   : > { %vm754_vm6 = vcmp.eq.s32.totalorder %v748_v48, %v753_v54 }
 0x181   : > { %v1079_v55 = vsel %vm754_vm6, 1.0, %v1251_v49 }
 0x182   : > { %v744_v46 = vld [vmem:[#allocation3] sm:$0xff] }
 0x183   : > { %v746_v50 = vmax.f32 %v742_v45, %v744_v46 }
 0x185   : > { %1092 = vmatpush3.msra.mxu0 %v746_v50  ;;  %1099 = vmatpush3.msra.mxu1 %v746_v50 }
 0x186   : > { %1093 = vmatprep.subr.mxu0 %v1251_v49  ;;  %1100 = vmatprep.subr.mxu1 %v1251_v49 }
 0x187   : > { %1094 = vmatpush3.msra.mxu0 %v745_v53  ;;  %1101 = vmatpush3.msra.mxu1 %v745_v53 }
 0x188   : > { %1096 = vmatmul.mubr.msk.f32.vlgmr.msra.gmra.mxu0 %vm757_vm5, %v1078_v4  ;;  %1103 = vmatmul.mubr.msk.f32.vlgmr.msra.gmra.mxu1 %vm757_vm5, %v1079_v55 }
 0x248   : > { %v827_v7 = vpop.f32.mrf.mxu0  ;;  %v900_v57 = vpop.f32.mrf.mxu1 }
 0x249   : > { %v904_v58 = vmax.f32 %v827_v7, %v900_v57 }
 0x24a   : > { %v1097_v59 = vpop.f32.mrf.mxu0  ;;  %v1104_v60 = vpop.f32.mrf.mxu1 }
 0x24b   : > { %v911_v61 = vadd.f32 %v1082_v56, %v904_v58 }
 0x24d   : > { %912 = vst [vmem:[%s1365_s16] sm:$0xff] %v911_v61 }
 0x24e PF: > { %s16_s27 = sadd.s32 1, %s1246_s27   ;;  %s1590_s21 = sld [smem:[#allocation4_spill]] }
 0x24f   : > { %p13_p3 = scmp.ge.s32.totalorder %s16_s27, 50   ;;  %s1591_s22 = sld [smem:[#allocation5_spill]] }
 0x250   : > { %s1592_s23 = sld [smem:[#allocation6_spill]] }
 0x251   : > { %s1593_s24 = sld [smem:[#allocation7_spill]]  ;;  %15 = sbr.rel (!%p13_p3) target bundleno = 4 (0x4), region = 88 }
 0x252   : > { %s1594_s25 = sld [smem:[#allocation8_spill]] }
 0x253   : > { %s1595_s26 = sld [smem:[#allocation9_spill]] }

// kernel: home_forward.13
= control target key start
LH: loop header
LB: loop body
LE: loop exit
PB: predicated region body
PF: predicated region fallthrough
CT: control target
= control target key end

     0   :  { %s776_s12 = smov 0   ;;  %s778_s13 = smov 0   ;;  %s891_s0 = inlined_call_operand.vmem [shape: f32[2,9,10,128], index: 0, kind: input, shape index: {}]   ;;  %s892_s1 = inlined_call_operand.vmem [shape: bf16[2,256,64], index: 1, kind: input, shape index: {}]   ;;  %s893_s2 = inlined_call_operand.vmem [shape: f32[1,64], index: 2, kind: input, shape index: {}]   ;;  %s894_s3 = inlined_call_operand.vmem [shape: f32[2,8,9,64], index: 3, kind: output, shape index: {}]  }
   0x1   :  { %s780_s14 = smov 0   ;;  %s782_s15 = smov 0  }
   0x2   :  { %s784_s16 = smov 0   ;;  %s786_s17 = smov 0  }
   0x3   :  { %s788_s18 = smov 0  }
   0x4 LB: > { %s25_s19 = sadd.s32 1, %s741_s15  ;;  %s28_s20 = sadd.s32 1, %s745_s16  ;;  %s753_s18 = sphi %s788_s18, %s13_s18   ;;  %s749_s17 = sphi %s786_s17, %s900_s17   ;;  %s745_s16 = sphi %s784_s16, %s899_s16   ;;  %s741_s15 = sphi %s782_s15, %s898_s15   ;;  %s737_s14 = sphi %s780_s14, %s897_s14   ;;  %s733_s13 = sphi %s778_s13, %s896_s13   ;;  %s729_s12 = sphi %s776_s12, %s895_s12  }
   0x5   : > { %p26_p0 = scmp.ge.s32.totalorder %s25_s19, 2  ;;  %p573_p1 = scmp.ge.s32.totalorder %s753_s18, 1 }
   0x6   : > { %p178_p2 = scmp.lt.s32.totalorder %s753_s18, 33  ;;  %s32_s21 = sadd.s32 1, %s749_s17 }
   0x7   : > { %s902_s19 = smov (%p26_p0, %s25_s19), 0  ;;  %s904_s20 = smov (!%p26_p0, %s28_s20), %s745_s16 }
   0x8   : > { %p179_p3 = pnand %p573_p1, %p178_p2  ;;  %p30_p4 = scmp.ge.s32.totalorder %s904_s20, 8 }
   0x9   : > { %s216_s22 = sadd.s32 (!%p179_p3), %s729_s12, %s733_s13  ;;  %p217_p6 = scmp.lt.s32.totalorder (!%p179_p3), %s737_s14, 1 }
   0xa   : > { %s906_s20 = smov (%p30_p4, %s904_s20), 0  ;;  %s908_s21 = smov (!%p30_p4, %s32_s21), %s749_s17 }
   0xb   : > { %p34_p5 = scmp.ge.s32.totalorder %s908_s21, 2  ;;  %182 = sbr.rel (%p179_p3) target bundleno = 278 (0x116), region = 32 }
   0xc   : > { %p219_p7 = scmp.lt.s32.totalorder (!%p179_p3), %s216_s22, 8  ;;  %p227_p8 = scmp.lt.s32.totalorder (!%p179_p3), %s729_s12, 1 }
   0xd   : > { %s910_s21 = smov (%p34_p5, %s908_s21), 0  ;;  %p234_p9 = scmp.lt.s32.totalorder (!%p179_p3), %s733_s13, 7 }
   0xe   : > { %p581_p10 = scmp.ne.s32.totalorder (!%p179_p3), %s729_s12, 0 }
  0x10   : > { %s912_s14 = smov (!%p217_p6, %s737_s14), 1  ;;  %s914_s22 = smov (!%p219_p7, %s216_s22), 8 }
  0x11   : > { %s625_s23 = smul.u32 18, %s912_s14  ;;  %s574_s24 = sshll.u32 %s914_s22, 1 }
  0x12   : > { %s579_s30 = sshll.u32 %s912_s14, 4  ;;  %s916_s13 = smov (!%p234_p9, %s733_s13), 7 }
  0x13   : > { %s223_s25 = sadd.s32 %s625_s23, %s574_s24  ;;  %s578_s9 = sshll.u32 %s916_s13, 1 }
  0x14   : > { %s575_s26 = sshll.u32 %s223_s25, 3  ;;  %s238_s10 = sadd.s32 %s579_s30, %s578_s9 }
  0x15   : > { %s829_s29 = scalar_lea.vmem %s891_s0, %s575_s26  ;;  %s580_s11 = sshll.u32 %s238_s10, 3 }
  0x16   : > { %s228_s4 = scalar_select %p227_p8, %s729_s12, 1 }
  0x17   : > { %s841_s24 = scalar_lea.vmem %s894_s3, %s580_s11  ;;  %245 = sbr.rel (%p581_p10) target bundleno = 31 (0x1f), region = 36 }
  0x18   : > { %s602_s5 = sshll.u32 %s228_s4, 7 }
  0x19   : > { %s836_s8 = scalar_lea.vmem %s892_s1, %s602_s5 }
  0x1c   : > { %vm246_vm0 = vcmask 523264   ;;  %vm248_vm1 = vcmask 516096   ;;  %v755_v0 = vmov 0.0  }
  0x1d   : > { %247 = vst.msk [vmem:[#allocation2] sm:$0xff] %vm246_vm0, %v755_v0 }
  0x1e   : > { %249 = vst.msk [vmem:[#allocation2 + $0x8] sm:$0x1] %vm248_vm1, %v755_v0 }
  0x1f PF: > { %v683_v1 = vld [vmem:[%s836_s8 + $0x78] sm:$0xff]   ;;  %v685_v3 = vld [vmem:[%s836_s8 + $0x70] sm:$0xff]   ;;  %v687_v5 = vld [vmem:[%s836_s8 + $0x68] sm:$0xff]   ;;  %vm288_vm2 = vcmask 1046528   ;;  %vm435_vm3 = vcmask 523264   ;;  %vm437_vm4 = vcmask 516096  }
  0x20   : > { %v684_v2 = vld [vmem:[%s836_s8 + $0x38] sm:$0xff]   ;;  %603 = vmatprep.subr.bf16.mxu0 %v683_v1  ;;  %v686_v4 = vld [vmem:[%s836_s8 + $0x30] sm:$0xff]   ;;  %v688_v6 = vld [vmem:[%s836_s8 + $0x28] sm:$0xff]   ;;  %p598_p11 = scmp.ne.s32.totalorder %s729_s12, 1 }
  0x21   : > { %604 = vmatpush3.bf16.msra.mxu0 %v684_v2  ;;  %v689_v7 = vld [vmem:[%s836_s8 + $0x60] sm:$0xff]   ;;  %v691_v9 = vld [vmem:[%s836_s8 + $0x58] sm:$0xff]   ;;  %v693_v11 = vld [vmem:[%s836_s8 + $0x50] sm:$0xff]  }
  0x22   : > { %605 = vmatprep.subr.bf16.mxu0 %v685_v3  ;;  %v690_v8 = vld [vmem:[%s836_s8 + $0x20] sm:$0xff]   ;;  %v692_v10 = vld [vmem:[%s836_s8 + $0x18] sm:$0xff]   ;;  %v285_v13 = vld [vmem:[%s829_s29 + $0x8] sm:$0x3] }
  0x23   : > { %v284_v12 = vld [vmem:[%s829_s29] sm:$0xff]  ;;  %v290_v15 = vrot.slane %v285_v13, 1  ;;  %v694_v16 = vld [vmem:[%s836_s8 + $0x10] sm:$0xff]   ;;  %v695_v18 = vld [vmem:[%s836_s8 + $0x48] sm:$0xff]  }
  0x24   : > { %v289_v14 = vrot.slane %v284_v12, 1  ;;  %v696_v20 = vld [vmem:[%s836_s8 + $0x8] sm:$0xff]   ;;  %v697_v21 = vld [vmem:[%s836_s8 + $0x40] sm:$0xff]   ;;  %v294_v23 = vpack.c.bf16 %v285_v13, %v284_v12 }
  0x25   : > { %606 = vmatpush3.bf16.msra.mxu0 %v686_v4  ;;  %v698_v22 = vld [vmem:[%s836_s8] sm:$0xff]   ;;  %v283_v30 = vld [vmem:[#allocation2 + $0x8] sm:$0x1] }
  0x26   : > { %607 = vmatprep.subr.bf16.mxu0 %v687_v5  ;;  %v291_v17 = vsel %vm288_vm2, %v289_v14, %v290_v15  ;;  %v282_v25 = vld [vmem:[#allocation2] sm:$0xff] }
  0x27   : > { %v295_v19 = vpack.c.bf16 %v290_v15, %v291_v17 }
  0x29   : > { %608 = vmatpush3.bf16.msra.mxu0 %v688_v6  ;;  %424 = vmatprep.mubr.bf16.mxu0 %v295_v19 }
  0x2a   : > { %609 = vmatprep.subr.bf16.mxu0 %v689_v7 }
  0x2d   : > { %610 = vmatpush3.bf16.msra.mxu0 %v690_v8 }
  0x2e   : > { %611 = vmatprep.subr.bf16.mxu0 %v691_v9 }
  0x31   : > { %612 = vmatpush3.bf16.msra.mxu0 %v692_v10 }
  0x32   : > { %613 = vmatprep.subr.bf16.mxu0 %v693_v11 }
  0x35   : > { %614 = vmatpush3.bf16.msra.mxu0 %v694_v16 }
  0x36   : > { %615 = vmatprep.subr.bf16.mxu0 %v695_v18 }
  0x39   : > { %616 = vmatpush3.bf16.msra.mxu0 %v696_v20 }
  0x3a   : > { %617 = vmatprep.subr.bf16.mxu0 %v697_v21 }
  0x3d   : > { %618 = vmatpush3.bf16.msra.mxu0 %v698_v22 }
  0x40   : > { %425 = vmatmul.mubr.bf16.vlgmr.msra.gmra.mxu0 %v294_v23 }
 0x100   : > { %v619_v24 = vpop.f32.mrf.mxu0 }
 0x102   : > { %v620_v26 = vpop.f32.mrf.mxu0 }
 0x103   : > { %v621_v27 = vadd.f32 %v620_v26, %v619_v24 }
 0x104   : > { %v622_v28 = vpop.f32.mrf.mxu0 }
 0x105   : > { %v433_v29 = vadd.f32 %v621_v27, %v282_v25 }
 0x106   : > { %v623_v31 = vpop.f32.mrf.mxu0 }
 0x107   : > { %436 = vst.msk [vmem:[#allocation2] sm:$0xff] %vm435_vm3, %v433_v29  ;;  %v624_v32 = vadd.f32 %v623_v31, %v622_v28  ;;  %442 = sbr.rel (%p598_p11) target bundleno = 278 (0x116), region = 40 }
 0x109   : > { %v434_v33 = vadd.f32 %v624_v32, %v283_v30 }
 0x10b   : > { %438 = vst.msk [vmem:[#allocation2 + $0x8] sm:$0x1] %vm437_vm4, %v434_v33 }
 0x10c   : > { %v599_v34 = vld [vmem:[%s893_s2] ss:$0 sm:$0xff] }
 0x10e   : > { %v444_v35 = vld [vmem:[#allocation2] sm:$0xff] }
 0x10f   : > { %v452_v37 = vadd.f32 %v599_v34, %v444_v35 }
 0x111   : > { %454 = vst.msk [vmem:[%s841_s24] sm:$0xff] %vm435_vm3, %v452_v37 }
 0x112   : > { %v445_v36 = vld [vmem:[#allocation2 + $0x8] sm:$0x1] }
 0x113   : > { %v453_v38 = vadd.f32 %v599_v34, %v445_v36 }
 0x115   : > { %455 = vst.msk [vmem:[%s841_s24 + $0x8] sm:$0x1] %vm437_vm4, %v453_v38 }
 0x116 PF: > { %s13_s18 = sadd.s32 1, %s753_s18   ;;  %s895_s12 = smov %s741_s15 }
 0x117   : > { %p10_p12 = scmp.ge.s32.totalorder %s13_s18, 34   ;;  %s896_s13 = smov %s745_s16 }
 0x118   : > { %s897_s14 = smov %s749_s17  ;;  %s898_s15 = smov %s902_s19 }
 0x119   : > { %s899_s16 = smov %s906_s20  ;;  %s900_s17 = smov %s910_s21 }
 0x11a   :  { %12 = sbr.rel (!%p10_p12) target bundleno = 4 (0x4), region = 73 }

// kernel: home_forward.11
= control target key start
LH: loop header
LB: loop body
LE: loop exit
PB: predicated region body
PF: predicated region fallthrough
CT: control target
= control target key end

     0   :  { %s740_s12 = smov 0   ;;  %s742_s13 = smov 0   ;;  %s858_s0 = inlined_call_operand.vmem [shape: f32[2,9,10,128], index: 0, kind: input, shape index: {}]   ;;  %s859_s1 = inlined_call_operand.vmem [shape: bf16[1,256,64], index: 1, kind: input, shape index: {}]   ;;  %s860_s2 = inlined_call_operand.vmem [shape: f32[1,64], index: 2, kind: input, shape index: {}]   ;;  %s861_s3 = inlined_call_operand.vmem [shape: f32[2,8,9,64], index: 3, kind: output, shape index: {}]  }
   0x1   :  { %s744_s14 = smov 0   ;;  %s746_s15 = smov 0  }
   0x2   :  { %s748_s16 = smov 0  }
   0x3 LB: > { %s28_s17 = sadd.s32 1, %s709_s14  ;;  %s32_s18 = sadd.s32 1, %s713_s15  ;;  %s717_s16 = sphi %s748_s16, %s13_s16   ;;  %s713_s15 = sphi %s746_s15, %s865_s15   ;;  %s709_s14 = sphi %s744_s14, %s864_s14   ;;  %s705_s13 = sphi %s742_s13, %s863_s13   ;;  %s701_s12 = sphi %s740_s12, %s862_s12  }
   0x4   : > { %p30_p0 = scmp.ge.s32.totalorder %s28_s17, 8  ;;  %p574_p1 = scmp.ge.s32.totalorder %s717_s16, 1 }
   0x5   : > { %p178_p2 = scmp.lt.s32.totalorder %s717_s16, 17 }
   0x6   : > { %s867_s17 = smov (%p30_p0, %s28_s17), 0  ;;  %s869_s18 = smov (!%p30_p0, %s32_s18), %s713_s15 }
   0x7   : > { %p179_p3 = pnand %p574_p1, %p178_p2  ;;  %p34_p4 = scmp.ge.s32.totalorder %s869_s18, 2 }
   0x8   : > { %p217_p5 = scmp.lt.s32.totalorder (!%p179_p3), %s705_s13, 1  ;;  %p219_p6 = scmp.lt.s32.totalorder (!%p179_p3), %s701_s12, 8 }
   0x9   : > { %s871_s18 = smov (%p34_p4, %s869_s18), 0  ;;  %182 = sbr.rel (%p179_p3) target bundleno = 261 (0x105), region = 32 }
   0xa   : > { %p234_p7 = scmp.lt.s32.totalorder (!%p179_p3), %s701_s12, 7 }
   0xe   : > { %v663_v0 = vld [vmem:[%s859_s1 + $0x78] sm:$0xff]   ;;  %v665_v2 = vld [vmem:[%s859_s1 + $0x70] sm:$0xff]   ;;  %s873_s13 = smov (!%p217_p5, %s705_s13), 1  ;;  %v667_v4 = vld [vmem:[%s859_s1 + $0x68] sm:$0xff]   ;;  %vm288_vm0 = vcmask 1046528   ;;  %vm246_vm1 = vcmask 523264  }
   0xf   : > { %v664_v1 = vld [vmem:[%s859_s1 + $0x38] sm:$0xff]   ;;  %599 = vmatprep.subr.bf16.mxu0 %v663_v0  ;;  %v666_v3 = vld [vmem:[%s859_s1 + $0x30] sm:$0xff]   ;;  %s220_s27 = scalar_select %p219_p6, %s701_s12, 8  ;;  %v668_v5 = vld [vmem:[%s859_s1 + $0x28] sm:$0xff]   ;;  %v719_v23 = vmov 0.0   ;;  %vm248_vm2 = vcmask 516096  }
  0x10   : > { %600 = vmatpush3.bf16.msra.mxu0 %v664_v1  ;;  %s621_s30 = smul.u32 18, %s873_s13  ;;  %v669_v6 = vld [vmem:[%s859_s1 + $0x60] sm:$0xff]   ;;  %v671_v8 = vld [vmem:[%s859_s1 + $0x58] sm:$0xff]   ;;  %v673_v10 = vld [vmem:[%s859_s1 + $0x50] sm:$0xff]   ;;  %247 = vst.msk [vmem:[#allocation2] sm:$0xff] %vm246_vm1, %v719_v23  ;;  %s875_s12 = smov (!%p234_p7, %s701_s12), 7 }
  0x11   : > { %601 = vmatprep.subr.bf16.mxu0 %v665_v2  ;;  %s575_s4 = sshll.u32 %s220_s27, 1  ;;  %v670_v7 = vld [vmem:[%s859_s1 + $0x20] sm:$0xff]   ;;  %v672_v9 = vld [vmem:[%s859_s1 + $0x18] sm:$0xff]   ;;  %v674_v15 = vld [vmem:[%s859_s1 + $0x10] sm:$0xff]   ;;  %249 = vst.msk [vmem:[#allocation2 + $0x8] sm:$0x1] %vm248_vm2, %v719_v23 }
  0x12   : > { %s223_s7 = sadd.s32 %s621_s30, %s575_s4  ;;  %v675_v17 = vld [vmem:[%s859_s1 + $0x48] sm:$0xff]   ;;  %v677_v20 = vld [vmem:[%s859_s1 + $0x40] sm:$0xff]   ;;  %s577_s19 = sshll.u32 %s875_s12, 1 }
  0x13   : > { %s576_s10 = sshll.u32 %s223_s7, 3  ;;  %v676_v19 = vld [vmem:[%s859_s1 + $0x8] sm:$0xff]   ;;  %v678_v21 = vld [vmem:[%s859_s1] sm:$0xff]   ;;  %s578_s20 = sshll.u32 %s873_s13, 4 }
  0x14   : > { %602 = vmatpush3.bf16.msra.mxu0 %v666_v3  ;;  %s225_s24 = scalar_lea.vmem %s858_s0, %s576_s10  ;;  %s238_s21 = sadd.s32 %s578_s20, %s577_s19  ;;  %v596_v34 = vld [vmem:[%s860_s2] ss:$0 sm:$0xff] }
  0x15   : > { %603 = vmatprep.subr.bf16.mxu0 %v667_v4  ;;  %v284_v11 = vld [vmem:[%s225_s24] sm:$0xff]  ;;  %v285_v12 = vld [vmem:[%s225_s24 + $0x8] sm:$0x3]  ;;  %s579_s22 = sshll.u32 %s238_s21, 3 }
  0x16   : > { %v289_v13 = vrot.slane %v284_v11, 1  ;;  %v290_v14 = vrot.slane %v285_v12, 1  ;;  %v294_v22 = vpack.c.bf16 %v285_v12, %v284_v11  ;;  %s240_s12 = scalar_lea.vmem %s861_s3, %s579_s22 }
  0x17   : > { %v282_v25 = vld [vmem:[#allocation2] sm:$0xff] }
  0x18   : > { %604 = vmatpush3.bf16.msra.mxu0 %v668_v5  ;;  %v291_v16 = vsel %vm288_vm0, %v289_v13, %v290_v14  ;;  %v283_v30 = vld [vmem:[#allocation2 + $0x8] sm:$0x1] }
  0x19   : > { %605 = vmatprep.subr.bf16.mxu0 %v669_v6  ;;  %v295_v18 = vpack.c.bf16 %v290_v14, %v291_v16 }
  0x1b   : > { %424 = vmatprep.mubr.bf16.mxu0 %v295_v18 }
  0x1c   : > { %606 = vmatpush3.bf16.msra.mxu0 %v670_v7 }
  0x1d   : > { %607 = vmatprep.subr.bf16.mxu0 %v671_v8 }
  0x20   : > { %608 = vmatpush3.bf16.msra.mxu0 %v672_v9 }
  0x21   : > { %609 = vmatprep.subr.bf16.mxu0 %v673_v10 }
  0x24   : > { %610 = vmatpush3.bf16.msra.mxu0 %v674_v15 }
  0x25   : > { %611 = vmatprep.subr.bf16.mxu0 %v675_v17 }
  0x28   : > { %612 = vmatpush3.bf16.msra.mxu0 %v676_v19 }
  0x29   : > { %613 = vmatprep.subr.bf16.mxu0 %v677_v20 }
  0x2c   : > { %614 = vmatpush3.bf16.msra.mxu0 %v678_v21 }
  0x2f   : > { %425 = vmatmul.mubr.bf16.vlgmr.msra.gmra.mxu0 %v294_v22 }
  0xef   : > { %v615_v24 = vpop.f32.mrf.mxu0 }
  0xf1   : > { %v616_v26 = vpop.f32.mrf.mxu0 }
  0xf2   : > { %v617_v27 = vadd.f32 %v616_v26, %v615_v24 }
  0xf3   : > { %v618_v28 = vpop.f32.mrf.mxu0 }
  0xf4   : > { %v433_v29 = vadd.f32 %v617_v27, %v282_v25 }
  0xf5   : > { %v619_v31 = vpop.f32.mrf.mxu0 }
  0xf6   : > { %436 = vst.msk [vmem:[#allocation2] sm:$0xff] %vm246_vm1, %v433_v29  ;;  %v620_v32 = vadd.f32 %v619_v31, %v618_v28 }
  0xf8   : > { %v434_v33 = vadd.f32 %v620_v32, %v283_v30 }
  0xfa   : > { %438 = vst.msk [vmem:[#allocation2 + $0x8] sm:$0x1] %vm248_vm2, %v434_v33 }
  0xfd   : > { %v443_v35 = vld [vmem:[#allocation2] sm:$0xff] }
  0xfe   : > { %v451_v36 = vadd.f32 %v596_v34, %v443_v35 }
 0x100   : > { %453 = vst.msk [vmem:[%s240_s12] sm:$0xff] %vm246_vm1, %v451_v36 }
 0x101   : > { %v444_v37 = vld [vmem:[#allocation2 + $0x8] sm:$0x1] }
 0x102   : > { %v452_v38 = vadd.f32 %v596_v34, %v444_v37 }
 0x104   : > { %454 = vst.msk [vmem:[%s240_s12 + $0x8] sm:$0x1] %vm248_vm2, %v452_v38 }
 0x105 PF: > { %s13_s16 = sadd.s32 1, %s717_s16   ;;  %s862_s12 = smov %s709_s14 }
 0x106   : > { %p10_p8 = scmp.ge.s32.totalorder %s13_s16, 18   ;;  %s863_s13 = smov %s713_s15 }
 0x107   : > { %s864_s14 = smov %s867_s17  ;;  %s865_s15 = smov %s871_s18 }
 0x108   :  { %12 = sbr.rel (!%p10_p8) target bundleno = 3 (0x3), region = 73 }

// kernel: home_forward.14
= control target key start
LH: loop header
LB: loop body
LE: loop exit
PB: predicated region body
PF: predicated region fallthrough
CT: control target
= control target key end

     0   :  { %s773_s12 = smov 0   ;;  %s775_s13 = smov 0   ;;  %s885_s0 = inlined_call_operand.vmem [shape: f32[2,9,10,128], index: 0, kind: input, shape index: {}]   ;;  %s886_s1 = inlined_call_operand.vmem [shape: bf16[2,256,64], index: 1, kind: input, shape index: {}]   ;;  %s887_s2 = inlined_call_operand.vmem [shape: f32[1,64], index: 2, kind: input, shape index: {}]   ;;  %s888_s3 = inlined_call_operand.vmem [shape: f32[2,8,8,64], index: 3, kind: output, shape index: {}]  }
   0x1   :  { %s777_s14 = smov 0   ;;  %s779_s15 = smov 0  }
   0x2   :  { %s781_s16 = smov 0   ;;  %s783_s17 = smov 0  }
   0x3   :  { %s785_s18 = smov 0  }
   0x4 LB: > { %s25_s19 = sadd.s32 1, %s738_s15  ;;  %s28_s20 = sadd.s32 1, %s742_s16  ;;  %s750_s18 = sphi %s785_s18, %s13_s18   ;;  %s746_s17 = sphi %s783_s17, %s894_s17   ;;  %s742_s16 = sphi %s781_s16, %s893_s16   ;;  %s738_s15 = sphi %s779_s15, %s892_s15   ;;  %s734_s14 = sphi %s777_s14, %s891_s14   ;;  %s730_s13 = sphi %s775_s13, %s890_s13   ;;  %s726_s12 = sphi %s773_s12, %s889_s12  }
   0x5   : > { %p26_p0 = scmp.ge.s32.totalorder %s25_s19, 2  ;;  %p571_p1 = scmp.ge.s32.totalorder %s750_s18, 1 }
   0x6   : > { %p178_p2 = scmp.lt.s32.totalorder %s750_s18, 33  ;;  %s32_s21 = sadd.s32 1, %s746_s17 }
   0x7   : > { %s896_s19 = smov (%p26_p0, %s25_s19), 0  ;;  %s898_s20 = smov (!%p26_p0, %s28_s20), %s742_s16 }
   0x8   : > { %p179_p3 = pnand %p571_p1, %p178_p2  ;;  %p30_p4 = scmp.ge.s32.totalorder %s898_s20, 8 }
   0x9   : > { %s215_s22 = sadd.s32 (!%p179_p3), %s726_s12, %s730_s13  ;;  %p216_p6 = scmp.lt.s32.totalorder (!%p179_p3), %s734_s14, 1 }
   0xa   : > { %s900_s20 = smov (%p30_p4, %s898_s20), 0  ;;  %s902_s21 = smov (!%p30_p4, %s32_s21), %s746_s17 }
   0xb   : > { %p34_p5 = scmp.ge.s32.totalorder %s902_s21, 2  ;;  %182 = sbr.rel (%p179_p3) target bundleno = 273 (0x111), region = 32 }
   0xc   : > { %p218_p7 = scmp.lt.s32.totalorder (!%p179_p3), %s215_s22, 8  ;;  %p226_p8 = scmp.lt.s32.totalorder (!%p179_p3), %s726_s12, 1 }
   0xd   : > { %s904_s21 = smov (%p34_p5, %s902_s21), 0  ;;  %p233_p9 = scmp.lt.s32.totalorder (!%p179_p3), %s730_s13, 7 }
   0xe   : > { %p578_p10 = scmp.ne.s32.totalorder (!%p179_p3), %s726_s12, 0 }
  0x10   : > { %s906_s14 = smov (!%p216_p6, %s734_s14), 1  ;;  %s908_s22 = smov (!%p218_p7, %s215_s22), 8 }
  0x11   : > { %s622_s23 = smul.u32 18, %s906_s14  ;;  %s572_s24 = sshll.u32 %s908_s22, 1 }
  0x12   : > { %s576_s30 = sshll.u32 %s906_s14, 3  ;;  %s910_s13 = smov (!%p233_p9, %s730_s13), 7 }
  0x13   : > { %s222_s25 = sadd.s32 %s622_s23, %s572_s24  ;;  %s236_s9 = sadd.s32 %s576_s30, %s910_s13 }
  0x14   : > { %s573_s26 = sshll.u32 %s222_s25, 3  ;;  %s577_s10 = sshll.u32 %s236_s9, 3 }
  0x15   : > { %s826_s29 = scalar_lea.vmem %s885_s0, %s573_s26  ;;  %s838_s23 = scalar_lea.vmem %s888_s3, %s577_s10 }
  0x16   : > { %s227_s4 = scalar_select %p226_p8, %s726_s12, 1 }
  0x17   : > { %243 = sbr.rel (%p578_p10) target bundleno = 30 (0x1e), region = 36 }
  0x18   : > { %s599_s5 = sshll.u32 %s227_s4, 7 }
  0x19   : > { %s833_s8 = scalar_lea.vmem %s886_s1, %s599_s5 }
  0x1c   : > { %vm244_vm0 = vcmask 523264   ;;  %v752_v0 = vmov 0.0  }
  0x1d   : > { %245 = vst.msk [vmem:[#allocation2] sm:$0xff] %vm244_vm0, %v752_v0 }
  0x1e PF: > { %v680_v1 = vld [vmem:[%s833_s8 + $0x78] sm:$0xff]   ;;  %v682_v3 = vld [vmem:[%s833_s8 + $0x70] sm:$0xff]   ;;  %v684_v5 = vld [vmem:[%s833_s8 + $0x68] sm:$0xff]   ;;  %vm283_vm1 = vcmask 1046528   ;;  %vm444_vm2 = vcmask 523264   ;;  %p595_p11 = scmp.ne.s32.totalorder %s726_s12, 1 }
  0x1f   : > { %v681_v2 = vld [vmem:[%s833_s8 + $0x38] sm:$0xff]   ;;  %600 = vmatprep.subr.bf16.mxu0 %v680_v1  ;;  %v683_v4 = vld [vmem:[%s833_s8 + $0x30] sm:$0xff]   ;;  %v685_v6 = vld [vmem:[%s833_s8 + $0x28] sm:$0xff]  }
  0x20   : > { %601 = vmatpush3.bf16.msra.mxu0 %v681_v2  ;;  %v686_v7 = vld [vmem:[%s833_s8 + $0x60] sm:$0xff]   ;;  %v688_v9 = vld [vmem:[%s833_s8 + $0x58] sm:$0xff]   ;;  %v690_v11 = vld [vmem:[%s833_s8 + $0x50] sm:$0xff]  }
  0x21   : > { %602 = vmatprep.subr.bf16.mxu0 %v682_v3  ;;  %v687_v8 = vld [vmem:[%s833_s8 + $0x20] sm:$0xff]   ;;  %v689_v10 = vld [vmem:[%s833_s8 + $0x18] sm:$0xff]   ;;  %v280_v13 = vld [vmem:[%s826_s29 + $0x8] sm:$0x3] }
  0x22   : > { %v279_v12 = vld [vmem:[%s826_s29] sm:$0xff]  ;;  %v285_v15 = vrot.slane %v280_v13, 1  ;;  %v691_v17 = vld [vmem:[%s833_s8 + $0x10] sm:$0xff]   ;;  %v692_v19 = vld [vmem:[%s833_s8 + $0x48] sm:$0xff]  }
  0x23   : > { %v284_v14 = vrot.slane %v279_v12, 1  ;;  %v289_v16 = vpack.c.bf16 %v280_v13, %v279_v12  ;;  %v693_v24 = vld [vmem:[%s833_s8 + $0x8] sm:$0xff]   ;;  %v694_v25 = vld [vmem:[%s833_s8 + $0x40] sm:$0xff]  }
  0x24   : > { %603 = vmatpush3.bf16.msra.mxu0 %v683_v4  ;;  %v695_v30 = vld [vmem:[%s833_s8] sm:$0xff]  }
  0x25   : > { %604 = vmatprep.subr.bf16.mxu0 %v684_v5  ;;  %v286_v18 = vsel %vm283_vm1, %v284_v14, %v285_v15  ;;  %v294_v23 = vshll.u32 %v289_v16, 16  ;;  %v292_v28 = vshrl.u32 %v289_v16, 16  ;;  %v278_v33 = vld [vmem:[#allocation2] sm:$0xff] }
  0x26   : > { %v290_v20 = vpack.c.bf16 %v285_v15, %v286_v18 }
  0x27   : > { %v296_v29 = vrot.slane %v294_v23, 1 }
  0x28   : > { %605 = vmatpush3.bf16.msra.mxu0 %v685_v6  ;;  %v299_v21 = vshrl.u32 %v290_v20, 16  ;;  %v301_v22 = vshll.u32 %v290_v20, 16 }
  0x29   : > { %606 = vmatprep.subr.bf16.mxu0 %v686_v7  ;;  %v297_v31 = vor.u32 %v296_v29, %v292_v28 }
  0x2a   : > { %v303_v26 = vrot.slane %v301_v22, 1 }
  0x2c   : > { %607 = vmatpush3.bf16.msra.mxu0 %v687_v8  ;;  %v304_v27 = vor.u32 %v303_v26, %v299_v21 }
  0x2d   : > { %608 = vmatprep.subr.bf16.mxu0 %v688_v9 }
  0x2e   : > { %435 = vmatprep.mubr.bf16.mxu0 %v304_v27 }
  0x30   : > { %609 = vmatpush3.bf16.msra.mxu0 %v689_v10 }
  0x31   : > { %610 = vmatprep.subr.bf16.mxu0 %v690_v11 }
  0x34   : > { %611 = vmatpush3.bf16.msra.mxu0 %v691_v17 }
  0x35   : > { %612 = vmatprep.subr.bf16.mxu0 %v692_v19 }
  0x38   : > { %613 = vmatpush3.bf16.msra.mxu0 %v693_v24 }
  0x39   : > { %614 = vmatprep.subr.bf16.mxu0 %v694_v25 }
  0x3c   : > { %615 = vmatpush3.bf16.msra.mxu0 %v695_v30 }
  0x3f   : > { %436 = vmatmul.mubr.bf16.vlgmr.msra.gmra.mxu0 %v297_v31 }
  0xff   : > { %v616_v32 = vpop.f32.mrf.mxu0 }
 0x101   : > { %v617_v34 = vpop.f32.mrf.mxu0 }
 0x102   : > { %v618_v35 = vadd.f32 %v617_v34, %v616_v32  ;;  %449 = sbr.rel (%p595_p11) target bundleno = 273 (0x111), region = 40 }
 0x103   : > { %v619_v36 = vpop.f32.mrf.mxu0 }
 0x104   : > { %v443_v37 = vadd.f32 %v618_v35, %v278_v33 }
 0x105   : > { %v620_v38 = vpop.f32.mrf.mxu0 }
 0x106   : > { %445 = vst.msk [vmem:[#allocation2] sm:$0xff] %vm444_vm2, %v443_v37 }
 0x107   : > { %v596_v39 = vld [vmem:[%s887_s2] ss:$0 sm:$0xff] }
 0x10d   : > { %v451_v40 = vld [vmem:[#allocation2] sm:$0xff] }
 0x10e   : > { %v458_v41 = vadd.f32 %v596_v39, %v451_v40 }
 0x110   : > { %459 = vst.msk [vmem:[%s838_s23] sm:$0xff] %vm444_vm2, %v458_v41 }
 0x111 PF: > { %s13_s18 = sadd.s32 1, %s750_s18   ;;  %s889_s12 = smov %s738_s15 }
 0x112   : > { %p10_p12 = scmp.ge.s32.totalorder %s13_s18, 34   ;;  %s890_s13 = smov %s742_s16 }
 0x113   : > { %s891_s14 = smov %s746_s17  ;;  %s892_s15 = smov %s896_s19 }
 0x114   : > { %s893_s16 = smov %s900_s20  ;;  %s894_s17 = smov %s904_s21 }
 0x115   :  { %12 = sbr.rel (!%p10_p12) target bundleno = 4 (0x4), region = 73 }

// kernel: home_forward.12
= control target key start
LH: loop header
LB: loop body
LE: loop exit
PB: predicated region body
PF: predicated region fallthrough
CT: control target
= control target key end

     0   :  { %s737_s12 = smov 0   ;;  %s739_s13 = smov 0   ;;  %s852_s0 = inlined_call_operand.vmem [shape: f32[2,9,10,128], index: 0, kind: input, shape index: {}]   ;;  %s853_s1 = inlined_call_operand.vmem [shape: bf16[1,256,64], index: 1, kind: input, shape index: {}]   ;;  %s854_s2 = inlined_call_operand.vmem [shape: f32[1,64], index: 2, kind: input, shape index: {}]   ;;  %s855_s3 = inlined_call_operand.vmem [shape: f32[2,8,8,64], index: 3, kind: output, shape index: {}]  }
   0x1   :  { %s741_s14 = smov 0   ;;  %s743_s15 = smov 0  }
   0x2   :  { %s745_s16 = smov 0  }
   0x3 LB: > { %s28_s17 = sadd.s32 1, %s706_s14  ;;  %s32_s18 = sadd.s32 1, %s710_s15  ;;  %s714_s16 = sphi %s745_s16, %s13_s16   ;;  %s710_s15 = sphi %s743_s15, %s859_s15   ;;  %s706_s14 = sphi %s741_s14, %s858_s14   ;;  %s702_s13 = sphi %s739_s13, %s857_s13   ;;  %s698_s12 = sphi %s737_s12, %s856_s12  }
   0x4   : > { %p30_p0 = scmp.ge.s32.totalorder %s28_s17, 8  ;;  %p572_p1 = scmp.ge.s32.totalorder %s714_s16, 1 }
   0x5   : > { %p178_p2 = scmp.lt.s32.totalorder %s714_s16, 17 }
   0x6   : > { %s861_s17 = smov (%p30_p0, %s28_s17), 0  ;;  %s863_s18 = smov (!%p30_p0, %s32_s18), %s710_s15 }
   0x7   : > { %p179_p3 = pnand %p572_p1, %p178_p2  ;;  %p34_p4 = scmp.ge.s32.totalorder %s863_s18, 2 }
   0x8   : > { %p216_p5 = scmp.lt.s32.totalorder (!%p179_p3), %s702_s13, 1  ;;  %p218_p6 = scmp.lt.s32.totalorder (!%p179_p3), %s698_s12, 8 }
   0x9   : > { %s865_s18 = smov (%p34_p4, %s863_s18), 0  ;;  %182 = sbr.rel (%p179_p3) target bundleno = 257 (0x101), region = 32 }
   0xa   : > { %p233_p7 = scmp.lt.s32.totalorder (!%p179_p3), %s698_s12, 7 }
   0xe   : > { %v660_v0 = vld [vmem:[%s853_s1 + $0x78] sm:$0xff]   ;;  %v662_v2 = vld [vmem:[%s853_s1 + $0x70] sm:$0xff]   ;;  %s867_s13 = smov (!%p216_p5, %s702_s13), 1  ;;  %v664_v4 = vld [vmem:[%s853_s1 + $0x68] sm:$0xff]   ;;  %vm283_vm0 = vcmask 1046528   ;;  %vm244_vm1 = vcmask 523264  }
   0xf   : > { %v661_v1 = vld [vmem:[%s853_s1 + $0x38] sm:$0xff]   ;;  %596 = vmatprep.subr.bf16.mxu0 %v660_v0  ;;  %v663_v3 = vld [vmem:[%s853_s1 + $0x30] sm:$0xff]   ;;  %s219_s27 = scalar_select %p218_p6, %s698_s12, 8  ;;  %v665_v5 = vld [vmem:[%s853_s1 + $0x28] sm:$0xff]   ;;  %v716_v31 = vmov 0.0  }
  0x10   : > { %597 = vmatpush3.bf16.msra.mxu0 %v661_v1  ;;  %s618_s30 = smul.u32 18, %s867_s13  ;;  %v666_v6 = vld [vmem:[%s853_s1 + $0x60] sm:$0xff]   ;;  %v668_v8 = vld [vmem:[%s853_s1 + $0x58] sm:$0xff]   ;;  %v670_v10 = vld [vmem:[%s853_s1 + $0x50] sm:$0xff]   ;;  %245 = vst.msk [vmem:[#allocation2] sm:$0xff] %vm244_vm1, %v716_v31  ;;  %s869_s12 = smov (!%p233_p7, %s698_s12), 7 }
  0x11   : > { %598 = vmatprep.subr.bf16.mxu0 %v662_v2  ;;  %s573_s4 = sshll.u32 %s219_s27, 1  ;;  %v667_v7 = vld [vmem:[%s853_s1 + $0x20] sm:$0xff]   ;;  %v669_v9 = vld [vmem:[%s853_s1 + $0x18] sm:$0xff]   ;;  %v671_v16 = vld [vmem:[%s853_s1 + $0x10] sm:$0xff]   ;;  %s575_s19 = sshll.u32 %s867_s13, 3 }
  0x12   : > { %s222_s7 = sadd.s32 %s618_s30, %s573_s4  ;;  %v672_v18 = vld [vmem:[%s853_s1 + $0x48] sm:$0xff]   ;;  %v674_v24 = vld [vmem:[%s853_s1 + $0x40] sm:$0xff]   ;;  %s236_s20 = sadd.s32 %s575_s19, %s869_s12 }
  0x13   : > { %s574_s10 = sshll.u32 %s222_s7, 3  ;;  %v673_v23 = vld [vmem:[%s853_s1 + $0x8] sm:$0xff]   ;;  %v675_v29 = vld [vmem:[%s853_s1] sm:$0xff]   ;;  %s576_s21 = sshll.u32 %s236_s20, 3 }
  0x14   : > { %599 = vmatpush3.bf16.msra.mxu0 %v663_v3  ;;  %s224_s24 = scalar_lea.vmem %s852_s0, %s574_s10  ;;  %v593_v39 = vld [vmem:[%s854_s2] ss:$0 sm:$0xff]  ;;  %s238_s26 = scalar_lea.vmem %s855_s3, %s576_s21 }
  0x15   : > { %600 = vmatprep.subr.bf16.mxu0 %v664_v4  ;;  %v279_v11 = vld [vmem:[%s224_s24] sm:$0xff]  ;;  %v280_v12 = vld [vmem:[%s224_s24 + $0x8] sm:$0x3] }
  0x16   : > { %v284_v13 = vrot.slane %v279_v11, 1  ;;  %v285_v14 = vrot.slane %v280_v12, 1  ;;  %v289_v15 = vpack.c.bf16 %v280_v12, %v279_v11 }
  0x17   : > { %v278_v33 = vld [vmem:[#allocation2] sm:$0xff] }
  0x18   : > { %601 = vmatpush3.bf16.msra.mxu0 %v665_v5  ;;  %v286_v17 = vsel %vm283_vm0, %v284_v13, %v285_v14  ;;  %v294_v22 = vshll.u32 %v289_v15, 16  ;;  %v292_v27 = vshrl.u32 %v289_v15, 16 }
  0x19   : > { %602 = vmatprep.subr.bf16.mxu0 %v666_v6  ;;  %v290_v19 = vpack.c.bf16 %v285_v14, %v286_v17 }
  0x1a   : > { %v296_v28 = vrot.slane %v294_v22, 1 }
  0x1b   : > { %v299_v20 = vshrl.u32 %v290_v19, 16  ;;  %v301_v21 = vshll.u32 %v290_v19, 16 }
  0x1c   : > { %603 = vmatpush3.bf16.msra.mxu0 %v667_v7  ;;  %v297_v30 = vor.u32 %v296_v28, %v292_v27 }
  0x1d   : > { %604 = vmatprep.subr.bf16.mxu0 %v668_v8  ;;  %v303_v25 = vrot.slane %v301_v21, 1 }
  0x1f   : > { %v304_v26 = vor.u32 %v303_v25, %v299_v20 }
  0x20   : > { %605 = vmatpush3.bf16.msra.mxu0 %v669_v9 }
  0x21   : > { %606 = vmatprep.subr.bf16.mxu0 %v670_v10  ;;  %435 = vmatprep.mubr.bf16.mxu0 %v304_v26 }
  0x24   : > { %607 = vmatpush3.bf16.msra.mxu0 %v671_v16 }
  0x25   : > { %608 = vmatprep.subr.bf16.mxu0 %v672_v18 }
  0x28   : > { %609 = vmatpush3.bf16.msra.mxu0 %v673_v23 }
  0x29   : > { %610 = vmatprep.subr.bf16.mxu0 %v674_v24 }
  0x2c   : > { %611 = vmatpush3.bf16.msra.mxu0 %v675_v29 }
  0x2f   : > { %436 = vmatmul.mubr.bf16.vlgmr.msra.gmra.mxu0 %v297_v30 }
  0xef   : > { %v612_v32 = vpop.f32.mrf.mxu0 }
  0xf1   : > { %v613_v34 = vpop.f32.mrf.mxu0 }
  0xf2   : > { %v614_v35 = vadd.f32 %v613_v34, %v612_v32 }
  0xf3   : > { %v615_v36 = vpop.f32.mrf.mxu0 }
  0xf4   : > { %v443_v37 = vadd.f32 %v614_v35, %v278_v33 }
  0xf5   : > { %v616_v38 = vpop.f32.mrf.mxu0 }
  0xf6   : > { %445 = vst.msk [vmem:[#allocation2] sm:$0xff] %vm244_vm1, %v443_v37 }
  0xfd   : > { %v450_v40 = vld [vmem:[#allocation2] sm:$0xff] }
  0xfe   : > { %v457_v41 = vadd.f32 %v593_v39, %v450_v40 }
 0x100   : > { %458 = vst.msk [vmem:[%s238_s26] sm:$0xff] %vm244_vm1, %v457_v41 }
 0x101 PF: > { %s13_s16 = sadd.s32 1, %s714_s16   ;;  %s856_s12 = smov %s706_s14 }
 0x102   : > { %p10_p8 = scmp.ge.s32.totalorder %s13_s16, 18   ;;  %s857_s13 = smov %s710_s15 }
 0x103   : > { %s858_s14 = smov %s861_s17  ;;  %s859_s15 = smov %s865_s18 }
 0x104   :  { %12 = sbr.rel (!%p10_p8) target bundleno = 3 (0x3), region = 73 }

// kernel: home_forward.15
= control target key start
LH: loop header
LB: loop body
LE: loop exit
PB: predicated region body
PF: predicated region fallthrough
CT: control target
= control target key end

     0   :  { %vm102_vm0 = vcmask 523264   ;;  %vm1300_vm1 = vcmask 261120   ;;  %vm2847_vm2 = vcmask 7168   ;;  %s7888_s3 = inlined_call_operand.vmem [shape: f32[64,32], index: 3, kind: input, shape index: {}]   ;;  %s7889_s0 = inlined_call_operand.vmem [shape: f32[544,64], index: 0, kind: input, shape index: {}]   ;;  %s7890_s1 = inlined_call_operand.vmem [shape: f32[1,64], index: 1, kind: input, shape index: {}]   ;;  %s7891_s2 = inlined_call_operand.vmem [shape: f32[1,64], index: 2, kind: input, shape index: {}]   ;;  %s7892_s4 = inlined_call_operand.vmem [shape: f32[1,32], index: 4, kind: input, shape index: {}]   ;;  %s7893_s8 = inlined_call_operand.<no memory space> [shape: f32[1,1], index: 8, kind: input, shape index: {}]   ;;  %s7894_s5 = inlined_call_operand.vmem [shape: f32[1,32], index: 5, kind: input, shape index: {}]   ;;  %s7895_s6 = inlined_call_operand.vmem [shape: f32[1,32], index: 6, kind: input, shape index: {}]   ;;  %s7896_s7 = inlined_call_operand.vmem [shape: f32[1,32], index: 7, kind: input, shape index: {}]   ;;  %s7897_s9 = inlined_call_operand.vmem [shape: f32[544,1], index: 9, kind: output, shape index: {}]  }
   0x1   :  { %v683_v0 = vld [vmem:[%s7888_s3 + $0x38] sm:$0xff]  ;;  %v682_v1 = vld [vmem:[%s7888_s3 + $0x30] sm:$0xff]  ;;  %v681_v2 = vld [vmem:[%s7888_s3 + $0x28] sm:$0xff] }
   0x2   :  { %3317 = vmatprep.subr.mxu0 %v683_v0  ;;  %3435 = vmatprep.subr.mxu1 %v683_v0  ;;  %v3863_v3 = vld [vmem:[%s7889_s0] sm:$0xff]  ;;  %v3868_v4 = vld [vmem:[%s7889_s0 + $0x8] sm:$0xff]  ;;  %v3873_v5 = vld [vmem:[%s7889_s0 + $0x10] sm:$0xff] }
   0x3   :  { %3318 = vmatpush3.msra.mxu0 %v683_v0  ;;  %3443 = vmatpush3.msra.mxu1 %v683_v0  ;;  %v3878_v6 = vld [vmem:[%s7889_s0 + $0x18] sm:$0xff]  ;;  %v103_v7 = vsel %vm102_vm0, %v3863_v3, 0.0  ;;  %v680_v8 = vld [vmem:[%s7888_s3 + $0x20] sm:$0xff]  ;;  %v104_v9 = vsel %vm102_vm0, %v3868_v4, 0.0  ;;  %v106_v10 = vsel %vm102_vm0, %v3873_v5, 0.0  ;;  %v3902_v15 = vld [vmem:[%s7889_s0 + $0x28] sm:$0xff] }
   0x4   :  { %3319 = vmatprep.subr.mxu0 %v682_v1  ;;  %3436 = vmatprep.subr.mxu1 %v682_v1  ;;  %v3892_v11 = vld [vmem:[%s7889_s0 + $0x20] sm:$0xff]  ;;  %v105_v12 = vadd.f32 %v104_v9, %v103_v7  ;;  %v679_v13 = vld [vmem:[%s7888_s3 + $0x18] sm:$0xff]  ;;  %v108_v14 = vsel %vm102_vm0, %v3878_v6, 0.0  ;;  %v678_v17 = vld [vmem:[%s7888_s3 + $0x10] sm:$0xff]  ;;  %v112_v22 = vsel %vm102_vm0, %v3902_v15, 0.0 }
   0x5   :  { %3320 = vmatpush3.msra.mxu0 %v682_v1  ;;  %3444 = vmatpush3.msra.mxu1 %v682_v1  ;;  %v110_v18 = vsel %vm102_vm0, %v3892_v11, 0.0  ;;  %v3912_v19 = vld [vmem:[%s7889_s0 + $0x30] sm:$0xff]  ;;  %v677_v21 = vld [vmem:[%s7888_s3 + $0x8] sm:$0xff]  ;;  %v3922_v23 = vld [vmem:[%s7889_s0 + $0x38] sm:$0xff] }
   0x6   :  { %3321 = vmatprep.subr.mxu0 %v681_v2  ;;  %3437 = vmatprep.subr.mxu1 %v681_v2  ;;  %v107_v16 = vadd.f32 %v106_v10, %v105_v12  ;;  %v676_v25 = vld [vmem:[%s7888_s3] sm:$0xff]  ;;  %v114_v26 = vsel %vm102_vm0, %v3912_v19, 0.0  ;;  %v116_v29 = vsel %vm102_vm0, %v3922_v23, 0.0  ;;  %v3939_v30 = vld [vmem:[%s7889_s0 + $0x48] sm:$0xff]  ;;  %v3946_v33 = vld [vmem:[%s7889_s0 + $0x50] sm:$0xff] }
   0x7   :  { %3322 = vmatpush3.msra.mxu0 %v681_v2  ;;  %3445 = vmatpush3.msra.mxu1 %v681_v2  ;;  %v3932_v27 = vld [vmem:[%s7889_s0 + $0x40] sm:$0xff]  ;;  %v120_v35 = vsel %vm102_vm0, %v3939_v30, 0.0  ;;  %v3953_v36 = vld [vmem:[%s7889_s0 + $0x58] sm:$0xff]  ;;  %v122_v38 = vsel %vm102_vm0, %v3946_v33, 0.0  ;;  %v3967_v42 = vld [vmem:[%s7889_s0 + $0x68] sm:$0xff] }
   0x8   :  { %3323 = vmatprep.subr.mxu0 %v680_v8  ;;  %3438 = vmatprep.subr.mxu1 %v680_v8  ;;  %v109_v20 = vadd.f32 %v108_v14, %v107_v16  ;;  %v118_v32 = vsel %vm102_vm0, %v3932_v27, 0.0  ;;  %v3960_v39 = vld [vmem:[%s7889_s0 + $0x60] sm:$0xff]  ;;  %v124_v41 = vsel %vm102_vm0, %v3953_v36, 0.0  ;;  %v3974_v45 = vld [vmem:[%s7889_s0 + $0x70] sm:$0xff]  ;;  %v128_v47 = vsel %vm102_vm0, %v3967_v42, 0.0  ;;  %v3981_v48 = vld [vmem:[%s7889_s0 + $0x78] sm:$0xff] }
   0x9   :  { %3324 = vmatpush3.msra.mxu0 %v680_v8  ;;  %3446 = vmatpush3.msra.mxu1 %v680_v8  ;;  %v126_v44 = vsel %vm102_vm0, %v3960_v39, 0.0  ;;  %v130_v50 = vsel %vm102_vm0, %v3974_v45, 0.0  ;;  %v3988_v51 = vld [vmem:[%s7889_s0 + $0x80] sm:$0xff]  ;;  %v132_v53 = vsel %vm102_vm0, %v3981_v48, 0.0  ;;  %v3995_v54 = vld [vmem:[%s7889_s0 + $0x88] sm:$0xff]  ;;  %v4002_v57 = vld [vmem:[%s7889_s0 + $0x90] sm:$0xff] }
   0xa   :  { %3325 = vmatprep.subr.mxu0 %v679_v13  ;;  %3439 = vmatprep.subr.mxu1 %v679_v13  ;;  %v111_v24 = vadd.f32 %v110_v18, %v109_v20  ;;  %v134_v56 = vsel %vm102_vm0, %v3988_v51, 0.0  ;;  %v136_v59 = vsel %vm102_vm0, %v3995_v54, 0.0  ;;  %v4009_v60 = vld [vmem:[%s7889_s0 + $0x98] sm:$0xff]  ;;  %v138_v62 = vsel %vm102_vm0, %v4002_v57, 0.0  ;;  %v4016_v63 = vld [vmem:[%s7889_s0 + $0xa0] sm:$0xff]  ;;  %v4023_v2 = vld [vmem:[%s7889_s0 + $0xa8] sm:$0xff] }
   0xb   :  { %3326 = vmatpush3.msra.mxu0 %v679_v13  ;;  %3447 = vmatpush3.msra.mxu1 %v679_v13  ;;  %v140_v1 = vsel %vm102_vm0, %v4009_v60, 0.0  ;;  %v142_v8 = vsel %vm102_vm0, %v4016_v63, 0.0  ;;  %v4030_v9 = vld [vmem:[%s7889_s0 + $0xb0] sm:$0xff]  ;;  %v144_v12 = vsel %vm102_vm0, %v4023_v2, 0.0  ;;  %v4037_v13 = vld [vmem:[%s7889_s0 + $0xb8] sm:$0xff] }
   0xc   :  { %3327 = vmatprep.subr.mxu0 %v678_v17  ;;  %3440 = vmatprep.subr.mxu1 %v678_v17  ;;  %v113_v28 = vadd.f32 %v112_v22, %v111_v24  ;;  %v146_v16 = vsel %vm102_vm0, %v4030_v9, 0.0  ;;  %v148_v20 = vsel %vm102_vm0, %v4037_v13, 0.0 }
   0xd   :  { %3328 = vmatpush3.msra.mxu0 %v678_v17  ;;  %3448 = vmatpush3.msra.mxu1 %v678_v17  ;;  %v4044_v17 = vld [vmem:[%s7889_s0 + $0xc0] sm:$0xff] }
   0xe   :  { %3329 = vmatprep.subr.mxu0 %v677_v21  ;;  %3441 = vmatprep.subr.mxu1 %v677_v21  ;;  %v115_v31 = vadd.f32 %v114_v26, %v113_v28  ;;  %v150_v24 = vsel %vm102_vm0, %v4044_v17, 0.0 }
   0xf   :  { %3330 = vmatpush3.msra.mxu0 %v677_v21  ;;  %3449 = vmatpush3.msra.mxu1 %v677_v21  ;;  %v4051_v21 = vld [vmem:[%s7889_s0 + $0xc8] sm:$0xff] }
  0x10   :  { %3331 = vmatprep.subr.mxu0 %v676_v25  ;;  %3442 = vmatprep.subr.mxu1 %v676_v25  ;;  %v117_v34 = vadd.f32 %v116_v29, %v115_v31  ;;  %v152_v28 = vsel %vm102_vm0, %v4051_v21, 0.0  ;;  %v4065_v29 = vld [vmem:[%s7889_s0 + $0xd8] sm:$0xff] }
  0x11   :  { %3332 = vmatpush3.msra.mxu0 %v676_v25  ;;  %3450 = vmatpush3.msra.mxu1 %v676_v25  ;;  %v4058_v25 = vld [vmem:[%s7889_s0 + $0xd0] sm:$0xff] }
  0x12   :  { %v119_v37 = vadd.f32 %v118_v32, %v117_v34  ;;  %v154_v32 = vsel %vm102_vm0, %v4058_v25, 0.0  ;;  %v4072_v34 = vld [vmem:[%s7889_s0 + $0xe0] sm:$0xff] }
  0x14   :  { %v121_v40 = vadd.f32 %v120_v35, %v119_v37  ;;  %v156_v37 = vsel %vm102_vm0, %v4065_v29, 0.0 }
  0x16   :  { %v123_v43 = vadd.f32 %v122_v38, %v121_v40  ;;  %v4079_v38 = vld [vmem:[%s7889_s0 + $0xe8] sm:$0xff] }
  0x18   :  { %v125_v46 = vadd.f32 %v124_v41, %v123_v43  ;;  %v158_v41 = vsel %vm102_vm0, %v4072_v34, 0.0  ;;  %v4086_v43 = vld [vmem:[%s7889_s0 + $0xf0] sm:$0xff] }
  0x1a   :  { %v127_v49 = vadd.f32 %v126_v44, %v125_v46  ;;  %v160_v46 = vsel %vm102_vm0, %v4079_v38, 0.0 }
  0x1c   :  { %v129_v52 = vadd.f32 %v128_v47, %v127_v49  ;;  %v4093_v47 = vld [vmem:[%s7889_s0 + $0xf8] sm:$0xff] }
  0x1e   :  { %v131_v55 = vadd.f32 %v130_v50, %v129_v52  ;;  %v162_v50 = vsel %vm102_vm0, %v4086_v43, 0.0  ;;  %v4100_v52 = vld [vmem:[%s7889_s0 + $0x100] sm:$0xff] }
  0x20   :  { %v133_v58 = vadd.f32 %v132_v53, %v131_v55  ;;  %v164_v55 = vsel %vm102_vm0, %v4093_v47, 0.0 }
  0x22   :  { %v135_v61 = vadd.f32 %v134_v56, %v133_v58  ;;  %v4107_v56 = vld [vmem:[%s7889_s0 + $0x108] sm:$0xff] }
  0x24   :  { %v137_v0 = vadd.f32 %v136_v59, %v135_v61  ;;  %v166_v59 = vsel %vm102_vm0, %v4100_v52, 0.0  ;;  %v4114_v61 = vld [vmem:[%s7889_s0 + $0x110] sm:$0xff] }
  0x26   :  { %v139_v7 = vadd.f32 %v138_v62, %v137_v0  ;;  %v168_v0 = vsel %vm102_vm0, %v4107_v56, 0.0 }
  0x28   :  { %v141_v10 = vadd.f32 %v140_v1, %v139_v7  ;;  %v4121_v1 = vld [vmem:[%s7889_s0 + $0x118] sm:$0xff] }
  0x2a   :  { %v143_v14 = vadd.f32 %v142_v8, %v141_v10  ;;  %v170_v8 = vsel %vm102_vm0, %v4114_v61, 0.0  ;;  %v4128_v10 = vld [vmem:[%s7889_s0 + $0x120] sm:$0xff] }
  0x2c   :  { %v145_v18 = vadd.f32 %v144_v12, %v143_v14  ;;  %v172_v14 = vsel %vm102_vm0, %v4121_v1, 0.0 }
  0x2e   :  { %v147_v22 = vadd.f32 %v146_v16, %v145_v18  ;;  %v4135_v16 = vld [vmem:[%s7889_s0 + $0x128] sm:$0xff] }
  0x30   :  { %v149_v26 = vadd.f32 %v148_v20, %v147_v22  ;;  %v174_v20 = vsel %vm102_vm0, %v4128_v10, 0.0  ;;  %v4142_v22 = vld [vmem:[%s7889_s0 + $0x130] sm:$0xff] }
  0x32   :  { %v151_v31 = vadd.f32 %v150_v24, %v149_v26  ;;  %v176_v26 = vsel %vm102_vm0, %v4135_v16, 0.0 }
  0x34   :  { %v153_v35 = vadd.f32 %v152_v28, %v151_v31  ;;  %v4149_v28 = vld [vmem:[%s7889_s0 + $0x138] sm:$0xff] }
  0x36   :  { %v155_v40 = vadd.f32 %v154_v32, %v153_v35  ;;  %v178_v32 = vsel %vm102_vm0, %v4142_v22, 0.0  ;;  %v4156_v35 = vld [vmem:[%s7889_s0 + $0x140] sm:$0xff] }
  0x38   :  { %v157_v44 = vadd.f32 %v156_v37, %v155_v40  ;;  %v180_v40 = vsel %vm102_vm0, %v4149_v28, 0.0 }
  0x3a   :  { %v159_v49 = vadd.f32 %v158_v41, %v157_v44  ;;  %v4163_v41 = vld [vmem:[%s7889_s0 + $0x148] sm:$0xff] }
  0x3c   :  { %v161_v53 = vadd.f32 %v160_v46, %v159_v49  ;;  %v182_v46 = vsel %vm102_vm0, %v4156_v35, 0.0  ;;  %v4170_v49 = vld [vmem:[%s7889_s0 + $0x150] sm:$0xff] }
  0x3e   :  { %v163_v58 = vadd.f32 %v162_v50, %v161_v53  ;;  %v184_v53 = vsel %vm102_vm0, %v4163_v41, 0.0 }
  0x40   :  { %v165_v62 = vadd.f32 %v164_v55, %v163_v58  ;;  %v4177_v55 = vld [vmem:[%s7889_s0 + $0x158] sm:$0xff] }
  0x42   :  { %v167_v7 = vadd.f32 %v166_v59, %v165_v62  ;;  %v186_v59 = vsel %vm102_vm0, %v4170_v49, 0.0  ;;  %v4184_v62 = vld [vmem:[%s7889_s0 + $0x160] sm:$0xff] }
  0x44   :  { %v169_v12 = vadd.f32 %v168_v0, %v167_v7  ;;  %v188_v7 = vsel %vm102_vm0, %v4177_v55, 0.0 }
  0x46   :  { %v171_v18 = vadd.f32 %v170_v8, %v169_v12  ;;  %v4191_v8 = vld [vmem:[%s7889_s0 + $0x168] sm:$0xff] }
  0x48   :  { %v173_v24 = vadd.f32 %v172_v14, %v171_v18  ;;  %v190_v14 = vsel %vm102_vm0, %v4184_v62, 0.0  ;;  %v4198_v18 = vld [vmem:[%s7889_s0 + $0x170] sm:$0xff] }
  0x4a   :  { %v175_v31 = vadd.f32 %v174_v20, %v173_v24  ;;  %v192_v24 = vsel %vm102_vm0, %v4191_v8, 0.0 }
  0x4c   :  { %v177_v37 = vadd.f32 %v176_v26, %v175_v31  ;;  %v4205_v26 = vld [vmem:[%s7889_s0 + $0x178] sm:$0xff] }
  0x4e   :  { %v179_v44 = vadd.f32 %v178_v32, %v177_v37  ;;  %v194_v32 = vsel %vm102_vm0, %v4198_v18, 0.0  ;;  %v4212_v37 = vld [vmem:[%s7889_s0 + $0x180] sm:$0xff] }
  0x50   :  { %v181_v50 = vadd.f32 %v180_v40, %v179_v44  ;;  %v196_v44 = vsel %vm102_vm0, %v4205_v26, 0.0 }
  0x52   :  { %v183_v58 = vadd.f32 %v182_v46, %v181_v50  ;;  %v4219_v46 = vld [vmem:[%s7889_s0 + $0x188] sm:$0xff] }
  0x53   :  { %8020 = vst [vmem:[#allocation3_spill] sm:$0xff] %v4219_v46 }
  0x54   :  { %v185_v0 = vadd.f32 %v184_v53, %v183_v58  ;;  %v198_v53 = vsel %vm102_vm0, %v4212_v37, 0.0  ;;  %v4226_v58 = vld [vmem:[%s7889_s0 + $0x190] sm:$0xff] }
  0x55   :  { %8021 = vst [vmem:[#allocation4_spill] sm:$0xff] %v4226_v58 }
  0x56   :  { %v187_v12 = vadd.f32 %v186_v59, %v185_v0  ;;  %v200_v0 = vsel %vm102_vm0, %v4219_v46, 0.0 }
  0x58   :  { %v189_v20 = vadd.f32 %v188_v7, %v187_v12  ;;  %v4233_v7 = vld [vmem:[%s7889_s0 + $0x198] sm:$0xff] }
  0x59   :  { %8022 = vst [vmem:[#allocation5_spill] sm:$0xff] %v4233_v7 }
  0x5a   :  { %v191_v31 = vadd.f32 %v190_v14, %v189_v20  ;;  %v202_v14 = vsel %vm102_vm0, %v4226_v58, 0.0  ;;  %v4240_v20 = vld [vmem:[%s7889_s0 + $0x1a0] sm:$0xff] }
  0x5b   :  { %8023 = vst [vmem:[#allocation6_spill] sm:$0xff] %v4240_v20 }
  0x5c   :  { %v193_v40 = vadd.f32 %v192_v24, %v191_v31  ;;  %v204_v31 = vsel %vm102_vm0, %v4233_v7, 0.0 }
  0x5e   :  { %v195_v50 = vadd.f32 %v194_v32, %v193_v40  ;;  %v4247_v32 = vld [vmem:[%s7889_s0 + $0x1a8] sm:$0xff] }
  0x5f   :  { %8024 = vst [vmem:[#allocation7_spill] sm:$0xff] %v4247_v32 }
  0x60   :  { %v197_v59 = vadd.f32 %v196_v44, %v195_v50  ;;  %v206_v44 = vsel %vm102_vm0, %v4240_v20, 0.0  ;;  %v4254_v50 = vld [vmem:[%s7889_s0 + $0x1b0] sm:$0xff] }
  0x61   :  { %8025 = vst [vmem:[#allocation8_spill] sm:$0xff] %v4254_v50 }
  0x62   :  { %v199_v12 = vadd.f32 %v198_v53, %v197_v59  ;;  %v208_v59 = vsel %vm102_vm0, %v4247_v32, 0.0 }
  0x64   :  { %v201_v24 = vadd.f32 %v200_v0, %v199_v12  ;;  %v4261_v0 = vld [vmem:[%s7889_s0 + $0x1b8] sm:$0xff] }
  0x65   :  { %8026 = vst [vmem:[#allocation9_spill] sm:$0xff] %v4261_v0 }
  0x66   :  { %v203_v40 = vadd.f32 %v202_v14, %v201_v24  ;;  %v210_v14 = vsel %vm102_vm0, %v4254_v50, 0.0  ;;  %v4268_v24 = vld [vmem:[%s7889_s0 + $0x1c0] sm:$0xff] }
  0x67   :  { %8027 = vst [vmem:[#allocation10_spill] sm:$0xff] %v4268_v24 }
  0x68   :  { %v205_v53 = vadd.f32 %v204_v31, %v203_v40  ;;  %v212_v31 = vsel %vm102_vm0, %v4261_v0, 0.0  ;;  %v4275_v40 = vld [vmem:[%s7889_s0 + $0x1c8] sm:$0xff] }
  0x69   :  { %8028 = vst [vmem:[#allocation11_spill] sm:$0xff] %v4275_v40 }
  0x6a   :  { %v207_v12 = vadd.f32 %v206_v44, %v205_v53  ;;  %v214_v44 = vsel %vm102_vm0, %v4268_v24, 0.0  ;;  %v4282_v53 = vld [vmem:[%s7889_s0 + $0x1d0] sm:$0xff] }
  0x6b   :  { %8029 = vst [vmem:[#allocation12_spill] sm:$0xff] %v4282_v53 }
  0x6c   :  { %v209_v20 = vadd.f32 %v208_v59, %v207_v12  ;;  %v216_v59 = vsel %vm102_vm0, %v4275_v40, 0.0  ;;  %v4289_v12 = vld [vmem:[%s7889_s0 + $0x1d8] sm:$0xff] }
  0x6d   :  { %8030 = vst [vmem:[#allocation13_spill] sm:$0xff] %v4289_v12 }
  0x6e   :  { %v211_v32 = vadd.f32 %v210_v14, %v209_v20  ;;  %v218_v20 = vsel %vm102_vm0, %v4282_v53, 0.0  ;;  %v4296_v14 = vld [vmem:[%s7889_s0 + $0x1e0] sm:$0xff] }
  0x6f   :  { %8031 = vst [vmem:[#allocation14_spill] sm:$0xff] %v4296_v14 }
  0x70   :  { %v213_v50 = vadd.f32 %v212_v31, %v211_v32  ;;  %v220_v32 = vsel %vm102_vm0, %v4289_v12, 0.0  ;;  %v4303_v31 = vld [vmem:[%s7889_s0 + $0x1e8] sm:$0xff] }
  0x71   :  { %8032 = vst [vmem:[#allocation15_spill] sm:$0xff] %v4303_v31 }
  0x72   :  { %v215_v0 = vadd.f32 %v214_v44, %v213_v50  ;;  %v222_v50 = vsel %vm102_vm0, %v4296_v14, 0.0  ;;  %v4310_v44 = vld [vmem:[%s7889_s0 + $0x1f0] sm:$0xff] }
  0x73   :  { %8033 = vst [vmem:[#allocation16_spill] sm:$0xff] %v4310_v44  ;;  %v226_v12 = vsel %vm102_vm0, %v4310_v44, 0.0 }
  0x74   :  { %v217_v24 = vadd.f32 %v216_v59, %v215_v0  ;;  %v224_v0 = vsel %vm102_vm0, %v4303_v31, 0.0 }
  0x76   :  { %v219_v40 = vadd.f32 %v218_v20, %v217_v24  ;;  %v4319_v24 = vld [vmem:[%s7889_s0 + $0x1f8] sm:$0xff] }
  0x77   :  { %8034 = vst [vmem:[#allocation17_spill] sm:$0xff] %v4319_v24  ;;  %v228_v7 = vsel %vm102_vm0, %v4319_v24, 0.0 }
  0x78   :  { %v221_v53 = vadd.f32 %v220_v32, %v219_v40  ;;  %v4326_v40 = vld [vmem:[%s7889_s0 + $0x200] sm:$0xff] }
  0x79   :  { %8035 = vst [vmem:[#allocation18_spill] sm:$0xff] %v4326_v40 }
  0x7a   :  { %v223_v59 = vadd.f32 %v222_v50, %v221_v53  ;;  %v230_v53 = vsel %vm102_vm0, %v4326_v40, 0.0  ;;  %v4333_v50 = vld [vmem:[%s7889_s0 + $0x208] sm:$0xff] }
  0x7b   :  { %8036 = vst [vmem:[#allocation19_spill] sm:$0xff] %v4333_v50 }
  0x7c   :  { %v225_v20 = vadd.f32 %v224_v0, %v223_v59  ;;  %v4340_v0 = vld [vmem:[%s7889_s0 + $0x210] sm:$0xff] }
  0x7d   :  { %8037 = vst [vmem:[#allocation20_spill] sm:$0xff] %v4340_v0 }
  0x7e   :  { %v227_v14 = vadd.f32 %v226_v12, %v225_v20  ;;  %v232_v12 = vsel %vm102_vm0, %v4333_v50, 0.0 }
  0x80   :  { %v229_v32 = vadd.f32 %v228_v7, %v227_v14  ;;  %v234_v7 = vsel %vm102_vm0, %v4340_v0, 0.0  ;;  %v4347_v14 = vld [vmem:[%s7889_s0 + $0x218] sm:$0xff] }
  0x82   :  { %v231_v44 = vadd.f32 %v230_v53, %v229_v32  ;;  %v236_v32 = vsel %vm102_vm0, %v4347_v14, 0.0 }
  0x84   :  { %v233_v59 = vadd.f32 %v232_v12, %v231_v44 }
  0x86   :  { %v235_v20 = vadd.f32 %v234_v7, %v233_v59 }
  0x88   :  { %v237_v53 = vadd.f32 %v236_v32, %v235_v20 }
  0x8a   :  { %v238_v50 = vrot.slane %v237_v53, 4 }
  0x8c   :  { %v239_v40 = vadd.f32 %v238_v50, %v237_v53 }
  0x8e   :  { %v240_v24 = vrot.slane %v239_v40, 2 }
  0x90   :  { %v241_v31 = vadd.f32 %v240_v24, %v239_v40 }
  0x92   :  { %v242_v58 = vrot.slane %v241_v31, 1 }
  0x94   :  { %v243_v46 = vadd.f32 %v242_v58, %v241_v31 }
  0x96   :  { %v4351_v44 = vmul.f32 0.0018382353, %v243_v46 }
  0x98   :  { %v4355_v12 = vsub.f32 %v3863_v3, %v4351_v44  ;;  %v4359_v0 = vsub.f32 %v3868_v4, %v4351_v44  ;;  %v4363_v59 = vsub.f32 %v3873_v5, %v4351_v44  ;;  %v4367_v50 = vsub.f32 %v3878_v6, %v4351_v44 }
  0x99   :  { %v4371_v46 = vsub.f32 %v3892_v11, %v4351_v44  ;;  %v4381_v5 = vsub.f32 %v3902_v15, %v4351_v44  ;;  %v4387_v11 = vsub.f32 %v3912_v19, %v4351_v44  ;;  %v4396_v15 = vsub.f32 %v3922_v23, %v4351_v44 }
  0x9a   :  { %v313_v3 = vmul.f32 %v4355_v12, %v4355_v12  ;;  %v314_v58 = vmul.f32 %v4359_v0, %v4359_v0  ;;  %v315_v4 = vmul.f32 %v4363_v59, %v4363_v59  ;;  %v316_v6 = vmul.f32 %v4367_v50, %v4367_v50 }
  0x9b   :  { %8038 = vst [vmem:[#allocation21_spill] sm:$0xff] %v4371_v46  ;;  %v317_v31 = vmul.f32 %v4371_v46, %v4371_v46  ;;  %v318_v32 = vmul.f32 %v4381_v5, %v4381_v5  ;;  %v4403_v46 = vsub.f32 %v3932_v27, %v4351_v44  ;;  %v4410_v23 = vsub.f32 %v3939_v30, %v4351_v44 }
  0x9c   :  { %v381_v24 = vsel %vm102_vm0, %v313_v3, 0.0  ;;  %v382_v40 = vsel %vm102_vm0, %v314_v58, 0.0  ;;  %v384_v7 = vsel %vm102_vm0, %v315_v4, 0.0  ;;  %v386_v19 = vsel %vm102_vm0, %v316_v6, 0.0 }
  0x9d   :  { %v383_v20 = vadd.f32 %v382_v40, %v381_v24  ;;  %v319_v3 = vmul.f32 %v4387_v11, %v4387_v11  ;;  %v388_v58 = vsel %vm102_vm0, %v317_v31, 0.0  ;;  %v320_v24 = vmul.f32 %v4396_v15, %v4396_v15 }
  0x9e   :  { %v390_v6 = vsel %vm102_vm0, %v318_v32, 0.0  ;;  %v4417_v27 = vsub.f32 %v3946_v33, %v4351_v44  ;;  %v4424_v30 = vsub.f32 %v3953_v36, %v4351_v44  ;;  %v4431_v33 = vsub.f32 %v3960_v39, %v4351_v44 }
  0x9f   :  { %v385_v53 = vadd.f32 %v384_v7, %v383_v20  ;;  %v321_v7 = vmul.f32 %v4403_v46, %v4403_v46  ;;  %v392_v31 = vsel %vm102_vm0, %v319_v3, 0.0  ;;  %v394_v32 = vsel %vm102_vm0, %v320_v24, 0.0 }
  0xa0   :  { %v4438_v36 = vsub.f32 %v3967_v42, %v4351_v44  ;;  %v4445_v39 = vsub.f32 %v3974_v45, %v4351_v44  ;;  %v4452_v42 = vsub.f32 %v3981_v48, %v4351_v44  ;;  %v4459_v45 = vsub.f32 %v3988_v51, %v4351_v44 }
  0xa1   :  { %v387_v4 = vadd.f32 %v386_v19, %v385_v53  ;;  %v322_v19 = vmul.f32 %v4410_v23, %v4410_v23  ;;  %v396_v3 = vsel %vm102_vm0, %v321_v7, 0.0  ;;  %v4466_v48 = vsub.f32 %v3995_v54, %v4351_v44 }
  0xa2   :  { %v4473_v51 = vsub.f32 %v4002_v57, %v4351_v44  ;;  %v4480_v54 = vsub.f32 %v4009_v60, %v4351_v44  ;;  %v4487_v57 = vsub.f32 %v4016_v63, %v4351_v44  ;;  %v4494_v60 = vsub.f32 %v4023_v2, %v4351_v44 }
  0xa3   :  { %v389_v40 = vadd.f32 %v388_v58, %v387_v4  ;;  %v323_v58 = vmul.f32 %v4417_v27, %v4417_v27  ;;  %v398_v24 = vsel %vm102_vm0, %v322_v19, 0.0  ;;  %v4501_v63 = vsub.f32 %v4030_v9, %v4351_v44 }
  0xa4   :  { %8039 = vst [vmem:[#allocation22_spill] sm:$0xff] %v4494_v60  ;;  %v4508_v2 = vsub.f32 %v4037_v13, %v4351_v44  ;;  %v4515_v9 = vsub.f32 %v4044_v17, %v4351_v44  ;;  %v4522_v13 = vsub.f32 %v4051_v21, %v4351_v44  ;;  %v4529_v17 = vsub.f32 %v4058_v25, %v4351_v44 }
  0xa5   :  { %v391_v20 = vadd.f32 %v390_v6, %v389_v40  ;;  %v324_v6 = vmul.f32 %v4424_v30, %v4424_v30  ;;  %v400_v7 = vsel %vm102_vm0, %v323_v58, 0.0  ;;  %8040 = vst [vmem:[#allocation23_spill] sm:$0xff] %v4501_v63  ;;  %v4536_v21 = vsub.f32 %v4065_v29, %v4351_v44 }
  0xa6   :  { %8041 = vst [vmem:[#allocation24_spill] sm:$0xff] %v4508_v2  ;;  %8042 = vst [vmem:[#allocation25_spill] sm:$0xff] %v4515_v9  ;;  %v4543_v25 = vsub.f32 %v4072_v34, %v4351_v44  ;;  %v4550_v29 = vsub.f32 %v4079_v38, %v4351_v44  ;;  %v4557_v34 = vsub.f32 %v4086_v43, %v4351_v44 }
  0xa7   :  { %v393_v53 = vadd.f32 %v392_v31, %v391_v20  ;;  %v325_v31 = vmul.f32 %v4431_v33, %v4431_v33  ;;  %v402_v19 = vsel %vm102_vm0, %v324_v6, 0.0  ;;  %8043 = vst [vmem:[#allocation26_spill] sm:$0xff] %v4522_v13  ;;  %8044 = vst [vmem:[#allocation27_spill] sm:$0xff] %v4529_v17  ;;  %v4564_v38 = vsub.f32 %v4093_v47, %v4351_v44 }
  0xa8   :  { %8045 = vst [vmem:[#allocation28_spill] sm:$0xff] %v4536_v21  ;;  %8046 = vst [vmem:[#allocation29_spill] sm:$0xff] %v4543_v25  ;;  %v4571_v43 = vsub.f32 %v4100_v52, %v4351_v44  ;;  %v4578_v47 = vsub.f32 %v4107_v56, %v4351_v44  ;;  %v4585_v52 = vsub.f32 %v4114_v61, %v4351_v44 }
  0xa9   :  { %v395_v4 = vadd.f32 %v394_v32, %v393_v53  ;;  %v326_v32 = vmul.f32 %v4438_v36, %v4438_v36  ;;  %v404_v58 = vsel %vm102_vm0, %v325_v31, 0.0  ;;  %8047 = vst [vmem:[#allocation30_spill] sm:$0xff] %v4550_v29  ;;  %8048 = vst [vmem:[#allocation31_spill] sm:$0xff] %v4557_v34  ;;  %v4592_v56 = vsub.f32 %v4121_v1, %v4351_v44 }
  0xaa   :  { %8049 = vst [vmem:[#allocation32_spill] sm:$0xff] %v4564_v38  ;;  %8050 = vst [vmem:[#allocation33_spill] sm:$0xff] %v4571_v43  ;;  %v4599_v61 = vsub.f32 %v4128_v10, %v4351_v44  ;;  %v4606_v1 = vsub.f32 %v4135_v16, %v4351_v44  ;;  %v4613_v10 = vsub.f32 %v4142_v22, %v4351_v44 }
  0xab   :  { %v397_v40 = vadd.f32 %v396_v3, %v395_v4  ;;  %v327_v3 = vmul.f32 %v4445_v39, %v4445_v39  ;;  %v406_v6 = vsel %vm102_vm0, %v326_v32, 0.0  ;;  %v4620_v16 = vsub.f32 %v4149_v28, %v4351_v44 }
  0xac   :  { %v4627_v22 = vsub.f32 %v4156_v35, %v4351_v44  ;;  %v4634_v28 = vsub.f32 %v4163_v41, %v4351_v44  ;;  %v4641_v35 = vsub.f32 %v4170_v49, %v4351_v44  ;;  %v4648_v41 = vsub.f32 %v4177_v55, %v4351_v44 }
  0xad   :  { %v399_v20 = vadd.f32 %v398_v24, %v397_v40  ;;  %v328_v24 = vmul.f32 %v4452_v42, %v4452_v42  ;;  %v408_v31 = vsel %vm102_vm0, %v327_v3, 0.0  ;;  %v4655_v49 = vsub.f32 %v4184_v62, %v4351_v44 }
  0xae   :  { %v4662_v55 = vsub.f32 %v4191_v8, %v4351_v44  ;;  %v4669_v62 = vsub.f32 %v4198_v18, %v4351_v44  ;;  %v4676_v8 = vsub.f32 %v4205_v26, %v4351_v44  ;;  %v4683_v18 = vsub.f32 %v4212_v37, %v4351_v44 }
  0xaf   :  { %v401_v53 = vadd.f32 %v400_v7, %v399_v20  ;;  %v329_v7 = vmul.f32 %v4459_v45, %v4459_v45  ;;  %v410_v32 = vsel %vm102_vm0, %v328_v24, 0.0 }
  0xb0   :  { %8051 = vst [vmem:[#allocation34_spill] sm:$0xff] %v4676_v8  ;;  %8052 = vst [vmem:[#allocation35_spill] sm:$0xff] %v4683_v18 }
  0xb1   :  { %v403_v4 = vadd.f32 %v402_v19, %v401_v53  ;;  %v330_v19 = vmul.f32 %v4466_v48, %v4466_v48  ;;  %v412_v3 = vsel %vm102_vm0, %v329_v7, 0.0 }
  0xb3   :  { %v405_v40 = vadd.f32 %v404_v58, %v403_v4  ;;  %v331_v58 = vmul.f32 %v4473_v51, %v4473_v51  ;;  %v414_v24 = vsel %vm102_vm0, %v330_v19, 0.0 }
  0xb5   :  { %v407_v20 = vadd.f32 %v406_v6, %v405_v40  ;;  %v332_v6 = vmul.f32 %v4480_v54, %v4480_v54  ;;  %v416_v7 = vsel %vm102_vm0, %v331_v58, 0.0 }
  0xb7   :  { %v409_v53 = vadd.f32 %v408_v31, %v407_v20  ;;  %v333_v31 = vmul.f32 %v4487_v57, %v4487_v57  ;;  %v418_v19 = vsel %vm102_vm0, %v332_v6, 0.0 }
  0xb9   :  { %v411_v4 = vadd.f32 %v410_v32, %v409_v53  ;;  %v334_v32 = vmul.f32 %v4494_v60, %v4494_v60  ;;  %v420_v58 = vsel %vm102_vm0, %v333_v31, 0.0  ;;  %v528_v60 = vlaneseq }
  0xbb   :  { %v413_v40 = vadd.f32 %v412_v3, %v411_v4  ;;  %v335_v3 = vmul.f32 %v4501_v63, %v4501_v63  ;;  %v422_v6 = vsel %vm102_vm0, %v334_v32, 0.0 }
  0xbd   :  { %v415_v20 = vadd.f32 %v414_v24, %v413_v40  ;;  %v336_v24 = vmul.f32 %v4508_v2, %v4508_v2  ;;  %v424_v31 = vsel %vm102_vm0, %v335_v3, 0.0 }
  0xbf   :  { %v417_v53 = vadd.f32 %v416_v7, %v415_v20  ;;  %v337_v7 = vmul.f32 %v4515_v9, %v4515_v9  ;;  %v426_v32 = vsel %vm102_vm0, %v336_v24, 0.0 }
  0xc1   :  { %v419_v4 = vadd.f32 %v418_v19, %v417_v53  ;;  %v338_v19 = vmul.f32 %v4522_v13, %v4522_v13  ;;  %v428_v3 = vsel %vm102_vm0, %v337_v7, 0.0 }
  0xc3   :  { %v421_v40 = vadd.f32 %v420_v58, %v419_v4  ;;  %v339_v58 = vmul.f32 %v4529_v17, %v4529_v17  ;;  %v430_v24 = vsel %vm102_vm0, %v338_v19, 0.0 }
  0xc5   :  { %v423_v20 = vadd.f32 %v422_v6, %v421_v40  ;;  %v340_v6 = vmul.f32 %v4536_v21, %v4536_v21  ;;  %v432_v7 = vsel %vm102_vm0, %v339_v58, 0.0 }
  0xc7   :  { %v425_v53 = vadd.f32 %v424_v31, %v423_v20  ;;  %v341_v31 = vmul.f32 %v4543_v25, %v4543_v25  ;;  %v434_v19 = vsel %vm102_vm0, %v340_v6, 0.0 }
  0xc9   :  { %v427_v4 = vadd.f32 %v426_v32, %v425_v53  ;;  %v342_v32 = vmul.f32 %v4550_v29, %v4550_v29  ;;  %v436_v58 = vsel %vm102_vm0, %v341_v31, 0.0 }
  0xcb   :  { %v429_v40 = vadd.f32 %v428_v3, %v427_v4  ;;  %v343_v3 = vmul.f32 %v4557_v34, %v4557_v34  ;;  %v438_v6 = vsel %vm102_vm0, %v342_v32, 0.0 }
  0xcd   :  { %v431_v20 = vadd.f32 %v430_v24, %v429_v40  ;;  %v344_v24 = vmul.f32 %v4564_v38, %v4564_v38  ;;  %v440_v31 = vsel %vm102_vm0, %v343_v3, 0.0 }
  0xcf   :  { %v433_v53 = vadd.f32 %v432_v7, %v431_v20  ;;  %v345_v7 = vmul.f32 %v4571_v43, %v4571_v43  ;;  %v442_v32 = vsel %vm102_vm0, %v344_v24, 0.0  ;;  %v361_v43 = vmul.f32 %v4683_v18, %v4683_v18 }
  0xd1   :  { %v435_v4 = vadd.f32 %v434_v19, %v433_v53  ;;  %v346_v19 = vmul.f32 %v4578_v47, %v4578_v47  ;;  %v444_v3 = vsel %vm102_vm0, %v345_v7, 0.0 }
  0xd3   :  { %v437_v40 = vadd.f32 %v436_v58, %v435_v4  ;;  %v347_v58 = vmul.f32 %v4585_v52, %v4585_v52  ;;  %v446_v24 = vsel %vm102_vm0, %v346_v19, 0.0 }
  0xd5   :  { %v439_v20 = vadd.f32 %v438_v6, %v437_v40  ;;  %v348_v6 = vmul.f32 %v4592_v56, %v4592_v56  ;;  %v448_v7 = vsel %vm102_vm0, %v347_v58, 0.0 }
  0xd7   :  { %v441_v53 = vadd.f32 %v440_v31, %v439_v20  ;;  %v349_v31 = vmul.f32 %v4599_v61, %v4599_v61  ;;  %v450_v19 = vsel %vm102_vm0, %v348_v6, 0.0 }
  0xd9   :  { %v443_v4 = vadd.f32 %v442_v32, %v441_v53  ;;  %v350_v32 = vmul.f32 %v4606_v1, %v4606_v1  ;;  %v452_v58 = vsel %vm102_vm0, %v349_v31, 0.0 }
  0xdb   :  { %v445_v40 = vadd.f32 %v444_v3, %v443_v4  ;;  %v351_v3 = vmul.f32 %v4613_v10, %v4613_v10  ;;  %v454_v6 = vsel %vm102_vm0, %v350_v32, 0.0 }
  0xdd   :  { %v447_v20 = vadd.f32 %v446_v24, %v445_v40  ;;  %v352_v24 = vmul.f32 %v4620_v16, %v4620_v16  ;;  %v456_v31 = vsel %vm102_vm0, %v351_v3, 0.0 }
  0xdf   :  { %v449_v53 = vadd.f32 %v448_v7, %v447_v20  ;;  %v353_v7 = vmul.f32 %v4627_v22, %v4627_v22  ;;  %v458_v32 = vsel %vm102_vm0, %v352_v24, 0.0 }
  0xe1   :  { %v451_v4 = vadd.f32 %v450_v19, %v449_v53  ;;  %v354_v19 = vmul.f32 %v4634_v28, %v4634_v28  ;;  %v460_v3 = vsel %vm102_vm0, %v353_v7, 0.0 }
  0xe3   :  { %v453_v40 = vadd.f32 %v452_v58, %v451_v4  ;;  %v355_v58 = vmul.f32 %v4641_v35, %v4641_v35  ;;  %v462_v24 = vsel %vm102_vm0, %v354_v19, 0.0 }
  0xe5   :  { %v455_v20 = vadd.f32 %v454_v6, %v453_v40  ;;  %v356_v6 = vmul.f32 %v4648_v41, %v4648_v41  ;;  %v464_v7 = vsel %vm102_vm0, %v355_v58, 0.0 }
  0xe7   :  { %v457_v53 = vadd.f32 %v456_v31, %v455_v20  ;;  %v357_v31 = vmul.f32 %v4655_v49, %v4655_v49  ;;  %v466_v19 = vsel %vm102_vm0, %v356_v6, 0.0 }
  0xe9   :  { %v459_v4 = vadd.f32 %v458_v32, %v457_v53  ;;  %v358_v32 = vmul.f32 %v4662_v55, %v4662_v55  ;;  %v468_v58 = vsel %vm102_vm0, %v357_v31, 0.0 }
  0xeb   :  { %v461_v40 = vadd.f32 %v460_v3, %v459_v4  ;;  %v359_v3 = vmul.f32 %v4669_v62, %v4669_v62  ;;  %v470_v6 = vsel %vm102_vm0, %v358_v32, 0.0 }
  0xed   :  { %v463_v20 = vadd.f32 %v462_v24, %v461_v40  ;;  %v8053_v24 = vld [vmem:[#allocation3_spill] sm:$0xff]  ;;  %v360_v40 = vmul.f32 %v4676_v8, %v4676_v8  ;;  %v472_v31 = vsel %vm102_vm0, %v359_v3, 0.0  ;;  %v476_v3 = vsel %vm102_vm0, %v361_v43, 0.0 }
  0xee   :  { %v4690_v26 = vsub.f32 %v8053_v24, %v4351_v44 }
  0xef   :  { %v465_v53 = vadd.f32 %v464_v7, %v463_v20  ;;  %v8055_v20 = vld [vmem:[#allocation4_spill] sm:$0xff]  ;;  %v474_v32 = vsel %vm102_vm0, %v360_v40, 0.0 }
  0xf0   :  { %8054 = vst [vmem:[#allocation3_spill] sm:$0xff] %v4690_v26  ;;  %v4697_v37 = vsub.f32 %v8055_v20, %v4351_v44  ;;  %v362_v38 = vmul.f32 %v4690_v26, %v4690_v26 }
  0xf1   :  { %v467_v4 = vadd.f32 %v466_v19, %v465_v53  ;;  %v8057_v53 = vld [vmem:[#allocation5_spill] sm:$0xff] }
  0xf2   :  { %8056 = vst [vmem:[#allocation4_spill] sm:$0xff] %v4697_v37  ;;  %v4704_v24 = vsub.f32 %v8057_v53, %v4351_v44  ;;  %v363_v34 = vmul.f32 %v4697_v37, %v4697_v37  ;;  %v478_v40 = vsel %vm102_vm0, %v362_v38, 0.0 }
  0xf3   :  { %v469_v7 = vadd.f32 %v468_v58, %v467_v4  ;;  %v8059_v4 = vld [vmem:[#allocation6_spill] sm:$0xff] }
  0xf4   :  { %8058 = vst [vmem:[#allocation5_spill] sm:$0xff] %v4704_v24  ;;  %v4711_v20 = vsub.f32 %v8059_v4, %v4351_v44  ;;  %v364_v29 = vmul.f32 %v4704_v24, %v4704_v24  ;;  %v480_v43 = vsel %vm102_vm0, %v363_v34, 0.0 }
  0xf5   :  { %v471_v19 = vadd.f32 %v470_v6, %v469_v7  ;;  %v8061_v7 = vld [vmem:[#allocation7_spill] sm:$0xff] }
  0xf6   :  { %8060 = vst [vmem:[#allocation6_spill] sm:$0xff] %v4711_v20  ;;  %v4718_v53 = vsub.f32 %v8061_v7, %v4351_v44  ;;  %v365_v25 = vmul.f32 %v4711_v20, %v4711_v20  ;;  %v482_v38 = vsel %vm102_vm0, %v364_v29, 0.0 }
  0xf7   :  { %v473_v58 = vadd.f32 %v472_v31, %v471_v19  ;;  %v8063_v19 = vld [vmem:[#allocation8_spill] sm:$0xff] }
  0xf8   :  { %8062 = vst [vmem:[#allocation7_spill] sm:$0xff] %v4718_v53  ;;  %v4725_v4 = vsub.f32 %v8063_v19, %v4351_v44  ;;  %v366_v21 = vmul.f32 %v4718_v53, %v4718_v53  ;;  %v484_v34 = vsel %vm102_vm0, %v365_v25, 0.0 }
  0xf9   :  { %v475_v6 = vadd.f32 %v474_v32, %v473_v58  ;;  %v8065_v58 = vld [vmem:[#allocation9_spill] sm:$0xff] }
  0xfa   :  { %8064 = vst [vmem:[#allocation8_spill] sm:$0xff] %v4725_v4  ;;  %v4732_v7 = vsub.f32 %v8065_v58, %v4351_v44  ;;  %v367_v20 = vmul.f32 %v4725_v4, %v4725_v4  ;;  %v486_v29 = vsel %vm102_vm0, %v366_v21, 0.0 }
  0xfb   :  { %v477_v31 = vadd.f32 %v476_v3, %v475_v6  ;;  %v8067_v6 = vld [vmem:[#allocation10_spill] sm:$0xff] }
  0xfc   :  { %8066 = vst [vmem:[#allocation9_spill] sm:$0xff] %v4732_v7  ;;  %v4739_v19 = vsub.f32 %v8067_v6, %v4351_v44  ;;  %v368_v53 = vmul.f32 %v4732_v7, %v4732_v7  ;;  %v488_v25 = vsel %vm102_vm0, %v367_v20, 0.0 }
  0xfd   :  { %v479_v32 = vadd.f32 %v478_v40, %v477_v31  ;;  %v8069_v31 = vld [vmem:[#allocation11_spill] sm:$0xff] }
  0xfe   :  { %8068 = vst [vmem:[#allocation10_spill] sm:$0xff] %v4739_v19  ;;  %v4746_v58 = vsub.f32 %v8069_v31, %v4351_v44  ;;  %v369_v4 = vmul.f32 %v4739_v19, %v4739_v19  ;;  %v490_v21 = vsel %vm102_vm0, %v368_v53, 0.0 }
  0xff   :  { %v481_v3 = vadd.f32 %v480_v43, %v479_v32  ;;  %v8071_v32 = vld [vmem:[#allocation12_spill] sm:$0xff] }
 0x100   :  { %8070 = vst [vmem:[#allocation11_spill] sm:$0xff] %v4746_v58  ;;  %v4753_v6 = vsub.f32 %v8071_v32, %v4351_v44  ;;  %v370_v7 = vmul.f32 %v4746_v58, %v4746_v58  ;;  %v492_v20 = vsel %vm102_vm0, %v369_v4, 0.0 }
 0x101   :  { %v483_v40 = vadd.f32 %v482_v38, %v481_v3  ;;  %v8073_v3 = vld [vmem:[#allocation13_spill] sm:$0xff] }
 0x102   :  { %8072 = vst [vmem:[#allocation12_spill] sm:$0xff] %v4753_v6  ;;  %v4760_v31 = vsub.f32 %v8073_v3, %v4351_v44  ;;  %v371_v19 = vmul.f32 %v4753_v6, %v4753_v6  ;;  %v494_v53 = vsel %vm102_vm0, %v370_v7, 0.0 }
 0x103   :  { %v485_v43 = vadd.f32 %v484_v34, %v483_v40  ;;  %v8074_v40 = vld [vmem:[#allocation14_spill] sm:$0xff] }
 0x104   :  { %v4767_v32 = vsub.f32 %v8074_v40, %v4351_v44  ;;  %v372_v58 = vmul.f32 %v4760_v31, %v4760_v31  ;;  %v496_v4 = vsel %vm102_vm0, %v371_v19, 0.0 }
 0x105   :  { %v487_v38 = vadd.f32 %v486_v29, %v485_v43  ;;  %v8075_v43 = vld [vmem:[#allocation15_spill] sm:$0xff] }
 0x106   :  { %v4774_v3 = vsub.f32 %v8075_v43, %v4351_v44  ;;  %v373_v6 = vmul.f32 %v4767_v32, %v4767_v32  ;;  %v498_v7 = vsel %vm102_vm0, %v372_v58, 0.0 }
 0x107   :  { %v489_v34 = vadd.f32 %v488_v25, %v487_v38  ;;  %v8076_v38 = vld [vmem:[#allocation16_spill] sm:$0xff] }
 0x108   :  { %v4781_v40 = vsub.f32 %v8076_v38, %v4351_v44  ;;  %v374_v24 = vmul.f32 %v4774_v3, %v4774_v3  ;;  %v500_v19 = vsel %vm102_vm0, %v373_v6, 0.0 }
 0x109   :  { %v491_v29 = vadd.f32 %v490_v21, %v489_v34  ;;  %v8077_v34 = vld [vmem:[#allocation17_spill] sm:$0xff] }
 0x10a   :  { %v4788_v43 = vsub.f32 %v8077_v34, %v4351_v44  ;;  %v375_v17 = vmul.f32 %v4781_v40, %v4781_v40  ;;  %v502_v58 = vsel %vm102_vm0, %v374_v24, 0.0 }
 0x10b   :  { %v493_v25 = vadd.f32 %v492_v20, %v491_v29  ;;  %v8078_v29 = vld [vmem:[#allocation18_spill] sm:$0xff] }
 0x10c   :  { %v4795_v38 = vsub.f32 %v8078_v29, %v4351_v44  ;;  %v376_v13 = vmul.f32 %v4788_v43, %v4788_v43  ;;  %v504_v6 = vsel %vm102_vm0, %v375_v17, 0.0 }
 0x10d   :  { %v495_v21 = vadd.f32 %v494_v53, %v493_v25  ;;  %v8079_v25 = vld [vmem:[#allocation19_spill] sm:$0xff] }
 0x10e   :  { %v4802_v34 = vsub.f32 %v8079_v25, %v4351_v44  ;;  %v377_v37 = vmul.f32 %v4795_v38, %v4795_v38  ;;  %v506_v24 = vsel %vm102_vm0, %v376_v13, 0.0 }
 0x10f   :  { %v497_v20 = vadd.f32 %v496_v4, %v495_v21  ;;  %v8080_v21 = vld [vmem:[#allocation20_spill] sm:$0xff] }
 0x110   :  { %v4809_v29 = vsub.f32 %v8080_v21, %v4351_v44  ;;  %v378_v25 = vmul.f32 %v4802_v34, %v4802_v34  ;;  %v508_v21 = vsel %vm102_vm0, %v377_v37, 0.0 }
 0x111   :  { %v499_v53 = vadd.f32 %v498_v7, %v497_v20  ;;  %v4816_v20 = vsub.f32 %v4347_v14, %v4351_v44 }
 0x113   :  { %v501_v4 = vadd.f32 %v500_v19, %v499_v53  ;;  %8081 = vst [vmem:[#allocation13_spill] sm:$0xff] %v4816_v20  ;;  %v379_v53 = vmul.f32 %v4809_v29, %v4809_v29  ;;  %v380_v17 = vmul.f32 %v4816_v20, %v4816_v20  ;;  %v4829_v20 = vshrl.u32 %v528_v60, 7 }
 0x115   :  { %v503_v7 = vadd.f32 %v502_v58, %v501_v4  ;;  %v510_v58 = vsel %vm102_vm0, %v378_v25, 0.0  ;;  %v512_v14 = vsel %vm102_vm0, %v379_v53, 0.0  ;;  %v514_v26 = vsel %vm102_vm0, %v380_v17, 0.0  ;;  %8082 = vst [vmem:[#allocation14_spill] sm:$0xff] %v4829_v20 }
 0x116   :  { %v7942_v25 = vsub.s32 0, %v4829_v20 }
 0x117   :  { %v505_v19 = vadd.f32 %v504_v6, %v503_v7 }
 0x119   :  { %v507_v9 = vadd.f32 %v506_v24, %v505_v19 }
 0x11b   :  { %v509_v4 = vadd.f32 %v508_v21, %v507_v9  ;;  %v523_v9 = vld [vmem:[%s7890_s1] sm:$0x1] }
 0x11d   :  { %v511_v44 = vadd.f32 %v510_v58, %v509_v4 }
 0x11f   :  { %v513_v2 = vadd.f32 %v512_v14, %v511_v44  ;;  %v8083_v14 = vld [vmem:[#allocation21_spill] sm:$0xff] }
 0x121   :  { %v515_v13 = vadd.f32 %v514_v26, %v513_v2 }
 0x123   :  { %v516_v6 = vrot.slane %v515_v13, 4 }
 0x125   :  { %v517_v7 = vadd.f32 %v516_v6, %v515_v13 }
 0x127   :  { %v518_v18 = vrot.slane %v517_v7, 2 }
 0x129   :  { %v519_v8 = vadd.f32 %v518_v18, %v517_v7 }
 0x12b   :  { %v520_v63 = vrot.slane %v519_v8, 1 }
 0x12d   :  { %v521_v37 = vadd.f32 %v520_v63, %v519_v8  ;;  %v4842_v63 = vld [vmem:[%s7891_s2] ss:$0 sm:$0xff] }
 0x12f   :  { %v522_v24 = vmul.f32 0.0018382353, %v521_v37 }
 0x131   :  { %v524_v19 = vadd.f32 1e-05, %v522_v24 }
 0x133   :  { %3453 = vrsqrt.f32 %v524_v19 }
 0x140   :  { %v3454_v53 = vpop.eup %3453 }
 0x141   :  { %v526_v2 = vmul.f32 %v3454_v53, %v523_v9 }
 0x143   :  { %v4837_v26 = vrot.slane %v526_v2, %v7942_v25 }
 0x145   :  { %v533_v60 = vmul.f32 %v4837_v26, %v4355_v12  ;;  %v534_v8 = vmul.f32 %v4837_v26, %v4359_v0  ;;  %v535_v18 = vmul.f32 %v4837_v26, %v4363_v59  ;;  %v536_v21 = vmul.f32 %v4837_v26, %v4367_v50 }
 0x146   :  { %v537_v44 = vmul.f32 %v4837_v26, %v8083_v14  ;;  %v538_v12 = vmul.f32 %v4837_v26, %v4381_v5  ;;  %v539_v50 = vmul.f32 %v4837_v26, %v4387_v11  ;;  %v540_v6 = vmul.f32 %v4837_v26, %v4396_v15 }
 0x147   :  { %v608_v17 = vadd.f32 %v4842_v63, %v533_v60  ;;  %v609_v58 = vadd.f32 %v4842_v63, %v534_v8  ;;  %v610_v4 = vadd.f32 %v4842_v63, %v535_v18  ;;  %v611_v0 = vadd.f32 %v4842_v63, %v536_v21 }
 0x148   :  { %v612_v59 = vadd.f32 %v4842_v63, %v537_v44  ;;  %v613_v13 = vadd.f32 %v4842_v63, %v538_v12  ;;  %v614_v7 = vadd.f32 %v4842_v63, %v539_v50  ;;  %v541_v5 = vmul.f32 %v4837_v26, %v4403_v46 }
 0x149   :  { %3333 = vmatprep.mubr.msk.f32.mxu0 %vm102_vm0, %v608_v17  ;;  %v615_v37 = vadd.f32 %v4842_v63, %v540_v6  ;;  %v542_v11 = vmul.f32 %v4837_v26, %v4410_v23  ;;  %v543_v24 = vmul.f32 %v4837_v26, %v4417_v27  ;;  %v544_v19 = vmul.f32 %v4837_v26, %v4424_v30 }
 0x14a   :  { %3334 = vmatmul.mubr.msk.f32.vlgmr.msra.gmra.mxu0 %vm102_vm0, %v609_v58  ;;  %v616_v15 = vadd.f32 %v4842_v63, %v541_v5  ;;  %v545_v46 = vmul.f32 %v4837_v26, %v4431_v33  ;;  %v566_v9 = vmul.f32 %v4837_v26, %v4578_v47  ;;  %v567_v53 = vmul.f32 %v4837_v26, %v4585_v52 }
 0x14b   :  { %3336 = vmatprep.mubr.msk.f32.mxu0 %vm102_vm0, %v610_v4  ;;  %v568_v23 = vmul.f32 %v4837_v26, %v4592_v56  ;;  %v617_v27 = vadd.f32 %v4842_v63, %v542_v11  ;;  %v618_v2 = vadd.f32 %v4842_v63, %v543_v24  ;;  %v569_v30 = vmul.f32 %v4837_v26, %v4599_v61 }
 0x14c   :  { %v570_v33 = vmul.f32 %v4837_v26, %v4606_v1  ;;  %v4901_v47 = vadd.f32 %v4842_v63, %v566_v9  ;;  %v642_v52 = vadd.f32 %v4842_v63, %v567_v53  ;;  %v571_v60 = vmul.f32 %v4837_v26, %v4613_v10 }
 0x14d   :  { %v643_v56 = vadd.f32 %v4842_v63, %v568_v23  ;;  %v644_v8 = vadd.f32 %v4842_v63, %v569_v30  ;;  %v546_v61 = vmul.f32 %v4837_v26, %v4438_v36  ;;  %v547_v1 = vmul.f32 %v4837_v26, %v4445_v39  ;;  %v8086_v30 = vld [vmem:[#allocation23_spill] sm:$0xff] }
 0x14e   :  { %3337 = vmatmul.mubr.msk.f32.gmra.mxu0 %vm102_vm0, %v611_v0  ;;  %3384 = vmatprep.mubr.msk.f32.mxu1 %vm102_vm0, %v642_v52  ;;  %v619_v18 = vadd.f32 %v4842_v63, %v544_v19  ;;  %v645_v21 = vadd.f32 %v4842_v63, %v570_v33  ;;  %v572_v10 = vmul.f32 %v4837_v26, %v4620_v16 }
 0x14f   :  { %3339 = vmatprep.mubr.msk.f32.mxu0 %vm102_vm0, %v612_v59  ;;  %3385 = vmatmul.mubr.msk.f32.vlgmr.msra.gmra.mxu1 %vm102_vm0, %v643_v56  ;;  %v620_v36 = vadd.f32 %v4842_v63, %v545_v46  ;;  %v646_v39 = vadd.f32 %v4842_v63, %v571_v60  ;;  %v573_v17 = vmul.f32 %v4837_v26, %v4627_v22  ;;  %v8087_v60 = vld [vmem:[#allocation34_spill] sm:$0xff] }
 0x150   :  { %3387 = vmatprep.mubr.msk.f32.mxu1 %vm102_vm0, %v644_v8  ;;  %v548_v58 = vmul.f32 %v4837_v26, %v4452_v42  ;;  %v549_v4 = vmul.f32 %v4837_v26, %v4459_v45  ;;  %v550_v16 = vmul.f32 %v4837_v26, %v4466_v48  ;;  %v551_v14 = vmul.f32 %v4837_v26, %v4473_v51 }
 0x151   :  { %v621_v44 = vadd.f32 %v4842_v63, %v546_v61  ;;  %v647_v22 = vadd.f32 %v4842_v63, %v572_v10  ;;  %v574_v42 = vmul.f32 %v4837_v26, %v4634_v28  ;;  %v622_v45 = vadd.f32 %v4842_v63, %v547_v1 }
 0x152   :  { %3340 = vmatmul.mubr.msk.f32.gmra.mxu0 %vm102_vm0, %v613_v13  ;;  %v648_v48 = vadd.f32 %v4842_v63, %v573_v17  ;;  %v575_v51 = vmul.f32 %v4837_v26, %v4641_v35  ;;  %v623_v0 = vadd.f32 %v4842_v63, %v548_v58  ;;  %v552_v12 = vmul.f32 %v4837_v26, %v4480_v54 }
 0x153   :  { %3342 = vmatprep.mubr.msk.f32.mxu0 %vm102_vm0, %v614_v7  ;;  %3388 = vmatmul.mubr.msk.f32.gmra.mxu1 %vm102_vm0, %v645_v21  ;;  %v576_v59 = vmul.f32 %v4837_v26, %v4648_v41  ;;  %v577_v28 = vmul.f32 %v4837_v26, %v4655_v49  ;;  %v624_v50 = vadd.f32 %v4842_v63, %v549_v4  ;;  %v8090_v4 = vld [vmem:[#allocation3_spill] sm:$0xff] }
 0x154   :  { %3390 = vmatprep.mubr.msk.f32.mxu1 %vm102_vm0, %v646_v39  ;;  %v625_v13 = vadd.f32 %v4842_v63, %v550_v16  ;;  %v626_v6 = vadd.f32 %v4842_v63, %v551_v14  ;;  %v553_v35 = vmul.f32 %v4837_v26, %v4487_v57  ;;  %v649_v54 = vadd.f32 %v4842_v63, %v574_v42  ;;  %v8091_v14 = vld [vmem:[#allocation25_spill] sm:$0xff]  ;;  %v8092_v42 = vld [vmem:[#allocation4_spill] sm:$0xff] }
 0x155   :  { %v592_v41 = vmul.f32 %v4837_v26, %v4760_v31  ;;  %v593_v49 = vmul.f32 %v4837_v26, %v4767_v32  ;;  %v650_v7 = vadd.f32 %v4842_v63, %v575_v51  ;;  %v578_v57 = vmul.f32 %v4837_v26, %v4662_v55  ;;  %v8093_v51 = vld [vmem:[#allocation26_spill] sm:$0xff] }
 0x156   :  { %3343 = vmatmul.mubr.msk.f32.gmra.mxu0 %vm102_vm0, %v615_v37  ;;  %v579_v5 = vmul.f32 %v4837_v26, %v4669_v62  ;;  %v651_v37 = vadd.f32 %v4842_v63, %v576_v59  ;;  %v652_v11 = vadd.f32 %v4842_v63, %v577_v28  ;;  %v594_v24 = vmul.f32 %v4837_v26, %v4774_v3  ;;  %v8084_v3 = vld [vmem:[#allocation13_spill] sm:$0xff] }
 0x157   :  { %3345 = vmatprep.mubr.msk.f32.mxu0 %vm102_vm0, %v616_v15  ;;  %3391 = vmatmul.mubr.msk.f32.gmra.mxu1 %vm102_vm0, %v647_v22  ;;  %v4974_v31 = vadd.f32 %v4842_v63, %v592_v41  ;;  %v4977_v32 = vadd.f32 %v4842_v63, %v593_v49  ;;  %v595_v15 = vmul.f32 %v4837_v26, %v4781_v40  ;;  %v8097_v49 = vld [vmem:[#allocation28_spill] sm:$0xff] }
 0x158   :  { %3393 = vmatprep.mubr.msk.f32.mxu1 %vm102_vm0, %v648_v48  ;;  %v596_v55 = vmul.f32 %v4837_v26, %v4788_v43  ;;  %v597_v62 = vmul.f32 %v4837_v26, %v4795_v38  ;;  %v598_v19 = vmul.f32 %v4837_v26, %v4802_v34  ;;  %v599_v46 = vmul.f32 %v4837_v26, %v4809_v29 }
 0x159   :  { %v600_v9 = vmul.f32 %v4837_v26, %v8084_v3  ;;  %v4998_v40 = vadd.f32 %v4842_v63, %v594_v24  ;;  %v5001_v43 = vadd.f32 %v4842_v63, %v595_v15  ;;  %v555_v33 = vmul.f32 %v4837_v26, %v8086_v30  ;;  %v8099_v24 = vld [vmem:[#allocation7_spill] sm:$0xff]  ;;  %v8101_v3 = vld [vmem:[#allocation30_spill] sm:$0xff] }
 0x15a   :  { %3346 = vmatmul.mubr.msk.f32.gmra.mxu0 %vm102_vm0, %v617_v27  ;;  %v5004_v38 = vadd.f32 %v4842_v63, %v596_v55  ;;  %v5007_v34 = vadd.f32 %v4842_v63, %v597_v62  ;;  %v5010_v29 = vadd.f32 %v4842_v63, %v598_v19  ;;  %v5013_v53 = vadd.f32 %v4842_v63, %v599_v46  ;;  %v8085_v27 = vld [vmem:[#allocation22_spill] sm:$0xff]  ;;  %v8100_v19 = vld [vmem:[#allocation8_spill] sm:$0xff] }
 0x15b   :  { %3348 = vmatprep.mubr.msk.f32.mxu0 %vm102_vm0, %v618_v2  ;;  %3394 = vmatmul.mubr.msk.f32.gmra.mxu1 %vm102_vm0, %v649_v54  ;;  %v5016_v23 = vadd.f32 %v4842_v63, %v600_v9  ;;  %v554_v2 = vmul.f32 %v4837_v26, %v8085_v27  ;;  %v627_v52 = vadd.f32 %v4842_v63, %v552_v12  ;;  %v8094_v12 = vld [vmem:[#allocation27_spill] sm:$0xff]  ;;  %v8096_v54 = vld [vmem:[#allocation6_spill] sm:$0xff] }
 0x15c   :  { %3396 = vmatprep.mubr.msk.f32.mxu1 %vm102_vm0, %v650_v7  ;;  %v653_v56 = vadd.f32 %v4842_v63, %v578_v57  ;;  %v580_v8 = vmul.f32 %v4837_v26, %v8087_v60  ;;  %v628_v61 = vadd.f32 %v4842_v63, %v553_v35  ;;  %v654_v1 = vadd.f32 %v4842_v63, %v579_v5  ;;  %v8098_v57 = vld [vmem:[#allocation29_spill] sm:$0xff]  ;;  %v8102_v27 = vld [vmem:[#allocation31_spill] sm:$0xff] }
 0x15d   :  { %v629_v10 = vadd.f32 %v4842_v63, %v554_v2  ;;  %v630_v17 = vadd.f32 %v4842_v63, %v555_v33  ;;  %v582_v16 = vmul.f32 %v4837_v26, %v8090_v4  ;;  %v559_v59 = vmul.f32 %v4837_v26, %v8094_v12  ;;  %v8107_v4 = vld [vmem:[#allocation33_spill] sm:$0xff] }
 0x15e   :  { %3349 = vmatmul.mubr.msk.f32.gmra.mxu0 %vm102_vm0, %v619_v18  ;;  %v8088_v18 = vld [vmem:[#allocation35_spill] sm:$0xff]  ;;  %v655_v58 = vadd.f32 %v4842_v63, %v580_v8  ;;  %v585_v41 = vmul.f32 %v4837_v26, %v8096_v54  ;;  %v560_v7 = vmul.f32 %v4837_v26, %v8097_v49  ;;  %v561_v5 = vmul.f32 %v4837_v26, %v8098_v57 }
 0x15f   :  { %3351 = vmatprep.mubr.msk.f32.mxu0 %vm102_vm0, %v620_v36  ;;  %3397 = vmatmul.mubr.msk.f32.gmra.mxu1 %vm102_vm0, %v651_v37  ;;  %v581_v21 = vmul.f32 %v4837_v26, %v8088_v18  ;;  %v8089_v36 = vld [vmem:[#allocation24_spill] sm:$0xff]  ;;  %v657_v28 = vadd.f32 %v4842_v63, %v582_v16  ;;  %v586_v15 = vmul.f32 %v4837_v26, %v8099_v24 }
 0x160   :  { %3399 = vmatprep.mubr.msk.f32.mxu1 %vm102_vm0, %v652_v11  ;;  %v556_v39 = vmul.f32 %v4837_v26, %v8089_v36  ;;  %v634_v55 = vadd.f32 %v4842_v63, %v559_v59  ;;  %v660_v62 = vadd.f32 %v4842_v63, %v585_v41  ;;  %v587_v46 = vmul.f32 %v4837_v26, %v8100_v19 }
 0x161   :  { %v656_v22 = vadd.f32 %v4842_v63, %v581_v21  ;;  %v562_v9 = vmul.f32 %v4837_v26, %v8101_v3  ;;  %v563_v2 = vmul.f32 %v4837_v26, %v8102_v27  ;;  %v635_v30 = vadd.f32 %v4842_v63, %v560_v7  ;;  %v8105_v21 = vld [vmem:[#allocation32_spill] sm:$0xff] }
 0x162   :  { %3352 = vmatmul.mubr.msk.f32.gmra.mxu0 %vm102_vm0, %v621_v44  ;;  %v557_v44 = vmul.f32 %v4837_v26, %v8091_v14  ;;  %v631_v48 = vadd.f32 %v4842_v63, %v556_v39  ;;  %v661_v33 = vadd.f32 %v4842_v63, %v586_v15  ;;  %v636_v60 = vadd.f32 %v4842_v63, %v561_v5 }
 0x163   :  { %3354 = vmatprep.mubr.msk.f32.mxu0 %vm102_vm0, %v622_v45  ;;  %3400 = vmatmul.mubr.msk.f32.gmra.mxu1 %vm102_vm0, %v653_v56  ;;  %v583_v45 = vmul.f32 %v4837_v26, %v8092_v42  ;;  %v662_v8 = vadd.f32 %v4842_v63, %v587_v46  ;;  %v637_v18 = vadd.f32 %v4842_v63, %v562_v9 }
 0x164   :  { %3402 = vmatprep.mubr.msk.f32.mxu1 %vm102_vm0, %v654_v1  ;;  %v638_v36 = vadd.f32 %v4842_v63, %v563_v2  ;;  %v565_v16 = vmul.f32 %v4837_v26, %v8107_v4 }
 0x165   :  { %v658_v35 = vadd.f32 %v4842_v63, %v583_v45 }
 0x166   :  { %3355 = vmatmul.mubr.msk.f32.gmra.mxu0 %vm102_vm0, %v623_v0  ;;  %v558_v0 = vmul.f32 %v4837_v26, %v8093_v51 }
 0x167   :  { %3357 = vmatprep.mubr.msk.f32.mxu0 %vm102_vm0, %v624_v50  ;;  %3403 = vmatmul.mubr.msk.f32.gmra.mxu1 %vm102_vm0, %v655_v58  ;;  %v8095_v50 = vld [vmem:[#allocation5_spill] sm:$0xff] }
 0x168   :  { %3405 = vmatprep.mubr.msk.f32.mxu1 %vm102_vm0, %v656_v22  ;;  %v633_v37 = vadd.f32 %v4842_v63, %v558_v0 }
 0x16a   :  { %3358 = vmatmul.mubr.msk.f32.gmra.mxu0 %vm102_vm0, %v625_v13  ;;  %v584_v13 = vmul.f32 %v4837_v26, %v8095_v50 }
 0x16b   :  { %3360 = vmatprep.mubr.msk.f32.mxu0 %vm102_vm0, %v626_v6  ;;  %v632_v6 = vadd.f32 %v4842_v63, %v557_v44  ;;  %3406 = vmatmul.mubr.msk.f32.gmra.mxu1 %vm102_vm0, %v657_v28  ;;  %v8108_v44 = vld [vmem:[#allocation12_spill] sm:$0xff] }
 0x16c   :  { %v659_v11 = vadd.f32 %v4842_v63, %v584_v13  ;;  %3408 = vmatprep.mubr.msk.f32.mxu1 %vm102_vm0, %v658_v35  ;;  %v591_v22 = vmul.f32 %v4837_v26, %v8108_v44 }
 0x16e   :  { %3361 = vmatmul.mubr.msk.f32.gmra.mxu0 %vm102_vm0, %v627_v52  ;;  %v8103_v52 = vld [vmem:[#allocation9_spill] sm:$0xff]  ;;  %v666_v51 = vadd.f32 %v4842_v63, %v591_v22 }
 0x16f   :  { %3363 = vmatprep.mubr.msk.f32.mxu0 %vm102_vm0, %v628_v61  ;;  %3409 = vmatmul.mubr.msk.f32.gmra.mxu1 %vm102_vm0, %v659_v11  ;;  %v588_v56 = vmul.f32 %v4837_v26, %v8103_v52  ;;  %v8104_v61 = vld [vmem:[#allocation10_spill] sm:$0xff] }
 0x170   :  { %3411 = vmatprep.mubr.msk.f32.mxu1 %vm102_vm0, %v660_v62  ;;  %v589_v1 = vmul.f32 %v4837_v26, %v8104_v61 }
 0x171   :  { %v663_v39 = vadd.f32 %v4842_v63, %v588_v56 }
 0x172   :  { %3364 = vmatmul.mubr.msk.f32.gmra.mxu0 %vm102_vm0, %v629_v10  ;;  %v564_v10 = vmul.f32 %v4837_v26, %v8105_v21  ;;  %v664_v14 = vadd.f32 %v4842_v63, %v589_v1 }
 0x173   :  { %3366 = vmatprep.mubr.msk.f32.mxu0 %vm102_vm0, %v630_v17  ;;  %3412 = vmatmul.mubr.msk.f32.gmra.mxu1 %vm102_vm0, %v661_v33  ;;  %v8106_v17 = vld [vmem:[#allocation11_spill] sm:$0xff] }
 0x174   :  { %v590_v58 = vmul.f32 %v4837_v26, %v8106_v17  ;;  %3414 = vmatprep.mubr.msk.f32.mxu1 %vm102_vm0, %v662_v8  ;;  %v639_v42 = vadd.f32 %v4842_v63, %v564_v10 }
 0x176   :  { %3367 = vmatmul.mubr.msk.f32.gmra.mxu0 %vm102_vm0, %v631_v48  ;;  %v665_v45 = vadd.f32 %v4842_v63, %v590_v58  ;;  %v640_v48 = vadd.f32 %v4842_v63, %v565_v16  ;;  %v5149_v63 = vld [vmem:[%s7892_s4] ss:$0 sm:$0xff] }
 0x177   :  { %3369 = vmatprep.mubr.msk.f32.mxu0 %vm102_vm0, %v632_v6  ;;  %3415 = vmatmul.mubr.msk.f32.gmra.mxu1 %vm102_vm0, %v663_v39 }
 0x178   :  { %3417 = vmatprep.mubr.msk.f32.mxu1 %vm102_vm0, %v664_v14 }
 0x17a   :  { %3370 = vmatmul.mubr.msk.f32.gmra.mxu0 %vm102_vm0, %v633_v37 }
 0x17b   :  { %3372 = vmatprep.mubr.msk.f32.mxu0 %vm102_vm0, %v634_v55  ;;  %3418 = vmatmul.mubr.msk.f32.gmra.mxu1 %vm102_vm0, %v665_v45 }
 0x17c   :  { %3420 = vmatprep.mubr.msk.f32.mxu1 %vm102_vm0, %v666_v51 }
 0x17e   :  { %3373 = vmatmul.mubr.msk.f32.gmra.mxu0 %vm102_vm0, %v635_v30 }
 0x17f   :  { %3375 = vmatprep.mubr.msk.f32.mxu0 %vm102_vm0, %v636_v60  ;;  %3421 = vmatmul.mubr.msk.f32.gmra.mxu1 %vm102_vm0, %v4974_v31 }
 0x180   :  { %3423 = vmatprep.mubr.msk.f32.mxu1 %vm102_vm0, %v4977_v32 }
 0x182   :  { %3376 = vmatmul.mubr.msk.f32.gmra.mxu0 %vm102_vm0, %v637_v18 }
 0x183   :  { %3378 = vmatprep.mubr.msk.f32.mxu0 %vm102_vm0, %v638_v36  ;;  %3424 = vmatmul.mubr.msk.f32.gmra.mxu1 %vm102_vm0, %v4998_v40 }
 0x184   :  { %3426 = vmatprep.mubr.msk.f32.mxu1 %vm102_vm0, %v5001_v43 }
 0x186   :  { %3379 = vmatmul.mubr.msk.f32.gmra.mxu0 %vm102_vm0, %v639_v42 }
 0x187   :  { %3381 = vmatprep.mubr.msk.f32.mxu0 %vm102_vm0, %v640_v48  ;;  %3427 = vmatmul.mubr.msk.f32.gmra.mxu1 %vm102_vm0, %v5004_v38 }
 0x188   :  { %3429 = vmatprep.mubr.msk.f32.mxu1 %vm102_vm0, %v5007_v34 }
 0x18a   :  { %3382 = vmatmul.mubr.msk.f32.gmra.mxu0 %vm102_vm0, %v4901_v47 }
 0x18b   :  { %3430 = vmatmul.mubr.msk.f32.gmra.mxu1 %vm102_vm0, %v5010_v29 }
 0x18c   :  { %3432 = vmatprep.mubr.msk.f32.mxu1 %vm102_vm0, %v5013_v53 }
 0x18f   :  { %3433 = vmatmul.mubr.msk.f32.gmra.mxu1 %vm102_vm0, %v5016_v23 }
 0x20a   :  { %v3335_v26 = vpop.f32.mrf.mxu0 }
 0x20b   :  { %v5152_v31 = vadd.f32 %v3335_v26, %v5149_v63 }
 0x20c   :  { %v961_v47 = vpop.f32.mrf.mxu0 }
 0x20d   :  { %v5155_v32 = vadd.f32 %v5149_v63, %v961_v47  ;;  %v1302_v34 = vsel %vm1300_vm1, %v5152_v31, 0.0 }
 0x20e   :  { %v3338_v40 = vpop.f32.mrf.mxu0 }
 0x20f   :  { %v1301_v43 = vsel %vm1300_vm1, %v5155_v32, 0.0  ;;  %v5162_v29 = vadd.f32 %v3338_v40, %v5149_v63  ;;  %v5187_v15 = vpop.f32.mrf.mxu1 }
 0x210   :  { %v971_v38 = vpop.f32.mrf.mxu0  ;;  %v1303_v23 = vadd.f32 %v1302_v34, %v1301_v43 }
 0x211   :  { %v5165_v53 = vadd.f32 %v5149_v63, %v971_v38  ;;  %v1306_v50 = vsel %vm1300_vm1, %v5162_v29, 0.0  ;;  %v5191_v46 = vpop.f32.mrf.mxu1 }
 0x212   :  { %v3341_v0 = vpop.f32.mrf.mxu0 }
 0x213   :  { %v1304_v12 = vsel %vm1300_vm1, %v5165_v53, 0.0  ;;  %v5172_v13 = vadd.f32 %v3341_v0, %v5149_v63  ;;  %v5201_v33 = vpop.f32.mrf.mxu1 }
 0x214   :  { %v1305_v59 = vadd.f32 %v1304_v12, %v1303_v23  ;;  %v981_v28 = vpop.f32.mrf.mxu0 }
 0x215   :  { %v5175_v6 = vadd.f32 %v5149_v63, %v981_v28  ;;  %v1310_v57 = vsel %vm1300_vm1, %v5172_v13, 0.0  ;;  %v5205_v8 = vpop.f32.mrf.mxu1 }
 0x216   :  { %v1307_v35 = vadd.f32 %v1306_v50, %v1305_v59  ;;  %v3344_v54 = vpop.f32.mrf.mxu0 }
 0x217   :  { %v1308_v41 = vsel %vm1300_vm1, %v5175_v6, 0.0  ;;  %v5182_v5 = vadd.f32 %v3344_v54, %v5149_v63  ;;  %v5215_v36 = vpop.f32.mrf.mxu1 }
 0x218   :  { %v1309_v49 = vadd.f32 %v1308_v41, %v1307_v35  ;;  %v991_v7 = vpop.f32.mrf.mxu0 }
 0x219   :  { %v5185_v37 = vadd.f32 %v5149_v63, %v991_v7  ;;  %v1314_v3 = vsel %vm1300_vm1, %v5182_v5, 0.0  ;;  %v5219_v4 = vpop.f32.mrf.mxu1 }
 0x21a   :  { %v1311_v11 = vadd.f32 %v1310_v57, %v1309_v49  ;;  %v3347_v24 = vpop.f32.mrf.mxu0 }
 0x21b   :  { %v1312_v55 = vsel %vm1300_vm1, %v5185_v37, 0.0  ;;  %v5196_v9 = vadd.f32 %v3347_v24, %v5149_v63  ;;  %v5231_v26 = vpop.f32.mrf.mxu1 }
 0x21c   :  { %v1313_v62 = vadd.f32 %v1312_v55, %v1311_v11  ;;  %v1001_v19 = vpop.f32.mrf.mxu0 }
 0x21d   :  { %v5199_v27 = vadd.f32 %v5149_v63, %v1001_v19  ;;  %v1318_v61 = vsel %vm1300_vm1, %v5196_v9, 0.0  ;;  %v5243_v59 = vpop.f32.mrf.mxu1 }
 0x21e   :  { %v1315_v2 = vadd.f32 %v1314_v3, %v1313_v62  ;;  %v3350_v30 = vpop.f32.mrf.mxu0 }
 0x21f   :  { %v1316_v52 = vsel %vm1300_vm1, %v5199_v27, 0.0  ;;  %v5210_v1 = vadd.f32 %v3350_v30, %v5149_v63  ;;  %v5255_v11 = vpop.f32.mrf.mxu1 }
 0x220   :  { %v1317_v56 = vadd.f32 %v1316_v52, %v1315_v2  ;;  %v1011_v60 = vpop.f32.mrf.mxu0 }
 0x221   :  { %v5213_v18 = vadd.f32 %v5149_v63, %v1011_v60  ;;  %v1322_v16 = vsel %vm1300_vm1, %v5210_v1, 0.0 }
 0x222   :  { %v1319_v21 = vadd.f32 %v1318_v61, %v1317_v56  ;;  %v3353_v10 = vpop.f32.mrf.mxu0  ;;  %v5267_v56 = vpop.f32.mrf.mxu1 }
 0x223   :  { %v1320_v39 = vsel %vm1300_vm1, %v5213_v18, 0.0  ;;  %v5224_v14 = vadd.f32 %v3353_v10, %v5149_v63 }
 0x224   :  { %v1321_v17 = vadd.f32 %v1320_v39, %v1319_v21  ;;  %v1021_v58 = vpop.f32.mrf.mxu0 }
 0x225   :  { %v5227_v44 = vadd.f32 %v5149_v63, %v1021_v58  ;;  %v1326_v47 = vsel %vm1300_vm1, %v5224_v14, 0.0 }
 0x226   :  { %v1323_v22 = vadd.f32 %v1322_v16, %v1321_v17  ;;  %v3356_v42 = vpop.f32.mrf.mxu0 }
 0x227   :  { %v1324_v45 = vsel %vm1300_vm1, %v5227_v44, 0.0  ;;  %v5236_v40 = vadd.f32 %v3356_v42, %v5149_v63 }
 0x228   :  { %v1325_v48 = vadd.f32 %v1324_v45, %v1323_v22  ;;  %v1031_v51 = vpop.f32.mrf.mxu0  ;;  %v5279_v22 = vpop.f32.mrf.mxu1 }
 0x229   :  { %v5239_v43 = vadd.f32 %v5149_v63, %v1031_v51  ;;  %v1330_v28 = vsel %vm1300_vm1, %v5236_v40, 0.0 }
 0x22a   :  { %v1327_v38 = vadd.f32 %v1326_v47, %v1325_v48  ;;  %v3359_v34 = vpop.f32.mrf.mxu0 }
 0x22b   :  { %v1328_v23 = vsel %vm1300_vm1, %v5239_v43, 0.0  ;;  %v5248_v50 = vadd.f32 %v3359_v34, %v5149_v63 }
 0x22c   :  { %v1329_v0 = vadd.f32 %v1328_v23, %v1327_v38  ;;  %v1041_v12 = vpop.f32.mrf.mxu0 }
 0x22d   :  { %v5251_v35 = vadd.f32 %v5149_v63, %v1041_v12  ;;  %v1334_v24 = vsel %vm1300_vm1, %v5248_v50, 0.0 }
 0x22e   :  { %v1331_v54 = vadd.f32 %v1330_v28, %v1329_v0  ;;  %v3362_v41 = vpop.f32.mrf.mxu0  ;;  %v5291_v0 = vpop.f32.mrf.mxu1 }
 0x22f   :  { %v1332_v49 = vsel %vm1300_vm1, %v5251_v35, 0.0  ;;  %v5260_v55 = vadd.f32 %v3362_v41, %v5149_v63 }
 0x230   :  { %v1333_v7 = vadd.f32 %v1332_v49, %v1331_v54  ;;  %v1051_v57 = vpop.f32.mrf.mxu0 }
 0x231   :  { %v5263_v62 = vadd.f32 %v5149_v63, %v1051_v57  ;;  %v1338_v60 = vsel %vm1300_vm1, %v5260_v55, 0.0 }
 0x232   :  { %v1335_v19 = vadd.f32 %v1334_v24, %v1333_v7  ;;  %v3365_v3 = vpop.f32.mrf.mxu0 }
 0x233   :  { %v1336_v2 = vsel %vm1300_vm1, %v5263_v62, 0.0  ;;  %v5272_v61 = vadd.f32 %v3365_v3, %v5149_v63 }
 0x234   :  { %v1337_v30 = vadd.f32 %v1336_v2, %v1335_v19  ;;  %v1061_v52 = vpop.f32.mrf.mxu0  ;;  %v5303_v19 = vpop.f32.mrf.mxu1 }
 0x235   :  { %v5275_v21 = vadd.f32 %v5149_v63, %v1061_v52  ;;  %v1342_v42 = vsel %vm1300_vm1, %v5272_v61, 0.0 }
 0x236   :  { %v1339_v10 = vadd.f32 %v1338_v60, %v1337_v30  ;;  %v3368_v39 = vpop.f32.mrf.mxu0 }
 0x237   :  { %v1340_v17 = vsel %vm1300_vm1, %v5275_v21, 0.0  ;;  %v5284_v45 = vadd.f32 %v3368_v39, %v5149_v63 }
 0x238   :  { %v1341_v58 = vadd.f32 %v1340_v17, %v1339_v10  ;;  %v1071_v16 = vpop.f32.mrf.mxu0 }
 0x239   :  { %v5287_v48 = vadd.f32 %v5149_v63, %v1071_v16  ;;  %v1346_v12 = vsel %vm1300_vm1, %v5284_v45, 0.0 }
 0x23a   :  { %v1343_v51 = vadd.f32 %v1342_v42, %v1341_v58  ;;  %v3371_v47 = vpop.f32.mrf.mxu0  ;;  %v5315_v58 = vpop.f32.mrf.mxu1 }
 0x23b   :  { %v1344_v38 = vsel %vm1300_vm1, %v5287_v48, 0.0  ;;  %v5296_v28 = vadd.f32 %v3371_v47, %v5149_v63 }
 0x23c   :  { %v1345_v34 = vadd.f32 %v1344_v38, %v1343_v51  ;;  %v1081_v23 = vpop.f32.mrf.mxu0 }
 0x23d   :  { %v5299_v54 = vadd.f32 %v5149_v63, %v1081_v23  ;;  %v1350_v3 = vsel %vm1300_vm1, %v5296_v28, 0.0 }
 0x23e   :  { %v1347_v41 = vadd.f32 %v1346_v12, %v1345_v34  ;;  %v3374_v49 = vpop.f32.mrf.mxu0 }
 0x23f   :  { %v1348_v7 = vsel %vm1300_vm1, %v5299_v54, 0.0  ;;  %v5308_v2 = vadd.f32 %v3374_v49, %v5149_v63 }
 0x240   :  { %v1349_v57 = vadd.f32 %v1348_v7, %v1347_v41  ;;  %v1091_v24 = vpop.f32.mrf.mxu0  ;;  %v5327_v41 = vpop.f32.mrf.mxu1 }
 0x241   :  { %v5311_v30 = vadd.f32 %v5149_v63, %v1091_v24  ;;  %v1354_v16 = vsel %vm1300_vm1, %v5308_v2, 0.0 }
 0x242   :  { %v1351_v52 = vadd.f32 %v1350_v3, %v1349_v57  ;;  %v3377_v60 = vpop.f32.mrf.mxu0 }
 0x243   :  { %v1352_v10 = vsel %vm1300_vm1, %v5311_v30, 0.0  ;;  %v5320_v42 = vadd.f32 %v3377_v60, %v5149_v63 }
 0x244   :  { %v1353_v39 = vadd.f32 %v1352_v10, %v1351_v52  ;;  %v1101_v17 = vpop.f32.mrf.mxu0 }
 0x245   :  { %v5323_v51 = vadd.f32 %v5149_v63, %v1101_v17  ;;  %v1358_v49 = vsel %vm1300_vm1, %v5320_v42, 0.0 }
 0x246   :  { %v1355_v47 = vadd.f32 %v1354_v16, %v1353_v39  ;;  %v3380_v38 = vpop.f32.mrf.mxu0  ;;  %v1201_v39 = vpop.f32.mrf.mxu1 }
 0x247   :  { %v1356_v34 = vsel %vm1300_vm1, %v5323_v51, 0.0  ;;  %v5332_v7 = vadd.f32 %v3380_v38, %v5149_v63 }
 0x248   :  { %v1357_v23 = vadd.f32 %v1356_v34, %v1355_v47  ;;  %v1111_v12 = vpop.f32.mrf.mxu0 }
 0x249   :  { %v5335_v57 = vadd.f32 %v5149_v63, %v1111_v12  ;;  %v1362_v17 = vsel %vm1300_vm1, %v5332_v7, 0.0 }
 0x24a   :  { %v1359_v24 = vadd.f32 %v1358_v49, %v1357_v23  ;;  %v3383_v3 = vpop.f32.mrf.mxu0  ;;  %v5351_v23 = vadd.f32 %v5149_v63, %v5191_v46  ;;  %v3410_v49 = vpop.f32.mrf.mxu1 }
 0x24b   :  { %v1360_v52 = vsel %vm1300_vm1, %v5335_v57, 0.0  ;;  %v5342_v16 = vadd.f32 %v3383_v3, %v5149_v63  ;;  %v5357_v3 = vadd.f32 %v5187_v15, %v5149_v63 }
 0x24c   :  { %v1361_v60 = vadd.f32 %v1360_v52, %v1359_v24  ;;  %v1121_v10 = vpop.f32.mrf.mxu0  ;;  %v1211_v46 = vpop.f32.mrf.mxu1 }
 0x24d   :  { %v5345_v47 = vadd.f32 %v5149_v63, %v1121_v10  ;;  %v1366_v24 = vsel %vm1300_vm1, %v5342_v16, 0.0  ;;  %v5363_v10 = vadd.f32 %v5149_v63, %v5205_v8 }
 0x24e   :  { %v1363_v38 = vadd.f32 %v1362_v17, %v1361_v60  ;;  %v1368_v60 = vsel %vm1300_vm1, %v5351_v23, 0.0  ;;  %v3413_v8 = vpop.f32.mrf.mxu1 }
 0x24f   :  { %v1364_v34 = vsel %vm1300_vm1, %v5345_v47, 0.0  ;;  %v1372_v15 = vsel %vm1300_vm1, %v5363_v10, 0.0 }
 0x250   :  { %v1365_v12 = vadd.f32 %v1364_v34, %v1363_v38  ;;  %v1370_v38 = vsel %vm1300_vm1, %v5357_v3, 0.0  ;;  %v5369_v34 = vadd.f32 %v5201_v33, %v5149_v63 }
 0x252   :  { %v1367_v52 = vadd.f32 %v1366_v24, %v1365_v12  ;;  %8109 = vst [vmem:[#allocation15_spill] sm:$0xff] %v5369_v34  ;;  %v5375_v12 = vadd.f32 %v5149_v63, %v5219_v4  ;;  %v1221_v4 = vpop.f32.mrf.mxu1 }
 0x254   :  { %v1369_v17 = vadd.f32 %v1368_v60, %v1367_v52  ;;  %v1374_v52 = vsel %vm1300_vm1, %v5369_v34, 0.0  ;;  %v5381_v60 = vadd.f32 %v5215_v36, %v5149_v63  ;;  %v1376_v33 = vsel %vm1300_vm1, %v5375_v12, 0.0 }
 0x256   :  { %v1371_v25 = vadd.f32 %v1370_v38, %v1369_v17  ;;  %8110 = vst [vmem:[#allocation16_spill] sm:$0xff] %v5381_v60  ;;  %v5387_v17 = vadd.f32 %v5149_v63, %v5243_v59  ;;  %v3416_v59 = vpop.f32.mrf.mxu1 }
 0x258   :  { %v1373_v24 = vadd.f32 %v1372_v15, %v1371_v25  ;;  %v1378_v25 = vsel %vm1300_vm1, %v5381_v60, 0.0  ;;  %v5393_v15 = vadd.f32 %v5231_v26, %v5149_v63  ;;  %v1380_v36 = vsel %vm1300_vm1, %v5387_v17, 0.0 }
 0x25a   :  { %v1375_v20 = vadd.f32 %v1374_v52, %v1373_v24  ;;  %8111 = vst [vmem:[#allocation17_spill] sm:$0xff] %v5393_v15  ;;  %v5399_v24 = vadd.f32 %v5149_v63, %v5267_v56  ;;  %v1231_v56 = vpop.f32.mrf.mxu1 }
 0x25c   :  { %v1377_v38 = vadd.f32 %v1376_v33, %v1375_v20  ;;  %v1382_v20 = vsel %vm1300_vm1, %v5393_v15, 0.0  ;;  %v5405_v33 = vadd.f32 %v5255_v11, %v5149_v63  ;;  %v1384_v26 = vsel %vm1300_vm1, %v5399_v24, 0.0 }
 0x25e   :  { %v1379_v34 = vadd.f32 %v1378_v25, %v1377_v38  ;;  %8112 = vst [vmem:[#allocation18_spill] sm:$0xff] %v5405_v33  ;;  %v5411_v38 = vadd.f32 %v5149_v63, %v5291_v0  ;;  %v3419_v0 = vpop.f32.mrf.mxu1 }
 0x260   :  { %v1381_v52 = vadd.f32 %v1380_v36, %v1379_v34  ;;  %8113 = vst [vmem:[#allocation19_spill] sm:$0xff] %v5411_v38  ;;  %v1386_v34 = vsel %vm1300_vm1, %v5405_v33, 0.0  ;;  %v5417_v36 = vadd.f32 %v5279_v22, %v5149_v63  ;;  %v1388_v11 = vsel %vm1300_vm1, %v5411_v38, 0.0  ;;  %v1241_v38 = vpop.f32.mrf.mxu1 }
 0x262   :  { %v1383_v60 = vadd.f32 %v1382_v20, %v1381_v52  ;;  %v5423_v52 = vadd.f32 %v5149_v63, %v5315_v58 }
 0x264   :  { %v1385_v25 = vadd.f32 %v1384_v26, %v1383_v60  ;;  %8114 = vst [vmem:[#allocation20_spill] sm:$0xff] %v5423_v52  ;;  %v1390_v60 = vsel %vm1300_vm1, %v5417_v36, 0.0  ;;  %v5429_v26 = vadd.f32 %v5303_v19, %v5149_v63  ;;  %v1392_v22 = vsel %vm1300_vm1, %v5423_v52, 0.0  ;;  %v3422_v52 = vpop.f32.mrf.mxu1 }
 0x266   :  { %v1387_v15 = vadd.f32 %v1386_v34, %v1385_v25  ;;  %v5434_v25 = vadd.f32 %v5149_v63, %v1201_v39  ;;  %v1394_v58 = vsel %vm1300_vm1, %v5429_v26, 0.0 }
 0x268   :  { %v1389_v20 = vadd.f32 %v1388_v11, %v1387_v15  ;;  %8115 = vst [vmem:[#allocation21_spill] sm:$0xff] %v5434_v25  ;;  %v5440_v15 = vadd.f32 %v5327_v41, %v5149_v63  ;;  %v1396_v19 = vsel %vm1300_vm1, %v5434_v25, 0.0  ;;  %v1251_v25 = vpop.f32.mrf.mxu1 }
 0x26a   :  { %v1391_v33 = vadd.f32 %v1390_v60, %v1389_v20  ;;  %v5445_v20 = vadd.f32 %v5149_v63, %v1211_v46  ;;  %v1398_v39 = vsel %vm1300_vm1, %v5440_v15, 0.0 }
 0x26c   :  { %v1393_v34 = vadd.f32 %v1392_v22, %v1391_v33  ;;  %8116 = vst [vmem:[#allocation13_spill] sm:$0xff] %v5445_v20  ;;  %v5450_v33 = vadd.f32 %v3410_v49, %v5149_v63  ;;  %v1400_v41 = vsel %vm1300_vm1, %v5445_v20, 0.0  ;;  %v3425_v20 = vpop.f32.mrf.mxu1 }
 0x26e   :  { %v1395_v11 = vadd.f32 %v1394_v58, %v1393_v34  ;;  %v5455_v34 = vadd.f32 %v5149_v63, %v1221_v4  ;;  %v1402_v46 = vsel %vm1300_vm1, %v5450_v33, 0.0 }
 0x270   :  { %v1397_v60 = vadd.f32 %v1396_v19, %v1395_v11  ;;  %8117 = vst [vmem:[#allocation22_spill] sm:$0xff] %v5455_v34  ;;  %v5460_v11 = vadd.f32 %v3413_v8, %v5149_v63  ;;  %v1404_v49 = vsel %vm1300_vm1, %v5455_v34, 0.0  ;;  %v1261_v34 = vpop.f32.mrf.mxu1 }
 0x272   :  { %v1399_v22 = vadd.f32 %v1398_v39, %v1397_v60  ;;  %v5465_v60 = vadd.f32 %v5149_v63, %v1231_v56  ;;  %v1406_v4 = vsel %vm1300_vm1, %v5460_v11, 0.0 }
 0x274   :  { %v1401_v58 = vadd.f32 %v1400_v41, %v1399_v22  ;;  %8118 = vst [vmem:[#allocation23_spill] sm:$0xff] %v5465_v60  ;;  %v5470_v22 = vadd.f32 %v3416_v59, %v5149_v63  ;;  %v1408_v8 = vsel %vm1300_vm1, %v5465_v60, 0.0  ;;  %v3428_v60 = vpop.f32.mrf.mxu1 }
 0x276   :  { %v1403_v19 = vadd.f32 %v1402_v46, %v1401_v58  ;;  %v5475_v58 = vadd.f32 %v5149_v63, %v1241_v38  ;;  %v1410_v56 = vsel %vm1300_vm1, %v5470_v22, 0.0 }
 0x278   :  { %v1405_v39 = vadd.f32 %v1404_v49, %v1403_v19  ;;  %8119 = vst [vmem:[#allocation34_spill] sm:$0xff] %v5475_v58  ;;  %v5480_v19 = vadd.f32 %v3419_v0, %v5149_v63  ;;  %v1412_v59 = vsel %vm1300_vm1, %v5475_v58, 0.0  ;;  %v1271_v58 = vpop.f32.mrf.mxu1 }
 0x27a   :  { %v1407_v41 = vadd.f32 %v1406_v4, %v1405_v39  ;;  %8120 = vst [vmem:[#allocation35_spill] sm:$0xff] %v5480_v19  ;;  %v5485_v39 = vadd.f32 %v5149_v63, %v1251_v25  ;;  %v1414_v38 = vsel %vm1300_vm1, %v5480_v19, 0.0 }
 0x27c   :  { %v1409_v46 = vadd.f32 %v1408_v8, %v1407_v41  ;;  %8121 = vst [vmem:[#allocation24_spill] sm:$0xff] %v5485_v39  ;;  %v5490_v41 = vadd.f32 %v3422_v52, %v5149_v63  ;;  %v1416_v0 = vsel %vm1300_vm1, %v5485_v39, 0.0  ;;  %v3431_v39 = vpop.f32.mrf.mxu1 }
 0x27e   :  { %v1411_v49 = vadd.f32 %v1410_v56, %v1409_v46  ;;  %8122 = vst [vmem:[#allocation3_spill] sm:$0xff] %v5490_v41  ;;  %v5495_v46 = vadd.f32 %v5149_v63, %v1261_v34  ;;  %v1418_v25 = vsel %vm1300_vm1, %v5490_v41, 0.0 }
 0x280   :  { %v1413_v4 = vadd.f32 %v1412_v59, %v1411_v49  ;;  %8123 = vst [vmem:[#allocation25_spill] sm:$0xff] %v5495_v46  ;;  %v5500_v49 = vadd.f32 %v3425_v20, %v5149_v63  ;;  %v1420_v52 = vsel %vm1300_vm1, %v5495_v46, 0.0  ;;  %v5520_v46 = vadd.f32 %v3431_v39, %v5149_v63 }
 0x282   :  { %v1415_v8 = vadd.f32 %v1414_v38, %v1413_v4  ;;  %8124 = vst [vmem:[#allocation4_spill] sm:$0xff] %v5500_v49  ;;  %v5505_v4 = vadd.f32 %v5149_v63, %v1271_v58  ;;  %v1422_v34 = vsel %vm1300_vm1, %v5500_v49, 0.0  ;;  %8128 = vst [vmem:[#allocation6_spill] sm:$0xff] %v5520_v46 }
 0x284   :  { %v1417_v56 = vadd.f32 %v1416_v0, %v1415_v8  ;;  %8125 = vst [vmem:[#allocation26_spill] sm:$0xff] %v5505_v4  ;;  %v5510_v0 = vadd.f32 %v3428_v60, %v5149_v63  ;;  %v1424_v20 = vsel %vm1300_vm1, %v5505_v4, 0.0 }
 0x286   :  { %v1419_v59 = vadd.f32 %v1418_v25, %v1417_v56  ;;  %8126 = vst [vmem:[#allocation27_spill] sm:$0xff] %v5510_v0  ;;  %v1281_v56 = vpop.f32.mrf.mxu1  ;;  %v1426_v25 = vsel %vm1300_vm1, %v5510_v0, 0.0 }
 0x287   :  { %v5517_v58 = vadd.f32 %v5149_v63, %v1281_v56 }
 0x288   :  { %v1421_v38 = vadd.f32 %v1420_v52, %v1419_v59  ;;  %v3434_v52 = vpop.f32.mrf.mxu1 }
 0x289   :  { %8127 = vst [vmem:[#allocation5_spill] sm:$0xff] %v5517_v58  ;;  %v1428_v60 = vsel %vm1300_vm1, %v5517_v58, 0.0  ;;  %v5530_v56 = vadd.f32 %v3434_v52, %v5149_v63 }
 0x28a   :  { %v1423_v8 = vadd.f32 %v1422_v34, %v1421_v38  ;;  %v1291_v34 = vpop.f32.mrf.mxu1 }
 0x28c   :  { %v1425_v41 = vadd.f32 %v1424_v20, %v1423_v8  ;;  %v1430_v8 = vsel %vm1300_vm1, %v5520_v46, 0.0  ;;  %v5527_v20 = vadd.f32 %v5149_v63, %v1291_v34 }
 0x28e   :  { %v1427_v59 = vadd.f32 %v1426_v25, %v1425_v41  ;;  %v1432_v41 = vsel %vm1300_vm1, %v5527_v20, 0.0  ;;  %v1434_v25 = vsel %vm1300_vm1, %v5530_v56, 0.0 }
 0x290   :  { %v1429_v38 = vadd.f32 %v1428_v60, %v1427_v59 }
 0x292   :  { %v1431_v0 = vadd.f32 %v1430_v8, %v1429_v38 }
 0x294   :  { %v1433_v39 = vadd.f32 %v1432_v41, %v1431_v0 }
 0x296   :  { %v1435_v58 = vadd.f32 %v1434_v25, %v1433_v39 }
 0x298   :  { %v1436_v59 = vrot.slane %v1435_v58, 4 }
 0x29a   :  { %v1437_v60 = vadd.f32 %v1436_v59, %v1435_v58 }
 0x29c   :  { %v1438_v4 = vrot.slane %v1437_v60, 2 }
 0x29e   :  { %v1439_v49 = vadd.f32 %v1438_v4, %v1437_v60 }
 0x2a0   :  { %v1440_v46 = vrot.slane %v1439_v49, 1 }
 0x2a2   :  { %v1441_v19 = vadd.f32 %v1440_v46, %v1439_v49 }
 0x2a4   :  { %v5536_v34 = vmul.f32 0.0018382353, %v1441_v19 }
 0x2a6   :  { %v5540_v63 = vsub.f32 %v5155_v32, %v5536_v34  ;;  %v5544_v52 = vsub.f32 %v5152_v31, %v5536_v34  ;;  %v5548_v0 = vsub.f32 %v5165_v53, %v5536_v34  ;;  %v5552_v58 = vsub.f32 %v5162_v29, %v5536_v34 }
 0x2a7   :  { %v5560_v32 = vsub.f32 %v5175_v6, %v5536_v34  ;;  %v5566_v53 = vsub.f32 %v5172_v13, %v5536_v34  ;;  %v5574_v8 = vsub.f32 %v5185_v37, %v5536_v34  ;;  %v5581_v13 = vsub.f32 %v5182_v5, %v5536_v34 }
 0x2a8   :  { %v1511_v19 = vmul.f32 %v5540_v63, %v5540_v63  ;;  %v1512_v46 = vmul.f32 %v5544_v52, %v5544_v52  ;;  %v1513_v31 = vmul.f32 %v5548_v0, %v5548_v0  ;;  %v1514_v29 = vmul.f32 %v5552_v58, %v5552_v58 }
 0x2a9   :  { %v1515_v6 = vmul.f32 %v5560_v32, %v5560_v32  ;;  %v1516_v25 = vmul.f32 %v5566_v53, %v5566_v53  ;;  %v5588_v37 = vsub.f32 %v5199_v27, %v5536_v34  ;;  %v5595_v5 = vsub.f32 %v5196_v9, %v5536_v34 }
 0x2aa   :  { %v1579_v49 = vsel %vm1300_vm1, %v1511_v19, 0.0  ;;  %v1580_v4 = vsel %vm1300_vm1, %v1512_v46, 0.0  ;;  %v1582_v41 = vsel %vm1300_vm1, %v1513_v31, 0.0  ;;  %v1584_v59 = vsel %vm1300_vm1, %v1514_v29, 0.0 }
 0x2ab   :  { %v1581_v38 = vadd.f32 %v1580_v4, %v1579_v49  ;;  %v1517_v19 = vmul.f32 %v5574_v8, %v5574_v8  ;;  %v1586_v46 = vsel %vm1300_vm1, %v1515_v6, 0.0  ;;  %v1518_v49 = vmul.f32 %v5581_v13, %v5581_v13 }
 0x2ac   :  { %v1588_v29 = vsel %vm1300_vm1, %v1516_v25, 0.0  ;;  %v5602_v27 = vsub.f32 %v5213_v18, %v5536_v34  ;;  %v5609_v9 = vsub.f32 %v5210_v1, %v5536_v34  ;;  %v5616_v18 = vsub.f32 %v5227_v44, %v5536_v34 }
 0x2ad   :  { %v1583_v39 = vadd.f32 %v1582_v41, %v1581_v38  ;;  %v1519_v38 = vmul.f32 %v5588_v37, %v5588_v37  ;;  %v1590_v6 = vsel %vm1300_vm1, %v1517_v19, 0.0  ;;  %v1592_v25 = vsel %vm1300_vm1, %v1518_v49, 0.0 }
 0x2ae   :  { %v5623_v1 = vsub.f32 %v5224_v14, %v5536_v34  ;;  %v5630_v44 = vsub.f32 %v5239_v43, %v5536_v34  ;;  %v5637_v14 = vsub.f32 %v5236_v40, %v5536_v34  ;;  %v5644_v43 = vsub.f32 %v5251_v35, %v5536_v34 }
 0x2af   :  { %v1585_v60 = vadd.f32 %v1584_v59, %v1583_v39  ;;  %v1520_v39 = vmul.f32 %v5595_v5, %v5595_v5  ;;  %v1594_v19 = vsel %vm1300_vm1, %v1519_v38, 0.0  ;;  %v5651_v40 = vsub.f32 %v5248_v50, %v5536_v34 }
 0x2b0   :  { %8129 = vst [vmem:[#allocation28_spill] sm:$0xff] %v5644_v43  ;;  %v5658_v35 = vsub.f32 %v5263_v62, %v5536_v34  ;;  %v5665_v50 = vsub.f32 %v5260_v55, %v5536_v34  ;;  %v5672_v62 = vsub.f32 %v5275_v21, %v5536_v34  ;;  %v5679_v55 = vsub.f32 %v5272_v61, %v5536_v34 }
 0x2b1   :  { %v1587_v31 = vadd.f32 %v1586_v46, %v1585_v60  ;;  %v1521_v60 = vmul.f32 %v5602_v27, %v5602_v27  ;;  %v1596_v49 = vsel %vm1300_vm1, %v1520_v39, 0.0  ;;  %8130 = vst [vmem:[#allocation29_spill] sm:$0xff] %v5651_v40  ;;  %v5686_v21 = vsub.f32 %v5287_v48, %v5536_v34 }
 0x2b2   :  { %v5693_v61 = vsub.f32 %v5284_v45, %v5536_v34  ;;  %v5700_v48 = vsub.f32 %v5299_v54, %v5536_v34  ;;  %v5707_v45 = vsub.f32 %v5296_v28, %v5536_v34  ;;  %v5714_v54 = vsub.f32 %v5311_v30, %v5536_v34 }
 0x2b3   :  { %v1589_v4 = vadd.f32 %v1588_v29, %v1587_v31  ;;  %v1522_v31 = vmul.f32 %v5609_v9, %v5609_v9  ;;  %v1598_v38 = vsel %vm1300_vm1, %v1521_v60, 0.0  ;;  %v5721_v28 = vsub.f32 %v5308_v2, %v5536_v34 }
 0x2b4   :  { %v5728_v30 = vsub.f32 %v5323_v51, %v5536_v34  ;;  %v5735_v2 = vsub.f32 %v5320_v42, %v5536_v34  ;;  %v5742_v51 = vsub.f32 %v5335_v57, %v5536_v34  ;;  %v5749_v42 = vsub.f32 %v5332_v7, %v5536_v34 }
 0x2b5   :  { %v1591_v41 = vadd.f32 %v1590_v6, %v1589_v4  ;;  %v1523_v4 = vmul.f32 %v5616_v18, %v5616_v18  ;;  %v1600_v39 = vsel %vm1300_vm1, %v1522_v31, 0.0  ;;  %v5756_v57 = vsub.f32 %v5345_v47, %v5536_v34 }
 0x2b6   :  { %v5763_v7 = vsub.f32 %v5342_v16, %v5536_v34  ;;  %v5770_v47 = vsub.f32 %v5351_v23, %v5536_v34  ;;  %v5777_v16 = vsub.f32 %v5357_v3, %v5536_v34  ;;  %v5784_v23 = vsub.f32 %v5363_v10, %v5536_v34 }
 0x2b7   :  { %v1593_v59 = vadd.f32 %v1592_v25, %v1591_v41  ;;  %v1524_v41 = vmul.f32 %v5623_v1, %v5623_v1  ;;  %v1602_v60 = vsel %vm1300_vm1, %v1523_v4, 0.0  ;;  %v5798_v10 = vsub.f32 %v5375_v12, %v5536_v34 }
 0x2b8   :  { %v5812_v12 = vsub.f32 %v5387_v17, %v5536_v34  ;;  %v5826_v17 = vsub.f32 %v5399_v24, %v5536_v34 }
 0x2b9   :  { %v1595_v46 = vadd.f32 %v1594_v19, %v1593_v59  ;;  %v1525_v59 = vmul.f32 %v5630_v44, %v5630_v44  ;;  %v1604_v31 = vsel %vm1300_vm1, %v1524_v41, 0.0 }
 0x2ba   :  { %8134 = vst [vmem:[#allocation7_spill] sm:$0xff] %v5826_v17 }
 0x2bb   :  { %v1597_v29 = vadd.f32 %v1596_v49, %v1595_v46  ;;  %v1526_v46 = vmul.f32 %v5637_v14, %v5637_v14  ;;  %v1606_v4 = vsel %vm1300_vm1, %v1525_v59, 0.0 }
 0x2bd   :  { %v1599_v6 = vadd.f32 %v1598_v38, %v1597_v29  ;;  %v1527_v29 = vmul.f32 %v5644_v43, %v5644_v43  ;;  %v1608_v41 = vsel %vm1300_vm1, %v1526_v46, 0.0  ;;  %v1553_v43 = vmul.f32 %v5826_v17, %v5826_v17 }
 0x2bf   :  { %v1601_v25 = vadd.f32 %v1600_v39, %v1599_v6  ;;  %v1528_v6 = vmul.f32 %v5651_v40, %v5651_v40  ;;  %v1610_v59 = vsel %vm1300_vm1, %v1527_v29, 0.0 }
 0x2c1   :  { %v1603_v19 = vadd.f32 %v1602_v60, %v1601_v25  ;;  %v1529_v25 = vmul.f32 %v5658_v35, %v5658_v35  ;;  %v1612_v46 = vsel %vm1300_vm1, %v1528_v6, 0.0 }
 0x2c3   :  { %v1605_v49 = vadd.f32 %v1604_v31, %v1603_v19  ;;  %v1530_v19 = vmul.f32 %v5665_v50, %v5665_v50  ;;  %v1614_v29 = vsel %vm1300_vm1, %v1529_v25, 0.0 }
 0x2c5   :  { %v1607_v38 = vadd.f32 %v1606_v4, %v1605_v49  ;;  %v1531_v49 = vmul.f32 %v5672_v62, %v5672_v62  ;;  %v1616_v6 = vsel %vm1300_vm1, %v1530_v19, 0.0 }
 0x2c7   :  { %v1609_v39 = vadd.f32 %v1608_v41, %v1607_v38  ;;  %v1532_v38 = vmul.f32 %v5679_v55, %v5679_v55  ;;  %v1618_v25 = vsel %vm1300_vm1, %v1531_v49, 0.0 }
 0x2c9   :  { %v1611_v60 = vadd.f32 %v1610_v59, %v1609_v39  ;;  %v1533_v39 = vmul.f32 %v5686_v21, %v5686_v21  ;;  %v1620_v19 = vsel %vm1300_vm1, %v1532_v38, 0.0 }
 0x2cb   :  { %v1613_v31 = vadd.f32 %v1612_v46, %v1611_v60  ;;  %v1534_v60 = vmul.f32 %v5693_v61, %v5693_v61  ;;  %v1622_v49 = vsel %vm1300_vm1, %v1533_v39, 0.0 }
 0x2cd   :  { %v1615_v4 = vadd.f32 %v1614_v29, %v1613_v31  ;;  %v1535_v31 = vmul.f32 %v5700_v48, %v5700_v48  ;;  %v1624_v38 = vsel %vm1300_vm1, %v1534_v60, 0.0 }
 0x2cf   :  { %v1617_v41 = vadd.f32 %v1616_v6, %v1615_v4  ;;  %v1536_v4 = vmul.f32 %v5707_v45, %v5707_v45  ;;  %v1626_v39 = vsel %vm1300_vm1, %v1535_v31, 0.0 }
 0x2d1   :  { %v1619_v59 = vadd.f32 %v1618_v25, %v1617_v41  ;;  %v1537_v41 = vmul.f32 %v5714_v54, %v5714_v54  ;;  %v1628_v60 = vsel %vm1300_vm1, %v1536_v4, 0.0 }
 0x2d3   :  { %v1621_v46 = vadd.f32 %v1620_v19, %v1619_v59  ;;  %v1538_v59 = vmul.f32 %v5721_v28, %v5721_v28  ;;  %v1630_v31 = vsel %vm1300_vm1, %v1537_v41, 0.0 }
 0x2d5   :  { %v1623_v29 = vadd.f32 %v1622_v49, %v1621_v46  ;;  %v1539_v46 = vmul.f32 %v5728_v30, %v5728_v30  ;;  %v1632_v4 = vsel %vm1300_vm1, %v1538_v59, 0.0 }
 0x2d7   :  { %v1625_v6 = vadd.f32 %v1624_v38, %v1623_v29  ;;  %v1540_v29 = vmul.f32 %v5735_v2, %v5735_v2  ;;  %v1634_v41 = vsel %vm1300_vm1, %v1539_v46, 0.0 }
 0x2d9   :  { %v1627_v25 = vadd.f32 %v1626_v39, %v1625_v6  ;;  %v1541_v6 = vmul.f32 %v5742_v51, %v5742_v51  ;;  %v1636_v59 = vsel %vm1300_vm1, %v1540_v29, 0.0 }
 0x2db   :  { %v1629_v19 = vadd.f32 %v1628_v60, %v1627_v25  ;;  %v1542_v25 = vmul.f32 %v5749_v42, %v5749_v42  ;;  %v1638_v46 = vsel %vm1300_vm1, %v1541_v6, 0.0 }
 0x2dd   :  { %v1631_v49 = vadd.f32 %v1630_v31, %v1629_v19  ;;  %v1543_v19 = vmul.f32 %v5756_v57, %v5756_v57  ;;  %v1640_v29 = vsel %vm1300_vm1, %v1542_v25, 0.0 }
 0x2df   :  { %v1633_v38 = vadd.f32 %v1632_v4, %v1631_v49  ;;  %v1544_v49 = vmul.f32 %v5763_v7, %v5763_v7  ;;  %v1642_v6 = vsel %vm1300_vm1, %v1543_v19, 0.0 }
 0x2e1   :  { %v1635_v39 = vadd.f32 %v1634_v41, %v1633_v38  ;;  %v1545_v38 = vmul.f32 %v5770_v47, %v5770_v47  ;;  %v1644_v25 = vsel %vm1300_vm1, %v1544_v49, 0.0 }
 0x2e3   :  { %v1637_v60 = vadd.f32 %v1636_v59, %v1635_v39  ;;  %v8131_v39 = vld [vmem:[#allocation15_spill] sm:$0xff]  ;;  %v1546_v59 = vmul.f32 %v5777_v16, %v5777_v16  ;;  %v1646_v19 = vsel %vm1300_vm1, %v1545_v38, 0.0 }
 0x2e4   :  { %v5791_v3 = vsub.f32 %v8131_v39, %v5536_v34  ;;  %v1549_v39 = vmul.f32 %v5798_v10, %v5798_v10 }
 0x2e5   :  { %v1639_v31 = vadd.f32 %v1638_v46, %v1637_v60  ;;  %v1547_v46 = vmul.f32 %v5784_v23, %v5784_v23  ;;  %v1648_v49 = vsel %vm1300_vm1, %v1546_v59, 0.0 }
 0x2e7   :  { %v1641_v4 = vadd.f32 %v1640_v29, %v1639_v31  ;;  %v8132_v29 = vld [vmem:[#allocation16_spill] sm:$0xff]  ;;  %v1650_v38 = vsel %vm1300_vm1, %v1547_v46, 0.0  ;;  %v1654_v46 = vsel %vm1300_vm1, %v1549_v39, 0.0 }
 0x2e9   :  { %v1643_v41 = vadd.f32 %v1642_v6, %v1641_v4  ;;  %v5805_v4 = vsub.f32 %v8132_v29, %v5536_v34  ;;  %v1548_v6 = vmul.f32 %v5791_v3, %v5791_v3 }
 0x2eb   :  { %v1645_v60 = vadd.f32 %v1644_v25, %v1643_v41  ;;  %v1550_v29 = vmul.f32 %v5805_v4, %v5805_v4  ;;  %v1652_v59 = vsel %vm1300_vm1, %v1548_v6, 0.0 }
 0x2ed   :  { %v1647_v31 = vadd.f32 %v1646_v19, %v1645_v60  ;;  %v8133_v60 = vld [vmem:[#allocation17_spill] sm:$0xff]  ;;  %v1656_v6 = vsel %vm1300_vm1, %v1550_v29, 0.0 }
 0x2ee   :  { %v5819_v19 = vsub.f32 %v8133_v60, %v5536_v34 }
 0x2ef   :  { %v1649_v41 = vadd.f32 %v1648_v49, %v1647_v31  ;;  %v1551_v49 = vmul.f32 %v5812_v12, %v5812_v12 }
 0x2f0   :  { %v1552_v40 = vmul.f32 %v5819_v19, %v5819_v19 }
 0x2f1   :  { %v1651_v25 = vadd.f32 %v1650_v38, %v1649_v41  ;;  %v8135_v38 = vld [vmem:[#allocation18_spill] sm:$0xff]  ;;  %v1658_v39 = vsel %vm1300_vm1, %v1551_v49, 0.0  ;;  %v1662_v49 = vsel %vm1300_vm1, %v1553_v43, 0.0 }
 0x2f2   :  { %v5833_v60 = vsub.f32 %v8135_v38, %v5536_v34  ;;  %v1660_v29 = vsel %vm1300_vm1, %v1552_v40, 0.0 }
 0x2f3   :  { %v1653_v31 = vadd.f32 %v1652_v59, %v1651_v25  ;;  %v8136_v59 = vld [vmem:[#allocation19_spill] sm:$0xff] }
 0x2f4   :  { %v5840_v24 = vsub.f32 %v8136_v59, %v5536_v34  ;;  %v1554_v38 = vmul.f32 %v5833_v60, %v5833_v60 }
 0x2f5   :  { %v1655_v41 = vadd.f32 %v1654_v46, %v1653_v31  ;;  %v5847_v46 = vsub.f32 %v5417_v36, %v5536_v34  ;;  %v5861_v36 = vsub.f32 %v5429_v26, %v5536_v34  ;;  %v5875_v26 = vsub.f32 %v5440_v15, %v5536_v34 }
 0x2f6   :  { %8137 = vst [vmem:[#allocation8_spill] sm:$0xff] %v5840_v24  ;;  %v1555_v17 = vmul.f32 %v5840_v24, %v5840_v24  ;;  %v1664_v40 = vsel %vm1300_vm1, %v1554_v38, 0.0  ;;  %v5889_v15 = vsub.f32 %v5450_v33, %v5536_v34  ;;  %v5903_v33 = vsub.f32 %v5460_v11, %v5536_v34 }
 0x2f7   :  { %v1657_v25 = vadd.f32 %v1656_v6, %v1655_v41  ;;  %v8138_v6 = vld [vmem:[#allocation20_spill] sm:$0xff]  ;;  %8142 = vst [vmem:[#allocation9_spill] sm:$0xff] %v5875_v26  ;;  %v5917_v11 = vsub.f32 %v5470_v22, %v5536_v34 }
 0x2f8   :  { %v5854_v59 = vsub.f32 %v8138_v6, %v5536_v34  ;;  %v1666_v43 = vsel %vm1300_vm1, %v1555_v17, 0.0  ;;  %8145 = vst [vmem:[#allocation32_spill] sm:$0xff] %v5889_v15  ;;  %8148 = vst [vmem:[#allocation33_spill] sm:$0xff] %v5903_v33 }
 0x2f9   :  { %v1659_v31 = vadd.f32 %v1658_v39, %v1657_v25  ;;  %v1556_v39 = vmul.f32 %v5847_v46, %v5847_v46  ;;  %8151 = vst [vmem:[#allocation15_spill] sm:$0xff] %v5917_v11 }
 0x2fa   :  { %8139 = vst [vmem:[#allocation30_spill] sm:$0xff] %v5854_v59  ;;  %v1557_v24 = vmul.f32 %v5854_v59, %v5854_v59 }
 0x2fb   :  { %v1661_v41 = vadd.f32 %v1660_v29, %v1659_v31  ;;  %v8140_v29 = vld [vmem:[#allocation21_spill] sm:$0xff]  ;;  %v1668_v38 = vsel %vm1300_vm1, %v1556_v39, 0.0 }
 0x2fc   :  { %v5868_v6 = vsub.f32 %v8140_v29, %v5536_v34  ;;  %v1670_v17 = vsel %vm1300_vm1, %v1557_v24, 0.0 }
 0x2fd   :  { %v1663_v25 = vadd.f32 %v1662_v49, %v1661_v41  ;;  %v1558_v49 = vmul.f32 %v5861_v36, %v5861_v36 }
 0x2fe   :  { %8141 = vst [vmem:[#allocation31_spill] sm:$0xff] %v5868_v6  ;;  %v1559_v59 = vmul.f32 %v5868_v6, %v5868_v6 }
 0x2ff   :  { %v1665_v31 = vadd.f32 %v1664_v40, %v1663_v25  ;;  %v8143_v40 = vld [vmem:[#allocation13_spill] sm:$0xff]  ;;  %v1672_v39 = vsel %vm1300_vm1, %v1558_v49, 0.0 }
 0x300   :  { %v5882_v29 = vsub.f32 %v8143_v40, %v5536_v34  ;;  %v1674_v24 = vsel %vm1300_vm1, %v1559_v59, 0.0 }
 0x301   :  { %v1667_v41 = vadd.f32 %v1666_v43, %v1665_v31  ;;  %v1560_v43 = vmul.f32 %v5875_v26, %v5875_v26 }
 0x302   :  { %8144 = vst [vmem:[#allocation10_spill] sm:$0xff] %v5882_v29  ;;  %v1561_v6 = vmul.f32 %v5882_v29, %v5882_v29 }
 0x303   :  { %v1669_v25 = vadd.f32 %v1668_v38, %v1667_v41  ;;  %v8146_v38 = vld [vmem:[#allocation22_spill] sm:$0xff]  ;;  %v1676_v49 = vsel %vm1300_vm1, %v1560_v43, 0.0 }
 0x304   :  { %v5896_v40 = vsub.f32 %v8146_v38, %v5536_v34  ;;  %v1678_v59 = vsel %vm1300_vm1, %v1561_v6, 0.0 }
 0x305   :  { %v1671_v31 = vadd.f32 %v1670_v17, %v1669_v25  ;;  %v1562_v17 = vmul.f32 %v5889_v15, %v5889_v15 }
 0x306   :  { %8147 = vst [vmem:[#allocation11_spill] sm:$0xff] %v5896_v40  ;;  %v1563_v29 = vmul.f32 %v5896_v40, %v5896_v40 }
 0x307   :  { %v1673_v41 = vadd.f32 %v1672_v39, %v1671_v31  ;;  %v8149_v39 = vld [vmem:[#allocation23_spill] sm:$0xff]  ;;  %v1680_v43 = vsel %vm1300_vm1, %v1562_v17, 0.0 }
 0x308   :  { %v5910_v38 = vsub.f32 %v8149_v39, %v5536_v34  ;;  %v1682_v6 = vsel %vm1300_vm1, %v1563_v29, 0.0 }
 0x309   :  { %v1675_v25 = vadd.f32 %v1674_v24, %v1673_v41  ;;  %v1564_v24 = vmul.f32 %v5903_v33, %v5903_v33  ;;  %v1566_v33 = vmul.f32 %v5917_v11, %v5917_v11 }
 0x30a   :  { %8150 = vst [vmem:[#allocation12_spill] sm:$0xff] %v5910_v38  ;;  %v1565_v40 = vmul.f32 %v5910_v38, %v5910_v38 }
 0x30b   :  { %v1677_v31 = vadd.f32 %v1676_v49, %v1675_v25  ;;  %v8152_v49 = vld [vmem:[#allocation34_spill] sm:$0xff]  ;;  %v1684_v17 = vsel %vm1300_vm1, %v1564_v24, 0.0  ;;  %v1688_v24 = vsel %vm1300_vm1, %v1566_v33, 0.0 }
 0x30c   :  { %v5924_v39 = vsub.f32 %v8152_v49, %v5536_v34  ;;  %v1686_v29 = vsel %vm1300_vm1, %v1565_v40, 0.0 }
 0x30d   :  { %v1679_v41 = vadd.f32 %v1678_v59, %v1677_v31  ;;  %v8154_v59 = vld [vmem:[#allocation35_spill] sm:$0xff] }
 0x30e   :  { %8153 = vst [vmem:[#allocation16_spill] sm:$0xff] %v5924_v39  ;;  %v5931_v22 = vsub.f32 %v8154_v59, %v5536_v34  ;;  %v1567_v38 = vmul.f32 %v5924_v39, %v5924_v39 }
 0x30f   :  { %v1681_v25 = vadd.f32 %v1680_v43, %v1679_v41  ;;  %v8156_v43 = vld [vmem:[#allocation24_spill] sm:$0xff] }
 0x310   :  { %8155 = vst [vmem:[#allocation17_spill] sm:$0xff] %v5931_v22  ;;  %v5938_v49 = vsub.f32 %v8156_v43, %v5536_v34  ;;  %v1568_v11 = vmul.f32 %v5931_v22, %v5931_v22  ;;  %v1690_v40 = vsel %vm1300_vm1, %v1567_v38, 0.0 }
 0x311   :  { %v1683_v31 = vadd.f32 %v1682_v6, %v1681_v25  ;;  %v8158_v6 = vld [vmem:[#allocation3_spill] sm:$0xff] }
 0x312   :  { %8157 = vst [vmem:[#allocation18_spill] sm:$0xff] %v5938_v49  ;;  %v5945_v59 = vsub.f32 %v8158_v6, %v5536_v34  ;;  %v1569_v39 = vmul.f32 %v5938_v49, %v5938_v49  ;;  %v1692_v33 = vsel %vm1300_vm1, %v1568_v11, 0.0 }
 0x313   :  { %v1685_v41 = vadd.f32 %v1684_v17, %v1683_v31  ;;  %v8160_v17 = vld [vmem:[#allocation25_spill] sm:$0xff] }
 0x314   :  { %8159 = vst [vmem:[#allocation19_spill] sm:$0xff] %v5945_v59  ;;  %v5952_v43 = vsub.f32 %v8160_v17, %v5536_v34  ;;  %v1570_v22 = vmul.f32 %v5945_v59, %v5945_v59  ;;  %v1694_v38 = vsel %vm1300_vm1, %v1569_v39, 0.0 }
 0x315   :  { %v1687_v25 = vadd.f32 %v1686_v29, %v1685_v41  ;;  %v8162_v29 = vld [vmem:[#allocation4_spill] sm:$0xff] }
 0x316   :  { %8161 = vst [vmem:[#allocation20_spill] sm:$0xff] %v5952_v43  ;;  %v5959_v6 = vsub.f32 %v8162_v29, %v5536_v34  ;;  %v1571_v49 = vmul.f32 %v5952_v43, %v5952_v43  ;;  %v1696_v11 = vsel %vm1300_vm1, %v1570_v22, 0.0 }
 0x317   :  { %v1689_v31 = vadd.f32 %v1688_v24, %v1687_v25  ;;  %v8164_v24 = vld [vmem:[#allocation26_spill] sm:$0xff] }
 0x318   :  { %8163 = vst [vmem:[#allocation21_spill] sm:$0xff] %v5959_v6  ;;  %v5966_v17 = vsub.f32 %v8164_v24, %v5536_v34  ;;  %v1572_v59 = vmul.f32 %v5959_v6, %v5959_v6  ;;  %v1698_v39 = vsel %vm1300_vm1, %v1571_v49, 0.0 }
 0x319   :  { %v1691_v41 = vadd.f32 %v1690_v40, %v1689_v31  ;;  %v8166_v40 = vld [vmem:[#allocation27_spill] sm:$0xff] }
 0x31a   :  { %8165 = vst [vmem:[#allocation13_spill] sm:$0xff] %v5966_v17  ;;  %v5973_v29 = vsub.f32 %v8166_v40, %v5536_v34  ;;  %v1573_v43 = vmul.f32 %v5966_v17, %v5966_v17  ;;  %v1700_v22 = vsel %vm1300_vm1, %v1572_v59, 0.0 }
 0x31b   :  { %v1693_v25 = vadd.f32 %v1692_v33, %v1691_v41  ;;  %v8168_v33 = vld [vmem:[#allocation5_spill] sm:$0xff] }
 0x31c   :  { %8167 = vst [vmem:[#allocation22_spill] sm:$0xff] %v5973_v29  ;;  %v5980_v24 = vsub.f32 %v8168_v33, %v5536_v34  ;;  %v1574_v6 = vmul.f32 %v5973_v29, %v5973_v29  ;;  %v1702_v17 = vsel %vm1300_vm1, %v1573_v43, 0.0 }
 0x31d   :  { %v1695_v31 = vadd.f32 %v1694_v38, %v1693_v25  ;;  %v8170_v38 = vld [vmem:[#allocation6_spill] sm:$0xff] }
 0x31e   :  { %8169 = vst [vmem:[#allocation23_spill] sm:$0xff] %v5980_v24  ;;  %v5987_v40 = vsub.f32 %v8170_v38, %v5536_v34  ;;  %v1575_v33 = vmul.f32 %v5980_v24, %v5980_v24  ;;  %v1704_v38 = vsel %vm1300_vm1, %v1574_v6, 0.0 }
 0x31f   :  { %v1697_v41 = vadd.f32 %v1696_v11, %v1695_v31  ;;  %v1509_v11 = vsub.f32 %v5527_v20, %v5536_v34 }
 0x320   :  { %8171 = vst [vmem:[#allocation34_spill] sm:$0xff] %v5987_v40 }
 0x321   :  { %v1699_v25 = vadd.f32 %v1698_v39, %v1697_v41  ;;  %v5999_v41 = vsub.f32 %v5530_v56, %v5536_v34  ;;  %v1576_v39 = vmul.f32 %v5987_v40, %v5987_v40 }
 0x323   :  { %v1701_v31 = vadd.f32 %v1700_v22, %v1699_v25  ;;  %v1577_v25 = vmul.f32 %v1509_v11, %v1509_v11  ;;  %v1706_v22 = vsel %vm1300_vm1, %v1575_v33, 0.0  ;;  %v1578_v24 = vmul.f32 %v5999_v41, %v5999_v41 }
 0x324   :  { %v1708_v43 = vsel %vm1300_vm1, %v1576_v39, 0.0 }
 0x325   :  { %v1703_v49 = vadd.f32 %v1702_v17, %v1701_v31  ;;  %v1710_v31 = vsel %vm1300_vm1, %v1577_v25, 0.0  ;;  %v1712_v34 = vsel %vm1300_vm1, %v1578_v24, 0.0  ;;  %v1721_v24 = vld [vmem:[%s7894_s5] sm:$0x1] }
 0x327   :  { %v1705_v59 = vadd.f32 %v1704_v38, %v1703_v49 }
 0x329   :  { %v1707_v20 = vadd.f32 %v1706_v22, %v1705_v59  ;;  %v14_v59 = vstv %s7893_s8 }
 0x32a   :  { %15 = vst [vmem:[#allocation2] sm:$0x1] %v14_v59 }
 0x32b   :  { %v1709_v17 = vadd.f32 %v1708_v43, %v1707_v20 }
 0x32d   :  { %v1711_v56 = vadd.f32 %v1710_v31, %v1709_v17 }
 0x32f   :  { %v1713_v29 = vadd.f32 %v1712_v34, %v1711_v56 }
 0x331   :  { %v1714_v40 = vrot.slane %v1713_v29, 4  ;;  %v2153_v22 = vld [vmem:[#allocation2] sm:$0x1] }
 0x332   :  { %3451 = vpush %v2153_v22 }
 0x333   :  { %v1715_v15 = vadd.f32 %v1714_v40, %v1713_v29  ;;  %v8172_v40 = vld [vmem:[#allocation14_spill] sm:$0xff] }
 0x335   :  { %v1716_v6 = vrot.slane %v1715_v15, 2 }
 0x337   :  { %v1717_v49 = vadd.f32 %v1716_v6, %v1715_v15  ;;  %v8173_v15 = vsub.s32 0, %v8172_v40 }
 0x339   :  { %v1718_v38 = vrot.slane %v1717_v49, 1 }
 0x33b   :  { %v1719_v26 = vadd.f32 %v1718_v38, %v1717_v49 }
 0x33d   :  { %v1720_v33 = vmul.f32 0.0018382353, %v1719_v26 }
 0x33f   :  { %v1722_v39 = vadd.f32 1e-05, %v1720_v33 }
 0x341   :  { %3455 = vrsqrt.f32 %v1722_v39 }
 0x34e   :  { %v3456_v25 = vpop.eup %3455 }
 0x34f   :  { %v1724_v29 = vmul.f32 %v3456_v25, %v1721_v24 }
 0x351   :  { %v6018_v20 = vrot.slane %v1724_v29, %v8173_v15 }
 0x353   :  { %v6021_v26 = vmul.f32 %v6018_v20, %v1509_v11  ;;  %v1731_v43 = vmul.f32 %v6018_v20, %v5540_v63  ;;  %v1732_v17 = vmul.f32 %v6018_v20, %v5544_v52  ;;  %v6029_v31 = vmul.f32 %v6018_v20, %v5548_v0 }
 0x354   :  { %v6033_v56 = vmul.f32 %v6018_v20, %v5552_v58  ;;  %v1735_v34 = vmul.f32 %v6018_v20, %v5560_v32  ;;  %v1736_v11 = vmul.f32 %v6018_v20, %v5566_v53  ;;  %v6041_v63 = vmul.f32 %v6018_v20, %v5574_v8 }
 0x355   :  { %8174 = vst [vmem:[#allocation35_spill] sm:$0xff] %v6021_v26  ;;  %v6045_v52 = vmul.f32 %v6018_v20, %v5581_v13  ;;  %v6049_v0 = vmul.f32 %v6018_v20, %v5588_v37  ;;  %v6053_v58 = vmul.f32 %v6018_v20, %v5595_v5  ;;  %v6057_v32 = vmul.f32 %v6018_v20, %v5602_v27  ;;  %v6074_v37 = vld [vmem:[%s7895_s6] ss:$0 sm:$0xff]  ;;  %v8197_v26 = vld [vmem:[#allocation23_spill] sm:$0xff] }
 0x356   :  { %v6061_v53 = vmul.f32 %v6018_v20, %v5609_v9  ;;  %v6065_v8 = vmul.f32 %v6018_v20, %v5616_v18  ;;  %v6069_v13 = vmul.f32 %v6018_v20, %v5623_v1  ;;  %v6078_v5 = vmul.f32 %v6018_v20, %v5630_v44 }
 0x357   :  { %v6082_v27 = vmul.f32 %v6018_v20, %v5637_v14  ;;  %v6086_v9 = vmul.f32 %v6018_v20, %v5658_v35  ;;  %v6090_v18 = vmul.f32 %v6018_v20, %v5665_v50  ;;  %v6094_v1 = vmul.f32 %v6018_v20, %v5672_v62  ;;  %v6107_v35 = vld [vmem:[%s7896_s7] ss:$0 sm:$0xff] }
 0x358   :  { %8175 = vst [vmem:[#allocation24_spill] sm:$0xff] %v6078_v5  ;;  %v6098_v44 = vmul.f32 %v6018_v20, %v5679_v55  ;;  %v1765_v14 = vmul.f32 %v6018_v20, %v5770_v47  ;;  %v1766_v6 = vmul.f32 %v6018_v20, %v5777_v16  ;;  %v1810_v50 = vadd.f32 %v6074_v37, %v1735_v34 }
 0x359   :  { %8176 = vst [vmem:[#allocation3_spill] sm:$0xff] %v6082_v27  ;;  %v1806_v62 = vadd.f32 %v6074_v37, %v1731_v43  ;;  %v1811_v49 = vadd.f32 %v6074_v37, %v1736_v11  ;;  %v1807_v55 = vadd.f32 %v6074_v37, %v1732_v17  ;;  %v6115_v38 = vmul.f32 %v6018_v20, %v5686_v21 }
 0x35a   :  { %v6119_v47 = vmul.f32 %v6018_v20, %v5693_v61  ;;  %v6123_v16 = vmul.f32 %v6018_v20, %v5700_v48  ;;  %v6127_v33 = vmul.f32 %v6018_v20, %v5707_v45  ;;  %v6131_v59 = vmul.f32 %v6018_v20, %v5714_v54 }
 0x35b   :  { %v6135_v21 = vmul.f32 %v6018_v20, %v5721_v28  ;;  %v1885_v39 = vmul.f32 %v6107_v35, %v1810_v50  ;;  %v1881_v61 = vmul.f32 %v6107_v35, %v1806_v62  ;;  %v1769_v48 = vmul.f32 %v6018_v20, %v5798_v10  ;;  %v8179_v50 = vld [vmem:[#allocation8_spill] sm:$0xff] }
 0x35c   :  { %v1770_v22 = vmul.f32 %v6018_v20, %v5805_v4  ;;  %v1841_v45 = vadd.f32 %v6074_v37, %v1766_v6  ;;  %v1840_v25 = vadd.f32 %v6074_v37, %v1765_v14  ;;  %v1886_v28 = vmul.f32 %v6107_v35, %v1811_v49 }
 0x35d   :  { %v1961_v54 = vsel %vm1300_vm1, %v1885_v39, 0.0  ;;  %v1949_v24 = vsel %vm1300_vm1, %v1881_v61, 0.0  ;;  %v1882_v29 = vmul.f32 %v6107_v35, %v1807_v55  ;;  %v6151_v40 = vmul.f32 %v6018_v20, %v5728_v30  ;;  %v8180_v55 = vld [vmem:[#allocation30_spill] sm:$0xff] }
 0x35e   :  { %v6155_v10 = vmul.f32 %v6018_v20, %v5735_v2  ;;  %v6159_v4 = vmul.f32 %v6018_v20, %v5742_v51  ;;  %1962 = vadd.xlane.f32.xlu1 %v1961_v54  ;;  %1950 = vadd.xlane.f32.xlu0 %v1949_v24  ;;  %v6163_v15 = vmul.f32 %v6018_v20, %v5749_v42 }
 0x35f   :  { %v6167_v43 = vmul.f32 %v6018_v20, %v5756_v57  ;;  %v6171_v30 = vmul.f32 %v6018_v20, %v5763_v7  ;;  %v1767_v2 = vmul.f32 %v6018_v20, %v5784_v23  ;;  %v1768_v51 = vmul.f32 %v6018_v20, %v5791_v3  ;;  %v8178_v3 = vld [vmem:[#allocation7_spill] sm:$0xff] }
 0x360   :  { %v6179_v17 = vmul.f32 %v6018_v20, %v5812_v12  ;;  %v1845_v42 = vadd.f32 %v6074_v37, %v1770_v22  ;;  %v1844_v34 = vadd.f32 %v6074_v37, %v1769_v48  ;;  %v1964_v57 = vsel %vm1300_vm1, %v1886_v28, 0.0  ;;  %v8182_v48 = vld [vmem:[#allocation9_spill] sm:$0xff]  ;;  %v8183_v28 = vld [vmem:[#allocation10_spill] sm:$0xff] }
 0x361   :  { %8177 = vst [vmem:[#allocation25_spill] sm:$0xff] %v6167_v43  ;;  %v1952_v11 = vsel %vm1300_vm1, %v1882_v29, 0.0  ;;  %v1916_v7 = vmul.f32 %v6107_v35, %v1841_v45  ;;  %v1915_v14 = vmul.f32 %v6107_v35, %v1840_v25  ;;  %v1772_v23 = vmul.f32 %v6018_v20, %v5819_v19  ;;  %v8199_v43 = vld [vmem:[#allocation34_spill] sm:$0xff] }
 0x362   :  { %v6191_v6 = vmul.f32 %v6018_v20, %v8178_v3  ;;  %v6195_v12 = vmul.f32 %v6018_v20, %v5833_v60  ;;  %1965 = vadd.xlane.f32.xlu1 %v1964_v57  ;;  %1953 = vadd.xlane.f32.xlu0 %v1952_v11  ;;  %v6199_v62 = vmul.f32 %v6018_v20, %v8179_v50  ;;  %v8181_v60 = vld [vmem:[#allocation31_spill] sm:$0xff]  ;;  %v8184_v57 = vld [vmem:[#allocation32_spill] sm:$0xff] }
 0x363   :  { %v6203_v49 = vmul.f32 %v6018_v20, %v5847_v46  ;;  %v6207_v19 = vmul.f32 %v6018_v20, %v8180_v55  ;;  %v6211_v39 = vmul.f32 %v6018_v20, %v5861_v36  ;;  %v1779_v61 = vmul.f32 %v6018_v20, %v8181_v60  ;;  %v8185_v3 = vld [vmem:[#allocation11_spill] sm:$0xff]  ;;  %v8187_v50 = vld [vmem:[#allocation12_spill] sm:$0xff]  ;;  %s3452_s7 = spop %3451 }
 0x364   :  { %v1780_v22 = vmul.f32 %v6018_v20, %v8182_v48  ;;  %v1920_v45 = vmul.f32 %v6107_v35, %v1845_v42  ;;  %v1919_v25 = vmul.f32 %v6107_v35, %v1844_v34  ;;  %v2054_v46 = vsel %vm1300_vm1, %v1916_v7, 0.0  ;;  %v8186_v34 = vld [vmem:[#allocation33_spill] sm:$0xff]  ;;  %v8188_v60 = vld [vmem:[#allocation15_spill] sm:$0xff] }
 0x365   :  { %v2051_v54 = vsel %vm1300_vm1, %v1915_v14, 0.0  ;;  %v1809_v24 = vadd.f32 %v6074_v37, %v6033_v56  ;;  %v1808_v36 = vadd.f32 %v6074_v37, %v6029_v31  ;;  %v1781_v29 = vmul.f32 %v6018_v20, %v8183_v28 }
 0x366   :  { %v1782_v11 = vmul.f32 %v6018_v20, %v8184_v57  ;;  %v6231_v42 = vmul.f32 %v6018_v20, %v8185_v3  ;;  %2055 = vadd.xlane.f32.xlu1 %v2054_v46  ;;  %2052 = vadd.xlane.f32.xlu0 %v2051_v54  ;;  %v6235_v7 = vmul.f32 %v6018_v20, %v8186_v34  ;;  %v8189_v46 = vld [vmem:[#allocation16_spill] sm:$0xff]  ;;  %v2063_v28 = vsel %vm1300_vm1, %v1919_v25, 0.0  ;;  %v8190_v3 = vld [vmem:[#allocation17_spill] sm:$0xff] }
 0x367   :  { %v1813_v56 = vadd.f32 %v6074_v37, %v6045_v52  ;;  %v1812_v31 = vadd.f32 %v6074_v37, %v6041_v63  ;;  %v1815_v14 = vadd.f32 %v6074_v37, %v6053_v58  ;;  %v6245_v55 = vmul.f32 %v6018_v20, %v8187_v50  ;;  %v8191_v50 = vld [vmem:[#allocation18_spill] sm:$0xff] }
 0x368   :  { %v6249_v48 = vmul.f32 %v6018_v20, %v8188_v60  ;;  %v6253_v54 = vmul.f32 %v6018_v20, %v8189_v46  ;;  %v1814_v52 = vadd.f32 %v6074_v37, %v6049_v0  ;;  %v2066_v63 = vsel %vm1300_vm1, %v1920_v45, 0.0  ;;  %v8192_v46 = vld [vmem:[#allocation19_spill] sm:$0xff] }
 0x369   :  { %v1884_v58 = vmul.f32 %v6107_v35, %v1809_v24  ;;  %v1883_v57 = vmul.f32 %v6107_v35, %v1808_v36  ;;  %v6263_v34 = vmul.f32 %v6018_v20, %v8190_v3  ;;  %v6267_v60 = vmul.f32 %v6018_v20, %v8191_v50  ;;  %v8193_v3 = vld [vmem:[#allocation20_spill] sm:$0xff]  ;;  %v8194_v50 = vld [vmem:[#allocation21_spill] sm:$0xff] }
 0x36a   :  { %2067 = vadd.xlane.f32.xlu1 %v2066_v63  ;;  %2064 = vadd.xlane.f32.xlu0 %v2063_v28  ;;  %v1843_v0 = vadd.f32 %v6074_v37, %v1768_v51  ;;  %v6272_v45 = vmul.f32 %v6018_v20, %v8192_v46  ;;  %v1888_v25 = vmul.f32 %v6107_v35, %v1813_v56  ;;  %v8195_v46 = vld [vmem:[#allocation13_spill] sm:$0xff]  ;;  %v8196_v56 = vld [vmem:[#allocation22_spill] sm:$0xff] }
 0x36b   :  { %v1887_v24 = vmul.f32 %v6107_v35, %v1812_v31  ;;  %v1890_v36 = vmul.f32 %v6107_v35, %v1815_v14  ;;  %v6279_v5 = vmul.f32 %v6018_v20, %v8193_v3  ;;  %v6283_v63 = vmul.f32 %v6018_v20, %v8194_v50 }
 0x36c   :  { %v1889_v51 = vmul.f32 %v6107_v35, %v1814_v52  ;;  %v1842_v28 = vadd.f32 %v6074_v37, %v1767_v2  ;;  %v6289_v27 = vmul.f32 %v6018_v20, %v8195_v46  ;;  %v6293_v31 = vmul.f32 %v6018_v20, %v8196_v56 }
 0x36d   :  { %v1958_v14 = vsel %vm1300_vm1, %v1884_v58, 0.0  ;;  %v1955_v3 = vsel %vm1300_vm1, %v1883_v57, 0.0  ;;  %v6299_v50 = vmul.f32 %v6018_v20, %v8197_v26  ;;  %v6303_v52 = vmul.f32 %v6018_v20, %v8199_v43 }
 0x36e   :  { %1959 = vadd.xlane.f32.xlu1 %v1958_v14  ;;  %1956 = vadd.xlane.f32.xlu0 %v1955_v3  ;;  %v1918_v2 = vmul.f32 %v6107_v35, %v1843_v0  ;;  %v6308_v46 = vmul.f32 %v6018_v20, %v5999_v41  ;;  %v1970_v58 = vsel %vm1300_vm1, %v1888_v25, 0.0  ;;  %v1967_v57 = vsel %vm1300_vm1, %v1887_v24, 0.0 }
 0x36f   :  { %8198 = vst [vmem:[#allocation4_spill] sm:$0xff] %v6299_v50  ;;  %v1976_v56 = vsel %vm1300_vm1, %v1890_v36, 0.0  ;;  %v1973_v26 = vsel %vm1300_vm1, %v1889_v51, 0.0  ;;  %v1917_v50 = vmul.f32 %v6107_v35, %v1842_v28  ;;  %v1847_v43 = vadd.f32 %v6074_v37, %v1772_v23 }
 0x370   :  { %v1846_v14 = vadd.f32 %v6074_v37, %v6179_v17  ;;  %v1855_v0 = vadd.f32 %v6074_v37, %v1780_v22  ;;  %v1854_v41 = vadd.f32 %v6074_v37, %v1779_v61  ;;  %v1857_v3 = vadd.f32 %v6074_v37, %v1782_v11 }
 0x371   :  { %v1856_v25 = vadd.f32 %v6074_v37, %v1781_v29  ;;  %v2060_v24 = vsel %vm1300_vm1, %v1918_v2, 0.0  ;;  %v1849_v36 = vadd.f32 %v6074_v37, %v6195_v12  ;;  %v1825_v23 = vadd.f32 %v6074_v37, %v6090_v18 }
 0x372   :  { %1971 = vadd.xlane.f32.xlu1 %v1970_v58  ;;  %1968 = vadd.xlane.f32.xlu0 %v1967_v57  ;;  %v1824_v17 = vadd.f32 %v6074_v37, %v6086_v9  ;;  %v6330_v22 = vmul.f32 %v6107_v35, %v1855_v0  ;;  %v6333_v61 = vmul.f32 %v6107_v35, %v1854_v41  ;;  %v2057_v57 = vsel %vm1300_vm1, %v1917_v50, 0.0 }
 0x373   :  { %v6336_v29 = vmul.f32 %v6107_v35, %v1857_v3  ;;  %v6339_v11 = vmul.f32 %v6107_v35, %v1856_v25  ;;  %v1848_v12 = vadd.f32 %v6074_v37, %v6191_v6  ;;  %v6344_v18 = vmul.f32 %v6107_v35, %v1825_v23 }
 0x374   :  { %v6347_v9 = vmul.f32 %v6107_v35, %v1824_v17  ;;  %v1827_v51 = vadd.f32 %v6074_v37, %v6098_v44  ;;  %v1922_v28 = vmul.f32 %v6107_v35, %v1847_v43  ;;  %v1817_v2 = vadd.f32 %v6074_v37, %v6061_v53 }
 0x375   :  { %v1816_v58 = vadd.f32 %v6074_v37, %v6057_v32  ;;  %v1819_v6 = vadd.f32 %v6074_v37, %v6069_v13  ;;  %v1921_v0 = vmul.f32 %v6107_v35, %v1846_v14  ;;  %v1826_v44 = vadd.f32 %v6074_v37, %v6094_v1 }
 0x376   :  { %1977 = vadd.xlane.f32.xlu1 %v1976_v56  ;;  %1974 = vadd.xlane.f32.xlu0 %v1973_v26  ;;  %v6361_v41 = vmul.f32 %v6107_v35, %v1827_v51  ;;  %v1859_v53 = vadd.f32 %v6074_v37, %v6235_v7  ;;  %v1858_v32 = vadd.f32 %v6074_v37, %v6231_v42 }
 0x377   :  { %v1861_v13 = vadd.f32 %v6074_v37, %v6249_v48  ;;  %v1860_v50 = vadd.f32 %v6074_v37, %v6245_v55  ;;  %v1924_v56 = vmul.f32 %v6107_v35, %v1849_v36  ;;  %v6375_v26 = vmul.f32 %v6107_v35, %v1826_v44 }
 0x378   :  { %v1829_v1 = vadd.f32 %v6074_v37, %v6119_v47  ;;  %v1828_v7 = vadd.f32 %v6074_v37, %v6115_v38  ;;  %v6382_v43 = vmul.f32 %v6107_v35, %v1859_v53  ;;  %v6385_v42 = vmul.f32 %v6107_v35, %v1858_v32 }
 0x379   :  { %v6388_v48 = vmul.f32 %v6107_v35, %v1861_v13  ;;  %v6391_v55 = vmul.f32 %v6107_v35, %v1860_v50  ;;  %v1831_v38 = vadd.f32 %v6074_v37, %v6127_v33  ;;  %v1923_v3 = vmul.f32 %v6107_v35, %v1848_v12 }
 0x37a   :  { %2061 = vadd.xlane.f32.xlu1 %v2060_v24  ;;  %2058 = vadd.xlane.f32.xlu0 %v2057_v57  ;;  %v6394_v14 = vmul.f32 %v6107_v35, %v1829_v1  ;;  %v6397_v47 = vmul.f32 %v6107_v35, %v1828_v7  ;;  %v1892_v25 = vmul.f32 %v6107_v35, %v1817_v2  ;;  %v2072_v24 = vsel %vm1300_vm1, %v1922_v28, 0.0 }
 0x37b   :  { %v1891_v36 = vmul.f32 %v6107_v35, %v1816_v58  ;;  %v1818_v23 = vadd.f32 %v6074_v37, %v6065_v8  ;;  %v2069_v17 = vsel %vm1300_vm1, %v1921_v0, 0.0  ;;  %v6409_v51 = vmul.f32 %v6107_v35, %v1831_v38 }
 0x37c   :  { %v1830_v57 = vadd.f32 %v6074_v37, %v6123_v16  ;;  %v1863_v33 = vadd.f32 %v6074_v37, %v6263_v34  ;;  %v1862_v12 = vadd.f32 %v6074_v37, %v6253_v54  ;;  %v1865_v2 = vadd.f32 %v6074_v37, %v6272_v45 }
 0x37d   :  { %v1864_v8 = vadd.f32 %v6074_v37, %v6267_v60  ;;  %v1833_v16 = vadd.f32 %v6074_v37, %v6135_v21  ;;  %v1832_v34 = vadd.f32 %v6074_v37, %v6131_v59  ;;  %v1894_v0 = vmul.f32 %v6107_v35, %v1819_v6 }
 0x37e   :  { %2073 = vadd.xlane.f32.xlu1 %v2072_v24  ;;  %2070 = vadd.xlane.f32.xlu0 %v2069_v17  ;;  %v6422_v28 = vmul.f32 %v6107_v35, %v1830_v57  ;;  %v6429_v58 = vmul.f32 %v6107_v35, %v1863_v33  ;;  %v6432_v54 = vmul.f32 %v6107_v35, %v1862_v12  ;;  %v2078_v53 = vsel %vm1300_vm1, %v1924_v56, 0.0 }
 0x37f   :  { %v6435_v45 = vmul.f32 %v6107_v35, %v1865_v2  ;;  %v6438_v60 = vmul.f32 %v6107_v35, %v1864_v8  ;;  %v6442_v44 = vmul.f32 %v6107_v35, %v1833_v16  ;;  %v6445_v21 = vmul.f32 %v6107_v35, %v1832_v34  ;;  %v8200_v16 = vld [vmem:[#allocation25_spill] sm:$0xff] }
 0x380   :  { %v1835_v59 = vadd.f32 %v6074_v37, %v6155_v10  ;;  %v2075_v32 = vsel %vm1300_vm1, %v1923_v3, 0.0  ;;  %v1982_v13 = vsel %vm1300_vm1, %v1892_v25, 0.0  ;;  %v1893_v50 = vmul.f32 %v6107_v35, %v1818_v23 }
 0x381   :  { %v1979_v6 = vsel %vm1300_vm1, %v1891_v36, 0.0  ;;  %v1851_v1 = vadd.f32 %v6074_v37, %v6203_v49  ;;  %v1834_v10 = vadd.f32 %v6074_v37, %v6151_v40  ;;  %v1867_v56 = vadd.f32 %v6074_v37, %v6283_v63 }
 0x382   :  { %2079 = vadd.xlane.f32.xlu1 %v2078_v53  ;;  %2076 = vadd.xlane.f32.xlu0 %v2075_v32  ;;  %v6457_v7 = vmul.f32 %v6107_v35, %v1835_v59  ;;  %v1866_v38 = vadd.f32 %v6074_v37, %v6279_v5  ;;  %v1869_v3 = vadd.f32 %v6074_v37, %v6293_v31  ;;  %v1988_v24 = vsel %vm1300_vm1, %v1894_v0, 0.0  ;;  %v8201_v0 = vld [vmem:[#allocation4_spill] sm:$0xff] }
 0x383   :  { %v1868_v25 = vadd.f32 %v6074_v37, %v6289_v27  ;;  %v1850_v49 = vadd.f32 %v6074_v37, %v6199_v62  ;;  %v6472_v36 = vmul.f32 %v6107_v35, %v1834_v10  ;;  %v1837_v40 = vadd.f32 %v6074_v37, %v6163_v15  ;;  %v8204_v10 = vld [vmem:[#allocation29_spill] sm:$0xff] }
 0x384   :  { %v1836_v63 = vadd.f32 %v6074_v37, %v6159_v4  ;;  %v6479_v5 = vmul.f32 %v6107_v35, %v1867_v56  ;;  %v6482_v31 = vmul.f32 %v6107_v35, %v1866_v38  ;;  %v6485_v27 = vmul.f32 %v6107_v35, %v1869_v3  ;;  %v8205_v38 = vld [vmem:[#allocation3_spill] sm:$0xff] }
 0x385   :  { %v6488_v62 = vmul.f32 %v6107_v35, %v1868_v25  ;;  %v6491_v23 = vmul.f32 %v6107_v35, %v1837_v40  ;;  %v1839_v4 = vadd.f32 %v6074_v37, %v6171_v30  ;;  %v1985_v17 = vsel %vm1300_vm1, %v1893_v50, 0.0  ;;  %v8206_v25 = vld [vmem:[#allocation24_spill] sm:$0xff] }
 0x386   :  { %1983 = vadd.xlane.f32.xlu1 %v1982_v13  ;;  %1980 = vadd.xlane.f32.xlu0 %v1979_v6  ;;  %v6494_v15 = vmul.f32 %v6107_v35, %v1836_v63  ;;  %v1853_v57 = vadd.f32 %v6074_v37, %v6211_v39  ;;  %v1852_v33 = vadd.f32 %v6074_v37, %v6207_v19  ;;  %v8202_v19 = vld [vmem:[#allocation35_spill] sm:$0xff] }
 0x387   :  { %v1926_v12 = vmul.f32 %v6107_v35, %v1851_v1  ;;  %v1925_v2 = vmul.f32 %v6107_v35, %v1850_v49  ;;  %v6507_v8 = vmul.f32 %v6107_v35, %v1839_v4  ;;  %v1838_v30 = vadd.f32 %v6074_v37, %v8200_v16 }
 0x388   :  { %v1871_v34 = vadd.f32 %v6074_v37, %v6303_v52  ;;  %v1870_v59 = vadd.f32 %v6074_v37, %v8201_v0  ;;  %v1873_v39 = vadd.f32 %v6074_v37, %v6308_v46  ;;  %v1872_v53 = vadd.f32 %v6074_v37, %v8202_v19  ;;  %v8203_v46 = vld [vmem:[#allocation28_spill] sm:$0xff] }
 0x389   :  { %v6520_v32 = vmul.f32 %v6107_v35, %v1838_v30  ;;  %v1747_v1 = vmul.f32 %v6018_v20, %v8203_v46  ;;  %v1748_v56 = vmul.f32 %v6018_v20, %v8204_v10  ;;  %v1821_v3 = vadd.f32 %v6074_v37, %v8205_v38 }
 0x38a   :  { %1989 = vadd.xlane.f32.xlu1 %v1988_v24  ;;  %1986 = vadd.xlane.f32.xlu0 %v1985_v17  ;;  %v6523_v13 = vmul.f32 %v6107_v35, %v1871_v34  ;;  %v6526_v50 = vmul.f32 %v6107_v35, %v1870_v59  ;;  %v6529_v52 = vmul.f32 %v6107_v35, %v1873_v39  ;;  %v2084_v40 = vsel %vm1300_vm1, %v1926_v12, 0.0 }
 0x38b   :  { %v6532_v6 = vmul.f32 %v6107_v35, %v1872_v53  ;;  %v1820_v49 = vadd.f32 %v6074_v37, %v8206_v25  ;;  %v2081_v63 = vsel %vm1300_vm1, %v1925_v2, 0.0  ;;  %v1928_v4 = vmul.f32 %v6107_v35, %v1853_v57 }
 0x38c   :  { %v1927_v24 = vmul.f32 %v6107_v35, %v1852_v33  ;;  %v1896_v17 = vmul.f32 %v6107_v35, %v1821_v3  ;;  %v1823_v20 = vadd.f32 %v6074_v37, %v1748_v56  ;;  %v1822_v12 = vadd.f32 %v6074_v37, %v1747_v1 }
 0x38d   :  { %v2090_v16 = vsel %vm1300_vm1, %v1928_v4, 0.0  ;;  %v1895_v34 = vmul.f32 %v6107_v35, %v1820_v49  ;;  %v2096_v37 = vsel %vm1300_vm1, %v6330_v22, 0.0  ;;  %v2093_v19 = vsel %vm1300_vm1, %v6333_v61, 0.0 }
 0x38e   :  { %2085 = vadd.xlane.f32.xlu1 %v2084_v40  ;;  %2082 = vadd.xlane.f32.xlu0 %v2081_v63  ;;  %v2087_v30 = vsel %vm1300_vm1, %v1927_v24, 0.0  ;;  %v1994_v57 = vsel %vm1300_vm1, %v1896_v17, 0.0  ;;  %v1898_v2 = vmul.f32 %v6107_v35, %v1823_v20  ;;  %v1897_v0 = vmul.f32 %v6107_v35, %v1822_v12 }
 0x38f   :  { %v1991_v33 = vsel %vm1300_vm1, %v1895_v34, 0.0  ;;  %v2102_v53 = vsel %vm1300_vm1, %v6336_v29, 0.0  ;;  %v2099_v35 = vsel %vm1300_vm1, %v6339_v11, 0.0  ;;  %v2006_v46 = vsel %vm1300_vm1, %v6344_v18, 0.0 }
 0x390   :  { %v2000_v59 = vsel %vm1300_vm1, %v1898_v2, 0.0  ;;  %v1997_v39 = vsel %vm1300_vm1, %v1897_v0, 0.0  ;;  %v2003_v1 = vsel %vm1300_vm1, %v6347_v9, 0.0  ;;  %v2012_v22 = vsel %vm1300_vm1, %v6361_v41, 0.0 }
 0x391   :  { %v2009_v61 = vsel %vm1300_vm1, %v6375_v26, 0.0  ;;  %v2108_v29 = vsel %vm1300_vm1, %v6382_v43, 0.0  ;;  %v2105_v11 = vsel %vm1300_vm1, %v6385_v42, 0.0  ;;  %v2114_v18 = vsel %vm1300_vm1, %v6388_v48, 0.0 }
 0x392   :  { %2091 = vadd.xlane.f32.xlu1 %v2090_v16  ;;  %2088 = vadd.xlane.f32.xlu0 %v2087_v30  ;;  %v2111_v9 = vsel %vm1300_vm1, %v6391_v55, 0.0  ;;  %v2018_v41 = vsel %vm1300_vm1, %v6394_v14, 0.0  ;;  %v2015_v26 = vsel %vm1300_vm1, %v6397_v47, 0.0  ;;  %v2024_v43 = vsel %vm1300_vm1, %v6409_v51, 0.0 }
 0x393   :  { %v2021_v42 = vsel %vm1300_vm1, %v6422_v28, 0.0  ;;  %v2120_v48 = vsel %vm1300_vm1, %v6429_v58, 0.0  ;;  %v2117_v55 = vsel %vm1300_vm1, %v6432_v54, 0.0  ;;  %v2126_v14 = vsel %vm1300_vm1, %v6435_v45, 0.0 }
 0x394   :  { %v2123_v47 = vsel %vm1300_vm1, %v6438_v60, 0.0  ;;  %v2030_v51 = vsel %vm1300_vm1, %v6442_v44, 0.0  ;;  %v2027_v28 = vsel %vm1300_vm1, %v6445_v21, 0.0  ;;  %v2036_v58 = vsel %vm1300_vm1, %v6457_v7, 0.0 }
 0x395   :  { %v2033_v54 = vsel %vm1300_vm1, %v6472_v36, 0.0  ;;  %v2132_v45 = vsel %vm1300_vm1, %v6479_v5, 0.0  ;;  %v2129_v60 = vsel %vm1300_vm1, %v6482_v31, 0.0  ;;  %v2138_v44 = vsel %vm1300_vm1, %v6485_v27, 0.0 }
 0x396   :  { %1995 = vadd.xlane.f32.xlu1 %v1994_v57  ;;  %1992 = vadd.xlane.f32.xlu0 %v1991_v33  ;;  %v2135_v21 = vsel %vm1300_vm1, %v6488_v62, 0.0  ;;  %v2042_v7 = vsel %vm1300_vm1, %v6491_v23, 0.0  ;;  %v2039_v36 = vsel %vm1300_vm1, %v6494_v15, 0.0  ;;  %v2048_v5 = vsel %vm1300_vm1, %v6507_v8, 0.0 }
 0x397   :  { %v2045_v31 = vsel %vm1300_vm1, %v6520_v32, 0.0  ;;  %v2144_v27 = vsel %vm1300_vm1, %v6523_v13, 0.0  ;;  %v2141_v62 = vsel %vm1300_vm1, %v6526_v50, 0.0  ;;  %v2150_v23 = vsel %vm1300_vm1, %v6529_v52, 0.0 }
 0x398   :  { %v2147_v15 = vsel %vm1300_vm1, %v6532_v6, 0.0  ;;  %v6630_v10 = vstv %s3452_s7 }
 0x39a   :  { %2001 = vadd.xlane.f32.xlu1 %v2000_v59  ;;  %1998 = vadd.xlane.f32.xlu0 %v1997_v39 }
 0x39e   :  { %2097 = vadd.xlane.f32.xlu1 %v2096_v37  ;;  %2094 = vadd.xlane.f32.xlu0 %v2093_v19 }
 0x3a2   :  { %2103 = vadd.xlane.f32.xlu1 %v2102_v53  ;;  %2100 = vadd.xlane.f32.xlu0 %v2099_v35 }
 0x3a6   :  { %2007 = vadd.xlane.f32.xlu1 %v2006_v46  ;;  %2004 = vadd.xlane.f32.xlu0 %v2003_v1 }
 0x3aa   :  { %2013 = vadd.xlane.f32.xlu1 %v2012_v22  ;;  %2010 = vadd.xlane.f32.xlu0 %v2009_v61 }
 0x3ae   :  { %2109 = vadd.xlane.f32.xlu1 %v2108_v29  ;;  %2106 = vadd.xlane.f32.xlu0 %v2105_v11 }
 0x3b2   :  { %2115 = vadd.xlane.f32.xlu1 %v2114_v18  ;;  %2112 = vadd.xlane.f32.xlu0 %v2111_v9 }
 0x3b6   :  { %2019 = vadd.xlane.f32.xlu1 %v2018_v41  ;;  %2016 = vadd.xlane.f32.xlu0 %v2015_v26 }
 0x3ba   :  { %2025 = vadd.xlane.f32.xlu1 %v2024_v43  ;;  %2022 = vadd.xlane.f32.xlu0 %v2021_v42 }
 0x3be   :  { %2121 = vadd.xlane.f32.xlu1 %v2120_v48  ;;  %2118 = vadd.xlane.f32.xlu0 %v2117_v55 }
 0x3c2   :  { %2127 = vadd.xlane.f32.xlu1 %v2126_v14  ;;  %2124 = vadd.xlane.f32.xlu0 %v2123_v47 }
 0x3c6   :  { %2031 = vadd.xlane.f32.xlu1 %v2030_v51  ;;  %2028 = vadd.xlane.f32.xlu0 %v2027_v28 }
 0x3ca   :  { %2037 = vadd.xlane.f32.xlu1 %v2036_v58  ;;  %2034 = vadd.xlane.f32.xlu0 %v2033_v54 }
 0x3ce   :  { %2133 = vadd.xlane.f32.xlu1 %v2132_v45  ;;  %2130 = vadd.xlane.f32.xlu0 %v2129_v60 }
 0x3d2   :  { %2139 = vadd.xlane.f32.xlu1 %v2138_v44  ;;  %2136 = vadd.xlane.f32.xlu0 %v2135_v21 }
 0x3d6   :  { %2043 = vadd.xlane.f32.xlu1 %v2042_v7  ;;  %2040 = vadd.xlane.f32.xlu0 %v2039_v36 }
 0x3da   :  { %2049 = vadd.xlane.f32.xlu1 %v2048_v5  ;;  %2046 = vadd.xlane.f32.xlu0 %v2045_v31 }
 0x3de   :  { %2145 = vadd.xlane.f32.xlu1 %v2144_v27  ;;  %2142 = vadd.xlane.f32.xlu0 %v2141_v62 }
 0x3e2   :  { %2151 = vadd.xlane.f32.xlu1 %v2150_v23  ;;  %2148 = vadd.xlane.f32.xlu0 %v2147_v15 }
 0x3e7   :  { %v1963_v8 = vpop.xlane.xlu1 %1962  ;;  %v1951_v32 = vpop.xlane.xlu0 %1950 }
 0x3e8   :  { %v2156_v38 = vadd.f32 %v6630_v10, %v1951_v32  ;;  %v2160_v24 = vadd.f32 %v6630_v10, %v1963_v8 }
 0x3ea   :  { %v2224_v6 = vmax.f32 %v2156_v38, 0.0  ;;  %v2228_v39 = vmax.f32 %v2160_v24, 0.0 }
 0x3eb   :  { %v1966_v56 = vpop.xlane.xlu1 %1965  ;;  %v1954_v13 = vpop.xlane.xlu0 %1953 }
 0x3ec   :  { %v2157_v50 = vadd.f32 %v6630_v10, %v1954_v13  ;;  %v2161_v17 = vadd.f32 %v6630_v10, %v1966_v56 }
 0x3ee   :  { %v2225_v40 = vmax.f32 %v2157_v50, 0.0  ;;  %v2229_v37 = vmax.f32 %v2161_v17, 0.0 }
 0x3ef   :  { %v2056_v3 = vpop.xlane.xlu1 %2055  ;;  %v2053_v25 = vpop.xlane.xlu0 %2052 }
 0x3f0   :  { %v2191_v52 = vadd.f32 %v6630_v10, %v2056_v3  ;;  %v2190_v49 = vadd.f32 %v6630_v10, %v2053_v25 }
 0x3f2   :  { %v2259_v63 = vmax.f32 %v2191_v52, 0.0  ;;  %v2258_v4 = vmax.f32 %v2190_v49, 0.0 }
 0x3f3   :  { %v2068_v20 = vpop.xlane.xlu1 %2067  ;;  %v2065_v16 = vpop.xlane.xlu0 %2064 }
 0x3f4   :  { %v2293_v30 = vmax.f32 %v2225_v40, %v2259_v63  ;;  %v2292_v34 = vmax.f32 %v2224_v6, %v2258_v4  ;;  %v2195_v12 = vadd.f32 %v6630_v10, %v2068_v20  ;;  %v2194_v57 = vadd.f32 %v6630_v10, %v2065_v16 }
 0x3f6   :  { %v2327_v33 = vsub.f32 %v2225_v40, %v2293_v30  ;;  %v2429_v2 = vsub.f32 %v2259_v63, %v2293_v30  ;;  %v2326_v0 = vsub.f32 %v2224_v6, %v2292_v34  ;;  %v2428_v59 = vsub.f32 %v2258_v4, %v2292_v34 }
 0x3f7   :  { %v2263_v19 = vmax.f32 %v2195_v12, 0.0  ;;  %v2262_v53 = vmax.f32 %v2194_v57, 0.0  ;;  %v1960_v35 = vpop.xlane.xlu1 %1959  ;;  %v1957_v46 = vpop.xlane.xlu0 %1956 }
 0x3f8   :  { %v2362_v1 = vmul.f32 1.442695, %v2327_v33  ;;  %v2464_v22 = vmul.f32 1.442695, %v2429_v2  ;;  %v2360_v61 = vmul.f32 1.442695, %v2326_v0  ;;  %v2159_v54 = vadd.f32 %v6630_v10, %v1960_v35 }
 0x3f9   :  { %v2462_v29 = vmul.f32 1.442695, %v2428_v59  ;;  %v2297_v11 = vmax.f32 %v2229_v37, %v2263_v19  ;;  %v2296_v18 = vmax.f32 %v2228_v39, %v2262_v53  ;;  %v2158_v45 = vadd.f32 %v6630_v10, %v1957_v46 }
 0x3fa   :  { %3457 = vpow2.f32 %v2362_v1  ;;  %v2227_v27 = vmax.f32 %v2159_v54, 0.0 }
 0x3fb   :  { %3459 = vpow2.f32 %v2464_v22  ;;  %v2331_v9 = vsub.f32 %v2229_v37, %v2297_v11  ;;  %v2433_v41 = vsub.f32 %v2263_v19, %v2297_v11  ;;  %v2330_v26 = vsub.f32 %v2228_v39, %v2296_v18  ;;  %v1972_v43 = vpop.xlane.xlu1 %1971  ;;  %v1969_v42 = vpop.xlane.xlu0 %1968 }
 0x3fc   :  { %3461 = vpow2.f32 %v2360_v61  ;;  %v2432_v48 = vsub.f32 %v2262_v53, %v2296_v18  ;;  %v2163_v60 = vadd.f32 %v6630_v10, %v1972_v43  ;;  %v2162_v5 = vadd.f32 %v6630_v10, %v1969_v42 }
 0x3fd   :  { %3463 = vpow2.f32 %v2462_v29  ;;  %v2370_v55 = vmul.f32 1.442695, %v2331_v9  ;;  %v2472_v14 = vmul.f32 1.442695, %v2433_v41  ;;  %v2368_v47 = vmul.f32 1.442695, %v2330_v26 }
 0x3fe   :  { %v2470_v51 = vmul.f32 1.442695, %v2432_v48  ;;  %v2226_v62 = vmax.f32 %v2158_v45, 0.0  ;;  %v2231_v32 = vmax.f32 %v2163_v60, 0.0  ;;  %v2230_v40 = vmax.f32 %v2162_v5, 0.0 }
 0x3ff   :  { %3465 = vpow2.f32 %v2370_v55  ;;  %v1978_v28 = vpop.xlane.xlu1 %1977  ;;  %v1975_v58 = vpop.xlane.xlu0 %1974 }
 0x400   :  { %3467 = vpow2.f32 %v2472_v14  ;;  %v2165_v31 = vadd.f32 %v6630_v10, %v1978_v28  ;;  %v2164_v4 = vadd.f32 %v6630_v10, %v1975_v58 }
 0x401   :  { %3469 = vpow2.f32 %v2368_v47 }
 0x402   :  { %3471 = vpow2.f32 %v2470_v51  ;;  %v2233_v63 = vmax.f32 %v2165_v31, 0.0  ;;  %v2232_v45 = vmax.f32 %v2164_v4, 0.0 }
 0x403   :  { %v2062_v44 = vpop.xlane.xlu1 %2061  ;;  %v2059_v21 = vpop.xlane.xlu0 %2058 }
 0x404   :  { %v2193_v7 = vadd.f32 %v6630_v10, %v2062_v44  ;;  %v2192_v36 = vadd.f32 %v6630_v10, %v2059_v21 }
 0x406   :  { %v2261_v23 = vmax.f32 %v2193_v7, 0.0  ;;  %v2260_v15 = vmax.f32 %v2192_v36, 0.0 }
 0x407   :  { %v6647_v8 = vpop.eup %3457  ;;  %v2074_v56 = vpop.xlane.xlu1 %2073 }
 0x408   :  { %v2071_v13 = vpop.xlane.xlu0 %2070  ;;  %v6649_v38 = vpop.eup %3459  ;;  %v2295_v50 = vmax.f32 %v2227_v27, %v2261_v23  ;;  %v2294_v3 = vmax.f32 %v2226_v62, %v2260_v15  ;;  %v2197_v25 = vadd.f32 %v6630_v10, %v2074_v56 }
 0x409   :  { %v2196_v52 = vadd.f32 %v6630_v10, %v2071_v13  ;;  %v6653_v49 = vpop.eup %3461  ;;  %v2531_v6 = vadd.f32 %v6649_v38, %v6647_v8 }
 0x40a   :  { %v6658_v24 = vpop.eup %3463  ;;  %v2329_v17 = vsub.f32 %v2227_v27, %v2295_v50  ;;  %v2431_v20 = vsub.f32 %v2261_v23, %v2295_v50  ;;  %v2328_v16 = vsub.f32 %v2226_v62, %v2294_v3  ;;  %v2430_v30 = vsub.f32 %v2260_v15, %v2294_v3 }
 0x40b   :  { %3473 = vrcp.f32 %v2531_v6  ;;  %v2530_v34 = vadd.f32 %v6658_v24, %v6653_v49  ;;  %v2265_v12 = vmax.f32 %v2197_v25, 0.0  ;;  %v2264_v57 = vmax.f32 %v2196_v52, 0.0  ;;  %v2080_v33 = vpop.xlane.xlu1 %2079 }
 0x40c   :  { %v2077_v2 = vpop.xlane.xlu0 %2076  ;;  %v6662_v0 = vpop.eup %3465  ;;  %v2366_v59 = vmul.f32 1.442695, %v2329_v17  ;;  %v2468_v39 = vmul.f32 1.442695, %v2431_v20  ;;  %v2364_v37 = vmul.f32 1.442695, %v2328_v16  ;;  %v2199_v19 = vadd.f32 %v6630_v10, %v2080_v33 }
 0x40d   :  { %v6665_v53 = vpop.eup %3467  ;;  %3475 = vrcp.f32 %v2530_v34  ;;  %v2466_v35 = vmul.f32 1.442695, %v2430_v30  ;;  %v2299_v46 = vmax.f32 %v2231_v32, %v2265_v12  ;;  %v2298_v1 = vmax.f32 %v2230_v40, %v2264_v57 }
 0x40e   :  { %v6667_v22 = vpop.eup %3469  ;;  %v2535_v61 = vadd.f32 %v6665_v53, %v6662_v0  ;;  %3477 = vpow2.f32 %v2366_v59  ;;  %v2267_v29 = vmax.f32 %v2199_v19, 0.0  ;;  %v2198_v11 = vadd.f32 %v6630_v10, %v2077_v2 }
 0x40f   :  { %v6672_v18 = vpop.eup %3471  ;;  %3479 = vpow2.f32 %v2468_v39  ;;  %v2333_v9 = vsub.f32 %v2231_v32, %v2299_v46  ;;  %v2435_v41 = vsub.f32 %v2265_v12, %v2299_v46  ;;  %v2332_v26 = vsub.f32 %v2230_v40, %v2298_v1  ;;  %v1984_v43 = vpop.xlane.xlu1 %1983 }
 0x410   :  { %v1981_v42 = vpop.xlane.xlu0 %1980  ;;  %3481 = vrcp.f32 %v2535_v61  ;;  %v2534_v48 = vadd.f32 %v6672_v18, %v6667_v22  ;;  %v2434_v55 = vsub.f32 %v2264_v57, %v2298_v1  ;;  %v2301_v14 = vmax.f32 %v2233_v63, %v2267_v29 }
 0x411   :  { %3483 = vpow2.f32 %v2364_v37  ;;  %v2374_v47 = vmul.f32 1.442695, %v2333_v9  ;;  %v2476_v51 = vmul.f32 1.442695, %v2435_v41  ;;  %v2372_v28 = vmul.f32 1.442695, %v2332_v26 }
 0x412   :  { %3485 = vrcp.f32 %v2534_v48  ;;  %v2335_v58 = vsub.f32 %v2233_v63, %v2301_v14  ;;  %v2437_v54 = vsub.f32 %v2267_v29, %v2301_v14  ;;  %v2474_v60 = vmul.f32 1.442695, %v2434_v55 }
 0x413   :  { %3487 = vpow2.f32 %v2466_v35  ;;  %v2266_v44 = vmax.f32 %v2198_v11, 0.0  ;;  %v1990_v21 = vpop.xlane.xlu1 %1989  ;;  %v2167_v5 = vadd.f32 %v6630_v10, %v1984_v43  ;;  %v2166_v62 = vadd.f32 %v6630_v10, %v1981_v42 }
 0x414   :  { %v1987_v7 = vpop.xlane.xlu0 %1986  ;;  %3489 = vpow2.f32 %v2374_v47  ;;  %v2378_v36 = vmul.f32 1.442695, %v2335_v58  ;;  %v2480_v31 = vmul.f32 1.442695, %v2437_v54 }
 0x415   :  { %3491 = vpow2.f32 %v2476_v51  ;;  %v2300_v27 = vmax.f32 %v2232_v45, %v2266_v44  ;;  %v2235_v50 = vmax.f32 %v2167_v5, 0.0  ;;  %v2234_v17 = vmax.f32 %v2166_v62, 0.0 }
 0x416   :  { %3493 = vpow2.f32 %v2372_v28  ;;  %v2168_v19 = vadd.f32 %v6630_v10, %v1987_v7 }
 0x417   :  { %3495 = vpow2.f32 %v2474_v60  ;;  %v2334_v23 = vsub.f32 %v2232_v45, %v2300_v27  ;;  %v2436_v15 = vsub.f32 %v2266_v44, %v2300_v27  ;;  %v2086_v32 = vpop.xlane.xlu1 %2085 }
 0x418   :  { %v2083_v56 = vpop.xlane.xlu0 %2082  ;;  %v3474_v13 = vpop.eup %3473  ;;  %3497 = vpow2.f32 %v2378_v36  ;;  %v2201_v3 = vadd.f32 %v6630_v10, %v2086_v32  ;;  %v2236_v14 = vmax.f32 %v2168_v19, 0.0 }
 0x419   :  { %v2200_v25 = vadd.f32 %v6630_v10, %v2083_v56  ;;  %v6681_v52 = vmul.f32 %v3474_v13, %v6647_v8  ;;  %v6684_v6 = vmul.f32 %v3474_v13, %v6649_v38  ;;  %3499 = vpow2.f32 %v2480_v31 }
 0x41a   :  { %v2376_v40 = vmul.f32 1.442695, %v2334_v23  ;;  %v3476_v63 = vpop.eup %3475  ;;  %v2478_v4 = vmul.f32 1.442695, %v2436_v15  ;;  %v2269_v20 = vmax.f32 %v2201_v3, 0.0  ;;  %v2169_v8 = vadd.f32 %v6630_v10, %v1990_v21 }
 0x41b   :  { %v2268_v16 = vmax.f32 %v2200_v25, 0.0  ;;  %v6686_v30 = vpop.eup %3477  ;;  %v6689_v34 = vmul.f32 %v3476_v63, %v6653_v49  ;;  %v6692_v12 = vmul.f32 %v3476_v63, %v6658_v24  ;;  %v2092_v38 = vpop.xlane.xlu1 %2091 }
 0x41c   :  { %3501 = vpow2.f32 %v2376_v40  ;;  %v2089_v57 = vpop.xlane.xlu0 %2088  ;;  %v6695_v33 = vpop.eup %3479  ;;  %v2303_v2 = vmax.f32 %v2235_v50, %v2269_v20  ;;  %v2203_v39 = vadd.f32 %v6630_v10, %v2092_v38  ;;  %v2237_v48 = vmax.f32 %v2169_v8, 0.0 }
 0x41d   :  { %3503 = vpow2.f32 %v2478_v4  ;;  %v2302_v59 = vmax.f32 %v2234_v17, %v2268_v16  ;;  %v3482_v37 = vpop.eup %3481  ;;  %v2533_v49 = vadd.f32 %v6695_v33, %v6686_v30  ;;  %v2202_v9 = vadd.f32 %v6630_v10, %v2089_v57 }
 0x41e   :  { %v6701_v24 = vpop.eup %3483  ;;  %v6704_v35 = vmul.f32 %v3482_v37, %v6662_v0  ;;  %v6707_v46 = vmul.f32 %v3482_v37, %v6665_v53  ;;  %v2337_v1 = vsub.f32 %v2235_v50, %v2303_v2  ;;  %v2439_v61 = vsub.f32 %v2269_v20, %v2303_v2 }
 0x41f   :  { %v3486_v29 = vpop.eup %3485  ;;  %v2271_v11 = vmax.f32 %v2203_v39, 0.0  ;;  %v1996_v41 = vpop.xlane.xlu1 %1995  ;;  %3505 = vrcp.f32 %v2533_v49  ;;  %v2336_v0 = vsub.f32 %v2234_v17, %v2302_v59  ;;  %v2438_v51 = vsub.f32 %v2268_v16, %v2302_v59 }
 0x420   :  { %8207 = vst [vmem:[#allocation26_spill] sm:$0xff] %v6707_v46  ;;  %v1993_v26 = vpop.xlane.xlu0 %1992  ;;  %v6710_v43 = vpop.eup %3487  ;;  %v6713_v42 = vmul.f32 %v3486_v29, %v6672_v18  ;;  %v2382_v47 = vmul.f32 1.442695, %v2337_v1  ;;  %v2633_v58 = vmax.f32 %v6681_v52, %v6704_v35  ;;  %v6724_v54 = vmul.f32 %v3486_v29, %v6667_v22 }
 0x421   :  { %v6715_v55 = vpop.eup %3489  ;;  %v2532_v53 = vadd.f32 %v6710_v43, %v6701_v24  ;;  %v2484_v18 = vmul.f32 1.442695, %v2439_v61  ;;  %v2305_v45 = vmax.f32 %v2237_v48, %v2271_v11  ;;  %v2917_v44 = vmax.f32 %v6684_v6, %v6707_v46 }
 0x422   :  { %8208 = vst [vmem:[#allocation27_spill] sm:$0xff] %v6713_v42  ;;  %v6719_v28 = vpop.eup %3491  ;;  %v2270_v7 = vmax.f32 %v2202_v9, 0.0  ;;  %v2380_v27 = vmul.f32 1.442695, %v2336_v0  ;;  %v2171_v62 = vadd.f32 %v6630_v10, %v1996_v41  ;;  %v2632_v50 = vmax.f32 %v6689_v34, %v6724_v54 }
 0x423   :  { %v6726_v60 = vpop.eup %3493  ;;  %3507 = vrcp.f32 %v2532_v53  ;;  %v2537_v21 = vadd.f32 %v6719_v28, %v6715_v55  ;;  %v2002_v36 = vpop.xlane.xlu1 %2001  ;;  %v2339_v22 = vsub.f32 %v2237_v48, %v2305_v45  ;;  %v2441_v32 = vsub.f32 %v2271_v11, %v2305_v45 }
 0x424   :  { %v1999_v5 = vpop.xlane.xlu0 %1998  ;;  %v6732_v31 = vpop.eup %3495  ;;  %3509 = vpow2.f32 %v2382_v47  ;;  %v2304_v56 = vmax.f32 %v2236_v14, %v2270_v7  ;;  %v2916_v3 = vmax.f32 %v6692_v12, %v6713_v42  ;;  %v2482_v25 = vmul.f32 1.442695, %v2438_v51 }
 0x425   :  { %v6735_v23 = vpop.eup %3497  ;;  %3511 = vrcp.f32 %v2537_v21  ;;  %v2536_v15 = vadd.f32 %v6732_v31, %v6726_v60  ;;  %v2386_v63 = vmul.f32 1.442695, %v2339_v22  ;;  %v2239_v38 = vmax.f32 %v2171_v62, 0.0 }
 0x426   :  { %v6739_v13 = vpop.eup %3499  ;;  %3513 = vpow2.f32 %v2484_v18  ;;  %v2338_v4 = vsub.f32 %v2236_v14, %v2304_v56  ;;  %v2440_v8 = vsub.f32 %v2270_v7, %v2304_v56  ;;  %v2170_v57 = vadd.f32 %v6630_v10, %v1993_v26 }
 0x427   :  { %3515 = vrcp.f32 %v2536_v15  ;;  %v2539_v40 = vadd.f32 %v6739_v13, %v6735_v23  ;;  %v2098_v17 = vpop.xlane.xlu1 %2097  ;;  %v2488_v59 = vmul.f32 1.442695, %v2441_v32  ;;  %v2173_v39 = vadd.f32 %v6630_v10, %v2002_v36 }
 0x428   :  { %v2095_v20 = vpop.xlane.xlu0 %2094  ;;  %3517 = vpow2.f32 %v2380_v27  ;;  %v2205_v37 = vadd.f32 %v6630_v10, %v2098_v17  ;;  %v2384_v19 = vmul.f32 1.442695, %v2338_v4  ;;  %v2172_v1 = vadd.f32 %v6630_v10, %v1999_v5 }
 0x429   :  { %v6747_v16 = vpop.eup %3501  ;;  %3519 = vrcp.f32 %v2539_v40  ;;  %v2486_v61 = vmul.f32 1.442695, %v2440_v8  ;;  %v2204_v11 = vadd.f32 %v6630_v10, %v2095_v20  ;;  %v2637_v26 = vmax.f32 %v2633_v58, %v2632_v50 }
 0x42a   :  { %v6750_v2 = vpop.eup %3503  ;;  %3521 = vpow2.f32 %v2482_v25  ;;  %v2273_v29 = vmax.f32 %v2205_v37, 0.0  ;;  %v2238_v14 = vmax.f32 %v2170_v57, 0.0  ;;  %v2241_v47 = vmax.f32 %v2173_v39, 0.0 }
 0x42b   :  { %v2538_v49 = vadd.f32 %v6750_v2, %v6747_v16  ;;  %3523 = vpow2.f32 %v2386_v63  ;;  %v2104_v9 = vpop.xlane.xlu1 %2103  ;;  %v2272_v18 = vmax.f32 %v2204_v11, 0.0  ;;  %v2240_v7 = vmax.f32 %v2172_v1, 0.0 }
 0x42c   :  { %v2101_v41 = vpop.xlane.xlu0 %2100  ;;  %v2207_v48 = vadd.f32 %v6630_v10, %v2104_v9  ;;  %v3506_v53 = vpop.eup %3505  ;;  %v2307_v51 = vmax.f32 %v2239_v38, %v2273_v29  ;;  %v2921_v62 = vmax.f32 %v2917_v44, %v2916_v3 }
 0x42d   :  { %3525 = vrcp.f32 %v2538_v49  ;;  %v6760_v0 = vadd.f32 %v6630_v10, %v2101_v41  ;;  %v6769_v15 = vmul.f32 %v3506_v53, %v6686_v30  ;;  %v2306_v32 = vmax.f32 %v2238_v14, %v2272_v18 }
 0x42e   :  { %3527 = vpow2.f32 %v2488_v59  ;;  %v2275_v45 = vmax.f32 %v2207_v48, 0.0  ;;  %v2341_v36 = vsub.f32 %v2239_v38, %v2307_v51  ;;  %v2443_v58 = vsub.f32 %v2273_v29, %v2307_v51 }
 0x42f   :  { %3529 = vpow2.f32 %v2384_v19  ;;  %v2274_v21 = vmax.f32 %v6760_v0, 0.0  ;;  %v2008_v5 = vpop.xlane.xlu1 %2007  ;;  %v6774_v25 = vmul.f32 %v3506_v53, %v6695_v33  ;;  %v2340_v8 = vsub.f32 %v2238_v14, %v2306_v32 }
 0x430   :  { %3531 = vpow2.f32 %v2486_v61  ;;  %v6763_v27 = vpop.xlane.xlu0 %2004  ;;  %v3508_v22 = vpop.eup %3507  ;;  %v2309_v56 = vmax.f32 %v2241_v47, %v2275_v45  ;;  %v2390_v40 = vmul.f32 1.442695, %v2341_v36  ;;  %v2492_v63 = vmul.f32 1.442695, %v2443_v58 }
 0x431   :  { %v6771_v50 = vpop.eup %3509  ;;  %8209 = vst [vmem:[#allocation5_spill] sm:$0xff] %v6774_v25  ;;  %v2308_v4 = vmax.f32 %v2240_v7, %v2274_v21  ;;  %v6777_v20 = vmul.f32 %v3508_v22, %v6701_v24  ;;  %v2442_v38 = vsub.f32 %v2272_v18, %v2306_v32  ;;  %v2388_v49 = vmul.f32 1.442695, %v2340_v8 }
 0x432   :  { %v3512_v17 = vpop.eup %3511  ;;  %v2343_v44 = vsub.f32 %v2241_v47, %v2309_v56  ;;  %3533 = vpow2.f32 %v2390_v40  ;;  %v2445_v33 = vsub.f32 %v2275_v45, %v2309_v56  ;;  %v6802_v9 = vmul.f32 %v3508_v22, %v6710_v43 }
 0x433   :  { %v6779_v3 = vpop.eup %3513  ;;  %v6782_v30 = vmul.f32 %v3512_v17, %v6715_v55  ;;  %v6785_v57 = vmul.f32 %v3512_v17, %v6719_v28  ;;  %v2014_v59 = vpop.xlane.xlu1 %2013  ;;  %3535 = vpow2.f32 %v2492_v63  ;;  %v2490_v19 = vmul.f32 1.442695, %v2442_v38 }
 0x434   :  { %v2011_v39 = vpop.xlane.xlu0 %2010  ;;  %v3516_v37 = vpop.eup %3515  ;;  %v2541_v24 = vadd.f32 %v6779_v3, %v6771_v50  ;;  %v2342_v41 = vsub.f32 %v2240_v7, %v2308_v4  ;;  %v6805_v48 = vadd.f32 %v6630_v10, %v2008_v5  ;;  %v2394_v47 = vmul.f32 1.442695, %v2343_v44 }
 0x435   :  { %8210 = vst [vmem:[#allocation6_spill] sm:$0xff] %v6785_v57  ;;  %v6789_v1 = vpop.eup %3517  ;;  %v2635_v55 = vmax.f32 %v6769_v15, %v6782_v30  ;;  %v2919_v28 = vmax.f32 %v6774_v25, %v6785_v57  ;;  %v6796_v61 = vmul.f32 %v3516_v37, %v6726_v60  ;;  %v6799_v29 = vmul.f32 %v3516_v37, %v6732_v31 }
 0x436   :  { %v3520_v11 = vpop.eup %3519  ;;  %3537 = vrcp.f32 %v2541_v24  ;;  %v2496_v7 = vmul.f32 1.442695, %v2445_v33  ;;  %v2444_v5 = vsub.f32 %v2274_v21, %v2308_v4  ;;  %v2392_v56 = vmul.f32 1.442695, %v2342_v41 }
 0x437   :  { %8211 = vst [vmem:[#allocation14_spill] sm:$0xff] %v6799_v29  ;;  %v6807_v0 = vpop.eup %3521  ;;  %v2636_v53 = vmax.f32 %v2635_v55, %v2637_v26  ;;  %v2920_v14 = vmax.f32 %v2919_v28, %v2921_v62  ;;  %v2634_v60 = vmax.f32 %v6777_v20, %v6796_v61  ;;  %v2110_v51 = vpop.xlane.xlu1 %2109  ;;  %v2918_v43 = vmax.f32 %v6802_v9, %v6799_v29 }
 0x438   :  { %v2107_v31 = vpop.xlane.xlu0 %2106  ;;  %v6811_v18 = vpop.eup %3523  ;;  %v2540_v45 = vadd.f32 %v6807_v0, %v6789_v1  ;;  %3539 = vpow2.f32 %v2388_v49  ;;  %v6818_v26 = vmul.f32 %v3520_v11, %v6735_v23  ;;  %v6823_v32 = vmul.f32 %v3520_v11, %v6739_v13 }
 0x439   :  { %v2639_v58 = vmax.f32 %v2634_v60, %v2636_v53  ;;  %3541 = vpow2.f32 %v2490_v19  ;;  %v2923_v62 = vmax.f32 %v2918_v43, %v2920_v14  ;;  %v2494_v13 = vmul.f32 1.442695, %v2444_v5 }
 0x43a   :  { %v3526_v36 = vpop.eup %3525  ;;  %8212 = vst [vmem:[#allocation7_spill] sm:$0xff] %v6823_v32  ;;  %3543 = vrcp.f32 %v2540_v45  ;;  %v2174_v38 = vadd.f32 %v6630_v10, %v6763_v27  ;;  %v2177_v44 = vadd.f32 %v6630_v10, %v2014_v59  ;;  %v2243_v37 = vmax.f32 %v6805_v48, 0.0 }
 0x43b   :  { %v6820_v22 = vpop.eup %3527  ;;  %v2638_v63 = vmax.f32 %v6818_v26, %v2639_v58  ;;  %v6829_v17 = vmul.f32 %v3526_v36, %v6747_v16  ;;  %3545 = vpow2.f32 %v2394_v47  ;;  %v2116_v21 = vpop.xlane.xlu1 %2115  ;;  %v6839_v33 = vmul.f32 %v3526_v36, %v6750_v2 }
 0x43c   :  { %v6825_v40 = vpop.eup %3529  ;;  %v2543_v23 = vadd.f32 %v6820_v22, %v6811_v18  ;;  %v2113_v4 = vpop.xlane.xlu0 %2112  ;;  %3547 = vpow2.f32 %v2496_v7  ;;  %v2922_v24 = vmax.f32 %v6823_v32, %v2923_v62  ;;  %v2176_v19 = vadd.f32 %v6630_v10, %v2011_v39 }
 0x43d   :  { %v6833_v8 = vpop.eup %3531  ;;  %8213 = vst [vmem:[#allocation8_spill] sm:$0xff] %v6839_v33  ;;  %v6846_v49 = vmax.f32 %v6829_v17, %v2638_v63  ;;  %v2209_v27 = vadd.f32 %v6630_v10, %v2110_v51  ;;  %v2208_v2 = vadd.f32 %v6630_v10, %v2107_v31  ;;  %v2211_v59 = vadd.f32 %v6630_v10, %v2116_v21 }
 0x43e   :  { %3549 = vrcp.f32 %v2543_v23  ;;  %v2542_v16 = vadd.f32 %v6833_v8, %v6825_v40  ;;  %v2242_v41 = vmax.f32 %v2174_v38, 0.0  ;;  %v2245_v48 = vmax.f32 %v2177_v44, 0.0 }
 0x43f   :  { %3551 = vpow2.f32 %v2392_v56  ;;  %v2020_v55 = vpop.xlane.xlu1 %2019  ;;  %v6852_v11 = vpop.eup %3533  ;;  %v2210_v53 = vadd.f32 %v6630_v10, %v2113_v4  ;;  %v2244_v60 = vmax.f32 %v2176_v19, 0.0  ;;  %v2277_v39 = vmax.f32 %v2209_v27, 0.0 }
 0x440   :  { %3553 = vrcp.f32 %v2542_v16  ;;  %v2017_v28 = vpop.xlane.xlu0 %2016  ;;  %v6855_v14 = vpop.eup %3535  ;;  %v2276_v47 = vmax.f32 %v2208_v2, 0.0  ;;  %v2279_v43 = vmax.f32 %v2211_v59, 0.0  ;;  %v6860_v45 = vadd.f32 %v6630_v10, %v2020_v55 }
 0x441   :  { %3555 = vpow2.f32 %v2494_v13  ;;  %v2545_v51 = vadd.f32 %v6855_v14, %v6852_v11  ;;  %v2278_v31 = vmax.f32 %v2210_v53, 0.0  ;;  %v6863_v7 = vadd.f32 %v6630_v10, %v2017_v28 }
 0x442   :  { %v2925_v58 = vmax.f32 %v6839_v33, %v2922_v24  ;;  %v2311_v5 = vmax.f32 %v2243_v37, %v2277_v39  ;;  %v2310_v62 = vmax.f32 %v2242_v41, %v2276_v47  ;;  %v2313_v56 = vmax.f32 %v2245_v48, %v2279_v43 }
 0x443   :  { %v3538_v36 = vpop.eup %3537  ;;  %v2026_v63 = vpop.xlane.xlu1 %2025  ;;  %3557 = vrcp.f32 %v2545_v51  ;;  %v2312_v13 = vmax.f32 %v2244_v60, %v2278_v31 }
 0x444   :  { %v2023_v23 = vpop.xlane.xlu0 %2022  ;;  %v6867_v21 = vmul.f32 %v3538_v36, %v6771_v50  ;;  %v6870_v4 = vmul.f32 %v3538_v36, %v6779_v3  ;;  %v2345_v44 = vsub.f32 %v2243_v37, %v2311_v5  ;;  %v2447_v16 = vsub.f32 %v2277_v39, %v2311_v5 }
 0x445   :  { %v6872_v38 = vpop.eup %3539  ;;  %v2344_v19 = vsub.f32 %v2242_v41, %v2310_v62  ;;  %v2446_v27 = vsub.f32 %v2276_v47, %v2310_v62  ;;  %v2347_v39 = vsub.f32 %v2245_v48, %v2313_v56  ;;  %v2449_v5 = vsub.f32 %v2279_v43, %v2313_v56 }
 0x446   :  { %8214 = vst [vmem:[#allocation30_spill] sm:$0xff] %v6870_v4  ;;  %v6874_v24 = vpop.eup %3541  ;;  %v2640_v2 = vmax.f32 %v6867_v21, %v6846_v49  ;;  %v2924_v59 = vmax.f32 %v6870_v4, %v2925_v58  ;;  %v2398_v53 = vmul.f32 1.442695, %v2345_v44  ;;  %v2500_v37 = vmul.f32 1.442695, %v2447_v16 }
 0x447   :  { %v3544_v55 = vpop.eup %3543  ;;  %v2544_v28 = vadd.f32 %v6874_v24, %v6872_v38  ;;  %v2122_v41 = vpop.xlane.xlu1 %2121  ;;  %v2396_v58 = vmul.f32 1.442695, %v2344_v19  ;;  %v2498_v3 = vmul.f32 1.442695, %v2446_v27  ;;  %v2346_v50 = vsub.f32 %v2244_v60, %v2312_v13 }
 0x448   :  { %v2119_v47 = vpop.xlane.xlu0 %2118  ;;  %v6883_v51 = vpop.eup %3545  ;;  %v6886_v36 = vmul.f32 %v3544_v55, %v6789_v1  ;;  %v6889_v49 = vmul.f32 %v3544_v55, %v6807_v0  ;;  %v2448_v44 = vsub.f32 %v2278_v31, %v2312_v13  ;;  %v2402_v60 = vmul.f32 1.442695, %v2347_v39 }
 0x449   :  { %v6891_v62 = vpop.eup %3547  ;;  %3559 = vrcp.f32 %v2544_v28  ;;  %v2504_v19 = vmul.f32 1.442695, %v2449_v5  ;;  %v2181_v27 = vadd.f32 %v6630_v10, %v2026_v63  ;;  %v2213_v5 = vadd.f32 %v6630_v10, %v2122_v41 }
 0x44a   :  { %8215 = vst [vmem:[#allocation31_spill] sm:$0xff] %v6889_v49  ;;  %v2643_v48 = vmax.f32 %v6886_v36, %v2640_v2  ;;  %v2927_v4 = vmax.f32 %v6889_v49, %v2924_v59  ;;  %v2547_v1 = vadd.f32 %v6891_v62, %v6883_v51  ;;  %3561 = vpow2.f32 %v2398_v53 }
 0x44b   :  { %v3550_v16 = vpop.eup %3549  ;;  %3563 = vpow2.f32 %v2500_v37  ;;  %v2128_v31 = vpop.xlane.xlu1 %2127  ;;  %v6907_v2 = vadd.f32 %v6630_v10, %v2023_v23  ;;  %v2502_v28 = vmul.f32 1.442695, %v2448_v44  ;;  %v2249_v23 = vmax.f32 %v2181_v27, 0.0 }
 0x44c   :  { %v6897_v32 = vpop.eup %3551  ;;  %v6900_v0 = vmul.f32 %v3550_v16, %v6811_v18  ;;  %v6903_v43 = vmul.f32 %v3550_v16, %v6820_v22  ;;  %v2125_v56 = vpop.xlane.xlu0 %2124  ;;  %3565 = vrcp.f32 %v2547_v1  ;;  %v2400_v22 = vmul.f32 1.442695, %v2346_v50 }
 0x44d   :  { %v3554_v13 = vpop.eup %3553  ;;  %3567 = vpow2.f32 %v2396_v58  ;;  %v2248_v39 = vmax.f32 %v6907_v2, 0.0  ;;  %v2212_v50 = vadd.f32 %v6630_v10, %v2119_v47  ;;  %v8219_v47 = vmax.f32 %v6860_v45, 0.0 }
 0x44e   :  { %8216 = vst [vmem:[#allocation9_spill] sm:$0xff] %v6903_v43  ;;  %v6909_v59 = vpop.eup %3555  ;;  %v2642_v18 = vmax.f32 %v6900_v0, %v2643_v48  ;;  %v2926_v55 = vmax.f32 %v6903_v43, %v2927_v4  ;;  %v6914_v53 = vmul.f32 %v3554_v13, %v6825_v40  ;;  %v6917_v37 = vmul.f32 %v3554_v13, %v6833_v8 }
 0x44f   :  { %v2546_v63 = vadd.f32 %v6909_v59, %v6897_v32  ;;  %3569 = vpow2.f32 %v2498_v3  ;;  %v2032_v16 = vpop.xlane.xlu1 %2031  ;;  %v2215_v40 = vadd.f32 %v6630_v10, %v2128_v31  ;;  %v2214_v8 = vadd.f32 %v6630_v10, %v2125_v56 }
 0x450   :  { %8217 = vst [vmem:[#allocation10_spill] sm:$0xff] %v6917_v37  ;;  %v2029_v4 = vpop.xlane.xlu0 %2028  ;;  %v3558_v44 = vpop.eup %3557  ;;  %v2645_v48 = vmax.f32 %v6914_v53, %v2642_v18  ;;  %v2929_v58 = vmax.f32 %v6917_v37, %v2926_v55  ;;  %v2281_v3 = vmax.f32 %v2213_v5, 0.0  ;;  %v2280_v13 = vmax.f32 %v2212_v50, 0.0 }
 0x451   :  { %3571 = vrcp.f32 %v2546_v63  ;;  %v6929_v1 = vmul.f32 %v3558_v44, %v6852_v11  ;;  %v6932_v41 = vmul.f32 %v3558_v44, %v6855_v14  ;;  %v2283_v56 = vmax.f32 %v2215_v40, 0.0 }
 0x452   :  { %3573 = vpow2.f32 %v2402_v60  ;;  %v2315_v31 = vmax.f32 %v8219_v47, %v2281_v3  ;;  %v2282_v27 = vmax.f32 %v2214_v8, 0.0  ;;  %v8220_v11 = vmax.f32 %v6863_v7, 0.0 }
 0x453   :  { %8218 = vst [vmem:[#allocation32_spill] sm:$0xff] %v6932_v41  ;;  %3575 = vpow2.f32 %v2504_v19  ;;  %v2038_v2 = vpop.xlane.xlu1 %2037  ;;  %v2644_v60 = vmax.f32 %v6929_v1, %v2645_v48  ;;  %v6942_v14 = vadd.f32 %v6630_v10, %v2032_v16  ;;  %v2928_v19 = vmax.f32 %v6932_v41, %v2929_v58 }
 0x454   :  { %3577 = vpow2.f32 %v2400_v22  ;;  %v6936_v18 = vpop.xlane.xlu0 %2034  ;;  %v2314_v55 = vmax.f32 %v8220_v11, %v2280_v13  ;;  %v8221_v22 = vmov %v8219_v47  ;;  %v2451_v5 = vsub.f32 %v2281_v3, %v2315_v31 }
 0x455   :  { %3579 = vpow2.f32 %v2502_v28  ;;  %v2349_v63 = vsub.f32 %v8221_v22, %v2315_v31  ;;  %v2317_v50 = vmax.f32 %v2249_v23, %v2283_v56  ;;  %v8222_v8 = vmov %v8220_v11 }
 0x456   :  { %v3560_v40 = vpop.eup %3559  ;;  %v2348_v44 = vsub.f32 %v8222_v8, %v2314_v55  ;;  %v2450_v47 = vsub.f32 %v2280_v13, %v2314_v55  ;;  %v2316_v48 = vmax.f32 %v2248_v39, %v2282_v27  ;;  %v6950_v28 = vadd.f32 %v6630_v10, %v2029_v4 }
 0x457   :  { %v6952_v11 = vpop.eup %3561  ;;  %v6955_v16 = vmul.f32 %v3560_v40, %v6872_v38  ;;  %v6958_v58 = vmul.f32 %v3560_v40, %v6874_v24  ;;  %v2406_v45 = vmul.f32 1.442695, %v2349_v63  ;;  %v2508_v3 = vmul.f32 1.442695, %v2451_v5  ;;  %v2134_v31 = vpop.xlane.xlu1 %2133 }
 0x458   :  { %v2131_v22 = vpop.xlane.xlu0 %2130  ;;  %v6960_v41 = vpop.eup %3563  ;;  %v2404_v7 = vmul.f32 1.442695, %v2348_v44  ;;  %v2506_v13 = vmul.f32 1.442695, %v2450_v47  ;;  %v2351_v55 = vsub.f32 %v2249_v23, %v2317_v50  ;;  %v2453_v8 = vsub.f32 %v2283_v56, %v2317_v50 }
 0x459   :  { %8223 = vst [vmem:[#allocation11_spill] sm:$0xff] %v6958_v58  ;;  %v3566_v4 = vpop.eup %3565  ;;  %v2647_v43 = vmax.f32 %v6955_v16, %v2644_v60  ;;  %v6964_v37 = vmax.f32 %v6958_v58, %v2928_v19  ;;  %v2549_v38 = vadd.f32 %v6960_v41, %v6952_v11  ;;  %3581 = vpow2.f32 %v2406_v45 }
 0x45a   :  { %v6969_v24 = vmul.f32 %v3566_v4, %v6883_v51  ;;  %v6972_v63 = vmul.f32 %v3566_v4, %v6891_v62  ;;  %3583 = vpow2.f32 %v2508_v3  ;;  %v2410_v5 = vmul.f32 1.442695, %v2351_v55  ;;  %v6974_v23 = vpop.eup %3567 }
 0x45b   :  { %3585 = vrcp.f32 %v2549_v38  ;;  %v2350_v56 = vsub.f32 %v2248_v39, %v2316_v48  ;;  %v2452_v60 = vsub.f32 %v2282_v27, %v2316_v48  ;;  %v2140_v50 = vpop.xlane.xlu1 %2139  ;;  %v2512_v44 = vmul.f32 1.442695, %v2453_v8 }
 0x45c   :  { %8224 = vst [vmem:[#allocation33_spill] sm:$0xff] %v6972_v63  ;;  %v2137_v19 = vpop.xlane.xlu0 %2136  ;;  %v6976_v40 = vpop.eup %3569  ;;  %3587 = vpow2.f32 %v2404_v7  ;;  %v2251_v47 = vmax.f32 %v6942_v14, 0.0  ;;  %v2250_v51 = vmax.f32 %v6950_v28, 0.0  ;;  %v2185_v55 = vadd.f32 %v6630_v10, %v2038_v2 }
 0x45d   :  { %v2548_v62 = vadd.f32 %v6976_v40, %v6974_v23  ;;  %3589 = vpow2.f32 %v2506_v13  ;;  %v2408_v3 = vmul.f32 1.442695, %v2350_v56  ;;  %v2646_v27 = vmax.f32 %v6969_v24, %v2647_v43 }
 0x45e   :  { %v3572_v45 = vpop.eup %3571  ;;  %v2930_v48 = vmax.f32 %v6972_v63, %v6964_v37  ;;  %3591 = vpow2.f32 %v2410_v5  ;;  %v2510_v7 = vmul.f32 1.442695, %v2452_v60  ;;  %v2217_v13 = vadd.f32 %v6630_v10, %v2134_v31 }
 0x45f   :  { %v6983_v39 = vpop.eup %3573  ;;  %v6991_v28 = vmul.f32 %v3572_v45, %v6897_v32  ;;  %3593 = vrcp.f32 %v2548_v62  ;;  %v2216_v8 = vadd.f32 %v6630_v10, %v2131_v22  ;;  %v2044_v2 = vpop.xlane.xlu1 %2043  ;;  %v6998_v43 = vmul.f32 %v3572_v45, %v6909_v59 }
 0x460   :  { %v6988_v14 = vpop.eup %3575  ;;  %v2041_v4 = vpop.xlane.xlu0 %2040  ;;  %3595 = vpow2.f32 %v2512_v44  ;;  %v2184_v32 = vadd.f32 %v6630_v10, %v6936_v18  ;;  %v2253_v31 = vmax.f32 %v2185_v55, 0.0  ;;  %v2285_v56 = vmax.f32 %v2217_v13, 0.0 }
 0x461   :  { %v6995_v38 = vpop.eup %3577  ;;  %8225 = vst [vmem:[#allocation12_spill] sm:$0xff] %v6998_v43  ;;  %v2551_v37 = vadd.f32 %v6988_v14, %v6983_v39  ;;  %3597 = vpow2.f32 %v2408_v3  ;;  %v2284_v22 = vmax.f32 %v2216_v8, 0.0  ;;  %v2219_v59 = vadd.f32 %v6630_v10, %v2140_v50 }
 0x462   :  { %v7004_v5 = vpop.eup %3579  ;;  %v2218_v45 = vadd.f32 %v6630_v10, %v2137_v19  ;;  %v2319_v62 = vmax.f32 %v2251_v47, %v2285_v56  ;;  %v7011_v63 = vadd.f32 %v6630_v10, %v2044_v2  ;;  %v2649_v3 = vmax.f32 %v6991_v28, %v2646_v27 }
 0x463   :  { %3599 = vrcp.f32 %v2551_v37  ;;  %v2550_v60 = vadd.f32 %v7004_v5, %v6995_v38  ;;  %v2318_v44 = vmax.f32 %v2250_v51, %v2284_v22  ;;  %v2050_v18 = vpop.xlane.xlu1 %2049  ;;  %v2252_v55 = vmax.f32 %v2184_v32, 0.0 }
 0x464   :  { %3601 = vpow2.f32 %v2510_v7  ;;  %v2287_v13 = vmax.f32 %v2219_v59, 0.0  ;;  %v2286_v8 = vmax.f32 %v2218_v45, 0.0  ;;  %v2353_v37 = vsub.f32 %v2251_v47, %v2319_v62  ;;  %v2047_v50 = vpop.xlane.xlu0 %2046 }
 0x465   :  { %v2455_v58 = vsub.f32 %v2285_v56, %v2319_v62  ;;  %v2352_v49 = vsub.f32 %v2250_v51, %v2318_v44  ;;  %v7015_v33 = vadd.f32 %v6630_v10, %v2041_v4  ;;  %3603 = vrcp.f32 %v2550_v60 }
 0x466   :  { %v7017_v19 = vpop.eup %3581  ;;  %v2454_v7 = vsub.f32 %v2284_v22, %v2318_v44  ;;  %v2321_v57 = vmax.f32 %v2253_v31, %v2287_v13  ;;  %v2320_v2 = vmax.f32 %v2252_v55, %v2286_v8  ;;  %v2933_v27 = vmax.f32 %v6998_v43, %v2930_v48 }
 0x467   :  { %v7019_v29 = vpop.eup %3583  ;;  %v2414_v32 = vmul.f32 1.442695, %v2353_v37  ;;  %v2516_v59 = vmul.f32 1.442695, %v2455_v58  ;;  %v2412_v4 = vmul.f32 1.442695, %v2352_v49  ;;  %v2146_v46 = vpop.xlane.xlu1 %2145 }
 0x468   :  { %v3586_v56 = vpop.eup %3585  ;;  %v2553_v51 = vadd.f32 %v7019_v29, %v7017_v19  ;;  %v2355_v45 = vsub.f32 %v2253_v31, %v2321_v57  ;;  %v2457_v62 = vsub.f32 %v2287_v13, %v2321_v57  ;;  %v2254_v58 = vmax.f32 %v7015_v33, 0.0 }
 0x469   :  { %v7025_v60 = vpop.eup %3587  ;;  %v7028_v22 = vmul.f32 %v3586_v56, %v6952_v11  ;;  %v7031_v44 = vmul.f32 %v3586_v56, %v6960_v41  ;;  %3605 = vpow2.f32 %v2414_v32  ;;  %v2514_v37 = vmul.f32 1.442695, %v2454_v7  ;;  %v2143_v41 = vpop.xlane.xlu0 %2142 }
 0x46a   :  { %v7034_v48 = vpop.eup %3589  ;;  %3607 = vrcp.f32 %v2553_v51  ;;  %v2418_v47 = vmul.f32 1.442695, %v2355_v45  ;;  %v2354_v49 = vsub.f32 %v2252_v55, %v2320_v2  ;;  %v2520_v33 = vmul.f32 1.442695, %v2457_v62 }
 0x46b   :  { %8226 = vst [vmem:[#allocation15_spill] sm:$0xff] %v7031_v44  ;;  %v7036_v31 = vpop.eup %3591  ;;  %v2648_v57 = vmax.f32 %v7028_v22, %v2649_v3  ;;  %v2932_v13 = vmax.f32 %v7031_v44, %v2933_v27  ;;  %v2552_v11 = vadd.f32 %v7034_v48, %v7025_v60  ;;  %3609 = vpow2.f32 %v2516_v59 }
 0x46c   :  { %v3594_v32 = vpop.eup %3593  ;;  %3611 = vpow2.f32 %v2412_v4  ;;  %v2456_v56 = vsub.f32 %v2286_v8, %v2320_v2  ;;  %v2189_v51 = vadd.f32 %v6630_v10, %v2050_v18  ;;  %v7052_v27 = vadd.f32 %v6630_v10, %v2047_v50  ;;  %v2152_v2 = vpop.xlane.xlu1 %2151 }
 0x46d   :  { %v7043_v7 = vpop.eup %3595  ;;  %v7046_v55 = vmul.f32 %v3594_v32, %v6974_v23  ;;  %v7049_v3 = vmul.f32 %v3594_v32, %v6976_v40  ;;  %3613 = vrcp.f32 %v2552_v11  ;;  %v2221_v18 = vadd.f32 %v6630_v10, %v2146_v46 }
 0x46e   :  { %v7054_v59 = vpop.eup %3597  ;;  %v2555_v4 = vadd.f32 %v7043_v7, %v7036_v31  ;;  %3615 = vpow2.f32 %v2514_v37  ;;  %v2220_v8 = vadd.f32 %v6630_v10, %v2143_v41  ;;  %v2416_v62 = vmul.f32 1.442695, %v2354_v49 }
 0x46f   :  { %8227 = vst [vmem:[#allocation16_spill] sm:$0xff] %v7049_v3  ;;  %v2651_v45 = vmax.f32 %v7046_v55, %v2648_v57  ;;  %v2935_v40 = vmax.f32 %v7049_v3, %v2932_v13  ;;  %3617 = vpow2.f32 %v2418_v47  ;;  %v2289_v46 = vmax.f32 %v2221_v18, 0.0  ;;  %v2149_v57 = vpop.xlane.xlu0 %2148 }
 0x470   :  { %v3600_v23 = vpop.eup %3599  ;;  %3619 = vrcp.f32 %v2555_v4  ;;  %v2518_v37 = vmul.f32 1.442695, %v2456_v56  ;;  %v2288_v41 = vmax.f32 %v2220_v8, 0.0  ;;  %v2223_v44 = vadd.f32 %v6630_v10, %v2152_v2 }
 0x471   :  { %v7062_v50 = vpop.eup %3601  ;;  %v7065_v11 = vmul.f32 %v3600_v23, %v6983_v39  ;;  %v7068_v32 = vmul.f32 %v3600_v23, %v6988_v14  ;;  %3621 = vpow2.f32 %v2520_v33  ;;  %v2257_v43 = vmax.f32 %v2189_v51, 0.0 }
 0x472   :  { %v2256_v47 = vmax.f32 %v7052_v27, 0.0  ;;  %v3604_v49 = vpop.eup %3603  ;;  %v2554_v13 = vadd.f32 %v7062_v50, %v7054_v59  ;;  %v8228_v39 = vmax.f32 %v7011_v63, 0.0  ;;  %v2322_v14 = vmax.f32 %v2254_v58, %v2288_v41 }
 0x473   :  { %v2291_v23 = vmax.f32 %v2223_v44, 0.0  ;;  %v2650_v4 = vmax.f32 %v7065_v11, %v2651_v45  ;;  %v2934_v33 = vmax.f32 %v7068_v32, %v2935_v40  ;;  %3623 = vpow2.f32 %v2416_v62 }
 0x474   :  { %v2323_v3 = vmax.f32 %v8228_v39, %v2289_v46  ;;  %v2222_v56 = vadd.f32 %v6630_v10, %v2149_v57  ;;  %3625 = vpow2.f32 %v2518_v37  ;;  %v8229_v51 = vmov %v8228_v39 }
 0x475   :  { %v2356_v8 = vsub.f32 %v2254_v58, %v2322_v14  ;;  %v7084_v42 = vmul.f32 %v3604_v49, %v6995_v38  ;;  %v2458_v39 = vsub.f32 %v2288_v41, %v2322_v14  ;;  %v2325_v44 = vmax.f32 %v2257_v43, %v2291_v23 }
 0x476   :  { %v2357_v27 = vsub.f32 %v8229_v51, %v2323_v3  ;;  %v2459_v18 = vsub.f32 %v2289_v46, %v2323_v3  ;;  %v7081_v2 = vpop.eup %3605  ;;  %v2290_v25 = vmax.f32 %v2222_v56, 0.0  ;;  %v7087_v40 = vmul.f32 %v3604_v49, %v7004_v5 }
 0x477   :  { %v3608_v45 = vpop.eup %3607  ;;  %3627 = vrcp.f32 %v2554_v13  ;;  %v2420_v58 = vmul.f32 1.442695, %v2356_v8  ;;  %v2522_v3 = vmul.f32 1.442695, %v2458_v39  ;;  %v2359_v46 = vsub.f32 %v2257_v43, %v2325_v44 }
 0x478   :  { %v2422_v10 = vmul.f32 1.442695, %v2357_v27  ;;  %v2524_v62 = vmul.f32 1.442695, %v2459_v18  ;;  %v3610_v37 = vpop.eup %3609  ;;  %v7090_v63 = vmul.f32 %v3608_v45, %v7019_v29  ;;  %v2461_v41 = vsub.f32 %v2291_v23, %v2325_v44 }
 0x479   :  { %v7092_v57 = vpop.eup %3611  ;;  %v2557_v38 = vadd.f32 %v3610_v37, %v7081_v2  ;;  %v2324_v14 = vmax.f32 %v2256_v47, %v2290_v25  ;;  %v2653_v5 = vmax.f32 %v7084_v42, %v2650_v4  ;;  %v7097_v49 = vmul.f32 %v3608_v45, %v7017_v19 }
 0x47a   :  { %3629 = vpow2.f32 %v2422_v10  ;;  %v3614_v56 = vpop.eup %3613  ;;  %v2937_v29 = vmax.f32 %v7087_v40, %v2934_v33  ;;  %v2426_v51 = vmul.f32 1.442695, %v2359_v46  ;;  %v2528_v43 = vmul.f32 1.442695, %v2461_v41 }
 0x47b   :  { %3631 = vpow2.f32 %v2524_v62  ;;  %v3616_v13 = vpop.eup %3615  ;;  %v2358_v8 = vsub.f32 %v2256_v47, %v2324_v14  ;;  %v2460_v23 = vsub.f32 %v2290_v25, %v2324_v14  ;;  %v2652_v19 = vmax.f32 %v7097_v49, %v2653_v5 }
 0x47c   :  { %3633 = vrcp.f32 %v2557_v38  ;;  %v3618_v27 = vpop.eup %3617  ;;  %v2556_v18 = vadd.f32 %v3616_v13, %v7092_v57  ;;  %v2936_v44 = vmax.f32 %v7090_v63, %v2937_v29  ;;  %v7104_v33 = vmul.f32 %v3614_v56, %v7034_v48 }
 0x47d   :  { %3635 = vpow2.f32 %v2420_v58  ;;  %v3620_v39 = vpop.eup %3619  ;;  %v2424_v45 = vmul.f32 1.442695, %v2358_v8  ;;  %v2526_v62 = vmul.f32 1.442695, %v2460_v23  ;;  %v7107_v46 = vmul.f32 %v3614_v56, %v7025_v60 }
 0x47e   :  { %3637 = vpow2.f32 %v2522_v3  ;;  %v3622_v4 = vpop.eup %3621  ;;  %v2939_v47 = vmax.f32 %v7104_v33, %v2936_v44  ;;  %v7111_v58 = vmul.f32 %v3620_v39, %v7043_v7  ;;  %v7115_v48 = vmul.f32 %v3620_v39, %v7036_v31 }
 0x47f   :  { %3639 = vrcp.f32 %v2556_v18  ;;  %v2559_v10 = vadd.f32 %v3622_v4, %v3618_v27  ;;  %v2655_v38 = vmax.f32 %v7107_v46, %v2652_v19 }
 0x480   :  { %3641 = vpow2.f32 %v2426_v51  ;;  %v3624_v25 = vpop.eup %3623  ;;  %8230 = vst [vmem:[#allocation17_spill] sm:$0xff] %v7111_v58  ;;  %v2938_v60 = vmax.f32 %v7111_v58, %v2939_v47 }
 0x481   :  { %3643 = vpow2.f32 %v2528_v43  ;;  %v3626_v3 = vpop.eup %3625  ;;  %v2654_v5 = vmax.f32 %v7115_v48, %v2655_v38 }
 0x482   :  { %3645 = vrcp.f32 %v2559_v10  ;;  %v2558_v41 = vadd.f32 %v3626_v3, %v3624_v25 }
 0x483   :  { %3647 = vpow2.f32 %v2424_v45 }
 0x484   :  { %3649 = vpow2.f32 %v2526_v62  ;;  %v3628_v14 = vpop.eup %3627 }
 0x485   :  { %3651 = vrcp.f32 %v2558_v41  ;;  %v7120_v7 = vmul.f32 %v3628_v14, %v7062_v50  ;;  %v7123_v43 = vmul.f32 %v3628_v14, %v7054_v59 }
 0x487   :  { %v3630_v56 = vpop.eup %3629  ;;  %8231 = vst [vmem:[#allocation18_spill] sm:$0xff] %v7120_v7  ;;  %v2941_v8 = vmax.f32 %v7120_v7, %v2938_v60  ;;  %v2657_v19 = vmax.f32 %v7123_v43, %v2654_v5 }
 0x488   :  { %v3632_v29 = vpop.eup %3631 }
 0x489   :  { %v3634_v51 = vpop.eup %3633  ;;  %v2561_v31 = vadd.f32 %v3632_v29, %v3630_v56 }
 0x48a   :  { %v3636_v18 = vpop.eup %3635  ;;  %v7127_v23 = vmul.f32 %v3634_v51, %v7081_v2  ;;  %v7129_v39 = vmul.f32 %v3634_v51, %v3610_v37 }
 0x48b   :  { %v3638_v44 = vpop.eup %3637  ;;  %3653 = vrcp.f32 %v2561_v31 }
 0x48c   :  { %8232 = vst [vmem:[#allocation19_spill] sm:$0xff] %v7129_v39  ;;  %v3640_v45 = vpop.eup %3639  ;;  %v2940_v50 = vmax.f32 %v7129_v39, %v2941_v8  ;;  %v2560_v10 = vadd.f32 %v3638_v44, %v3636_v18  ;;  %v2656_v59 = vmax.f32 %v7127_v23, %v2657_v19 }
 0x48d   :  { %v3642_v62 = vpop.eup %3641  ;;  %v7134_v47 = vmul.f32 %v3640_v45, %v3616_v13  ;;  %v7137_v2 = vmul.f32 %v3640_v45, %v7092_v57 }
 0x48e   :  { %v3644_v38 = vpop.eup %3643  ;;  %3655 = vrcp.f32 %v2560_v10 }
 0x48f   :  { %v3646_v41 = vpop.eup %3645  ;;  %v2943_v37 = vmax.f32 %v7134_v47, %v2940_v50  ;;  %v2563_v14 = vadd.f32 %v3644_v38, %v3642_v62  ;;  %v2659_v31 = vmax.f32 %v7137_v2, %v2656_v59 }
 0x490   :  { %v3648_v60 = vpop.eup %3647  ;;  %v7140_v5 = vmul.f32 %v3646_v41, %v3622_v4  ;;  %v7143_v8 = vmul.f32 %v3646_v41, %v3618_v27 }
 0x491   :  { %v3650_v51 = vpop.eup %3649  ;;  %3657 = vrcp.f32 %v2563_v14 }
 0x492   :  { %v2942_v13 = vmax.f32 %v7140_v5, %v2943_v37  ;;  %v2562_v19 = vadd.f32 %v3650_v51, %v3648_v60  ;;  %v3652_v10 = vpop.eup %3651  ;;  %v2658_v57 = vmax.f32 %v7143_v8, %v2659_v31 }
 0x493   :  { %v7146_v39 = vmul.f32 %v3652_v10, %v3626_v3  ;;  %v7150_v50 = vmul.f32 %v3652_v10, %v3624_v25 }
 0x494   :  { %3659 = vrcp.f32 %v2562_v19 }
 0x495   :  { %v2947_v45 = vmax.f32 %v2942_v13, %v7146_v39  ;;  %v2663_v58 = vmax.f32 %v2658_v57, %v7150_v50 }
 0x498   :  { %v3654_v4 = vpop.eup %3653 }
 0x499   :  { %v7153_v59 = vmul.f32 %v3654_v4, %v3630_v56  ;;  %v7155_v27 = vmul.f32 %v3654_v4, %v3632_v29 }
 0x49b   :  { %v3656_v41 = vpop.eup %3655  ;;  %v2661_v37 = vmax.f32 %v7153_v59, %v2663_v58  ;;  %v2945_v3 = vmax.f32 %v7155_v27, %v2947_v45 }
 0x49c   :  { %v7159_v14 = vmul.f32 %v3656_v41, %v3636_v18  ;;  %v7161_v19 = vmul.f32 %v3656_v41, %v3638_v44 }
 0x49e   :  { %v3658_v31 = vpop.eup %3657  ;;  %v2660_v25 = vmax.f32 %v7159_v14, %v2661_v37  ;;  %v2944_v13 = vmax.f32 %v7161_v19, %v2945_v3 }
 0x49f   :  { %v7165_v10 = vmul.f32 %v3658_v31, %v3642_v62  ;;  %v7167_v56 = vmul.f32 %v3658_v31, %v3644_v38 }
 0x4a1   :  { %v3660_v29 = vpop.eup %3659  ;;  %v2662_v57 = vmax.f32 %v2660_v25, %v7165_v10  ;;  %v2946_v58 = vmax.f32 %v2944_v13, %v7167_v56 }
 0x4a2   :  { %v7171_v4 = vmul.f32 %v3660_v29, %v3648_v60  ;;  %v7173_v18 = vmul.f32 %v3660_v29, %v3650_v51 }
 0x4a4   :  { %v2664_v44 = vmax.f32 %v2662_v57, %v7171_v4  ;;  %v2948_v45 = vmax.f32 %v2946_v58, %v7173_v18 }
 0x4a6   :  { %v2665_v41 = vrot.slane %v2664_v44, 4  ;;  %v2949_v25 = vrot.slane %v2948_v45, 4 }
 0x4a8   :  { %v2666_v37 = vmax.f32 %v2664_v44, %v2665_v41 }
 0x4aa   :  { %v2667_v3 = vrot.slane %v2666_v37, 2 }
 0x4ac   :  { %v2668_v62 = vmax.f32 %v2666_v37, %v2667_v3 }
 0x4ae   :  { %v2669_v7 = vrot.slane %v2668_v62, 1 }
 0x4b0   :  { %v7177_v38 = vmax.f32 %v2668_v62, %v2669_v7  ;;  %v2950_v7 = vmax.f32 %v2948_v45, %v2949_v25 }
 0x4b2   :  { %v2671_v31 = vsub.f32 %v6689_v34, %v7177_v38  ;;  %v2672_v60 = vsub.f32 %v6681_v52, %v7177_v38  ;;  %v2673_v51 = vsub.f32 %v6777_v20, %v7177_v38  ;;  %v2674_v13 = vsub.f32 %v6769_v15, %v7177_v38 }
 0x4b3   :  { %v2675_v44 = vsub.f32 %v6724_v54, %v7177_v38  ;;  %v2676_v52 = vsub.f32 %v6704_v35, %v7177_v38  ;;  %v2951_v20 = vrot.slane %v2950_v7, 2  ;;  %v2677_v15 = vsub.f32 %v6796_v61, %v7177_v38 }
 0x4b4   :  { %v2705_v57 = vmul.f32 1.442695, %v2671_v31  ;;  %v2707_v58 = vmul.f32 1.442695, %v2672_v60  ;;  %v2709_v34 = vmul.f32 1.442695, %v2673_v51  ;;  %v2678_v3 = vsub.f32 %v6782_v30, %v7177_v38 }
 0x4b5   :  { %v2711_v41 = vmul.f32 1.442695, %v2674_v13  ;;  %v2713_v37 = vmul.f32 1.442695, %v2675_v44  ;;  %v2715_v45 = vmul.f32 1.442695, %v2676_v52  ;;  %v2952_v62 = vmax.f32 %v2950_v7, %v2951_v20 }
 0x4b6   :  { %3661 = vpow2.f32 %v2705_v57  ;;  %v2679_v54 = vsub.f32 %v6829_v17, %v7177_v38  ;;  %v2717_v31 = vmul.f32 1.442695, %v2677_v15  ;;  %v2680_v35 = vsub.f32 %v6818_v26, %v7177_v38  ;;  %v8248_v15 = vld [vmem:[#allocation12_spill] sm:$0xff] }
 0x4b7   :  { %3663 = vpow2.f32 %v2707_v58  ;;  %v2719_v60 = vmul.f32 1.442695, %v2678_v3  ;;  %v2953_v25 = vrot.slane %v2952_v62, 1  ;;  %v2681_v61 = vsub.f32 %v6886_v36, %v7177_v38 }
 0x4b8   :  { %3665 = vpow2.f32 %v2709_v34  ;;  %v2721_v51 = vmul.f32 1.442695, %v2679_v54  ;;  %v2682_v13 = vsub.f32 %v6867_v21, %v7177_v38  ;;  %v2723_v17 = vmul.f32 1.442695, %v2680_v35 }
 0x4b9   :  { %3667 = vpow2.f32 %v2711_v41  ;;  %v7209_v58 = vmax.f32 %v2952_v62, %v2953_v25  ;;  %v2683_v26 = vsub.f32 %v6914_v53, %v7177_v38  ;;  %v2725_v7 = vmul.f32 1.442695, %v2681_v61 }
 0x4ba   :  { %3669 = vpow2.f32 %v2713_v37  ;;  %v2684_v34 = vsub.f32 %v6900_v0, %v7177_v38  ;;  %v2727_v21 = vmul.f32 1.442695, %v2682_v13  ;;  %v2685_v20 = vsub.f32 %v6955_v16, %v7177_v38 }
 0x4bb   :  { %3671 = vpow2.f32 %v2715_v45  ;;  %v2686_v53 = vsub.f32 %v6929_v1, %v7177_v38  ;;  %v2729_v37 = vmul.f32 1.442695, %v2683_v26  ;;  %v2687_v61 = vsub.f32 %v6991_v28, %v7177_v38 }
 0x4bc   :  { %3673 = vpow2.f32 %v2717_v31  ;;  %v2731_v62 = vmul.f32 1.442695, %v2684_v34  ;;  %v2688_v26 = vsub.f32 %v6969_v24, %v7177_v38  ;;  %v2955_v28 = vsub.f32 %v6692_v12, %v7209_v58 }
 0x4bd   :  { %3675 = vpow2.f32 %v2719_v60  ;;  %v2957_v12 = vsub.f32 %v6802_v9, %v7209_v58  ;;  %v2702_v16 = vsub.f32 %v7153_v59, %v7177_v38 }
 0x4be   :  { %3677 = vpow2.f32 %v2721_v51  ;;  %v2733_v51 = vmul.f32 1.442695, %v2685_v20 }
 0x4bf   :  { %3679 = vpow2.f32 %v2723_v17 }
 0x4c0   :  { %3681 = vpow2.f32 %v2725_v7  ;;  %v2689_v7 = vsub.f32 %v7046_v55, %v7177_v38  ;;  %v2690_v55 = vsub.f32 %v7028_v22, %v7177_v38 }
 0x4c1   :  { %3683 = vpow2.f32 %v2727_v21 }
 0x4c2   :  { %3685 = vpow2.f32 %v2729_v37  ;;  %v2956_v37 = vsub.f32 %v6684_v6, %v7209_v58  ;;  %v2743_v9 = vmul.f32 1.442695, %v2690_v55 }
 0x4c3   :  { %v7203_v30 = vpop.eup %3661  ;;  %3687 = vpow2.f32 %v2731_v62 }
 0x4c4   :  { %v7207_v57 = vpop.eup %3663  ;;  %3689 = vpow2.f32 %v2733_v51  ;;  %v2989_v51 = vmul.f32 1.442695, %v2955_v28 }
 0x4c5   :  { %v2773_v36 = vadd.f32 %v7207_v57, %v7203_v30  ;;  %v7215_v44 = vpop.eup %3665 }
 0x4c6   :  { %v7220_v41 = vpop.eup %3667 }
 0x4c7   :  { %v2774_v52 = vadd.f32 %v7215_v44, %v2773_v36  ;;  %v7231_v45 = vpop.eup %3669  ;;  %v2735_v36 = vmul.f32 1.442695, %v2686_v53  ;;  %v2739_v53 = vmul.f32 1.442695, %v2688_v26  ;;  %v2991_v26 = vmul.f32 1.442695, %v2956_v37 }
 0x4c8   :  { %v7244_v25 = vpop.eup %3671 }
 0x4c9   :  { %v2775_v3 = vadd.f32 %v7220_v41, %v2774_v52  ;;  %v7249_v17 = vpop.eup %3673  ;;  %v2737_v52 = vmul.f32 1.442695, %v2687_v61  ;;  %3691 = vpow2.f32 %v2735_v36  ;;  %v2691_v61 = vsub.f32 %v7084_v42, %v7177_v38  ;;  %v8234_v42 = vld [vmem:[#allocation27_spill] sm:$0xff] }
 0x4ca   :  { %v7256_v21 = vpop.eup %3675  ;;  %v2959_v28 = vsub.f32 %v8234_v42, %v7209_v58 }
 0x4cb   :  { %v2776_v31 = vadd.f32 %v7231_v45, %v2775_v3  ;;  %v7263_v24 = vpop.eup %3677  ;;  %v2741_v3 = vmul.f32 1.442695, %v2689_v7  ;;  %3693 = vpow2.f32 %v2737_v52  ;;  %v2692_v7 = vsub.f32 %v7065_v11, %v7177_v38  ;;  %v8235_v11 = vld [vmem:[#allocation26_spill] sm:$0xff] }
 0x4cc   :  { %3695 = vpow2.f32 %v2739_v53  ;;  %v2993_v52 = vmul.f32 1.442695, %v2957_v12  ;;  %v2745_v37 = vmul.f32 1.442695, %v2691_v61  ;;  %v2960_v53 = vsub.f32 %v8235_v11, %v7209_v58 }
 0x4cd   :  { %v2777_v13 = vadd.f32 %v7244_v25, %v2776_v31  ;;  %v7270_v31 = vpop.eup %3679  ;;  %3697 = vpow2.f32 %v2741_v3  ;;  %v2747_v12 = vmul.f32 1.442695, %v2692_v7 }
 0x4ce   :  { %v7277_v36 = vpop.eup %3681  ;;  %3699 = vpow2.f32 %v2989_v51  ;;  %v2997_v51 = vmul.f32 1.442695, %v2959_v28  ;;  %v2999_v7 = vmul.f32 1.442695, %v2960_v53 }
 0x4cf   :  { %v2778_v34 = vadd.f32 %v7249_v17, %v2777_v13  ;;  %v8233_v13 = vld [vmem:[#allocation5_spill] sm:$0xff]  ;;  %3701 = vpow2.f32 %v2991_v26  ;;  %v2695_v26 = vsub.f32 %v7123_v43, %v7177_v38  ;;  %v8238_v43 = vld [vmem:[#allocation8_spill] sm:$0xff] }
 0x4d0   :  { %v2958_v22 = vsub.f32 %v8233_v13, %v7209_v58  ;;  %3703 = vpow2.f32 %v2743_v9 }
 0x4d1   :  { %v2779_v20 = vadd.f32 %v7256_v21, %v2778_v34  ;;  %3705 = vpow2.f32 %v2993_v52  ;;  %v2696_v52 = vsub.f32 %v7115_v48, %v7177_v38  ;;  %v2753_v53 = vmul.f32 1.442695, %v2695_v26  ;;  %v8239_v48 = vld [vmem:[#allocation7_spill] sm:$0xff] }
 0x4d2   :  { %v2995_v55 = vmul.f32 1.442695, %v2958_v22  ;;  %3707 = vpow2.f32 %v2745_v37  ;;  %v2963_v37 = vsub.f32 %v8238_v43, %v7209_v58  ;;  %v8240_v26 = vld [vmem:[#allocation31_spill] sm:$0xff] }
 0x4d3   :  { %v2780_v62 = vadd.f32 %v7263_v24, %v2779_v20  ;;  %v7284_v20 = vpop.eup %3683 }
 0x4d4   :  { %v7291_v3 = vpop.eup %3685  ;;  %3709 = vpow2.f32 %v2995_v55  ;;  %v2697_v55 = vsub.f32 %v7137_v2, %v7177_v38 }
 0x4d5   :  { %v2781_v6 = vadd.f32 %v7270_v31, %v2780_v62  ;;  %v2693_v62 = vsub.f32 %v7107_v46, %v7177_v38  ;;  %v8236_v46 = vld [vmem:[#allocation14_spill] sm:$0xff]  ;;  %3711 = vpow2.f32 %v2747_v12  ;;  %v2964_v12 = vsub.f32 %v8239_v48, %v7209_v58 }
 0x4d6   :  { %v2961_v61 = vsub.f32 %v8236_v46, %v7209_v58  ;;  %3713 = vpow2.f32 %v2997_v51  ;;  %v2698_v51 = vsub.f32 %v7127_v23, %v7177_v38 }
 0x4d7   :  { %v2782_v34 = vadd.f32 %v7277_v36, %v2781_v6  ;;  %v2694_v6 = vsub.f32 %v7097_v49, %v7177_v38  ;;  %v2749_v22 = vmul.f32 1.442695, %v2693_v62  ;;  %v8237_v49 = vld [vmem:[#allocation6_spill] sm:$0xff] }
 0x4d8   :  { %v2962_v9 = vsub.f32 %v8237_v49, %v7209_v58  ;;  %v3001_v62 = vmul.f32 1.442695, %v2961_v61  ;;  %v2755_v61 = vmul.f32 1.442695, %v2696_v52  ;;  %v8241_v52 = vld [vmem:[#allocation30_spill] sm:$0xff] }
 0x4d9   :  { %v2783_v13 = vadd.f32 %v7284_v20, %v2782_v34  ;;  %v7298_v34 = vpop.eup %3687  ;;  %v2751_v28 = vmul.f32 1.442695, %v2694_v6  ;;  %3715 = vpow2.f32 %v2749_v22  ;;  %v2965_v22 = vsub.f32 %v8240_v26, %v7209_v58 }
 0x4da   :  { %3717 = vpow2.f32 %v2999_v7  ;;  %v3003_v6 = vmul.f32 1.442695, %v2962_v9  ;;  %v2699_v9 = vsub.f32 %v7150_v50, %v7177_v38  ;;  %v2757_v7 = vmul.f32 1.442695, %v2697_v55  ;;  %v8242_v50 = vld [vmem:[#allocation10_spill] sm:$0xff] }
 0x4db   :  { %v2784_v42 = vadd.f32 %v7291_v3, %v2783_v13  ;;  %v7305_v13 = vpop.eup %3689  ;;  %3719 = vpow2.f32 %v2751_v28  ;;  %v2966_v28 = vsub.f32 %v8241_v52, %v7209_v58  ;;  %v2701_v52 = vsub.f32 %v7159_v14, %v7177_v38 }
 0x4dc   :  { %3721 = vpow2.f32 %v3001_v62  ;;  %v2759_v62 = vmul.f32 1.442695, %v2698_v51  ;;  %v8243_v51 = vld [vmem:[#allocation9_spill] sm:$0xff] }
 0x4dd   :  { %v2785_v11 = vadd.f32 %v7298_v34, %v2784_v42  ;;  %v7312_v42 = vpop.eup %3691  ;;  %3723 = vpow2.f32 %v2753_v53  ;;  %v2967_v53 = vsub.f32 %v8242_v50, %v7209_v58  ;;  %v2765_v59 = vmul.f32 1.442695, %v2701_v52 }
 0x4df   :  { %v2786_v46 = vadd.f32 %v7305_v13, %v2785_v11  ;;  %v7319_v11 = vpop.eup %3693  ;;  %3725 = vpow2.f32 %v3003_v6 }
 0x4e0   :  { %v7323_v43 = vpop.eup %3695  ;;  %3727 = vpow2.f32 %v2755_v61  ;;  %v2968_v61 = vsub.f32 %v8243_v51, %v7209_v58 }
 0x4e1   :  { %v2787_v49 = vadd.f32 %v7312_v42, %v2786_v46  ;;  %v3005_v46 = vmul.f32 1.442695, %v2963_v37  ;;  %v7328_v60 = vpop.eup %3697  ;;  %v2700_v37 = vsub.f32 %v7143_v8, %v7177_v38  ;;  %v2761_v8 = vmul.f32 1.442695, %v2699_v9  ;;  %v8244_v9 = vld [vmem:[#allocation11_spill] sm:$0xff] }
 0x4e2   :  { %v7332_v48 = vpop.eup %3699 }
 0x4e3   :  { %v2788_v2 = vadd.f32 %v7319_v11, %v2787_v49  ;;  %v3007_v49 = vmul.f32 1.442695, %v2964_v12  ;;  %v7337_v35 = vpop.eup %3701  ;;  %3729 = vpow2.f32 %v3005_v46  ;;  %v3011_v46 = vmul.f32 1.442695, %v2966_v28 }
 0x4e4   :  { %v7343_v55 = vpop.eup %3703  ;;  %v3057_v6 = vadd.f32 %v7337_v35, %v7332_v48  ;;  %3731 = vpow2.f32 %v2757_v7  ;;  %v2763_v14 = vmul.f32 1.442695, %v2700_v37  ;;  %v2969_v7 = vsub.f32 %v8244_v9, %v7209_v58  ;;  %v8246_v37 = vld [vmem:[#allocation32_spill] sm:$0xff] }
 0x4e5   :  { %v2789_v23 = vadd.f32 %v7323_v43, %v2788_v2  ;;  %v3009_v2 = vmul.f32 1.442695, %v2965_v22  ;;  %v7348_v12 = vpop.eup %3705  ;;  %3733 = vpow2.f32 %v3007_v49 }
 0x4e6   :  { %v7354_v50 = vpop.eup %3707  ;;  %v3058_v22 = vadd.f32 %v7348_v12, %v3057_v6  ;;  %3735 = vpow2.f32 %v2759_v62  ;;  %v2703_v6 = vsub.f32 %v7171_v4, %v7177_v38  ;;  %v2970_v62 = vsub.f32 %v8246_v37, %v7209_v58 }
 0x4e7   :  { %v2790_v26 = vadd.f32 %v7328_v60, %v2789_v23  ;;  %v7358_v23 = vpop.eup %3709  ;;  %3737 = vpow2.f32 %v3009_v2  ;;  %v2971_v4 = vsub.f32 %v8248_v15, %v7209_v58  ;;  %v3017_v37 = vmul.f32 1.442695, %v2969_v7 }
 0x4e8   :  { %v7364_v54 = vpop.eup %3711  ;;  %v3059_v28 = vadd.f32 %v7358_v23, %v3058_v22  ;;  %3739 = vpow2.f32 %v2761_v8  ;;  %v2767_v22 = vmul.f32 1.442695, %v2702_v16  ;;  %v3019_v15 = vmul.f32 1.442695, %v2970_v62 }
 0x4e9   :  { %v2791_v1 = vadd.f32 %v7343_v55, %v2790_v26  ;;  %v3013_v26 = vmul.f32 1.442695, %v2967_v53  ;;  %v7368_v49 = vpop.eup %3713  ;;  %3741 = vpow2.f32 %v3011_v46  ;;  %v8250_v46 = vld [vmem:[#allocation33_spill] sm:$0xff]  ;;  %v8252_v7 = vsub.f32 %v7165_v10, %v7177_v38 }
 0x4ea   :  { %8245 = vst [vmem:[#allocation20_spill] sm:$0xff] %v7368_v49  ;;  %v7374_v0 = vpop.eup %3715  ;;  %v3060_v53 = vadd.f32 %v7368_v49, %v3059_v28  ;;  %3743 = vpow2.f32 %v2763_v14  ;;  %v2972_v28 = vsub.f32 %v8250_v46, %v7209_v58 }
 0x4eb   :  { %v2792_v51 = vadd.f32 %v7354_v50, %v2791_v1  ;;  %v3015_v1 = vmul.f32 1.442695, %v2968_v61  ;;  %v7378_v2 = vpop.eup %3717  ;;  %3745 = vpow2.f32 %v3013_v26  ;;  %v2769_v61 = vmul.f32 1.442695, %v2703_v6  ;;  %v8253_v6 = vld [vmem:[#allocation16_spill] sm:$0xff] }
 0x4ec   :  { %8247 = vst [vmem:[#allocation21_spill] sm:$0xff] %v7378_v2  ;;  %v7382_v8 = vpop.eup %3719  ;;  %v3061_v29 = vadd.f32 %v7378_v2, %v3060_v53  ;;  %3747 = vpow2.f32 %v2765_v59  ;;  %v2771_v26 = vmul.f32 1.442695, %v8252_v7  ;;  %v2973_v59 = vsub.f32 %v8253_v6, %v7209_v58 }
 0x4ed   :  { %v2793_v9 = vadd.f32 %v7364_v54, %v2792_v51  ;;  %v7386_v51 = vpop.eup %3721  ;;  %3749 = vpow2.f32 %v3015_v1  ;;  %v3023_v38 = vmul.f32 1.442695, %v2972_v28  ;;  %v2976_v28 = vsub.f32 %v7068_v32, %v7209_v58 }
 0x4ee   :  { %8249 = vst [vmem:[#allocation13_spill] sm:$0xff] %v7386_v51  ;;  %v7390_v14 = vpop.eup %3723  ;;  %v3062_v49 = vadd.f32 %v7386_v51, %v3061_v29  ;;  %3751 = vpow2.f32 %v2767_v22  ;;  %v8255_v29 = vld [vmem:[#allocation15_spill] sm:$0xff] }
 0x4ef   :  { %v2794_v52 = vadd.f32 %v7374_v0, %v2793_v9  ;;  %v7394_v9 = vpop.eup %3725  ;;  %3753 = vpow2.f32 %v3017_v37  ;;  %v2974_v22 = vsub.f32 %v8255_v29, %v7209_v58 }
 0x4f0   :  { %8251 = vst [vmem:[#allocation22_spill] sm:$0xff] %v7394_v9  ;;  %v7401_v53 = vpop.eup %3727  ;;  %v3063_v62 = vadd.f32 %v7394_v9, %v3062_v49  ;;  %3755 = vpow2.f32 %v2769_v61  ;;  %v2975_v49 = vsub.f32 %v7087_v40, %v7209_v58  ;;  %v3025_v61 = vmul.f32 1.442695, %v2973_v59 }
 0x4f1   :  { %v2795_v16 = vadd.f32 %v7382_v8, %v2794_v52  ;;  %v3021_v52 = vmul.f32 1.442695, %v2971_v4  ;;  %v7405_v1 = vpop.eup %3729  ;;  %3757 = vpow2.f32 %v3019_v15  ;;  %v2977_v59 = vsub.f32 %v7104_v33, %v7209_v58 }
 0x4f2   :  { %8254 = vst [vmem:[#allocation23_spill] sm:$0xff] %v7405_v1  ;;  %v7409_v51 = vpop.eup %3731  ;;  %v3064_v7 = vadd.f32 %v7405_v1, %v3063_v62  ;;  %3759 = vpow2.f32 %v2771_v26 }
 0x4f3   :  { %v2796_v46 = vadd.f32 %v7390_v14, %v2795_v16  ;;  %v7413_v6 = vpop.eup %3733  ;;  %3761 = vpow2.f32 %v3021_v52 }
 0x4f4   :  { %8256 = vst [vmem:[#allocation34_spill] sm:$0xff] %v7413_v6  ;;  %v7417_v4 = vpop.eup %3735  ;;  %v3065_v16 = vadd.f32 %v7413_v6, %v3064_v7  ;;  %3763 = vpow2.f32 %v3023_v38  ;;  %v3029_v7 = vmul.f32 1.442695, %v2975_v49 }
 0x4f5   :  { %v2797_v10 = vadd.f32 %v7401_v53, %v2796_v46  ;;  %v7421_v29 = vpop.eup %3737  ;;  %v3027_v46 = vmul.f32 1.442695, %v2974_v22  ;;  %3765 = vpow2.f32 %v3025_v61  ;;  %v2978_v22 = vsub.f32 %v7090_v63, %v7209_v58  ;;  %v8261_v61 = vld [vmem:[#allocation18_spill] sm:$0xff] }
 0x4f6   :  { %8257 = vst [vmem:[#allocation25_spill] sm:$0xff] %v7421_v29  ;;  %v7425_v15 = vpop.eup %3739  ;;  %v3066_v40 = vadd.f32 %v7421_v29, %v3065_v16  ;;  %v3031_v16 = vmul.f32 1.442695, %v2976_v28  ;;  %v2979_v49 = vsub.f32 %v8261_v61, %v7209_v58 }
 0x4f7   :  { %v2798_v37 = vadd.f32 %v7409_v51, %v2797_v10  ;;  %v7429_v62 = vpop.eup %3741  ;;  %3767 = vpow2.f32 %v3027_v46  ;;  %v8263_v46 = vld [vmem:[#allocation17_spill] sm:$0xff] }
 0x4f8   :  { %8258 = vst [vmem:[#allocation4_spill] sm:$0xff] %v7429_v62  ;;  %v7433_v52 = vpop.eup %3743  ;;  %v3067_v32 = vadd.f32 %v7429_v62, %v3066_v40  ;;  %3769 = vpow2.f32 %v3029_v7  ;;  %v3033_v62 = vmul.f32 1.442695, %v2977_v59  ;;  %v2980_v28 = vsub.f32 %v8263_v46, %v7209_v58  ;;  %v8265_v46 = vld [vmem:[#allocation19_spill] sm:$0xff] }
 0x4f9   :  { %v2799_v26 = vadd.f32 %v7417_v4, %v2798_v37  ;;  %v7437_v6 = vpop.eup %3745  ;;  %3771 = vpow2.f32 %v3031_v16  ;;  %v3037_v7 = vmul.f32 1.442695, %v2979_v49  ;;  %v2982_v2 = vsub.f32 %v8265_v46, %v7209_v58 }
 0x4fa   :  { %8259 = vst [vmem:[#allocation35_spill] sm:$0xff] %v7437_v6  ;;  %v7441_v38 = vpop.eup %3747  ;;  %v3068_v33 = vadd.f32 %v7437_v6, %v3067_v32  ;;  %v3035_v6 = vmul.f32 1.442695, %v2978_v22  ;;  %3773 = vpow2.f32 %v3033_v62  ;;  %v3039_v22 = vmul.f32 1.442695, %v2980_v28 }
 0x4fb   :  { %v2800_v10 = vadd.f32 %v7425_v15, %v2799_v26  ;;  %v7445_v29 = vpop.eup %3749  ;;  %v8266_v62 = vsub.f32 %v7134_v47, %v7209_v58  ;;  %v3043_v46 = vmul.f32 1.442695, %v2982_v2 }
 0x4fc   :  { %8260 = vst [vmem:[#allocation28_spill] sm:$0xff] %v7445_v29  ;;  %v7449_v26 = vpop.eup %3751  ;;  %v3069_v63 = vadd.f32 %v7445_v29, %v3068_v33  ;;  %3775 = vpow2.f32 %v3035_v6 }
 0x4fd   :  { %v2801_v37 = vadd.f32 %v7433_v52, %v2800_v10  ;;  %v7453_v1 = vpop.eup %3753  ;;  %3777 = vpow2.f32 %v3037_v7  ;;  %v3041_v49 = vmul.f32 1.442695, %v8266_v62  ;;  %v8267_v7 = vsub.f32 %v7146_v39, %v7209_v58 }
 0x4fe   :  { %8262 = vst [vmem:[#allocation29_spill] sm:$0xff] %v7453_v1  ;;  %v7457_v10 = vpop.eup %3755  ;;  %v3070_v61 = vadd.f32 %v7453_v1, %v3069_v63  ;;  %3779 = vpow2.f32 %v3039_v22 }
 0x4ff   :  { %v2802_v40 = vadd.f32 %v7441_v38, %v2801_v37  ;;  %v7461_v9 = vpop.eup %3757  ;;  %3781 = vpow2.f32 %v3041_v49 }
 0x500   :  { %8264 = vst [vmem:[#allocation3_spill] sm:$0xff] %v7461_v9  ;;  %v7463_v37 = vpop.eup %3759  ;;  %v3071_v33 = vadd.f32 %v7461_v9, %v3070_v61  ;;  %3783 = vpow2.f32 %v3043_v46 }
 0x501   :  { %v2803_v32 = vadd.f32 %v7449_v26, %v2802_v40  ;;  %v7467_v29 = vpop.eup %3761 }
 0x502   :  { %v3072_v40 = vadd.f32 %v7467_v29, %v3071_v33  ;;  %v7473_v63 = vpop.eup %3763  ;;  %v3045_v33 = vmul.f32 1.442695, %v8267_v7 }
 0x503   :  { %v2804_v59 = vadd.f32 %v7457_v10, %v2803_v32  ;;  %v7479_v61 = vpop.eup %3765 }
 0x504   :  { %v3073_v32 = vadd.f32 %v7473_v63, %v3072_v40  ;;  %v7482_v28 = vpop.eup %3767  ;;  %3785 = vpow2.f32 %v3045_v33  ;;  %v8270_v33 = vsub.f32 %v7161_v19, %v7209_v58 }
 0x505   :  { %v2805_v16 = vadd.f32 %v7463_v37, %v2804_v59  ;;  %v7488_v62 = vpop.eup %3769 }
 0x506   :  { %v3074_v6 = vadd.f32 %v7479_v61, %v3073_v32  ;;  %v7494_v22 = vpop.eup %3771 }
 0x507   :  { %v2806_v1 = vrot.slane %v2805_v16, 4  ;;  %v7497_v39 = vpop.eup %3773 }
 0x508   :  { %v3075_v47 = vadd.f32 %v7482_v28, %v3074_v6 }
 0x509   :  { %v2807_v9 = vadd.f32 %v2806_v1, %v2805_v16  ;;  %v8268_v1 = vsub.f32 %v7140_v5, %v7209_v58 }
 0x50a   :  { %v3076_v16 = vadd.f32 %v7488_v62, %v3075_v47 }
 0x50b   :  { %v2808_v59 = vrot.slane %v2807_v9, 2  ;;  %v3047_v2 = vmul.f32 1.442695, %v8268_v1  ;;  %v3049_v1 = vmul.f32 1.442695, %v8270_v33 }
 0x50c   :  { %v3077_v49 = vadd.f32 %v7494_v22, %v3076_v16  ;;  %v8271_v16 = vsub.f32 %v7155_v27, %v7209_v58 }
 0x50d   :  { %v2809_v40 = vadd.f32 %v2808_v59, %v2807_v9  ;;  %3787 = vpow2.f32 %v3047_v2  ;;  %v7500_v9 = vpop.eup %3775 }
 0x50e   :  { %v3078_v6 = vadd.f32 %v7497_v39, %v3077_v49  ;;  %v7503_v46 = vpop.eup %3777 }
 0x50f   :  { %v2810_v32 = vrot.slane %v2809_v40, 1  ;;  %v7506_v47 = vpop.eup %3779 }
 0x510   :  { %v3079_v5 = vadd.f32 %v7500_v9, %v3078_v6  ;;  %8269 = vst [vmem:[#allocation24_spill] sm:$0xff] %v7506_v47  ;;  %v7512_v2 = vpop.eup %3781  ;;  %v8272_v6 = vsub.f32 %v7173_v18, %v7209_v58 }
 0x511   :  { %v2811_v7 = vadd.f32 %v2810_v32, %v2809_v40  ;;  %v3051_v32 = vmul.f32 1.442695, %v8271_v16 }
 0x512   :  { %v3080_v59 = vadd.f32 %v7503_v46, %v3079_v5  ;;  %v3053_v5 = vmul.f32 1.442695, %v8272_v6 }
 0x513   :  { %3789 = vrcp.f32 %v2811_v7  ;;  %v7518_v7 = vpop.eup %3783 }
 0x514   :  { %v3081_v40 = vadd.f32 %v7506_v47, %v3080_v59  ;;  %3791 = vpow2.f32 %v3049_v1  ;;  %v7524_v33 = vpop.eup %3785  ;;  %v8273_v59 = vsub.f32 %v7167_v56, %v7209_v58 }
 0x515   :  { %3793 = vpow2.f32 %v3051_v32 }
 0x516   :  { %v3082_v49 = vadd.f32 %v7512_v2, %v3081_v40  ;;  %v3055_v47 = vmul.f32 1.442695, %v8273_v59  ;;  %3795 = vpow2.f32 %v3053_v5 }
 0x518   :  { %v3083_v19 = vadd.f32 %v7518_v7, %v3082_v49  ;;  %3797 = vpow2.f32 %v3055_v47 }
 0x51a   :  { %v3084_v27 = vadd.f32 %v7524_v33, %v3083_v19  ;;  %v7530_v16 = vpop.eup %3787 }
 0x51c   :  { %v7533_v1 = vadd.f32 %v7530_v16, %v3084_v27 }
 0x520   :  { %v3790_v40 = vpop.eup %3789 }
 0x521   :  { %v2813_v18 = vmul.f32 %v3790_v40, %v7203_v30  ;;  %v2814_v49 = vmul.f32 %v3790_v40, %v7207_v57  ;;  %v2815_v6 = vmul.f32 %v3790_v40, %v7215_v44  ;;  %v2816_v56 = vmul.f32 %v3790_v40, %v7220_v41 }
 0x522   :  { %v2817_v58 = vmul.f32 %v3790_v40, %v7231_v45  ;;  %v2818_v32 = vmul.f32 %v3790_v40, %v7244_v25  ;;  %v2819_v5 = vmul.f32 %v3790_v40, %v7249_v17  ;;  %v2820_v19 = vmul.f32 %v3790_v40, %v7256_v21 }
 0x523   :  { %v2821_v59 = vmul.f32 %v3790_v40, %v7263_v24  ;;  %v2822_v47 = vmul.f32 %v3790_v40, %v7270_v31  ;;  %v2823_v30 = vmul.f32 %v3790_v40, %v7277_v36  ;;  %v2824_v57 = vmul.f32 %v3790_v40, %v7284_v20  ;;  %2848 = vst.msk [vmem:[%s7897_s9] sm:$0xff] %vm2847_vm2, %v2813_v18 }
 0x524   :  { %2849 = vst.msk [vmem:[%s7897_s9 + $0x8] sm:$0xff] %vm2847_vm2, %v2814_v49  ;;  %2850 = vst.msk [vmem:[%s7897_s9 + $0x10] sm:$0xff] %vm2847_vm2, %v2815_v6  ;;  %v2825_v44 = vmul.f32 %v3790_v40, %v7291_v3  ;;  %v2826_v41 = vmul.f32 %v3790_v40, %v7298_v34  ;;  %v2827_v45 = vmul.f32 %v3790_v40, %v7305_v13 }
 0x525   :  { %2851 = vst.msk [vmem:[%s7897_s9 + $0x18] sm:$0xff] %vm2847_vm2, %v2816_v56  ;;  %v2828_v25 = vmul.f32 %v3790_v40, %v7312_v42  ;;  %2852 = vst.msk [vmem:[%s7897_s9 + $0x20] sm:$0xff] %vm2847_vm2, %v2817_v58  ;;  %v2829_v17 = vmul.f32 %v3790_v40, %v7319_v11  ;;  %v2830_v21 = vmul.f32 %v3790_v40, %v7323_v43  ;;  %v7643_v42 = vpop.eup %3791 }
 0x526   :  { %2853 = vst.msk [vmem:[%s7897_s9 + $0x28] sm:$0xff] %vm2847_vm2, %v2818_v32  ;;  %2854 = vst.msk [vmem:[%s7897_s9 + $0x30] sm:$0xff] %vm2847_vm2, %v2819_v5  ;;  %v2831_v24 = vmul.f32 %v3790_v40, %v7328_v60  ;;  %v2832_v31 = vmul.f32 %v3790_v40, %v7343_v55  ;;  %v2833_v60 = vmul.f32 %v3790_v40, %v7354_v50  ;;  %v8274_v5 = vld [vmem:[#allocation20_spill] sm:$0xff] }
 0x527   :  { %2855 = vst.msk [vmem:[%s7897_s9 + $0x38] sm:$0xff] %vm2847_vm2, %v2820_v19  ;;  %2856 = vst.msk [vmem:[%s7897_s9 + $0x40] sm:$0xff] %vm2847_vm2, %v2821_v59  ;;  %v2834_v36 = vmul.f32 %v3790_v40, %v7364_v54  ;;  %v2835_v20 = vmul.f32 %v3790_v40, %v7374_v0  ;;  %v2836_v3 = vmul.f32 %v3790_v40, %v7382_v8  ;;  %v8275_v59 = vld [vmem:[#allocation21_spill] sm:$0xff] }
 0x528   :  { %2857 = vst.msk [vmem:[%s7897_s9 + $0x48] sm:$0xff] %vm2847_vm2, %v2822_v47  ;;  %2858 = vst.msk [vmem:[%s7897_s9 + $0x50] sm:$0xff] %vm2847_vm2, %v2823_v30  ;;  %v2837_v0 = vmul.f32 %v3790_v40, %v7390_v14  ;;  %v2838_v54 = vmul.f32 %v3790_v40, %v7401_v53  ;;  %v2839_v34 = vmul.f32 %v3790_v40, %v7409_v51  ;;  %v7685_v53 = vpop.eup %3793  ;;  %v8276_v30 = vld [vmem:[#allocation13_spill] sm:$0xff] }
 0x529   :  { %2859 = vst.msk [vmem:[%s7897_s9 + $0x58] sm:$0xff] %vm2847_vm2, %v2824_v57  ;;  %2860 = vst.msk [vmem:[%s7897_s9 + $0x60] sm:$0xff] %vm2847_vm2, %v2825_v44  ;;  %v2840_v13 = vmul.f32 %v3790_v40, %v7417_v4  ;;  %v2841_v11 = vmul.f32 %v3790_v40, %v7425_v15  ;;  %v2842_v43 = vmul.f32 %v3790_v40, %v7433_v52  ;;  %v7712_v15 = vpop.eup %3795  ;;  %v8277_v44 = vld [vmem:[#allocation22_spill] sm:$0xff] }
 0x52a   :  { %2861 = vst.msk [vmem:[%s7897_s9 + $0x68] sm:$0xff] %vm2847_vm2, %v2826_v41  ;;  %2862 = vst.msk [vmem:[%s7897_s9 + $0x70] sm:$0xff] %vm2847_vm2, %v2827_v45  ;;  %v2843_v55 = vmul.f32 %v3790_v40, %v7441_v38  ;;  %v2844_v50 = vmul.f32 %v3790_v40, %v7449_v26  ;;  %v2845_v8 = vmul.f32 %v3790_v40, %v7457_v10  ;;  %v7714_v52 = vpop.eup %3797  ;;  %v8278_v45 = vld [vmem:[#allocation23_spill] sm:$0xff] }
 0x52b   :  { %2863 = vst.msk [vmem:[%s7897_s9 + $0x78] sm:$0xff] %vm2847_vm2, %v2828_v25  ;;  %2864 = vst.msk [vmem:[%s7897_s9 + $0x80] sm:$0xff] %vm2847_vm2, %v2829_v17  ;;  %v2846_v51 = vmul.f32 %v3790_v40, %v7463_v37  ;;  %v3086_v14 = vadd.f32 %v7643_v42, %v7533_v1  ;;  %v8279_v17 = vld [vmem:[#allocation34_spill] sm:$0xff] }
 0x52c   :  { %2865 = vst.msk [vmem:[%s7897_s9 + $0x88] sm:$0xff] %vm2847_vm2, %v2830_v21  ;;  %2866 = vst.msk [vmem:[%s7897_s9 + $0x90] sm:$0xff] %vm2847_vm2, %v2831_v24  ;;  %v8280_v24 = vld [vmem:[#allocation25_spill] sm:$0xff] }
 0x52d   :  { %2867 = vst.msk [vmem:[%s7897_s9 + $0x98] sm:$0xff] %vm2847_vm2, %v2832_v31  ;;  %2868 = vst.msk [vmem:[%s7897_s9 + $0xa0] sm:$0xff] %vm2847_vm2, %v2833_v60  ;;  %v3087_v4 = vadd.f32 %v7685_v53, %v3086_v14  ;;  %v8281_v31 = vld [vmem:[#allocation4_spill] sm:$0xff] }
 0x52e   :  { %2869 = vst.msk [vmem:[%s7897_s9 + $0xa8] sm:$0xff] %vm2847_vm2, %v2834_v36  ;;  %2870 = vst.msk [vmem:[%s7897_s9 + $0xb0] sm:$0xff] %vm2847_vm2, %v2835_v20  ;;  %v8283_v60 = vld [vmem:[#allocation28_spill] sm:$0xff]  ;;  %v8284_v20 = vld [vmem:[#allocation29_spill] sm:$0xff] }
 0x52f   :  { %2871 = vst.msk [vmem:[%s7897_s9 + $0xb8] sm:$0xff] %vm2847_vm2, %v2836_v3  ;;  %2872 = vst.msk [vmem:[%s7897_s9 + $0xc0] sm:$0xff] %vm2847_vm2, %v2837_v0  ;;  %v3088_v38 = vadd.f32 %v7712_v15, %v3087_v4  ;;  %v8285_v0 = vld [vmem:[#allocation3_spill] sm:$0xff] }
 0x530   :  { %2873 = vst.msk [vmem:[%s7897_s9 + $0xc8] sm:$0xff] %vm2847_vm2, %v2838_v54  ;;  %2874 = vst.msk [vmem:[%s7897_s9 + $0xd0] sm:$0xff] %vm2847_vm2, %v2839_v34 }
 0x531   :  { %2875 = vst.msk [vmem:[%s7897_s9 + $0xd8] sm:$0xff] %vm2847_vm2, %v2840_v13  ;;  %2876 = vst.msk [vmem:[%s7897_s9 + $0xe0] sm:$0xff] %vm2847_vm2, %v2841_v11  ;;  %v3089_v26 = vadd.f32 %v7714_v52, %v3088_v38 }
 0x532   :  { %2877 = vst.msk [vmem:[%s7897_s9 + $0xe8] sm:$0xff] %vm2847_vm2, %v2842_v43  ;;  %2878 = vst.msk [vmem:[%s7897_s9 + $0xf0] sm:$0xff] %vm2847_vm2, %v2843_v55 }
 0x533   :  { %2879 = vst.msk [vmem:[%s7897_s9 + $0xf8] sm:$0xff] %vm2847_vm2, %v2844_v50  ;;  %2880 = vst.msk [vmem:[%s7897_s9 + $0x100] sm:$0xff] %vm2847_vm2, %v2845_v8  ;;  %v3090_v10 = vrot.slane %v3089_v26, 4 }
 0x534   :  { %2881 = vst.msk [vmem:[%s7897_s9 + $0x108] sm:$0xff] %vm2847_vm2, %v2846_v51 }
 0x535   :  { %v3091_v37 = vadd.f32 %v3090_v10, %v3089_v26 }
 0x537   :  { %v3092_v27 = vrot.slane %v3091_v37, 2 }
 0x539   :  { %v3093_v1 = vadd.f32 %v3092_v27, %v3091_v37 }
 0x53b   :  { %v3094_v40 = vrot.slane %v3093_v1, 1 }
 0x53d   :  { %v3095_v18 = vadd.f32 %v3094_v40, %v3093_v1 }
 0x53f   :  { %3799 = vrcp.f32 %v3095_v18 }
 0x54c   :  { %v3800_v49 = vpop.eup %3799 }
 0x54d   :  { %v3097_v6 = vmul.f32 %v3800_v49, %v7332_v48  ;;  %v3098_v56 = vmul.f32 %v3800_v49, %v7337_v35  ;;  %v3099_v58 = vmul.f32 %v3800_v49, %v7348_v12  ;;  %v3100_v32 = vmul.f32 %v3800_v49, %v7358_v23  ;;  %v8282_v12 = vld [vmem:[#allocation35_spill] sm:$0xff] }
 0x54e   :  { %v3101_v19 = vmul.f32 %v3800_v49, %v8274_v5  ;;  %v3102_v47 = vmul.f32 %v3800_v49, %v8275_v59  ;;  %v3103_v57 = vmul.f32 %v3800_v49, %v8276_v30  ;;  %v3104_v41 = vmul.f32 %v3800_v49, %v8277_v44 }
 0x54f   :  { %v3105_v25 = vmul.f32 %v3800_v49, %v8278_v45  ;;  %v3106_v21 = vmul.f32 %v3800_v49, %v8279_v17  ;;  %v3107_v48 = vmul.f32 %v3800_v49, %v8280_v24  ;;  %v3108_v35 = vmul.f32 %v3800_v49, %v8281_v31  ;;  %3131 = vst.msk [vmem:[%s7897_s9 + $0x110] sm:$0xff] %vm2847_vm2, %v3097_v6 }
 0x550   :  { %3132 = vst.msk [vmem:[%s7897_s9 + $0x118] sm:$0xff] %vm2847_vm2, %v3098_v56  ;;  %3133 = vst.msk [vmem:[%s7897_s9 + $0x120] sm:$0xff] %vm2847_vm2, %v3099_v58  ;;  %v3109_v23 = vmul.f32 %v3800_v49, %v8282_v12  ;;  %v3110_v36 = vmul.f32 %v3800_v49, %v8283_v60  ;;  %v3111_v3 = vmul.f32 %v3800_v49, %v8284_v20 }
 0x551   :  { %3134 = vst.msk [vmem:[%s7897_s9 + $0x128] sm:$0xff] %vm2847_vm2, %v3100_v32  ;;  %v3112_v54 = vmul.f32 %v3800_v49, %v8285_v0  ;;  %3135 = vst.msk [vmem:[%s7897_s9 + $0x130] sm:$0xff] %vm2847_vm2, %v3101_v19  ;;  %v3113_v34 = vmul.f32 %v3800_v49, %v7467_v29  ;;  %v3114_v13 = vmul.f32 %v3800_v49, %v7473_v63 }
 0x552   :  { %3136 = vst.msk [vmem:[%s7897_s9 + $0x138] sm:$0xff] %vm2847_vm2, %v3102_v47  ;;  %3137 = vst.msk [vmem:[%s7897_s9 + $0x140] sm:$0xff] %vm2847_vm2, %v3103_v57  ;;  %v3115_v11 = vmul.f32 %v3800_v49, %v7479_v61  ;;  %v3116_v43 = vmul.f32 %v3800_v49, %v7482_v28  ;;  %v3117_v29 = vmul.f32 %v3800_v49, %v7488_v62 }
 0x553   :  { %3138 = vst.msk [vmem:[%s7897_s9 + $0x148] sm:$0xff] %vm2847_vm2, %v3104_v41  ;;  %3139 = vst.msk [vmem:[%s7897_s9 + $0x150] sm:$0xff] %vm2847_vm2, %v3105_v25  ;;  %v3118_v63 = vmul.f32 %v3800_v49, %v7494_v22  ;;  %v3119_v61 = vmul.f32 %v3800_v49, %v7497_v39  ;;  %v3120_v28 = vmul.f32 %v3800_v49, %v7500_v9  ;;  %v8286_v22 = vld [vmem:[#allocation24_spill] sm:$0xff] }
 0x554   :  { %3140 = vst.msk [vmem:[%s7897_s9 + $0x158] sm:$0xff] %vm2847_vm2, %v3106_v21  ;;  %3141 = vst.msk [vmem:[%s7897_s9 + $0x160] sm:$0xff] %vm2847_vm2, %v3107_v48  ;;  %v3121_v62 = vmul.f32 %v3800_v49, %v7503_v46  ;;  %v3122_v39 = vmul.f32 %v3800_v49, %v8286_v22  ;;  %v3123_v9 = vmul.f32 %v3800_v49, %v7512_v2 }
 0x555   :  { %3142 = vst.msk [vmem:[%s7897_s9 + $0x168] sm:$0xff] %vm2847_vm2, %v3108_v35  ;;  %3143 = vst.msk [vmem:[%s7897_s9 + $0x170] sm:$0xff] %vm2847_vm2, %v3109_v23  ;;  %v3124_v55 = vmul.f32 %v3800_v49, %v7518_v7  ;;  %v3125_v46 = vmul.f32 %v3800_v49, %v7524_v33  ;;  %v3126_v2 = vmul.f32 %v3800_v49, %v7530_v16 }
 0x556   :  { %3144 = vst.msk [vmem:[%s7897_s9 + $0x178] sm:$0xff] %vm2847_vm2, %v3110_v36  ;;  %3145 = vst.msk [vmem:[%s7897_s9 + $0x180] sm:$0xff] %vm2847_vm2, %v3111_v3  ;;  %v3127_v7 = vmul.f32 %v3800_v49, %v7643_v42  ;;  %v3128_v50 = vmul.f32 %v3800_v49, %v7685_v53  ;;  %v3129_v33 = vmul.f32 %v3800_v49, %v7712_v15 }
 0x557   :  { %3146 = vst.msk [vmem:[%s7897_s9 + $0x188] sm:$0xff] %vm2847_vm2, %v3112_v54  ;;  %3147 = vst.msk [vmem:[%s7897_s9 + $0x190] sm:$0xff] %vm2847_vm2, %v3113_v34  ;;  %v3130_v16 = vmul.f32 %v3800_v49, %v7714_v52 }
 0x558   :  { %3148 = vst.msk [vmem:[%s7897_s9 + $0x198] sm:$0xff] %vm2847_vm2, %v3114_v13  ;;  %3149 = vst.msk [vmem:[%s7897_s9 + $0x1a0] sm:$0xff] %vm2847_vm2, %v3115_v11 }
 0x559   :  { %3150 = vst.msk [vmem:[%s7897_s9 + $0x1a8] sm:$0xff] %vm2847_vm2, %v3116_v43  ;;  %3151 = vst.msk [vmem:[%s7897_s9 + $0x1b0] sm:$0xff] %vm2847_vm2, %v3117_v29 }
 0x55a   :  { %3152 = vst.msk [vmem:[%s7897_s9 + $0x1b8] sm:$0xff] %vm2847_vm2, %v3118_v63  ;;  %3153 = vst.msk [vmem:[%s7897_s9 + $0x1c0] sm:$0xff] %vm2847_vm2, %v3119_v61 }
 0x55b   :  { %3154 = vst.msk [vmem:[%s7897_s9 + $0x1c8] sm:$0xff] %vm2847_vm2, %v3120_v28  ;;  %3155 = vst.msk [vmem:[%s7897_s9 + $0x1d0] sm:$0xff] %vm2847_vm2, %v3121_v62 }
 0x55c   :  { %3156 = vst.msk [vmem:[%s7897_s9 + $0x1d8] sm:$0xff] %vm2847_vm2, %v3122_v39  ;;  %3157 = vst.msk [vmem:[%s7897_s9 + $0x1e0] sm:$0xff] %vm2847_vm2, %v3123_v9 }
 0x55d   :  { %3158 = vst.msk [vmem:[%s7897_s9 + $0x1e8] sm:$0xff] %vm2847_vm2, %v3124_v55  ;;  %3159 = vst.msk [vmem:[%s7897_s9 + $0x1f0] sm:$0xff] %vm2847_vm2, %v3125_v46 }
 0x55e   :  { %3160 = vst.msk [vmem:[%s7897_s9 + $0x1f8] sm:$0xff] %vm2847_vm2, %v3126_v2  ;;  %3161 = vst.msk [vmem:[%s7897_s9 + $0x200] sm:$0xff] %vm2847_vm2, %v3127_v7 }
 0x55f   :  { %3162 = vst.msk [vmem:[%s7897_s9 + $0x208] sm:$0xff] %vm2847_vm2, %v3128_v50  ;;  %3163 = vst.msk [vmem:[%s7897_s9 + $0x210] sm:$0xff] %vm2847_vm2, %v3129_v33 }
 0x560   :  { %3164 = vst.msk [vmem:[%s7897_s9 + $0x218] sm:$0xff] %vm2847_vm2, %v3130_v16 }

</bundles_post_ra>
